<compile_context>
chip_gen: v6e
topology: v6e:2x2x1
jax: 0.10.0
libtpu: 0.0.40
codegen_flags: <defaults>
</compile_context>

<pallas_src>
import jax
import jax.numpy as jnp
from jax import lax
from jax.experimental import pallas as pl
from jax.experimental.pallas import tpu as pltpu

CNV_LAYERS = [(6, True), (16, True)]      # (out_channels, pooling), 5x5 valid convs
FC_FEATURES = [(400, 120), (120, 84)]     # (in_features, out_features)
BN_EPS = 1e-5
TN_EPS = 1e-5

# Squeeze-out-the-batch-dim sentinel (None is the long-standing equivalent spelling).
_SQUEEZED = pl.Squeezed() if hasattr(pl, "Squeezed") else None


# ----------------------------- the fused Pallas kernel ------------------------

def _lenet5_kernel(cols_ref, w1_ref, w2_ref, fc1w_ref, fc1b_ref,
                   fc2w_ref, fc2b_ref, fc3w_ref, fc3b_ref, o_ref):
    """Whole LeNet-5 forward for one batch element, entirely in VMEM."""
    # ---- stage 1: conv1 (input affine + BN folded into weights) + 2x2 max-pool.
    # cols_ref (128, 1024) bf16: sublanes = K (75 real + pad), lanes = corner*256 + (ph*14+pw).
    # w1_ref   (8, 128)   f32 : rows = out channel (6 real + 2 pad), cols = K.
    cols = cols_ref[...].astype(jnp.float32)          # bf16 on the wire, f32 math
    y1 = jnp.dot(w1_ref[...], cols, preferred_element_type=jnp.float32)   # (8, 1024) lane-dense
    p1 = jnp.maximum(jnp.maximum(y1[:, 0:256], y1[:, 256:512]),
                     jnp.maximum(y1[:, 512:768], y1[:, 768:1024]))        # (8, 256) max-pool
    x1 = jnp.transpose(p1, (1, 0))                    # (256, 8): rows = 14x14 spatial, lanes = ch

    # ---- stage 2: conv2 (BN folded) as 25 shifted matmuls + 2x2 max-pool.
    # acc row p holds conv2 output at (oh, ow) with p = oh*14 + ow (valid for oh, ow <= 9).
    acc = jnp.zeros((152, 16), jnp.float32)
    for dy in range(5):
        for dx in range(5):
            off = dy * 14 + dx
            acc = acc + jnp.dot(x1[off:off + 152, :], w2_ref[dy * 5 + dx],
                                preferred_element_type=jnp.float32)
    # 2x2 pool = max over rows {p, p+1, p+14, p+15}; row 28*ph + 2*pw is pool output (ph, pw).
    pooled = jnp.maximum(jnp.maximum(acc[0:136, :], acc[1:137, :]),
                         jnp.maximum(acc[14:150, :], acc[15:151, :]))     # (136, 16)

    # ---- stage 3: FC stack (BN1d / TensorNorm / upstream conv biases folded host-side).
    h1 = fc1b_ref[...]                                # (1, 120) -- bias already includes folds
    for k in range(25):                               # k = ph*5 + pw (torch flatten order handled host-side)
        r = 28 * (k // 5) + 2 * (k % 5)
        h1 = h1 + jnp.dot(pooled[r:r + 1, :], fc1w_ref[k],
                          preferred_element_type=jnp.float32)
    h2 = jnp.dot(h1, fc2w_ref[...], preferred_element_type=jnp.float32) + fc2b_ref[...]
    h3 = jnp.dot(h2, fc3w_ref[...], preferred_element_type=jnp.float32) + fc3b_ref[...]
    o_ref[0] = h3


def lenet5_fused_call(cols1, params):
    """One pallas_call for the whole network; grid over batch ('parallel' => both v7x TCs)."""
    n = cols1.shape[0]
    w1m, w2m, fc1w, fc1b, fc2w, fc2b, fc3w, fc3b = params
    c2 = lambda b: (0, 0)
    c3 = lambda b: (0, 0, 0)
    out = pl.pallas_call(
        _lenet5_kernel,
        out_shape=jax.ShapeDtypeStruct((n, 1, 10), jnp.float32),
        grid=(n,),
        in_specs=[
            pl.BlockSpec((_SQUEEZED, 128, 1024), lambda b: (b, 0, 0)),  # per-sample im2col (bf16)
            pl.BlockSpec((8, 128), c2),          # conv1 weight (affine + BN folded)
            pl.BlockSpec((25, 8, 16), c3),       # conv2 weight (BN folded), one block per (dy, dx)
            pl.BlockSpec((25, 16, 120), c3),     # fc1 weight (BN folded), one block per pooled (ph, pw)
            pl.BlockSpec((1, 120), c2),          # fc1 bias (includes conv1/conv2 bias folds)
            pl.BlockSpec((120, 84), c2),         # fc2 weight (BN folded)
            pl.BlockSpec((1, 84), c2),           # fc2 bias
            pl.BlockSpec((84, 10), c2),          # fc3 weight (TensorNorm folded)
            pl.BlockSpec((1, 10), c2),           # fc3 bias
        ],
        out_specs=pl.BlockSpec((1, 1, 10), lambda b: (b, 0, 0)),
        compiler_params=pltpu.CompilerParams(dimension_semantics=("parallel",)),
    )(cols1, w1m, w2m, fc1w, fc1b, fc2w, fc2b, fc3w, fc3b)
    return out.reshape(n, 10)


# ----------------------------- wrapper glue (one patches HLO + layout) ---------

def lenet5_forward(x_nchw, prep):
    n = x_nchw.shape[0]
    # One HLO extracts all 5x5 patches; feature dim ordered (ci, dy, dx).  The "2x-1"
    # input affine is folded into the conv1 weights host-side, so patches use raw x.
    patches = lax.conv_general_dilated_patches(
        x_nchw, (5, 5), (1, 1), "VALID",
        dimension_numbers=("NCHW", "OIHW", "NCHW"),
        precision=lax.Precision.HIGHEST)                        # (n, 75, 28, 28)
    corners = []
    for py in (0, 1):
        for px in (0, 1):
            c = patches[:, :, py::2, px::2].reshape(n, 75, 196)  # patches feeding pool corner (py, px)
            corners.append(jnp.pad(c, ((0, 0), (0, 0), (0, 60))))   # 196 -> 256 lanes (128-aligned)
    cols1 = jnp.concatenate(corners, axis=-1)                   # (n, 75, 1024) single stacked stream
    cols1 = jnp.pad(cols1, ((0, 0), (0, 53), (0, 0)))           # K: 75 -> 128
    cols1 = cols1.astype(jnp.bfloat16)                          # halve HBM->VMEM bytes
    return lenet5_fused_call(cols1, prep["kernel_args"])


# ----------------------------- parameters --------------------------------------

def init_raw_params(key):
    """Torch-layout parameters.  uniform(-1,1) init scaled by sqrt(3/fan_in) so
    activations stay O(1) and the numerical self-check is tight (semantics unchanged)."""
    raw = {"conv": [], "fc_bn": []}
    in_c = 3
    for out_c, _pool in CNV_LAYERS:
        key, kw, kg, kb, km, kv = jax.random.split(key, 6)
        fan_in = in_c * 25
        w = jax.random.uniform(kw, (out_c, in_c, 5, 5), jnp.float32, -1.0, 1.0) \
            * (3.0 / fan_in) ** 0.5
        gamma = jax.random.uniform(kg, (out_c,), jnp.float32, 0.5, 1.5)
        beta = jax.random.uniform(kb, (out_c,), jnp.float32, -0.5, 0.5)
        mean = jax.random.uniform(km, (out_c,), jnp.float32, -0.5, 0.5)
        var = jax.random.uniform(kv, (out_c,), jnp.float32, 0.5, 1.5)
        raw["conv"].append((w, gamma, beta, mean, var))
        in_c = out_c

    for in_f, out_f in FC_FEATURES:
        key, kw, kg, kb, km, kv = jax.random.split(key, 6)
        w = jax.random.uniform(kw, (out_f, in_f), jnp.float32, -1.0, 1.0) \
            * (3.0 / in_f) ** 0.5
        gamma = jax.random.uniform(kg, (out_f,), jnp.float32, 0.5, 1.5)
        beta = jax.random.uniform(kb, (out_f,), jnp.float32, -0.5, 0.5)
        mean = jax.random.uniform(km, (out_f,), jnp.float32, -0.5, 0.5)
        var = jax.random.uniform(kv, (out_f,), jnp.float32, 0.5, 1.5)
        raw["fc_bn"].append((w, gamma, beta, mean, var))

    key, kw, ktw, ktb = jax.random.split(key, 4)
    w_last = jax.random.uniform(kw, (10, 84), jnp.float32, -1.0, 1.0) * (3.0 / 84.0) ** 0.5
    tn_w = jax.random.uniform(ktw, (), jnp.float32, 0.5, 1.5)
    tn_b = jax.random.uniform(ktb, (), jnp.float32, -0.5, 0.5)
    raw["fc_last"] = (w_last, tn_w, tn_b)
    return raw


def prepare_params(raw):
    """Kernel-ready parameters: BN / TensorNorm / input-affine / bias pushes all folded."""
    (w1, g1, b1, m1, v1), (w2, g2, b2, m2, v2) = raw["conv"]
    s1 = g1 / jnp.sqrt(v1 + BN_EPS)                        # (6,)
    s2 = g2 / jnp.sqrt(v2 + BN_EPS)                        # (16,)

    # conv1: fold the "2x-1" input affine and BatchNorm2d into weight / bias.
    w1_flat = w1.reshape(6, 75)                            # (co, ci*25 + dy*5 + dx)
    w1m = jnp.pad(2.0 * s1[:, None] * w1_flat, ((0, 2), (0, 53)))     # (8, 128) f32
    bias1 = b1 - m1 * s1 - s1 * jnp.sum(w1_flat, axis=1)   # conv1(+BN) bias, per channel

    # conv2: fold BatchNorm2d; one (ci, co) block per filter tap (dy, dx); ci padded 6 -> 8.
    w2_blk = jnp.transpose(w2, (2, 3, 1, 0)) * s2          # (5, 5, 6, 16)
    w2m = jnp.pad(w2_blk.reshape(25, 6, 16), ((0, 0), (0, 2), (0, 0)))  # (25, 8, 16)
    # conv1 bias is a per-channel constant -> push it through (linear) conv2 into bias2.
    bias2 = (b2 - m2 * s2) + s2 * jnp.einsum("oihw,i->o", w2, bias1)    # (16,)

    # fc1 + BN1d: torch flattens (co, ph, pw); kernel consumes one (16, 120) block per (ph, pw).
    (wf1, gf1, bf1, mf1, vf1), (wf2, gf2, bf2, mf2, vf2) = raw["fc_bn"]
    sf1 = gf1 / jnp.sqrt(vf1 + BN_EPS)
    fc1w = jnp.transpose(wf1.reshape(120, 16, 25), (2, 1, 0)) * sf1     # (25, 16, 120)
    # conv2 bias pushed through (linear) fc1 into the fc1 bias.
    fc1b = ((bf1 - mf1 * sf1) + jnp.einsum("c,kcj->j", bias2, fc1w)).reshape(1, 120)

    sf2 = gf2 / jnp.sqrt(vf2 + BN_EPS)
    fc2w = wf2.T * sf2[None, :]
    fc2b = (bf2 - mf2 * sf2).reshape(1, 84)

    w3, tn_w, tn_b = raw["fc_last"]
    tn_scale = tn_w / jnp.sqrt(1.0 + TN_EPS)               # TensorNorm eval: running mean 0, var 1
    fc3w = w3.T * tn_scale
    fc3b = jnp.full((1, 10), tn_b, jnp.float32)

    return {"kernel_args": (w1m, w2m, fc1w, fc1b, fc2w, fc2b, fc3w, fc3b)}


# ----------------------------- pure-JAX reference ------------------------------

def reference_forward(x_nchw, raw):
    """Pure-JAX reference mirroring the PyTorch module op-for-op (torch layouts)."""
    x = 2.0 * x_nchw - 1.0
    for (w, gamma, beta, mean, var), (_oc, pool) in zip(raw["conv"], CNV_LAYERS):
        x = lax.conv_general_dilated(
            x, w, (1, 1), "VALID",
            dimension_numbers=("NCHW", "OIHW", "NCHW"),
            precision=lax.Precision.HIGHEST)
        scale = gamma / jnp.sqrt(var + BN_EPS)
        x = x * scale[None, :, None, None] + (beta - mean * scale)[None, :, None, None]
        if pool:
            n, c, h, wd = x.shape
            x = x.reshape(n, c, h // 2, 2, wd // 2, 2).max(axis=(3, 5))
    x = x.reshape(x.shape[0], -1)                 # torch .view: (c, h, w) order
    for (w, gamma, beta, mean, var) in raw["fc_bn"]:
        x = jnp.dot(x, w.T, precision=lax.Precision.HIGHEST)
        scale = gamma / jnp.sqrt(var + BN_EPS)
        x = x * scale + (beta - mean * scale)
    w3, tn_w, tn_b = raw["fc_last"]
    x = jnp.dot(x, w3.T, precision=lax.Precision.HIGHEST)
    return x / jnp.sqrt(1.0 + TN_EPS) * tn_w + tn_b      # TensorNorm (eval: rm=0, rv=1)


# ----------------------------- main --------------------------------------------

if __name__ == "__main__":
    key = jax.random.PRNGKey(0)
    kp, kx = jax.random.split(key)
    raw = init_raw_params(kp)
    prep = prepare_params(raw)

    # CIFAR10-like input: batch=2, 3 channels, 32x32 (required so flatten -> 400 = 16*5*5).
    x = jax.random.uniform(kx, (2, 3, 32, 32), jnp.float32)

    fwd = jax.jit(lambda inp: lenet5_forward(inp, prep))
    out = jax.block_until_ready(fwd(x))

    ref = reference_forward(x, raw)
    assert out.shape == (2, 10), out.shape
    assert bool(jnp.all(jnp.isfinite(out)))
    max_diff = float(jnp.max(jnp.abs(out - ref)))
    assert jnp.allclose(out, ref, rtol=2e-2, atol=2e-2), f"max abs diff {max_diff}"
    print("KERNEL_OK")
</pallas_src>

<mosaic_0001>
module attributes {stable_mosaic.version = 11 : i64} {
  func.func @_lenet5_kernel(%arg0: i32, %arg1: memref<1x128x1024xbf16, #tpu.memory_space<vmem>>, %arg2: memref<8x128xf32, #tpu.memory_space<vmem>>, %arg3: memref<25x8x16xf32, #tpu.memory_space<vmem>>, %arg4: memref<25x16x120xf32, #tpu.memory_space<vmem>>, %arg5: memref<1x120xf32, #tpu.memory_space<vmem>>, %arg6: memref<120x84xf32, #tpu.memory_space<vmem>>, %arg7: memref<1x84xf32, #tpu.memory_space<vmem>>, %arg8: memref<84x10xf32, #tpu.memory_space<vmem>>, %arg9: memref<1x10xf32, #tpu.memory_space<vmem>>, %arg10: memref<1x1x10xf32, #tpu.memory_space<vmem>>) attributes {dimension_semantics = [#tpu.dimension_semantics<parallel>], iteration_bounds = array<i64: 2>, scalar_prefetch = 0 : i64, scratch_operands = 0 : i64, tpu.core_type = #tpu.core_type<tc>, window_params = [{transform_indices = @transform_0, window_bounds = array<i64: 1, 128, 1024>}, {pipeline_mode = #tpu.pipeline_mode<synchronous>, transform_indices = @transform_1, window_bounds = array<i64: 8, 128>}, {pipeline_mode = #tpu.pipeline_mode<synchronous>, transform_indices = @transform_2, window_bounds = array<i64: 25, 8, 16>}, {pipeline_mode = #tpu.pipeline_mode<synchronous>, transform_indices = @transform_3, window_bounds = array<i64: 25, 16, 120>}, {pipeline_mode = #tpu.pipeline_mode<synchronous>, transform_indices = @transform_4, window_bounds = array<i64: 1, 120>}, {pipeline_mode = #tpu.pipeline_mode<synchronous>, transform_indices = @transform_5, window_bounds = array<i64: 120, 84>}, {pipeline_mode = #tpu.pipeline_mode<synchronous>, transform_indices = @transform_6, window_bounds = array<i64: 1, 84>}, {pipeline_mode = #tpu.pipeline_mode<synchronous>, transform_indices = @transform_7, window_bounds = array<i64: 84, 10>}, {pipeline_mode = #tpu.pipeline_mode<synchronous>, transform_indices = @transform_8, window_bounds = array<i64: 1, 10>}, {transform_indices = @transform_9, window_bounds = array<i64: 1, 1, 10>}]} {
    %c0 = arith.constant 0 : index
    %c0_0 = arith.constant 0 : index
    %c0_1 = arith.constant 0 : index
    %0 = vector.load %arg1[%c0, %c0_0, %c0_1] : memref<1x128x1024xbf16, #tpu.memory_space<vmem>>, vector<1x128x1024xbf16>
    %1 = vector.shape_cast %0 : vector<1x128x1024xbf16> to vector<128x1024xbf16>
    %2 = arith.extf %1 : vector<128x1024xbf16> to vector<128x1024xf32>
    %c0_2 = arith.constant 0 : index
    %c0_3 = arith.constant 0 : index
    %3 = vector.load %arg2[%c0_2, %c0_3] : memref<8x128xf32, #tpu.memory_space<vmem>>, vector<8x128xf32>
    %cst = arith.constant dense<0.000000e+00> : vector<8x1024xf32>
    %4 = tpu.matmul %3, %2, %cst {dimension_numbers = #tpu.dot_dimension_numbers<[1], [0], [0], [1], [0, 0, 1, 1], [], []>} : vector<8x128xf32>, vector<128x1024xf32>, vector<8x1024xf32> -> vector<8x1024xf32>
    %5 = vector.extract_strided_slice %4 {offsets = [0, 0], sizes = [8, 256], strides = [1, 1]} : vector<8x1024xf32> to vector<8x256xf32>
    %6 = vector.extract_strided_slice %4 {offsets = [0, 256], sizes = [8, 256], strides = [1, 1]} : vector<8x1024xf32> to vector<8x256xf32>
    %7 = arith.maximumf %5, %6 : vector<8x256xf32>
    %8 = vector.extract_strided_slice %4 {offsets = [0, 512], sizes = [8, 256], strides = [1, 1]} : vector<8x1024xf32> to vector<8x256xf32>
    %9 = vector.extract_strided_slice %4 {offsets = [0, 768], sizes = [8, 256], strides = [1, 1]} : vector<8x1024xf32> to vector<8x256xf32>
    %10 = arith.maximumf %8, %9 : vector<8x256xf32>
    %11 = arith.maximumf %7, %10 : vector<8x256xf32>
    %12 = tpu.transpose %11, [1, 0] : vector<8x256xf32> -> vector<256x8xf32>
    %cst_4 = arith.constant 0.000000e+00 : f32
    %13 = vector.broadcast %cst_4 : f32 to vector<152x16xf32>
    %14 = vector.extract_strided_slice %12 {offsets = [0, 0], sizes = [152, 8], strides = [1, 1]} : vector<256x8xf32> to vector<152x8xf32>
    %c0_5 = arith.constant 0 : index
    %c0_6 = arith.constant 0 : index
    %c0_7 = arith.constant 0 : index
    %15 = vector.load %arg3[%c0_5, %c0_6, %c0_7] : memref<25x8x16xf32, #tpu.memory_space<vmem>>, vector<1x8x16xf32>
    %16 = vector.shape_cast %15 : vector<1x8x16xf32> to vector<8x16xf32>
    %cst_8 = arith.constant dense<0.000000e+00> : vector<152x16xf32>
    %17 = tpu.matmul %14, %16, %cst_8 {dimension_numbers = #tpu.dot_dimension_numbers<[1], [0], [0], [1], [0, 0, 1, 1], [], []>} : vector<152x8xf32>, vector<8x16xf32>, vector<152x16xf32> -> vector<152x16xf32>
    %18 = arith.addf %13, %17 : vector<152x16xf32>
    %19 = vector.extract_strided_slice %12 {offsets = [1, 0], sizes = [152, 8], strides = [1, 1]} : vector<256x8xf32> to vector<152x8xf32>
    %c1 = arith.constant 1 : index
    %c0_9 = arith.constant 0 : index
    %c0_10 = arith.constant 0 : index
    %20 = vector.load %arg3[%c1, %c0_9, %c0_10] : memref<25x8x16xf32, #tpu.memory_space<vmem>>, vector<1x8x16xf32>
    %21 = vector.shape_cast %20 : vector<1x8x16xf32> to vector<8x16xf32>
    %cst_11 = arith.constant dense<0.000000e+00> : vector<152x16xf32>
    %22 = tpu.matmul %19, %21, %cst_11 {dimension_numbers = #tpu.dot_dimension_numbers<[1], [0], [0], [1], [0, 0, 1, 1], [], []>} : vector<152x8xf32>, vector<8x16xf32>, vector<152x16xf32> -> vector<152x16xf32>
    %23 = arith.addf %18, %22 : vector<152x16xf32>
    %24 = vector.extract_strided_slice %12 {offsets = [2, 0], sizes = [152, 8], strides = [1, 1]} : vector<256x8xf32> to vector<152x8xf32>
    %c2 = arith.constant 2 : index
    %c0_12 = arith.constant 0 : index
    %c0_13 = arith.constant 0 : index
    %25 = vector.load %arg3[%c2, %c0_12, %c0_13] : memref<25x8x16xf32, #tpu.memory_space<vmem>>, vector<1x8x16xf32>
    %26 = vector.shape_cast %25 : vector<1x8x16xf32> to vector<8x16xf32>
    %cst_14 = arith.constant dense<0.000000e+00> : vector<152x16xf32>
    %27 = tpu.matmul %24, %26, %cst_14 {dimension_numbers = #tpu.dot_dimension_numbers<[1], [0], [0], [1], [0, 0, 1, 1], [], []>} : vector<152x8xf32>, vector<8x16xf32>, vector<152x16xf32> -> vector<152x16xf32>
    %28 = arith.addf %23, %27 : vector<152x16xf32>
    %29 = vector.extract_strided_slice %12 {offsets = [3, 0], sizes = [152, 8], strides = [1, 1]} : vector<256x8xf32> to vector<152x8xf32>
    %c3 = arith.constant 3 : index
    %c0_15 = arith.constant 0 : index
    %c0_16 = arith.constant 0 : index
    %30 = vector.load %arg3[%c3, %c0_15, %c0_16] : memref<25x8x16xf32, #tpu.memory_space<vmem>>, vector<1x8x16xf32>
    %31 = vector.shape_cast %30 : vector<1x8x16xf32> to vector<8x16xf32>
    %cst_17 = arith.constant dense<0.000000e+00> : vector<152x16xf32>
    %32 = tpu.matmul %29, %31, %cst_17 {dimension_numbers = #tpu.dot_dimension_numbers<[1], [0], [0], [1], [0, 0, 1, 1], [], []>} : vector<152x8xf32>, vector<8x16xf32>, vector<152x16xf32> -> vector<152x16xf32>
    %33 = arith.addf %28, %32 : vector<152x16xf32>
    %34 = vector.extract_strided_slice %12 {offsets = [4, 0], sizes = [152, 8], strides = [1, 1]} : vector<256x8xf32> to vector<152x8xf32>
    %c4 = arith.constant 4 : index
    %c0_18 = arith.constant 0 : index
    %c0_19 = arith.constant 0 : index
    %35 = vector.load %arg3[%c4, %c0_18, %c0_19] : memref<25x8x16xf32, #tpu.memory_space<vmem>>, vector<1x8x16xf32>
    %36 = vector.shape_cast %35 : vector<1x8x16xf32> to vector<8x16xf32>
    %cst_20 = arith.constant dense<0.000000e+00> : vector<152x16xf32>
    %37 = tpu.matmul %34, %36, %cst_20 {dimension_numbers = #tpu.dot_dimension_numbers<[1], [0], [0], [1], [0, 0, 1, 1], [], []>} : vector<152x8xf32>, vector<8x16xf32>, vector<152x16xf32> -> vector<152x16xf32>
    %38 = arith.addf %33, %37 : vector<152x16xf32>
    %39 = vector.extract_strided_slice %12 {offsets = [14, 0], sizes = [152, 8], strides = [1, 1]} : vector<256x8xf32> to vector<152x8xf32>
    %c5 = arith.constant 5 : index
    %c0_21 = arith.constant 0 : index
    %c0_22 = arith.constant 0 : index
    %40 = vector.load %arg3[%c5, %c0_21, %c0_22] : memref<25x8x16xf32, #tpu.memory_space<vmem>>, vector<1x8x16xf32>
    %41 = vector.shape_cast %40 : vector<1x8x16xf32> to vector<8x16xf32>
    %cst_23 = arith.constant dense<0.000000e+00> : vector<152x16xf32>
    %42 = tpu.matmul %39, %41, %cst_23 {dimension_numbers = #tpu.dot_dimension_numbers<[1], [0], [0], [1], [0, 0, 1, 1], [], []>} : vector<152x8xf32>, vector<8x16xf32>, vector<152x16xf32> -> vector<152x16xf32>
    %43 = arith.addf %38, %42 : vector<152x16xf32>
    %44 = vector.extract_strided_slice %12 {offsets = [15, 0], sizes = [152, 8], strides = [1, 1]} : vector<256x8xf32> to vector<152x8xf32>
    %c6 = arith.constant 6 : index
    %c0_24 = arith.constant 0 : index
    %c0_25 = arith.constant 0 : index
    %45 = vector.load %arg3[%c6, %c0_24, %c0_25] : memref<25x8x16xf32, #tpu.memory_space<vmem>>, vector<1x8x16xf32>
    %46 = vector.shape_cast %45 : vector<1x8x16xf32> to vector<8x16xf32>
    %cst_26 = arith.constant dense<0.000000e+00> : vector<152x16xf32>
    %47 = tpu.matmul %44, %46, %cst_26 {dimension_numbers = #tpu.dot_dimension_numbers<[1], [0], [0], [1], [0, 0, 1, 1], [], []>} : vector<152x8xf32>, vector<8x16xf32>, vector<152x16xf32> -> vector<152x16xf32>
    %48 = arith.addf %43, %47 : vector<152x16xf32>
    %49 = vector.extract_strided_slice %12 {offsets = [16, 0], sizes = [152, 8], strides = [1, 1]} : vector<256x8xf32> to vector<152x8xf32>
    %c7 = arith.constant 7 : index
    %c0_27 = arith.constant 0 : index
    %c0_28 = arith.constant 0 : index
    %50 = vector.load %arg3[%c7, %c0_27, %c0_28] : memref<25x8x16xf32, #tpu.memory_space<vmem>>, vector<1x8x16xf32>
    %51 = vector.shape_cast %50 : vector<1x8x16xf32> to vector<8x16xf32>
    %cst_29 = arith.constant dense<0.000000e+00> : vector<152x16xf32>
    %52 = tpu.matmul %49, %51, %cst_29 {dimension_numbers = #tpu.dot_dimension_numbers<[1], [0], [0], [1], [0, 0, 1, 1], [], []>} : vector<152x8xf32>, vector<8x16xf32>, vector<152x16xf32> -> vector<152x16xf32>
    %53 = arith.addf %48, %52 : vector<152x16xf32>
    %54 = vector.extract_strided_slice %12 {offsets = [17, 0], sizes = [152, 8], strides = [1, 1]} : vector<256x8xf32> to vector<152x8xf32>
    %c8 = arith.constant 8 : index
    %c0_30 = arith.constant 0 : index
    %c0_31 = arith.constant 0 : index
    %55 = vector.load %arg3[%c8, %c0_30, %c0_31] : memref<25x8x16xf32, #tpu.memory_space<vmem>>, vector<1x8x16xf32>
    %56 = vector.shape_cast %55 : vector<1x8x16xf32> to vector<8x16xf32>
    %cst_32 = arith.constant dense<0.000000e+00> : vector<152x16xf32>
    %57 = tpu.matmul %54, %56, %cst_32 {dimension_numbers = #tpu.dot_dimension_numbers<[1], [0], [0], [1], [0, 0, 1, 1], [], []>} : vector<152x8xf32>, vector<8x16xf32>, vector<152x16xf32> -> vector<152x16xf32>
    %58 = arith.addf %53, %57 : vector<152x16xf32>
    %59 = vector.extract_strided_slice %12 {offsets = [18, 0], sizes = [152, 8], strides = [1, 1]} : vector<256x8xf32> to vector<152x8xf32>
    %c9 = arith.constant 9 : index
    %c0_33 = arith.constant 0 : index
    %c0_34 = arith.constant 0 : index
    %60 = vector.load %arg3[%c9, %c0_33, %c0_34] : memref<25x8x16xf32, #tpu.memory_space<vmem>>, vector<1x8x16xf32>
    %61 = vector.shape_cast %60 : vector<1x8x16xf32> to vector<8x16xf32>
    %cst_35 = arith.constant dense<0.000000e+00> : vector<152x16xf32>
    %62 = tpu.matmul %59, %61, %cst_35 {dimension_numbers = #tpu.dot_dimension_numbers<[1], [0], [0], [1], [0, 0, 1, 1], [], []>} : vector<152x8xf32>, vector<8x16xf32>, vector<152x16xf32> -> vector<152x16xf32>
    %63 = arith.addf %58, %62 : vector<152x16xf32>
    %64 = vector.extract_strided_slice %12 {offsets = [28, 0], sizes = [152, 8], strides = [1, 1]} : vector<256x8xf32> to vector<152x8xf32>
    %c10 = arith.constant 10 : index
    %c0_36 = arith.constant 0 : index
    %c0_37 = arith.constant 0 : index
    %65 = vector.load %arg3[%c10, %c0_36, %c0_37] : memref<25x8x16xf32, #tpu.memory_space<vmem>>, vector<1x8x16xf32>
    %66 = vector.shape_cast %65 : vector<1x8x16xf32> to vector<8x16xf32>
    %cst_38 = arith.constant dense<0.000000e+00> : vector<152x16xf32>
    %67 = tpu.matmul %64, %66, %cst_38 {dimension_numbers = #tpu.dot_dimension_numbers<[1], [0], [0], [1], [0, 0, 1, 1], [], []>} : vector<152x8xf32>, vector<8x16xf32>, vector<152x16xf32> -> vector<152x16xf32>
    %68 = arith.addf %63, %67 : vector<152x16xf32>
    %69 = vector.extract_strided_slice %12 {offsets = [29, 0], sizes = [152, 8], strides = [1, 1]} : vector<256x8xf32> to vector<152x8xf32>
    %c11 = arith.constant 11 : index
    %c0_39 = arith.constant 0 : index
    %c0_40 = arith.constant 0 : index
    %70 = vector.load %arg3[%c11, %c0_39, %c0_40] : memref<25x8x16xf32, #tpu.memory_space<vmem>>, vector<1x8x16xf32>
    %71 = vector.shape_cast %70 : vector<1x8x16xf32> to vector<8x16xf32>
    %cst_41 = arith.constant dense<0.000000e+00> : vector<152x16xf32>
    %72 = tpu.matmul %69, %71, %cst_41 {dimension_numbers = #tpu.dot_dimension_numbers<[1], [0], [0], [1], [0, 0, 1, 1], [], []>} : vector<152x8xf32>, vector<8x16xf32>, vector<152x16xf32> -> vector<152x16xf32>
    %73 = arith.addf %68, %72 : vector<152x16xf32>
    %74 = vector.extract_strided_slice %12 {offsets = [30, 0], sizes = [152, 8], strides = [1, 1]} : vector<256x8xf32> to vector<152x8xf32>
    %c12 = arith.constant 12 : index
    %c0_42 = arith.constant 0 : index
    %c0_43 = arith.constant 0 : index
    %75 = vector.load %arg3[%c12, %c0_42, %c0_43] : memref<25x8x16xf32, #tpu.memory_space<vmem>>, vector<1x8x16xf32>
    %76 = vector.shape_cast %75 : vector<1x8x16xf32> to vector<8x16xf32>
    %cst_44 = arith.constant dense<0.000000e+00> : vector<152x16xf32>
    %77 = tpu.matmul %74, %76, %cst_44 {dimension_numbers = #tpu.dot_dimension_numbers<[1], [0], [0], [1], [0, 0, 1, 1], [], []>} : vector<152x8xf32>, vector<8x16xf32>, vector<152x16xf32> -> vector<152x16xf32>
    %78 = arith.addf %73, %77 : vector<152x16xf32>
    %79 = vector.extract_strided_slice %12 {offsets = [31, 0], sizes = [152, 8], strides = [1, 1]} : vector<256x8xf32> to vector<152x8xf32>
    %c13 = arith.constant 13 : index
    %c0_45 = arith.constant 0 : index
    %c0_46 = arith.constant 0 : index
    %80 = vector.load %arg3[%c13, %c0_45, %c0_46] : memref<25x8x16xf32, #tpu.memory_space<vmem>>, vector<1x8x16xf32>
    %81 = vector.shape_cast %80 : vector<1x8x16xf32> to vector<8x16xf32>
    %cst_47 = arith.constant dense<0.000000e+00> : vector<152x16xf32>
    %82 = tpu.matmul %79, %81, %cst_47 {dimension_numbers = #tpu.dot_dimension_numbers<[1], [0], [0], [1], [0, 0, 1, 1], [], []>} : vector<152x8xf32>, vector<8x16xf32>, vector<152x16xf32> -> vector<152x16xf32>
    %83 = arith.addf %78, %82 : vector<152x16xf32>
    %84 = vector.extract_strided_slice %12 {offsets = [32, 0], sizes = [152, 8], strides = [1, 1]} : vector<256x8xf32> to vector<152x8xf32>
    %c14 = arith.constant 14 : index
    %c0_48 = arith.constant 0 : index
    %c0_49 = arith.constant 0 : index
    %85 = vector.load %arg3[%c14, %c0_48, %c0_49] : memref<25x8x16xf32, #tpu.memory_space<vmem>>, vector<1x8x16xf32>
    %86 = vector.shape_cast %85 : vector<1x8x16xf32> to vector<8x16xf32>
    %cst_50 = arith.constant dense<0.000000e+00> : vector<152x16xf32>
    %87 = tpu.matmul %84, %86, %cst_50 {dimension_numbers = #tpu.dot_dimension_numbers<[1], [0], [0], [1], [0, 0, 1, 1], [], []>} : vector<152x8xf32>, vector<8x16xf32>, vector<152x16xf32> -> vector<152x16xf32>
    %88 = arith.addf %83, %87 : vector<152x16xf32>
    %89 = vector.extract_strided_slice %12 {offsets = [42, 0], sizes = [152, 8], strides = [1, 1]} : vector<256x8xf32> to vector<152x8xf32>
    %c15 = arith.constant 15 : index
    %c0_51 = arith.constant 0 : index
    %c0_52 = arith.constant 0 : index
    %90 = vector.load %arg3[%c15, %c0_51, %c0_52] : memref<25x8x16xf32, #tpu.memory_space<vmem>>, vector<1x8x16xf32>
    %91 = vector.shape_cast %90 : vector<1x8x16xf32> to vector<8x16xf32>
    %cst_53 = arith.constant dense<0.000000e+00> : vector<152x16xf32>
    %92 = tpu.matmul %89, %91, %cst_53 {dimension_numbers = #tpu.dot_dimension_numbers<[1], [0], [0], [1], [0, 0, 1, 1], [], []>} : vector<152x8xf32>, vector<8x16xf32>, vector<152x16xf32> -> vector<152x16xf32>
    %93 = arith.addf %88, %92 : vector<152x16xf32>
    %94 = vector.extract_strided_slice %12 {offsets = [43, 0], sizes = [152, 8], strides = [1, 1]} : vector<256x8xf32> to vector<152x8xf32>
    %c16 = arith.constant 16 : index
    %c0_54 = arith.constant 0 : index
    %c0_55 = arith.constant 0 : index
    %95 = vector.load %arg3[%c16, %c0_54, %c0_55] : memref<25x8x16xf32, #tpu.memory_space<vmem>>, vector<1x8x16xf32>
    %96 = vector.shape_cast %95 : vector<1x8x16xf32> to vector<8x16xf32>
    %cst_56 = arith.constant dense<0.000000e+00> : vector<152x16xf32>
    %97 = tpu.matmul %94, %96, %cst_56 {dimension_numbers = #tpu.dot_dimension_numbers<[1], [0], [0], [1], [0, 0, 1, 1], [], []>} : vector<152x8xf32>, vector<8x16xf32>, vector<152x16xf32> -> vector<152x16xf32>
    %98 = arith.addf %93, %97 : vector<152x16xf32>
    %99 = vector.extract_strided_slice %12 {offsets = [44, 0], sizes = [152, 8], strides = [1, 1]} : vector<256x8xf32> to vector<152x8xf32>
    %c17 = arith.constant 17 : index
    %c0_57 = arith.constant 0 : index
    %c0_58 = arith.constant 0 : index
    %100 = vector.load %arg3[%c17, %c0_57, %c0_58] : memref<25x8x16xf32, #tpu.memory_space<vmem>>, vector<1x8x16xf32>
    %101 = vector.shape_cast %100 : vector<1x8x16xf32> to vector<8x16xf32>
    %cst_59 = arith.constant dense<0.000000e+00> : vector<152x16xf32>
    %102 = tpu.matmul %99, %101, %cst_59 {dimension_numbers = #tpu.dot_dimension_numbers<[1], [0], [0], [1], [0, 0, 1, 1], [], []>} : vector<152x8xf32>, vector<8x16xf32>, vector<152x16xf32> -> vector<152x16xf32>
    %103 = arith.addf %98, %102 : vector<152x16xf32>
    %104 = vector.extract_strided_slice %12 {offsets = [45, 0], sizes = [152, 8], strides = [1, 1]} : vector<256x8xf32> to vector<152x8xf32>
    %c18 = arith.constant 18 : index
    %c0_60 = arith.constant 0 : index
    %c0_61 = arith.constant 0 : index
    %105 = vector.load %arg3[%c18, %c0_60, %c0_61] : memref<25x8x16xf32, #tpu.memory_space<vmem>>, vector<1x8x16xf32>
    %106 = vector.shape_cast %105 : vector<1x8x16xf32> to vector<8x16xf32>
    %cst_62 = arith.constant dense<0.000000e+00> : vector<152x16xf32>
    %107 = tpu.matmul %104, %106, %cst_62 {dimension_numbers = #tpu.dot_dimension_numbers<[1], [0], [0], [1], [0, 0, 1, 1], [], []>} : vector<152x8xf32>, vector<8x16xf32>, vector<152x16xf32> -> vector<152x16xf32>
    %108 = arith.addf %103, %107 : vector<152x16xf32>
    %109 = vector.extract_strided_slice %12 {offsets = [46, 0], sizes = [152, 8], strides = [1, 1]} : vector<256x8xf32> to vector<152x8xf32>
    %c19 = arith.constant 19 : index
    %c0_63 = arith.constant 0 : index
    %c0_64 = arith.constant 0 : index
    %110 = vector.load %arg3[%c19, %c0_63, %c0_64] : memref<25x8x16xf32, #tpu.memory_space<vmem>>, vector<1x8x16xf32>
    %111 = vector.shape_cast %110 : vector<1x8x16xf32> to vector<8x16xf32>
    %cst_65 = arith.constant dense<0.000000e+00> : vector<152x16xf32>
    %112 = tpu.matmul %109, %111, %cst_65 {dimension_numbers = #tpu.dot_dimension_numbers<[1], [0], [0], [1], [0, 0, 1, 1], [], []>} : vector<152x8xf32>, vector<8x16xf32>, vector<152x16xf32> -> vector<152x16xf32>
    %113 = arith.addf %108, %112 : vector<152x16xf32>
    %114 = vector.extract_strided_slice %12 {offsets = [56, 0], sizes = [152, 8], strides = [1, 1]} : vector<256x8xf32> to vector<152x8xf32>
    %c20 = arith.constant 20 : index
    %c0_66 = arith.constant 0 : index
    %c0_67 = arith.constant 0 : index
    %115 = vector.load %arg3[%c20, %c0_66, %c0_67] : memref<25x8x16xf32, #tpu.memory_space<vmem>>, vector<1x8x16xf32>
    %116 = vector.shape_cast %115 : vector<1x8x16xf32> to vector<8x16xf32>
    %cst_68 = arith.constant dense<0.000000e+00> : vector<152x16xf32>
    %117 = tpu.matmul %114, %116, %cst_68 {dimension_numbers = #tpu.dot_dimension_numbers<[1], [0], [0], [1], [0, 0, 1, 1], [], []>} : vector<152x8xf32>, vector<8x16xf32>, vector<152x16xf32> -> vector<152x16xf32>
    %118 = arith.addf %113, %117 : vector<152x16xf32>
    %119 = vector.extract_strided_slice %12 {offsets = [57, 0], sizes = [152, 8], strides = [1, 1]} : vector<256x8xf32> to vector<152x8xf32>
    %c21 = arith.constant 21 : index
    %c0_69 = arith.constant 0 : index
    %c0_70 = arith.constant 0 : index
    %120 = vector.load %arg3[%c21, %c0_69, %c0_70] : memref<25x8x16xf32, #tpu.memory_space<vmem>>, vector<1x8x16xf32>
    %121 = vector.shape_cast %120 : vector<1x8x16xf32> to vector<8x16xf32>
    %cst_71 = arith.constant dense<0.000000e+00> : vector<152x16xf32>
    %122 = tpu.matmul %119, %121, %cst_71 {dimension_numbers = #tpu.dot_dimension_numbers<[1], [0], [0], [1], [0, 0, 1, 1], [], []>} : vector<152x8xf32>, vector<8x16xf32>, vector<152x16xf32> -> vector<152x16xf32>
    %123 = arith.addf %118, %122 : vector<152x16xf32>
    %124 = vector.extract_strided_slice %12 {offsets = [58, 0], sizes = [152, 8], strides = [1, 1]} : vector<256x8xf32> to vector<152x8xf32>
    %c22 = arith.constant 22 : index
    %c0_72 = arith.constant 0 : index
    %c0_73 = arith.constant 0 : index
    %125 = vector.load %arg3[%c22, %c0_72, %c0_73] : memref<25x8x16xf32, #tpu.memory_space<vmem>>, vector<1x8x16xf32>
    %126 = vector.shape_cast %125 : vector<1x8x16xf32> to vector<8x16xf32>
    %cst_74 = arith.constant dense<0.000000e+00> : vector<152x16xf32>
    %127 = tpu.matmul %124, %126, %cst_74 {dimension_numbers = #tpu.dot_dimension_numbers<[1], [0], [0], [1], [0, 0, 1, 1], [], []>} : vector<152x8xf32>, vector<8x16xf32>, vector<152x16xf32> -> vector<152x16xf32>
    %128 = arith.addf %123, %127 : vector<152x16xf32>
    %129 = vector.extract_strided_slice %12 {offsets = [59, 0], sizes = [152, 8], strides = [1, 1]} : vector<256x8xf32> to vector<152x8xf32>
    %c23 = arith.constant 23 : index
    %c0_75 = arith.constant 0 : index
    %c0_76 = arith.constant 0 : index
    %130 = vector.load %arg3[%c23, %c0_75, %c0_76] : memref<25x8x16xf32, #tpu.memory_space<vmem>>, vector<1x8x16xf32>
    %131 = vector.shape_cast %130 : vector<1x8x16xf32> to vector<8x16xf32>
    %cst_77 = arith.constant dense<0.000000e+00> : vector<152x16xf32>
    %132 = tpu.matmul %129, %131, %cst_77 {dimension_numbers = #tpu.dot_dimension_numbers<[1], [0], [0], [1], [0, 0, 1, 1], [], []>} : vector<152x8xf32>, vector<8x16xf32>, vector<152x16xf32> -> vector<152x16xf32>
    %133 = arith.addf %128, %132 : vector<152x16xf32>
    %134 = vector.extract_strided_slice %12 {offsets = [60, 0], sizes = [152, 8], strides = [1, 1]} : vector<256x8xf32> to vector<152x8xf32>
    %c24 = arith.constant 24 : index
    %c0_78 = arith.constant 0 : index
    %c0_79 = arith.constant 0 : index
    %135 = vector.load %arg3[%c24, %c0_78, %c0_79] : memref<25x8x16xf32, #tpu.memory_space<vmem>>, vector<1x8x16xf32>
    %136 = vector.shape_cast %135 : vector<1x8x16xf32> to vector<8x16xf32>
    %cst_80 = arith.constant dense<0.000000e+00> : vector<152x16xf32>
    %137 = tpu.matmul %134, %136, %cst_80 {dimension_numbers = #tpu.dot_dimension_numbers<[1], [0], [0], [1], [0, 0, 1, 1], [], []>} : vector<152x8xf32>, vector<8x16xf32>, vector<152x16xf32> -> vector<152x16xf32>
    %138 = arith.addf %133, %137 : vector<152x16xf32>
    %139 = vector.extract_strided_slice %138 {offsets = [0, 0], sizes = [136, 16], strides = [1, 1]} : vector<152x16xf32> to vector<136x16xf32>
    %140 = vector.extract_strided_slice %138 {offsets = [1, 0], sizes = [136, 16], strides = [1, 1]} : vector<152x16xf32> to vector<136x16xf32>
    %141 = arith.maximumf %139, %140 : vector<136x16xf32>
    %142 = vector.extract_strided_slice %138 {offsets = [14, 0], sizes = [136, 16], strides = [1, 1]} : vector<152x16xf32> to vector<136x16xf32>
    %143 = vector.extract_strided_slice %138 {offsets = [15, 0], sizes = [136, 16], strides = [1, 1]} : vector<152x16xf32> to vector<136x16xf32>
    %144 = arith.maximumf %142, %143 : vector<136x16xf32>
    %145 = arith.maximumf %141, %144 : vector<136x16xf32>
    %c0_81 = arith.constant 0 : index
    %c0_82 = arith.constant 0 : index
    %146 = vector.load %arg5[%c0_81, %c0_82] : memref<1x120xf32, #tpu.memory_space<vmem>>, vector<1x120xf32>
    %147 = vector.extract_strided_slice %145 {offsets = [0, 0], sizes = [1, 16], strides = [1, 1]} : vector<136x16xf32> to vector<1x16xf32>
    %c0_83 = arith.constant 0 : index
    %c0_84 = arith.constant 0 : index
    %c0_85 = arith.constant 0 : index
    %148 = vector.load %arg4[%c0_83, %c0_84, %c0_85] : memref<25x16x120xf32, #tpu.memory_space<vmem>>, vector<1x16x120xf32>
    %149 = vector.shape_cast %148 : vector<1x16x120xf32> to vector<16x120xf32>
    %cst_86 = arith.constant dense<0.000000e+00> : vector<1x120xf32>
    %150 = tpu.matmul %147, %149, %cst_86 {dimension_numbers = #tpu.dot_dimension_numbers<[1], [0], [0], [1], [0, 0, 1, 1], [], []>} : vector<1x16xf32>, vector<16x120xf32>, vector<1x120xf32> -> vector<1x120xf32>
    %151 = arith.addf %146, %150 : vector<1x120xf32>
    %152 = vector.extract_strided_slice %145 {offsets = [2, 0], sizes = [1, 16], strides = [1, 1]} : vector<136x16xf32> to vector<1x16xf32>
    %c1_87 = arith.constant 1 : index
    %c0_88 = arith.constant 0 : index
    %c0_89 = arith.constant 0 : index
    %153 = vector.load %arg4[%c1_87, %c0_88, %c0_89] : memref<25x16x120xf32, #tpu.memory_space<vmem>>, vector<1x16x120xf32>
    %154 = vector.shape_cast %153 : vector<1x16x120xf32> to vector<16x120xf32>
    %cst_90 = arith.constant dense<0.000000e+00> : vector<1x120xf32>
    %155 = tpu.matmul %152, %154, %cst_90 {dimension_numbers = #tpu.dot_dimension_numbers<[1], [0], [0], [1], [0, 0, 1, 1], [], []>} : vector<1x16xf32>, vector<16x120xf32>, vector<1x120xf32> -> vector<1x120xf32>
    %156 = arith.addf %151, %155 : vector<1x120xf32>
    %157 = vector.extract_strided_slice %145 {offsets = [4, 0], sizes = [1, 16], strides = [1, 1]} : vector<136x16xf32> to vector<1x16xf32>
    %c2_91 = arith.constant 2 : index
    %c0_92 = arith.constant 0 : index
    %c0_93 = arith.constant 0 : index
    %158 = vector.load %arg4[%c2_91, %c0_92, %c0_93] : memref<25x16x120xf32, #tpu.memory_space<vmem>>, vector<1x16x120xf32>
    %159 = vector.shape_cast %158 : vector<1x16x120xf32> to vector<16x120xf32>
    %cst_94 = arith.constant dense<0.000000e+00> : vector<1x120xf32>
    %160 = tpu.matmul %157, %159, %cst_94 {dimension_numbers = #tpu.dot_dimension_numbers<[1], [0], [0], [1], [0, 0, 1, 1], [], []>} : vector<1x16xf32>, vector<16x120xf32>, vector<1x120xf32> -> vector<1x120xf32>
    %161 = arith.addf %156, %160 : vector<1x120xf32>
    %162 = vector.extract_strided_slice %145 {offsets = [6, 0], sizes = [1, 16], strides = [1, 1]} : vector<136x16xf32> to vector<1x16xf32>
    %c3_95 = arith.constant 3 : index
    %c0_96 = arith.constant 0 : index
    %c0_97 = arith.constant 0 : index
    %163 = vector.load %arg4[%c3_95, %c0_96, %c0_97] : memref<25x16x120xf32, #tpu.memory_space<vmem>>, vector<1x16x120xf32>
    %164 = vector.shape_cast %163 : vector<1x16x120xf32> to vector<16x120xf32>
    %cst_98 = arith.constant dense<0.000000e+00> : vector<1x120xf32>
    %165 = tpu.matmul %162, %164, %cst_98 {dimension_numbers = #tpu.dot_dimension_numbers<[1], [0], [0], [1], [0, 0, 1, 1], [], []>} : vector<1x16xf32>, vector<16x120xf32>, vector<1x120xf32> -> vector<1x120xf32>
    %166 = arith.addf %161, %165 : vector<1x120xf32>
    %167 = vector.extract_strided_slice %145 {offsets = [8, 0], sizes = [1, 16], strides = [1, 1]} : vector<136x16xf32> to vector<1x16xf32>
    %c4_99 = arith.constant 4 : index
    %c0_100 = arith.constant 0 : index
    %c0_101 = arith.constant 0 : index
    %168 = vector.load %arg4[%c4_99, %c0_100, %c0_101] : memref<25x16x120xf32, #tpu.memory_space<vmem>>, vector<1x16x120xf32>
    %169 = vector.shape_cast %168 : vector<1x16x120xf32> to vector<16x120xf32>
    %cst_102 = arith.constant dense<0.000000e+00> : vector<1x120xf32>
    %170 = tpu.matmul %167, %169, %cst_102 {dimension_numbers = #tpu.dot_dimension_numbers<[1], [0], [0], [1], [0, 0, 1, 1], [], []>} : vector<1x16xf32>, vector<16x120xf32>, vector<1x120xf32> -> vector<1x120xf32>
    %171 = arith.addf %166, %170 : vector<1x120xf32>
    %172 = vector.extract_strided_slice %145 {offsets = [28, 0], sizes = [1, 16], strides = [1, 1]} : vector<136x16xf32> to vector<1x16xf32>
    %c5_103 = arith.constant 5 : index
    %c0_104 = arith.constant 0 : index
    %c0_105 = arith.constant 0 : index
    %173 = vector.load %arg4[%c5_103, %c0_104, %c0_105] : memref<25x16x120xf32, #tpu.memory_space<vmem>>, vector<1x16x120xf32>
    %174 = vector.shape_cast %173 : vector<1x16x120xf32> to vector<16x120xf32>
    %cst_106 = arith.constant dense<0.000000e+00> : vector<1x120xf32>
    %175 = tpu.matmul %172, %174, %cst_106 {dimension_numbers = #tpu.dot_dimension_numbers<[1], [0], [0], [1], [0, 0, 1, 1], [], []>} : vector<1x16xf32>, vector<16x120xf32>, vector<1x120xf32> -> vector<1x120xf32>
    %176 = arith.addf %171, %175 : vector<1x120xf32>
    %177 = vector.extract_strided_slice %145 {offsets = [30, 0], sizes = [1, 16], strides = [1, 1]} : vector<136x16xf32> to vector<1x16xf32>
    %c6_107 = arith.constant 6 : index
    %c0_108 = arith.constant 0 : index
    %c0_109 = arith.constant 0 : index
    %178 = vector.load %arg4[%c6_107, %c0_108, %c0_109] : memref<25x16x120xf32, #tpu.memory_space<vmem>>, vector<1x16x120xf32>
    %179 = vector.shape_cast %178 : vector<1x16x120xf32> to vector<16x120xf32>
    %cst_110 = arith.constant dense<0.000000e+00> : vector<1x120xf32>
    %180 = tpu.matmul %177, %179, %cst_110 {dimension_numbers = #tpu.dot_dimension_numbers<[1], [0], [0], [1], [0, 0, 1, 1], [], []>} : vector<1x16xf32>, vector<16x120xf32>, vector<1x120xf32> -> vector<1x120xf32>
    %181 = arith.addf %176, %180 : vector<1x120xf32>
    %182 = vector.extract_strided_slice %145 {offsets = [32, 0], sizes = [1, 16], strides = [1, 1]} : vector<136x16xf32> to vector<1x16xf32>
    %c7_111 = arith.constant 7 : index
    %c0_112 = arith.constant 0 : index
    %c0_113 = arith.constant 0 : index
    %183 = vector.load %arg4[%c7_111, %c0_112, %c0_113] : memref<25x16x120xf32, #tpu.memory_space<vmem>>, vector<1x16x120xf32>
    %184 = vector.shape_cast %183 : vector<1x16x120xf32> to vector<16x120xf32>
    %cst_114 = arith.constant dense<0.000000e+00> : vector<1x120xf32>
    %185 = tpu.matmul %182, %184, %cst_114 {dimension_numbers = #tpu.dot_dimension_numbers<[1], [0], [0], [1], [0, 0, 1, 1], [], []>} : vector<1x16xf32>, vector<16x120xf32>, vector<1x120xf32> -> vector<1x120xf32>
    %186 = arith.addf %181, %185 : vector<1x120xf32>
    %187 = vector.extract_strided_slice %145 {offsets = [34, 0], sizes = [1, 16], strides = [1, 1]} : vector<136x16xf32> to vector<1x16xf32>
    %c8_115 = arith.constant 8 : index
    %c0_116 = arith.constant 0 : index
    %c0_117 = arith.constant 0 : index
    %188 = vector.load %arg4[%c8_115, %c0_116, %c0_117] : memref<25x16x120xf32, #tpu.memory_space<vmem>>, vector<1x16x120xf32>
    %189 = vector.shape_cast %188 : vector<1x16x120xf32> to vector<16x120xf32>
    %cst_118 = arith.constant dense<0.000000e+00> : vector<1x120xf32>
    %190 = tpu.matmul %187, %189, %cst_118 {dimension_numbers = #tpu.dot_dimension_numbers<[1], [0], [0], [1], [0, 0, 1, 1], [], []>} : vector<1x16xf32>, vector<16x120xf32>, vector<1x120xf32> -> vector<1x120xf32>
    %191 = arith.addf %186, %190 : vector<1x120xf32>
    %192 = vector.extract_strided_slice %145 {offsets = [36, 0], sizes = [1, 16], strides = [1, 1]} : vector<136x16xf32> to vector<1x16xf32>
    %c9_119 = arith.constant 9 : index
    %c0_120 = arith.constant 0 : index
    %c0_121 = arith.constant 0 : index
    %193 = vector.load %arg4[%c9_119, %c0_120, %c0_121] : memref<25x16x120xf32, #tpu.memory_space<vmem>>, vector<1x16x120xf32>
    %194 = vector.shape_cast %193 : vector<1x16x120xf32> to vector<16x120xf32>
    %cst_122 = arith.constant dense<0.000000e+00> : vector<1x120xf32>
    %195 = tpu.matmul %192, %194, %cst_122 {dimension_numbers = #tpu.dot_dimension_numbers<[1], [0], [0], [1], [0, 0, 1, 1], [], []>} : vector<1x16xf32>, vector<16x120xf32>, vector<1x120xf32> -> vector<1x120xf32>
    %196 = arith.addf %191, %195 : vector<1x120xf32>
    %197 = vector.extract_strided_slice %145 {offsets = [56, 0], sizes = [1, 16], strides = [1, 1]} : vector<136x16xf32> to vector<1x16xf32>
    %c10_123 = arith.constant 10 : index
    %c0_124 = arith.constant 0 : index
    %c0_125 = arith.constant 0 : index
    %198 = vector.load %arg4[%c10_123, %c0_124, %c0_125] : memref<25x16x120xf32, #tpu.memory_space<vmem>>, vector<1x16x120xf32>
    %199 = vector.shape_cast %198 : vector<1x16x120xf32> to vector<16x120xf32>
    %cst_126 = arith.constant dense<0.000000e+00> : vector<1x120xf32>
    %200 = tpu.matmul %197, %199, %cst_126 {dimension_numbers = #tpu.dot_dimension_numbers<[1], [0], [0], [1], [0, 0, 1, 1], [], []>} : vector<1x16xf32>, vector<16x120xf32>, vector<1x120xf32> -> vector<1x120xf32>
    %201 = arith.addf %196, %200 : vector<1x120xf32>
    %202 = vector.extract_strided_slice %145 {offsets = [58, 0], sizes = [1, 16], strides = [1, 1]} : vector<136x16xf32> to vector<1x16xf32>
    %c11_127 = arith.constant 11 : index
    %c0_128 = arith.constant 0 : index
    %c0_129 = arith.constant 0 : index
    %203 = vector.load %arg4[%c11_127, %c0_128, %c0_129] : memref<25x16x120xf32, #tpu.memory_space<vmem>>, vector<1x16x120xf32>
    %204 = vector.shape_cast %203 : vector<1x16x120xf32> to vector<16x120xf32>
    %cst_130 = arith.constant dense<0.000000e+00> : vector<1x120xf32>
    %205 = tpu.matmul %202, %204, %cst_130 {dimension_numbers = #tpu.dot_dimension_numbers<[1], [0], [0], [1], [0, 0, 1, 1], [], []>} : vector<1x16xf32>, vector<16x120xf32>, vector<1x120xf32> -> vector<1x120xf32>
    %206 = arith.addf %201, %205 : vector<1x120xf32>
    %207 = vector.extract_strided_slice %145 {offsets = [60, 0], sizes = [1, 16], strides = [1, 1]} : vector<136x16xf32> to vector<1x16xf32>
    %c12_131 = arith.constant 12 : index
    %c0_132 = arith.constant 0 : index
    %c0_133 = arith.constant 0 : index
    %208 = vector.load %arg4[%c12_131, %c0_132, %c0_133] : memref<25x16x120xf32, #tpu.memory_space<vmem>>, vector<1x16x120xf32>
    %209 = vector.shape_cast %208 : vector<1x16x120xf32> to vector<16x120xf32>
    %cst_134 = arith.constant dense<0.000000e+00> : vector<1x120xf32>
    %210 = tpu.matmul %207, %209, %cst_134 {dimension_numbers = #tpu.dot_dimension_numbers<[1], [0], [0], [1], [0, 0, 1, 1], [], []>} : vector<1x16xf32>, vector<16x120xf32>, vector<1x120xf32> -> vector<1x120xf32>
    %211 = arith.addf %206, %210 : vector<1x120xf32>
    %212 = vector.extract_strided_slice %145 {offsets = [62, 0], sizes = [1, 16], strides = [1, 1]} : vector<136x16xf32> to vector<1x16xf32>
    %c13_135 = arith.constant 13 : index
    %c0_136 = arith.constant 0 : index
    %c0_137 = arith.constant 0 : index
    %213 = vector.load %arg4[%c13_135, %c0_136, %c0_137] : memref<25x16x120xf32, #tpu.memory_space<vmem>>, vector<1x16x120xf32>
    %214 = vector.shape_cast %213 : vector<1x16x120xf32> to vector<16x120xf32>
    %cst_138 = arith.constant dense<0.000000e+00> : vector<1x120xf32>
    %215 = tpu.matmul %212, %214, %cst_138 {dimension_numbers = #tpu.dot_dimension_numbers<[1], [0], [0], [1], [0, 0, 1, 1], [], []>} : vector<1x16xf32>, vector<16x120xf32>, vector<1x120xf32> -> vector<1x120xf32>
    %216 = arith.addf %211, %215 : vector<1x120xf32>
    %217 = vector.extract_strided_slice %145 {offsets = [64, 0], sizes = [1, 16], strides = [1, 1]} : vector<136x16xf32> to vector<1x16xf32>
    %c14_139 = arith.constant 14 : index
    %c0_140 = arith.constant 0 : index
    %c0_141 = arith.constant 0 : index
    %218 = vector.load %arg4[%c14_139, %c0_140, %c0_141] : memref<25x16x120xf32, #tpu.memory_space<vmem>>, vector<1x16x120xf32>
    %219 = vector.shape_cast %218 : vector<1x16x120xf32> to vector<16x120xf32>
    %cst_142 = arith.constant dense<0.000000e+00> : vector<1x120xf32>
    %220 = tpu.matmul %217, %219, %cst_142 {dimension_numbers = #tpu.dot_dimension_numbers<[1], [0], [0], [1], [0, 0, 1, 1], [], []>} : vector<1x16xf32>, vector<16x120xf32>, vector<1x120xf32> -> vector<1x120xf32>
    %221 = arith.addf %216, %220 : vector<1x120xf32>
    %222 = vector.extract_strided_slice %145 {offsets = [84, 0], sizes = [1, 16], strides = [1, 1]} : vector<136x16xf32> to vector<1x16xf32>
    %c15_143 = arith.constant 15 : index
    %c0_144 = arith.constant 0 : index
    %c0_145 = arith.constant 0 : index
    %223 = vector.load %arg4[%c15_143, %c0_144, %c0_145] : memref<25x16x120xf32, #tpu.memory_space<vmem>>, vector<1x16x120xf32>
    %224 = vector.shape_cast %223 : vector<1x16x120xf32> to vector<16x120xf32>
    %cst_146 = arith.constant dense<0.000000e+00> : vector<1x120xf32>
    %225 = tpu.matmul %222, %224, %cst_146 {dimension_numbers = #tpu.dot_dimension_numbers<[1], [0], [0], [1], [0, 0, 1, 1], [], []>} : vector<1x16xf32>, vector<16x120xf32>, vector<1x120xf32> -> vector<1x120xf32>
    %226 = arith.addf %221, %225 : vector<1x120xf32>
    %227 = vector.extract_strided_slice %145 {offsets = [86, 0], sizes = [1, 16], strides = [1, 1]} : vector<136x16xf32> to vector<1x16xf32>
    %c16_147 = arith.constant 16 : index
    %c0_148 = arith.constant 0 : index
    %c0_149 = arith.constant 0 : index
    %228 = vector.load %arg4[%c16_147, %c0_148, %c0_149] : memref<25x16x120xf32, #tpu.memory_space<vmem>>, vector<1x16x120xf32>
    %229 = vector.shape_cast %228 : vector<1x16x120xf32> to vector<16x120xf32>
    %cst_150 = arith.constant dense<0.000000e+00> : vector<1x120xf32>
    %230 = tpu.matmul %227, %229, %cst_150 {dimension_numbers = #tpu.dot_dimension_numbers<[1], [0], [0], [1], [0, 0, 1, 1], [], []>} : vector<1x16xf32>, vector<16x120xf32>, vector<1x120xf32> -> vector<1x120xf32>
    %231 = arith.addf %226, %230 : vector<1x120xf32>
    %232 = vector.extract_strided_slice %145 {offsets = [88, 0], sizes = [1, 16], strides = [1, 1]} : vector<136x16xf32> to vector<1x16xf32>
    %c17_151 = arith.constant 17 : index
    %c0_152 = arith.constant 0 : index
    %c0_153 = arith.constant 0 : index
    %233 = vector.load %arg4[%c17_151, %c0_152, %c0_153] : memref<25x16x120xf32, #tpu.memory_space<vmem>>, vector<1x16x120xf32>
    %234 = vector.shape_cast %233 : vector<1x16x120xf32> to vector<16x120xf32>
    %cst_154 = arith.constant dense<0.000000e+00> : vector<1x120xf32>
    %235 = tpu.matmul %232, %234, %cst_154 {dimension_numbers = #tpu.dot_dimension_numbers<[1], [0], [0], [1], [0, 0, 1, 1], [], []>} : vector<1x16xf32>, vector<16x120xf32>, vector<1x120xf32> -> vector<1x120xf32>
    %236 = arith.addf %231, %235 : vector<1x120xf32>
    %237 = vector.extract_strided_slice %145 {offsets = [90, 0], sizes = [1, 16], strides = [1, 1]} : vector<136x16xf32> to vector<1x16xf32>
    %c18_155 = arith.constant 18 : index
    %c0_156 = arith.constant 0 : index
    %c0_157 = arith.constant 0 : index
    %238 = vector.load %arg4[%c18_155, %c0_156, %c0_157] : memref<25x16x120xf32, #tpu.memory_space<vmem>>, vector<1x16x120xf32>
    %239 = vector.shape_cast %238 : vector<1x16x120xf32> to vector<16x120xf32>
    %cst_158 = arith.constant dense<0.000000e+00> : vector<1x120xf32>
    %240 = tpu.matmul %237, %239, %cst_158 {dimension_numbers = #tpu.dot_dimension_numbers<[1], [0], [0], [1], [0, 0, 1, 1], [], []>} : vector<1x16xf32>, vector<16x120xf32>, vector<1x120xf32> -> vector<1x120xf32>
    %241 = arith.addf %236, %240 : vector<1x120xf32>
    %242 = vector.extract_strided_slice %145 {offsets = [92, 0], sizes = [1, 16], strides = [1, 1]} : vector<136x16xf32> to vector<1x16xf32>
    %c19_159 = arith.constant 19 : index
    %c0_160 = arith.constant 0 : index
    %c0_161 = arith.constant 0 : index
    %243 = vector.load %arg4[%c19_159, %c0_160, %c0_161] : memref<25x16x120xf32, #tpu.memory_space<vmem>>, vector<1x16x120xf32>
    %244 = vector.shape_cast %243 : vector<1x16x120xf32> to vector<16x120xf32>
    %cst_162 = arith.constant dense<0.000000e+00> : vector<1x120xf32>
    %245 = tpu.matmul %242, %244, %cst_162 {dimension_numbers = #tpu.dot_dimension_numbers<[1], [0], [0], [1], [0, 0, 1, 1], [], []>} : vector<1x16xf32>, vector<16x120xf32>, vector<1x120xf32> -> vector<1x120xf32>
    %246 = arith.addf %241, %245 : vector<1x120xf32>
    %247 = vector.extract_strided_slice %145 {offsets = [112, 0], sizes = [1, 16], strides = [1, 1]} : vector<136x16xf32> to vector<1x16xf32>
    %c20_163 = arith.constant 20 : index
    %c0_164 = arith.constant 0 : index
    %c0_165 = arith.constant 0 : index
    %248 = vector.load %arg4[%c20_163, %c0_164, %c0_165] : memref<25x16x120xf32, #tpu.memory_space<vmem>>, vector<1x16x120xf32>
    %249 = vector.shape_cast %248 : vector<1x16x120xf32> to vector<16x120xf32>
    %cst_166 = arith.constant dense<0.000000e+00> : vector<1x120xf32>
    %250 = tpu.matmul %247, %249, %cst_166 {dimension_numbers = #tpu.dot_dimension_numbers<[1], [0], [0], [1], [0, 0, 1, 1], [], []>} : vector<1x16xf32>, vector<16x120xf32>, vector<1x120xf32> -> vector<1x120xf32>
    %251 = arith.addf %246, %250 : vector<1x120xf32>
    %252 = vector.extract_strided_slice %145 {offsets = [114, 0], sizes = [1, 16], strides = [1, 1]} : vector<136x16xf32> to vector<1x16xf32>
    %c21_167 = arith.constant 21 : index
    %c0_168 = arith.constant 0 : index
    %c0_169 = arith.constant 0 : index
    %253 = vector.load %arg4[%c21_167, %c0_168, %c0_169] : memref<25x16x120xf32, #tpu.memory_space<vmem>>, vector<1x16x120xf32>
    %254 = vector.shape_cast %253 : vector<1x16x120xf32> to vector<16x120xf32>
    %cst_170 = arith.constant dense<0.000000e+00> : vector<1x120xf32>
    %255 = tpu.matmul %252, %254, %cst_170 {dimension_numbers = #tpu.dot_dimension_numbers<[1], [0], [0], [1], [0, 0, 1, 1], [], []>} : vector<1x16xf32>, vector<16x120xf32>, vector<1x120xf32> -> vector<1x120xf32>
    %256 = arith.addf %251, %255 : vector<1x120xf32>
    %257 = vector.extract_strided_slice %145 {offsets = [116, 0], sizes = [1, 16], strides = [1, 1]} : vector<136x16xf32> to vector<1x16xf32>
    %c22_171 = arith.constant 22 : index
    %c0_172 = arith.constant 0 : index
    %c0_173 = arith.constant 0 : index
    %258 = vector.load %arg4[%c22_171, %c0_172, %c0_173] : memref<25x16x120xf32, #tpu.memory_space<vmem>>, vector<1x16x120xf32>
    %259 = vector.shape_cast %258 : vector<1x16x120xf32> to vector<16x120xf32>
    %cst_174 = arith.constant dense<0.000000e+00> : vector<1x120xf32>
    %260 = tpu.matmul %257, %259, %cst_174 {dimension_numbers = #tpu.dot_dimension_numbers<[1], [0], [0], [1], [0, 0, 1, 1], [], []>} : vector<1x16xf32>, vector<16x120xf32>, vector<1x120xf32> -> vector<1x120xf32>
    %261 = arith.addf %256, %260 : vector<1x120xf32>
    %262 = vector.extract_strided_slice %145 {offsets = [118, 0], sizes = [1, 16], strides = [1, 1]} : vector<136x16xf32> to vector<1x16xf32>
    %c23_175 = arith.constant 23 : index
    %c0_176 = arith.constant 0 : index
    %c0_177 = arith.constant 0 : index
    %263 = vector.load %arg4[%c23_175, %c0_176, %c0_177] : memref<25x16x120xf32, #tpu.memory_space<vmem>>, vector<1x16x120xf32>
    %264 = vector.shape_cast %263 : vector<1x16x120xf32> to vector<16x120xf32>
    %cst_178 = arith.constant dense<0.000000e+00> : vector<1x120xf32>
    %265 = tpu.matmul %262, %264, %cst_178 {dimension_numbers = #tpu.dot_dimension_numbers<[1], [0], [0], [1], [0, 0, 1, 1], [], []>} : vector<1x16xf32>, vector<16x120xf32>, vector<1x120xf32> -> vector<1x120xf32>
    %266 = arith.addf %261, %265 : vector<1x120xf32>
    %267 = vector.extract_strided_slice %145 {offsets = [120, 0], sizes = [1, 16], strides = [1, 1]} : vector<136x16xf32> to vector<1x16xf32>
    %c24_179 = arith.constant 24 : index
    %c0_180 = arith.constant 0 : index
    %c0_181 = arith.constant 0 : index
    %268 = vector.load %arg4[%c24_179, %c0_180, %c0_181] : memref<25x16x120xf32, #tpu.memory_space<vmem>>, vector<1x16x120xf32>
    %269 = vector.shape_cast %268 : vector<1x16x120xf32> to vector<16x120xf32>
    %cst_182 = arith.constant dense<0.000000e+00> : vector<1x120xf32>
    %270 = tpu.matmul %267, %269, %cst_182 {dimension_numbers = #tpu.dot_dimension_numbers<[1], [0], [0], [1], [0, 0, 1, 1], [], []>} : vector<1x16xf32>, vector<16x120xf32>, vector<1x120xf32> -> vector<1x120xf32>
    %271 = arith.addf %266, %270 : vector<1x120xf32>
    %c0_183 = arith.constant 0 : index
    %c0_184 = arith.constant 0 : index
    %272 = vector.load %arg6[%c0_183, %c0_184] : memref<120x84xf32, #tpu.memory_space<vmem>>, vector<120x84xf32>
    %cst_185 = arith.constant dense<0.000000e+00> : vector<1x84xf32>
    %273 = tpu.matmul %271, %272, %cst_185 {dimension_numbers = #tpu.dot_dimension_numbers<[1], [0], [0], [1], [0, 0, 1, 1], [], []>} : vector<1x120xf32>, vector<120x84xf32>, vector<1x84xf32> -> vector<1x84xf32>
    %c0_186 = arith.constant 0 : index
    %c0_187 = arith.constant 0 : index
    %274 = vector.load %arg7[%c0_186, %c0_187] : memref<1x84xf32, #tpu.memory_space<vmem>>, vector<1x84xf32>
    %275 = arith.addf %273, %274 : vector<1x84xf32>
    %c0_188 = arith.constant 0 : index
    %c0_189 = arith.constant 0 : index
    %276 = vector.load %arg8[%c0_188, %c0_189] : memref<84x10xf32, #tpu.memory_space<vmem>>, vector<84x10xf32>
    %cst_190 = arith.constant dense<0.000000e+00> : vector<1x10xf32>
    %277 = tpu.matmul %275, %276, %cst_190 {dimension_numbers = #tpu.dot_dimension_numbers<[1], [0], [0], [1], [0, 0, 1, 1], [], []>} : vector<1x84xf32>, vector<84x10xf32>, vector<1x10xf32> -> vector<1x10xf32>
    %c0_191 = arith.constant 0 : index
    %c0_192 = arith.constant 0 : index
    %278 = vector.load %arg9[%c0_191, %c0_192] : memref<1x10xf32, #tpu.memory_space<vmem>>, vector<1x10xf32>
    %279 = arith.addf %277, %278 : vector<1x10xf32>
    %c0_193 = arith.constant 0 : index
    %c0_194 = arith.constant 0 : index
    %c0_195 = arith.constant 0 : index
    %280 = vector.load %arg10[%c0_193, %c0_194, %c0_195] : memref<1x1x10xf32, #tpu.memory_space<vmem>>, vector<1x1x10xf32>
    %281 = vector.shape_cast %280 : vector<1x1x10xf32> to vector<1x10xf32>
    %282 = vector.shape_cast %279 : vector<1x10xf32> to vector<1x1x10xf32>
    tpu.vector_store %arg10[%c0_193, %c0_194, %c0_195], %282 {strides = array<i32>} : memref<1x1x10xf32, #tpu.memory_space<vmem>>, vector<1x1x10xf32>,
    return
  }
  func.func @transform_0(%arg0: i32) -> (i32, i32, i32) {
    %c0_i32 = arith.constant 0 : i32
    %c0_i32_0 = arith.constant 0 : i32
    %c0_i32_1 = arith.constant 0 : i32
    return %arg0, %c0_i32, %c0_i32_0 : i32, i32, i32
  }
  func.func @transform_1(%arg0: i32) -> (i32, i32) {
    %c0_i32 = arith.constant 0 : i32
    %c0_i32_0 = arith.constant 0 : i32
    %c0_i32_1 = arith.constant 0 : i32
    return %c0_i32, %c0_i32_0 : i32, i32
  }
  func.func @transform_2(%arg0: i32) -> (i32, i32, i32) {
    %c0_i32 = arith.constant 0 : i32
    %c0_i32_0 = arith.constant 0 : i32
    %c0_i32_1 = arith.constant 0 : i32
    %c0_i32_2 = arith.constant 0 : i32
    return %c0_i32, %c0_i32_0, %c0_i32_1 : i32, i32, i32
  }
  func.func @transform_3(%arg0: i32) -> (i32, i32, i32) {
    %c0_i32 = arith.constant 0 : i32
    %c0_i32_0 = arith.constant 0 : i32
    %c0_i32_1 = arith.constant 0 : i32
    %c0_i32_2 = arith.constant 0 : i32
    return %c0_i32, %c0_i32_0, %c0_i32_1 : i32, i32, i32
  }
  func.func @transform_4(%arg0: i32) -> (i32, i32) {
    %c0_i32 = arith.constant 0 : i32
    %c0_i32_0 = arith.constant 0 : i32
    %c0_i32_1 = arith.constant 0 : i32
    return %c0_i32, %c0_i32_0 : i32, i32
  }
  func.func @transform_5(%arg0: i32) -> (i32, i32) {
    %c0_i32 = arith.constant 0 : i32
    %c0_i32_0 = arith.constant 0 : i32
    %c0_i32_1 = arith.constant 0 : i32
    return %c0_i32, %c0_i32_0 : i32, i32
  }
  func.func @transform_6(%arg0: i32) -> (i32, i32) {
    %c0_i32 = arith.constant 0 : i32
    %c0_i32_0 = arith.constant 0 : i32
    %c0_i32_1 = arith.constant 0 : i32
    return %c0_i32, %c0_i32_0 : i32, i32
  }
  func.func @transform_7(%arg0: i32) -> (i32, i32) {
    %c0_i32 = arith.constant 0 : i32
    %c0_i32_0 = arith.constant 0 : i32
    %c0_i32_1 = arith.constant 0 : i32
    return %c0_i32, %c0_i32_0 : i32, i32
  }
  func.func @transform_8(%arg0: i32) -> (i32, i32) {
    %c0_i32 = arith.constant 0 : i32
    %c0_i32_0 = arith.constant 0 : i32
    %c0_i32_1 = arith.constant 0 : i32
    return %c0_i32, %c0_i32_0 : i32, i32
  }
  func.func @transform_9(%arg0: i32) -> (i32, i32, i32) {
    %c0_i32 = arith.constant 0 : i32
    %c0_i32_0 = arith.constant 0 : i32
    %c0_i32_1 = arith.constant 0 : i32
    return %arg0, %c0_i32, %c0_i32_0 : i32, i32, i32
  }
}

</mosaic_0001>

<bundles_post_ra>
// kernel: _lambda_.1
= control target key start
LH: loop header
LB: loop body
LE: loop exit
PB: predicated region body
PF: predicated region fallthrough
CT: control target
= control target key end

     0   :  { %14 = vsyncpa [#allocation3], 0  ;;  %s15574_s0 = inlined_call_operand.vmem [shape: bf16[2,128,1024], index: 0, kind: input, shape index: {}]   ;;  %s15575_s1 = inlined_call_operand.vmem [shape: f32[8,128], index: 1, kind: input, shape index: {}]   ;;  %s15576_s2 = inlined_call_operand.vmem [shape: f32[25,8,16], index: 2, kind: input, shape index: {}]   ;;  %s15577_s3 = inlined_call_operand.vmem [shape: f32[25,16,120], index: 3, kind: input, shape index: {}]   ;;  %s15578_s4 = inlined_call_operand.vmem [shape: f32[1,120], index: 4, kind: input, shape index: {}]   ;;  %s15579_s5 = inlined_call_operand.vmem [shape: f32[120,84], index: 5, kind: input, shape index: {}]   ;;  %s15580_s6 = inlined_call_operand.vmem [shape: f32[1,84], index: 6, kind: input, shape index: {}]   ;;  %s15581_s7 = inlined_call_operand.vmem [shape: f32[84,10], index: 7, kind: input, shape index: {}]   ;;  %s15582_s8 = inlined_call_operand.vmem [shape: f32[1,10], index: 8, kind: input, shape index: {}]   ;;  %s15583_s9 = inlined_call_operand.hbm [shape: f32[2,1,10], index: 9, kind: output, shape index: {}]  }
   0x1   :  { %16 = vsyncpa [#allocation3 + $0x1], 0  ;;  %s11516_s30 = smov 0   ;;  %s11518_s10 = smov 0  }
   0x2   :  { %s11520_s11 = smov 0   ;;  %s11522_s12 = smov 0  }
   0x3 LB: > { %s11537_s13 = sadd.s32 4294967295, %s11461_s12   ;;  %s8462_s14 = sadd.s32 4294967294, %s11461_s12   ;;  %s11461_s12 = sphi %s11522_s12, %s16106_s12   ;;  %s11457_s11 = sphi %s11520_s11, %s16105_s11   ;;  %s11453_s10 = sphi %s11518_s10, %s16104_s10   ;;  %s11449_s30 = sphi %s11516_s30, %s16103_s30  }
   0x4   : > { %s11541_s15 = sadd.s32 1, %s11461_s12   ;;  %s223_s16 = sadd.s32 1, %s11457_s11 }
   0x5   : > { %s220_s17 = ssub.s32 %s11461_s12, %s11541_s15  ;;  %p233_p0 = scmp.ne.s32.totalorder %s11457_s11, %s11453_s10 }
   0x6   : > { %p221_p1 = scmp.eq.s32.totalorder %s220_s17, 0  ;;  %p234_p2 = scmp.eq.s32.totalorder %s11537_s13, 1 }
   0x7   : > { %p239_p3 = scmp.ne.s32.totalorder %s11453_s10, %s11449_s30  ;;  %p240_p4 = scmp.eq.s32.totalorder %s8462_s14, 1 }
   0x8   : > { %s11552_s18 = scalar_select %p221_p1, %s11457_s11, %s223_s16  }
   0x9   : > { %p11554_p5 = por %p234_p2, %p233_p0  ;;  %p11558_p6 = por %p240_p4, %p239_p3 }
   0xa   : > { %p8465_p7 = scmp.ge.s32.totalorder %s11461_s12, 1  ;;  %p290_p8 = scmp.lt.s32.totalorder %s11461_s12, 3 }
   0xc   : > { %p291_p9 = pnand %p8465_p7, %p290_p8 }
   0xe   : > { %294 = sbr.rel (%p291_p9) target bundleno = 2237 (0x8bd), region = 56 }
  0x13   : > { %p325_p10 = scmp.lt.s32.totalorder %s11537_s13, 1  ;;  %v11463_v0 = vmov 0.0   ;;  %vm11464_vm0 = vmmov 0   ;;  %vm900_vm1 = vcmask 1046528   ;;  %vm940_vm2 = vcmask 64512   ;;  %s323_s14 = sand.u32 1, %s11453_s10  }
  0x14   : > { %587 = vmatprep.mubr.f32.mxu0 %v11463_v0  ;;  %658 = vmatprep.mubr.f32.mxu1 %v11463_v0  ;;  %vm1339_vm3 = vcmask 1045504   ;;  %vm1857_vm4 = vcmask 1043456   ;;  %vm1598_vm5 = vcmask 1044480   ;;  %vm2376_vm6 = vcmask 1040384   ;;  %s8395_s27 = scalar_lea.sflag [#allocation3], %s323_s14 }
  0x15   : > { %s326_s21 = scalar_select %p325_p10, %s11537_s13, 1  ;;  %vm2117_vm7 = vcmask 1041408   ;;  %vm3393_vm8 = vcmask 1042432   ;;  %vm6288_vm9 = vcmask 130048   ;;  %vm8229_vm10 = vcmask 982016  }
  0x16   : > { %vm8315_vm11 = vcmask 687104   ;;  %vm8392_vm12 = vcmask 73728  }
  0x17   : > { %s9046_s22 = sshll.u32 %s326_s21, 9  ;;  %s9043_s21 = sshll.u32 %s11537_s13, 4 }
  0x18   : > { %s11571_s25 = scalar_lea.vmem %s15574_s0, %s9046_s22  ;;  %s324_s22 = scalar_lea.vmem [#allocation2], %s323_s14 }
  0x19   : > { %v390_v1 = vld [vmem:[%s11571_s25 + $0x1e0] sm:$0xff]  ;;  %v391_v2 = vld [vmem:[%s11571_s25 + $0x1e8] sm:$0xff]  ;;  %s8407_s23 = sshll.u32 %s324_s22, 4  ;;  %s15539_s26 = scalar_lea.hbm %s15583_s9, %s9043_s21  ;;  %s8408_s23 = int_to_ptr.vmem [resolvable:$true] %s8407_s23 }
  0x1a   : > { %v386_v3 = vld [vmem:[%s11571_s25 + $0x1c0] sm:$0xff]  ;;  %v515_v4 = vunpack.c.h.bf16 %v390_v1  ;;  %v517_v5 = vunpack.c.h.bf16 %v391_v2  ;;  %v514_v6 = vunpack.c.l.bf16 %v390_v1  ;;  %v516_v7 = vunpack.c.l.bf16 %v391_v2  ;;  %v387_v8 = vld [vmem:[%s11571_s25 + $0x1c8] sm:$0xff]  ;;  %s11401_s28 = scalar_lea.vmem %s8408_s23, 16  ;;  %s11465_s13 = smov [#allocation2]  }
  0x1b   : > { %v382_v9 = vld [vmem:[%s11571_s25 + $0x1a0] sm:$0xff]  ;;  %v383_v10 = vld [vmem:[%s11571_s25 + $0x1a8] sm:$0xff]  ;;  %v507_v11 = vunpack.c.h.bf16 %v386_v3  ;;  %v509_v12 = vunpack.c.h.bf16 %v387_v8  ;;  %v506_v13 = vunpack.c.l.bf16 %v386_v3  ;;  %v508_v14 = vunpack.c.l.bf16 %v387_v8  ;;  %p11402_p11 = scmp.ne.s32.totalorder %s8408_s23, %s11401_s28  ;;  %s11405_s29 = sshll.u32 %s11465_s13, 4  ;;  %s11406_s29 = int_to_ptr.vmem [resolvable:$false] %s11405_s29 }
  0x1c   : > { %v378_v15 = vld [vmem:[%s11571_s25 + $0x180] sm:$0xff]  ;;  %v379_v16 = vld [vmem:[%s11571_s25 + $0x188] sm:$0xff]  ;;  %523 = vmatprep.subr.mxu0 %v515_v4  ;;  %594 = vmatprep.subr.mxu1 %v517_v5  ;;  %v499_v17 = vunpack.c.h.bf16 %v382_v9  ;;  %v501_v18 = vunpack.c.h.bf16 %v383_v10  ;;  %v498_v19 = vunpack.c.l.bf16 %v382_v9  ;;  %v500_v20 = vunpack.c.l.bf16 %v383_v10  ;;  %s11407_s16 = scalar_lea.vmem %s11406_s29, 32  ;;  %p11408_p0 = scmp.lt.s32.totalorder %s8408_s23, %s11406_s29 }
  0x1d   : > { %524 = vmatpush1.msra.mxu0 %v514_v6  ;;  %595 = vmatpush1.msra.mxu1 %v516_v7  ;;  %v374_v21 = vld [vmem:[%s11571_s25 + $0x160] sm:$0xff]  ;;  %v375_v22 = vld [vmem:[%s11571_s25 + $0x168] sm:$0xff]  ;;  %v491_v23 = vunpack.c.h.bf16 %v378_v15  ;;  %v493_v24 = vunpack.c.h.bf16 %v379_v16  ;;  %v490_v25 = vunpack.c.l.bf16 %v378_v15  ;;  %v492_v26 = vunpack.c.l.bf16 %v379_v16  ;;  %p11403_p12 = pnand %p11402_p11, %p11554_p5  ;;  %p11409_p1 = scmp.lt.s32.totalorder %s11407_s16, %s11401_s28 }
  0x1e   : > { %525 = vmatprep.subr.mxu0 %v507_v11  ;;  %596 = vmatprep.subr.mxu1 %v509_v12  ;;  %v370_v27 = vld [vmem:[%s11571_s25 + $0x140] sm:$0xff]  ;;  %v371_v28 = vld [vmem:[%s11571_s25 + $0x148] sm:$0xff]  ;;  %v483_v29 = vunpack.c.h.bf16 %v374_v21  ;;  %v485_v30 = vunpack.c.h.bf16 %v375_v22  ;;  %v482_v31 = vunpack.c.l.bf16 %v374_v21  ;;  %v484_v32 = vunpack.c.l.bf16 %v375_v22 }
  0x1f   : > { %526 = vmatpush1.msra.mxu0 %v506_v13  ;;  %597 = vmatpush1.msra.mxu1 %v508_v14  ;;  %v366_v33 = vld [vmem:[%s11571_s25 + $0x120] sm:$0xff]  ;;  %v367_v34 = vld [vmem:[%s11571_s25 + $0x128] sm:$0xff]  ;;  %v475_v35 = vunpack.c.h.bf16 %v370_v27  ;;  %v477_v36 = vunpack.c.h.bf16 %v371_v28  ;;  %v474_v37 = vunpack.c.l.bf16 %v370_v27  ;;  %v476_v38 = vunpack.c.l.bf16 %v371_v28  ;;  %p11404_p13 = pneg %p11403_p12  ;;  %p11410_p2 = por %p11409_p1, %p11408_p0 }
  0x20   : > { %527 = vmatprep.subr.mxu0 %v499_v17  ;;  %598 = vmatprep.subr.mxu1 %v501_v18  ;;  %v362_v39 = vld [vmem:[%s11571_s25 + $0x100] sm:$0xff]  ;;  %v363_v40 = vld [vmem:[%s11571_s25 + $0x108] sm:$0xff]  ;;  %v467_v41 = vunpack.c.h.bf16 %v366_v33  ;;  %v469_v42 = vunpack.c.h.bf16 %v367_v34  ;;  %v466_v43 = vunpack.c.l.bf16 %v366_v33  ;;  %v468_v44 = vunpack.c.l.bf16 %v367_v34  ;;  %v393_v33 = vld [vmem:[%s11571_s25 + $0x1f8] sm:$0xff] }
  0x21   : > { %528 = vmatpush1.msra.mxu0 %v498_v19  ;;  %599 = vmatpush1.msra.mxu1 %v500_v20  ;;  %v358_v45 = vld [vmem:[%s11571_s25 + $0xe0] sm:$0xff]  ;;  %v359_v46 = vld [vmem:[%s11571_s25 + $0xe8] sm:$0xff]  ;;  %v459_v47 = vunpack.c.h.bf16 %v362_v39  ;;  %v461_v48 = vunpack.c.h.bf16 %v363_v40  ;;  %v458_v49 = vunpack.c.l.bf16 %v362_v39  ;;  %v460_v50 = vunpack.c.l.bf16 %v363_v40  ;;  %p11411_p3 = pnand %p11410_p2, %p11404_p13 }
  0x22   : > { %529 = vmatprep.subr.mxu0 %v491_v23  ;;  %600 = vmatprep.subr.mxu1 %v493_v24  ;;  %v354_v51 = vld [vmem:[%s11571_s25 + $0xc0] sm:$0xff]  ;;  %v355_v52 = vld [vmem:[%s11571_s25 + $0xc8] sm:$0xff]  ;;  %v451_v53 = vunpack.c.h.bf16 %v358_v45  ;;  %v453_v54 = vunpack.c.h.bf16 %v359_v46  ;;  %v450_v55 = vunpack.c.l.bf16 %v358_v45  ;;  %v452_v56 = vunpack.c.l.bf16 %v359_v46 }
  0x23   : > { %530 = vmatpush1.msra.mxu0 %v490_v25  ;;  %601 = vmatpush1.msra.mxu1 %v492_v26  ;;  %v350_v57 = vld [vmem:[%s11571_s25 + $0xa0] sm:$0xff]  ;;  %v351_v58 = vld [vmem:[%s11571_s25 + $0xa8] sm:$0xff]  ;;  %v443_v59 = vunpack.c.h.bf16 %v354_v51  ;;  %v445_v60 = vunpack.c.h.bf16 %v355_v52  ;;  %v442_v61 = vunpack.c.l.bf16 %v354_v51  ;;  %v444_v62 = vunpack.c.l.bf16 %v355_v52 }
  0x24   : > { %531 = vmatprep.subr.mxu0 %v483_v29  ;;  %602 = vmatprep.subr.mxu1 %v485_v30  ;;  %v346_v63 = vld [vmem:[%s11571_s25 + $0x80] sm:$0xff]  ;;  %v347_v1 = vld [vmem:[%s11571_s25 + $0x88] sm:$0xff]  ;;  %v435_v2 = vunpack.c.h.bf16 %v350_v57  ;;  %v437_v3 = vunpack.c.h.bf16 %v351_v58  ;;  %v434_v4 = vunpack.c.l.bf16 %v350_v57  ;;  %v436_v5 = vunpack.c.l.bf16 %v351_v58 }
  0x25   : > { %532 = vmatpush1.msra.mxu0 %v482_v31  ;;  %603 = vmatpush1.msra.mxu1 %v484_v32  ;;  %v342_v6 = vld [vmem:[%s11571_s25 + $0x60] sm:$0xff]  ;;  %v343_v7 = vld [vmem:[%s11571_s25 + $0x68] sm:$0xff]  ;;  %v427_v8 = vunpack.c.h.bf16 %v346_v63  ;;  %v429_v9 = vunpack.c.h.bf16 %v347_v1  ;;  %v426_v10 = vunpack.c.l.bf16 %v346_v63  ;;  %v428_v11 = vunpack.c.l.bf16 %v347_v1  ;;  %v392_v32 = vld [vmem:[%s11571_s25 + $0x1f0] sm:$0xff] }
  0x26   : > { %533 = vmatprep.subr.mxu0 %v475_v35  ;;  %604 = vmatprep.subr.mxu1 %v477_v36  ;;  %v338_v12 = vld [vmem:[%s11571_s25 + $0x40] sm:$0xff]  ;;  %v339_v13 = vld [vmem:[%s11571_s25 + $0x48] sm:$0xff]  ;;  %v419_v14 = vunpack.c.h.bf16 %v342_v6  ;;  %v421_v15 = vunpack.c.h.bf16 %v343_v7  ;;  %v418_v16 = vunpack.c.l.bf16 %v342_v6  ;;  %v420_v17 = vunpack.c.l.bf16 %v343_v7  ;;  %v388_v36 = vld [vmem:[%s11571_s25 + $0x1d0] sm:$0xff] }
  0x27   : > { %534 = vmatpush1.msra.mxu0 %v474_v37  ;;  %605 = vmatpush1.msra.mxu1 %v476_v38  ;;  %v334_v18 = vld [vmem:[%s11571_s25 + $0x20] sm:$0xff]  ;;  %v335_v19 = vld [vmem:[%s11571_s25 + $0x28] sm:$0xff]  ;;  %v411_v20 = vunpack.c.h.bf16 %v338_v12  ;;  %v413_v21 = vunpack.c.h.bf16 %v339_v13  ;;  %v410_v22 = vunpack.c.l.bf16 %v338_v12  ;;  %v412_v23 = vunpack.c.l.bf16 %v339_v13  ;;  %v389_v37 = vld [vmem:[%s11571_s25 + $0x1d8] sm:$0xff] }
  0x28   : > { %535 = vmatprep.subr.mxu0 %v467_v41  ;;  %606 = vmatprep.subr.mxu1 %v469_v42  ;;  %v330_v24 = vld [vmem:[%s11571_s25] sm:$0xff]  ;;  %v331_v25 = vld [vmem:[%s11571_s25 + $0x8] sm:$0xff]  ;;  %v403_v26 = vunpack.c.h.bf16 %v334_v18  ;;  %v405_v27 = vunpack.c.h.bf16 %v335_v19  ;;  %v402_v28 = vunpack.c.l.bf16 %v334_v18  ;;  %v404_v29 = vunpack.c.l.bf16 %v335_v19 }
  0x29   : > { %536 = vmatpush1.msra.mxu0 %v466_v43  ;;  %607 = vmatpush1.msra.mxu1 %v468_v44  ;;  %v395_v30 = vunpack.c.h.bf16 %v330_v24  ;;  %v397_v31 = vunpack.c.h.bf16 %v331_v25  ;;  %v394_v34 = vunpack.c.l.bf16 %v330_v24  ;;  %v396_v35 = vunpack.c.l.bf16 %v331_v25  ;;  %v11612_v38 = vld [vmem:[%s15575_s1] sm:$0xff]  ;;  %v384_v43 = vld [vmem:[%s11571_s25 + $0x1b0] sm:$0xff]  ;;  %v385_v44 = vld [vmem:[%s11571_s25 + $0x1b8] sm:$0xff] }
  0x2a   : > { %537 = vmatprep.subr.mxu0 %v459_v47  ;;  %608 = vmatprep.subr.mxu1 %v461_v48  ;;  %v519_v39 = vunpack.c.h.bf16 %v392_v32  ;;  %v521_v40 = vunpack.c.h.bf16 %v393_v33  ;;  %v518_v41 = vunpack.c.l.bf16 %v392_v32  ;;  %v520_v42 = vunpack.c.l.bf16 %v393_v33 }
  0x2b   : > { %538 = vmatpush1.msra.mxu0 %v458_v49  ;;  %609 = vmatpush1.msra.mxu1 %v460_v50  ;;  %v511_v45 = vunpack.c.h.bf16 %v388_v36  ;;  %v513_v46 = vunpack.c.h.bf16 %v389_v37  ;;  %v510_v47 = vunpack.c.l.bf16 %v388_v36  ;;  %v512_v48 = vunpack.c.l.bf16 %v389_v37  ;;  %v380_v49 = vld [vmem:[%s11571_s25 + $0x190] sm:$0xff]  ;;  %v381_v50 = vld [vmem:[%s11571_s25 + $0x198] sm:$0xff] }
  0x2c   : > { %539 = vmatprep.subr.mxu0 %v451_v53  ;;  %610 = vmatprep.subr.mxu1 %v453_v54  ;;  %v503_v51 = vunpack.c.h.bf16 %v384_v43  ;;  %v505_v52 = vunpack.c.h.bf16 %v385_v44  ;;  %v502_v53 = vunpack.c.l.bf16 %v384_v43  ;;  %v504_v54 = vunpack.c.l.bf16 %v385_v44 }
  0x2d   : > { %540 = vmatpush1.msra.mxu0 %v450_v55  ;;  %611 = vmatpush1.msra.mxu1 %v452_v56  ;;  %v376_v55 = vld [vmem:[%s11571_s25 + $0x170] sm:$0xff]  ;;  %v377_v56 = vld [vmem:[%s11571_s25 + $0x178] sm:$0xff]  ;;  %v495_v57 = vunpack.c.h.bf16 %v380_v49  ;;  %v497_v58 = vunpack.c.h.bf16 %v381_v50 }
  0x2e   : > { %541 = vmatprep.subr.mxu0 %v443_v59  ;;  %612 = vmatprep.subr.mxu1 %v445_v60  ;;  %v494_v59 = vunpack.c.l.bf16 %v380_v49  ;;  %v496_v60 = vunpack.c.l.bf16 %v381_v50  ;;  %v487_v63 = vunpack.c.h.bf16 %v376_v55  ;;  %v489_v1 = vunpack.c.h.bf16 %v377_v56 }
  0x2f   : > { %542 = vmatpush1.msra.mxu0 %v442_v61  ;;  %613 = vmatpush1.msra.mxu1 %v444_v62  ;;  %v372_v61 = vld [vmem:[%s11571_s25 + $0x150] sm:$0xff]  ;;  %v373_v62 = vld [vmem:[%s11571_s25 + $0x158] sm:$0xff] }
  0x30   : > { %543 = vmatprep.subr.mxu0 %v435_v2  ;;  %614 = vmatprep.subr.mxu1 %v437_v3  ;;  %v486_v2 = vunpack.c.l.bf16 %v376_v55  ;;  %v488_v3 = vunpack.c.l.bf16 %v377_v56  ;;  %v479_v6 = vunpack.c.h.bf16 %v372_v61  ;;  %v481_v7 = vunpack.c.h.bf16 %v373_v62 }
  0x31   : > { %544 = vmatpush1.msra.mxu0 %v434_v4  ;;  %615 = vmatpush1.msra.mxu1 %v436_v5  ;;  %v368_v4 = vld [vmem:[%s11571_s25 + $0x130] sm:$0xff]  ;;  %v369_v5 = vld [vmem:[%s11571_s25 + $0x138] sm:$0xff] }
  0x32   : > { %545 = vmatprep.subr.mxu0 %v427_v8  ;;  %616 = vmatprep.subr.mxu1 %v429_v9  ;;  %v478_v8 = vunpack.c.l.bf16 %v372_v61  ;;  %v480_v9 = vunpack.c.l.bf16 %v373_v62  ;;  %v471_v12 = vunpack.c.h.bf16 %v368_v4  ;;  %v473_v13 = vunpack.c.h.bf16 %v369_v5 }
  0x33   : > { %546 = vmatpush1.msra.mxu0 %v426_v10  ;;  %617 = vmatpush1.msra.mxu1 %v428_v11  ;;  %v364_v10 = vld [vmem:[%s11571_s25 + $0x110] sm:$0xff]  ;;  %v365_v11 = vld [vmem:[%s11571_s25 + $0x118] sm:$0xff] }
  0x34   : > { %547 = vmatprep.subr.mxu0 %v419_v14  ;;  %618 = vmatprep.subr.mxu1 %v421_v15  ;;  %v470_v14 = vunpack.c.l.bf16 %v368_v4  ;;  %v472_v15 = vunpack.c.l.bf16 %v369_v5  ;;  %v463_v18 = vunpack.c.h.bf16 %v364_v10  ;;  %v465_v19 = vunpack.c.h.bf16 %v365_v11 }
  0x35   : > { %548 = vmatpush1.msra.mxu0 %v418_v16  ;;  %619 = vmatpush1.msra.mxu1 %v420_v17  ;;  %v360_v16 = vld [vmem:[%s11571_s25 + $0xf0] sm:$0xff]  ;;  %v361_v17 = vld [vmem:[%s11571_s25 + $0xf8] sm:$0xff] }
  0x36   : > { %549 = vmatprep.subr.mxu0 %v411_v20  ;;  %620 = vmatprep.subr.mxu1 %v413_v21  ;;  %v462_v20 = vunpack.c.l.bf16 %v364_v10  ;;  %v464_v21 = vunpack.c.l.bf16 %v365_v11  ;;  %v455_v24 = vunpack.c.h.bf16 %v360_v16  ;;  %v457_v25 = vunpack.c.h.bf16 %v361_v17 }
  0x37   : > { %550 = vmatpush1.msra.mxu0 %v410_v22  ;;  %621 = vmatpush1.msra.mxu1 %v412_v23  ;;  %v356_v22 = vld [vmem:[%s11571_s25 + $0xd0] sm:$0xff]  ;;  %v357_v23 = vld [vmem:[%s11571_s25 + $0xd8] sm:$0xff] }
  0x38   : > { %551 = vmatprep.subr.mxu0 %v403_v26  ;;  %622 = vmatprep.subr.mxu1 %v405_v27  ;;  %v454_v26 = vunpack.c.l.bf16 %v360_v16  ;;  %v456_v27 = vunpack.c.l.bf16 %v361_v17  ;;  %v446_v32 = vunpack.c.l.bf16 %v356_v22  ;;  %v448_v33 = vunpack.c.l.bf16 %v357_v23 }
  0x39   : > { %552 = vmatpush1.msra.mxu0 %v402_v28  ;;  %623 = vmatpush1.msra.mxu1 %v404_v29  ;;  %v352_v28 = vld [vmem:[%s11571_s25 + $0xb0] sm:$0xff]  ;;  %v353_v29 = vld [vmem:[%s11571_s25 + $0xb8] sm:$0xff] }
  0x3a   : > { %553 = vmatprep.subr.mxu0 %v395_v30  ;;  %624 = vmatprep.subr.mxu1 %v397_v31  ;;  %v447_v30 = vunpack.c.h.bf16 %v356_v22  ;;  %v449_v31 = vunpack.c.h.bf16 %v357_v23  ;;  %v439_v36 = vunpack.c.h.bf16 %v352_v28  ;;  %v441_v37 = vunpack.c.h.bf16 %v353_v29 }
  0x3b   : > { %554 = vmatpush1.msra.mxu0 %v394_v34  ;;  %625 = vmatpush1.msra.mxu1 %v396_v35  ;;  %v348_v34 = vld [vmem:[%s11571_s25 + $0x90] sm:$0xff]  ;;  %v349_v35 = vld [vmem:[%s11571_s25 + $0x98] sm:$0xff] }
  0x3c   : > { %588 = vmatmul.mubr.f32.vlgmr.msra.gmra.mxu0 %v11612_v38  ;;  %659 = vmatmul.mubr.f32.vlgmr.msra.gmra.mxu1 %v11612_v38  ;;  %v431_v43 = vunpack.c.h.bf16 %v348_v34  ;;  %v433_v44 = vunpack.c.h.bf16 %v349_v35 }
  0x3d   : > { %665 = vmatprep.subr.mxu0 %v519_v39  ;;  %736 = vmatprep.subr.mxu1 %v521_v40  ;;  %v438_v39 = vunpack.c.l.bf16 %v352_v28  ;;  %v440_v40 = vunpack.c.l.bf16 %v353_v29 }
  0x3e   : > { %666 = vmatpush1.msra.mxu0 %v518_v41  ;;  %737 = vmatpush1.msra.mxu1 %v520_v42  ;;  %v344_v41 = vld [vmem:[%s11571_s25 + $0x70] sm:$0xff]  ;;  %v345_v42 = vld [vmem:[%s11571_s25 + $0x78] sm:$0xff] }
  0x3f   : > { %667 = vmatprep.subr.mxu0 %v511_v45  ;;  %738 = vmatprep.subr.mxu1 %v513_v46  ;;  %v430_v45 = vunpack.c.l.bf16 %v348_v34  ;;  %v432_v46 = vunpack.c.l.bf16 %v349_v35  ;;  %v423_v49 = vunpack.c.h.bf16 %v344_v41  ;;  %v425_v50 = vunpack.c.h.bf16 %v345_v42 }
  0x40   : > { %668 = vmatpush1.msra.mxu0 %v510_v47  ;;  %739 = vmatpush1.msra.mxu1 %v512_v48  ;;  %v340_v47 = vld [vmem:[%s11571_s25 + $0x50] sm:$0xff]  ;;  %v341_v48 = vld [vmem:[%s11571_s25 + $0x58] sm:$0xff] }
  0x41   : > { %669 = vmatprep.subr.mxu0 %v503_v51  ;;  %740 = vmatprep.subr.mxu1 %v505_v52  ;;  %v422_v51 = vunpack.c.l.bf16 %v344_v41  ;;  %v424_v52 = vunpack.c.l.bf16 %v345_v42  ;;  %v415_v55 = vunpack.c.h.bf16 %v340_v47  ;;  %v417_v56 = vunpack.c.h.bf16 %v341_v48 }
  0x42   : > { %670 = vmatpush1.msra.mxu0 %v502_v53  ;;  %741 = vmatpush1.msra.mxu1 %v504_v54  ;;  %v336_v53 = vld [vmem:[%s11571_s25 + $0x30] sm:$0xff]  ;;  %v337_v54 = vld [vmem:[%s11571_s25 + $0x38] sm:$0xff] }
  0x43   : > { %671 = vmatprep.subr.mxu0 %v495_v57  ;;  %742 = vmatprep.subr.mxu1 %v497_v58  ;;  %v414_v57 = vunpack.c.l.bf16 %v340_v47  ;;  %v416_v58 = vunpack.c.l.bf16 %v341_v48  ;;  %v407_v61 = vunpack.c.h.bf16 %v336_v53  ;;  %v409_v62 = vunpack.c.h.bf16 %v337_v54 }
  0x44   : > { %672 = vmatpush1.msra.mxu0 %v494_v59  ;;  %743 = vmatpush1.msra.mxu1 %v496_v60  ;;  %v332_v59 = vld [vmem:[%s11571_s25 + $0x10] sm:$0xff]  ;;  %v333_v60 = vld [vmem:[%s11571_s25 + $0x18] sm:$0xff] }
  0x45   : > { %673 = vmatprep.subr.mxu0 %v487_v63  ;;  %744 = vmatprep.subr.mxu1 %v489_v1  ;;  %v406_v63 = vunpack.c.l.bf16 %v336_v53  ;;  %v408_v1 = vunpack.c.l.bf16 %v337_v54  ;;  %v398_v4 = vunpack.c.l.bf16 %v332_v59  ;;  %v400_v5 = vunpack.c.l.bf16 %v333_v60 }
  0x46   : > { %674 = vmatpush1.msra.mxu0 %v486_v2  ;;  %745 = vmatpush1.msra.mxu1 %v488_v3  ;;  %v399_v2 = vunpack.c.h.bf16 %v332_v59  ;;  %v401_v3 = vunpack.c.h.bf16 %v333_v60 }
  0x47   : > { %675 = vmatprep.subr.mxu0 %v479_v6  ;;  %746 = vmatprep.subr.mxu1 %v481_v7 }
  0x48   : > { %676 = vmatpush1.msra.mxu0 %v478_v8  ;;  %747 = vmatpush1.msra.mxu1 %v480_v9 }
  0x49   : > { %677 = vmatprep.subr.mxu0 %v471_v12  ;;  %748 = vmatprep.subr.mxu1 %v473_v13 }
  0x4a   : > { %678 = vmatpush1.msra.mxu0 %v470_v14  ;;  %749 = vmatpush1.msra.mxu1 %v472_v15  ;;  %v8468_v15 = vld [vmem:[%s15576_s2 + $0x8] sm:$0xff] }
  0x4b   : > { %679 = vmatprep.subr.mxu0 %v463_v18  ;;  %750 = vmatprep.subr.mxu1 %v465_v19 }
  0x4c   : > { %680 = vmatpush1.msra.mxu0 %v462_v20  ;;  %751 = vmatpush1.msra.mxu1 %v464_v21 }
  0x4d   : > { %681 = vmatprep.subr.mxu0 %v455_v24  ;;  %752 = vmatprep.subr.mxu1 %v457_v25  ;;  %v8507_v24 = vld [vmem:[%s15576_s2 + $0x10] sm:$0xff] }
  0x4e   : > { %682 = vmatpush1.msra.mxu0 %v454_v26  ;;  %753 = vmatpush1.msra.mxu1 %v456_v27 }
  0x4f   : > { %683 = vmatprep.subr.mxu0 %v447_v30  ;;  %754 = vmatprep.subr.mxu1 %v449_v31 }
  0x50   : > { %684 = vmatpush1.msra.mxu0 %v446_v32  ;;  %755 = vmatpush1.msra.mxu1 %v448_v33 }
  0x51   : > { %685 = vmatprep.subr.mxu0 %v439_v36  ;;  %756 = vmatprep.subr.mxu1 %v441_v37 }
  0x52   : > { %686 = vmatpush1.msra.mxu0 %v438_v39  ;;  %757 = vmatpush1.msra.mxu1 %v440_v40 }
  0x53   : > { %687 = vmatprep.subr.mxu0 %v431_v43  ;;  %758 = vmatprep.subr.mxu1 %v433_v44 }
  0x54   : > { %688 = vmatpush1.msra.mxu0 %v430_v45  ;;  %759 = vmatpush1.msra.mxu1 %v432_v46 }
  0x55   : > { %689 = vmatprep.subr.mxu0 %v423_v49  ;;  %760 = vmatprep.subr.mxu1 %v425_v50 }
  0x56   : > { %690 = vmatpush1.msra.mxu0 %v422_v51  ;;  %761 = vmatpush1.msra.mxu1 %v424_v52 }
  0x57   : > { %691 = vmatprep.subr.mxu0 %v415_v55  ;;  %762 = vmatprep.subr.mxu1 %v417_v56 }
  0x58   : > { %692 = vmatpush1.msra.mxu0 %v414_v57  ;;  %763 = vmatpush1.msra.mxu1 %v416_v58 }
  0x59   : > { %693 = vmatprep.subr.mxu0 %v407_v61  ;;  %764 = vmatprep.subr.mxu1 %v409_v62 }
  0x5a   : > { %694 = vmatpush1.msra.mxu0 %v406_v63  ;;  %765 = vmatpush1.msra.mxu1 %v408_v1 }
  0x5b   : > { %695 = vmatprep.subr.mxu0 %v399_v2  ;;  %766 = vmatprep.subr.mxu1 %v401_v3 }
  0x5c   : > { %696 = vmatpush1.msra.mxu0 %v398_v4  ;;  %729 = vmatprep.mubr.f32.mxu0 %v11463_v0 }
  0x5d   : > { %767 = vmatpush1.msra.mxu1 %v400_v5  ;;  %800 = vmatprep.mubr.f32.mxu1 %v11463_v0 }
  0x5e   : > { %730 = vmatmul.mubr.f32.vlgmr.msra.gmra.mxu0 %v11612_v38  ;;  %801 = vmatmul.mubr.f32.vlgmr.msra.gmra.mxu1 %v11612_v38 }
  0x5f   : > { %9650 = vmatprep.subr.mxu0 %v11463_v0  ;;  %11358 = vmatprep.subr.mxu1 %v11463_v0 }
  0x60   : > { %9651 = vmatpush3.msra.mxu0 %v8468_v15  ;;  %9652 = vmatprep.mubr.msk.f32.mxu0 %vm11464_vm0, %v11463_v0 }
  0x61   : > { %9768 = vmatprep.subr.mxu0 %v11463_v0  ;;  %11359 = vmatpush3.msra.mxu1 %v8468_v15 }
  0x62   : > { %9706 = vmatprep.mubr.msk.f32.mxu1 %vm11464_vm0, %v11463_v0  ;;  %9709 = vmatprep.subr.mxu1 %v11463_v0 }
  0xfc   : > { %v589_v6 = vpop.f32.mrf.mxu0  ;;  %v660_v7 = vpop.f32.mrf.mxu1 }
  0xfd   : > { %v807_v12 = vmax.f32 %v589_v6, %v660_v7 }
  0xfe   : > { %v591_v8 = vpop.f32.mrf.mxu0  ;;  %v662_v9 = vpop.f32.mrf.mxu1 }
  0xff   : > { %v808_v18 = vmax.f32 %v591_v8, %v662_v9 }
 0x11e   : > { %v731_v10 = vpop.f32.mrf.mxu0  ;;  %v802_v11 = vpop.f32.mrf.mxu1 }
 0x11f   : > { %v809_v13 = vmax.f32 %v731_v10, %v802_v11 }
 0x120   : > { %v733_v38 = vpop.f32.mrf.mxu0  ;;  %v804_v16 = vpop.f32.mrf.mxu1 }
 0x121   : > { %v811_v14 = vmax.f32 %v807_v12, %v809_v13  ;;  %v810_v17 = vmax.f32 %v733_v38, %v804_v16 }
 0x123   : > { %813 = vxpose.xlu0.b32.start.end [1/1] (short) %v811_v14, 128  ;;  %v812_v19 = vmax.f32 %v808_v18, %v810_v17  ;;  %v877_v18 = vld [vmem:[%s15576_s2] sm:$0xff] }
 0x160   : > { %845 = vxpose.xlu0.b32.start.end [1/1] (short) (narrow) %v812_v19, 88 }
 0x19f   : > { %v11659_v20 = vpop.trf.xlu0 }
 0x1a0   : > { %v901_v22 = vrot.slane %v11659_v20, 1  ;;  %v1340_v16 = vrot.slane %v11659_v20, 2 }
 0x1a3   : > { %v11661_v21 = vpop.trf.xlu0 }
 0x1a4   : > { %v902_v23 = vrot.slane %v11661_v21, 1  ;;  %v1341_v15 = vrot.slane %v11661_v21, 2 }
 0x1a6   : > { %v903_v25 = vsel %vm900_vm1, %v901_v22, %v902_v23  ;;  %v1342_v22 = vsel %vm1339_vm3, %v1340_v16, %v1341_v15 }
 0x1a7   : > { %9653 = vmatmul.mubr.msk.f32.vlgmr.msra.gmra.mxu0 %vm940_vm2, %v903_v25  ;;  %v11670_v26 = vpop.trf.xlu0  ;;  %v8527_v25 = vld [vmem:[%s15576_s2 + $0x18] sm:$0xff] }
 0x1a8   : > { %9655 = vmatprep.mubr.msk.f32.mxu0 %vm11464_vm0, %v11463_v0  ;;  %v904_v27 = vrot.slane %v11670_v26, 1  ;;  %9769 = vmatpush3.msra.mxu0 %v8507_v24  ;;  %v8547_v24 = vld [vmem:[%s15576_s2 + $0x20] sm:$0xff] }
 0x1a9   : > { %9886 = vmatprep.subr.mxu0 %v11463_v0 }
 0x1aa   : > { %v905_v28 = vsel %vm900_vm1, %v902_v23, %v904_v27  ;;  %v1343_v23 = vrot.slane %v11670_v26, 2 }
 0x1ab   : > { %9656 = vmatmul.mubr.msk.f32.gmra.mxu0 %vm940_vm2, %v905_v28  ;;  %v11678_v29 = vpop.trf.xlu0 }
 0x1ac   : > { %9658 = vmatprep.mubr.msk.f32.mxu0 %vm11464_vm0, %v11463_v0  ;;  %v906_v30 = vrot.slane %v11678_v29, 1  ;;  %v1345_v28 = vrot.slane %v11678_v29, 2 }
 0x1ae   : > { %v11684_v31 = vsel %vm900_vm1, %v904_v27, %v906_v30  ;;  %v1344_v27 = vsel %vm1339_vm3, %v1341_v15, %v1343_v23 }
 0x1af   : > { %9659 = vmatmul.mubr.msk.f32.gmra.mxu0 %vm940_vm2, %v11684_v31  ;;  %v11688_v32 = vpop.trf.xlu0 }
 0x1b0   : > { %9661 = vmatprep.mubr.msk.f32.mxu0 %vm11464_vm0, %v11463_v0  ;;  %v908_v33 = vrot.slane %v11688_v32, 1 }
 0x1b2   : > { %v11694_v34 = vsel %vm900_vm1, %v906_v30, %v908_v33  ;;  %v11880_v30 = vsel %vm1339_vm3, %v1343_v23, %v1345_v28 }
 0x1b3   : > { %9662 = vmatmul.mubr.msk.f32.gmra.mxu0 %vm940_vm2, %v11694_v34  ;;  %v11698_v35 = vpop.trf.xlu0  ;;  %15795 = vst [vmem:[#allocation19_spill] sm:$0xff] %v11880_v30 }
 0x1b4   : > { %9664 = vmatprep.mubr.msk.f32.mxu0 %vm11464_vm0, %v11463_v0  ;;  %v910_v36 = vrot.slane %v11698_v35, 1 }
 0x1b6   : > { %v11704_v37 = vsel %vm900_vm1, %v908_v33, %v910_v36  ;;  %v1347_v33 = vrot.slane %v11688_v32, 2 }
 0x1b7   : > { %9665 = vmatmul.mubr.msk.f32.gmra.mxu0 %vm940_vm2, %v11704_v37  ;;  %v11708_v39 = vpop.trf.xlu0 }
 0x1b8   : > { %9667 = vmatprep.mubr.msk.f32.mxu0 %vm11464_vm0, %v11463_v0  ;;  %v912_v40 = vrot.slane %v11708_v39, 1 }
 0x1ba   : > { %v11714_v41 = vsel %vm900_vm1, %v910_v36, %v912_v40  ;;  %v11893_v36 = vsel %vm1339_vm3, %v1345_v28, %v1347_v33 }
 0x1bb   : > { %9668 = vmatmul.mubr.msk.f32.gmra.mxu0 %vm940_vm2, %v11714_v41  ;;  %v11718_v42 = vpop.trf.xlu0  ;;  %15796 = vst [vmem:[#allocation20_spill] sm:$0xff] %v11893_v36 }
 0x1bc   : > { %9670 = vmatprep.mubr.msk.f32.mxu0 %vm11464_vm0, %v11463_v0  ;;  %v914_v43 = vrot.slane %v11718_v42, 1 }
 0x1be   : > { %v11724_v44 = vsel %vm900_vm1, %v912_v40, %v914_v43  ;;  %v1349_v40 = vrot.slane %v11698_v35, 2 }
 0x1bf   : > { %9671 = vmatmul.mubr.msk.f32.gmra.mxu0 %vm940_vm2, %v11724_v44  ;;  %v11728_v45 = vpop.trf.xlu0 }
 0x1c0   : > { %9673 = vmatprep.mubr.msk.f32.mxu0 %vm11464_vm0, %v11463_v0  ;;  %v916_v46 = vrot.slane %v11728_v45, 1 }
 0x1c2   : > { %v11734_v47 = vsel %vm900_vm1, %v914_v43, %v916_v46  ;;  %v11905_v43 = vsel %vm1339_vm3, %v1347_v33, %v1349_v40 }
 0x1c3   : > { %15781 = vst [vmem:[#allocation5_spill] sm:$0xff] %v11734_v47  ;;  %9674 = vmatmul.mubr.msk.f32.gmra.mxu0 %vm940_vm2, %v11734_v47  ;;  %v11738_v48 = vpop.trf.xlu0  ;;  %15797 = vst [vmem:[#allocation21_spill] sm:$0xff] %v11905_v43 }
 0x1c4   : > { %9676 = vmatprep.mubr.msk.f32.mxu0 %vm11464_vm0, %v11463_v0  ;;  %v918_v49 = vrot.slane %v11738_v48, 1 }
 0x1c6   : > { %v11744_v50 = vsel %vm900_vm1, %v916_v46, %v918_v49  ;;  %v1351_v46 = vrot.slane %v11708_v39, 2 }
 0x1c7   : > { %15782 = vst [vmem:[#allocation6_spill] sm:$0xff] %v11744_v50  ;;  %9677 = vmatmul.mubr.msk.f32.gmra.mxu0 %vm940_vm2, %v11744_v50  ;;  %v11748_v51 = vpop.trf.xlu0 }
 0x1c8   : > { %9679 = vmatprep.mubr.msk.f32.mxu0 %vm11464_vm0, %v11463_v0  ;;  %v920_v52 = vrot.slane %v11748_v51, 1 }
 0x1ca   : > { %v11754_v53 = vsel %vm900_vm1, %v918_v49, %v920_v52  ;;  %v11917_v49 = vsel %vm1339_vm3, %v1349_v40, %v1351_v46 }
 0x1cb   : > { %15783 = vst [vmem:[#allocation7_spill] sm:$0xff] %v11754_v53  ;;  %9680 = vmatmul.mubr.msk.f32.gmra.mxu0 %vm940_vm2, %v11754_v53  ;;  %v11758_v54 = vpop.trf.xlu0  ;;  %15798 = vst [vmem:[#allocation22_spill] sm:$0xff] %v11917_v49 }
 0x1cc   : > { %9682 = vmatprep.mubr.msk.f32.mxu0 %vm11464_vm0, %v11463_v0  ;;  %v922_v55 = vrot.slane %v11758_v54, 1 }
 0x1ce   : > { %v11764_v56 = vsel %vm900_vm1, %v920_v52, %v922_v55  ;;  %v1353_v52 = vrot.slane %v11718_v42, 2 }
 0x1cf   : > { %15784 = vst [vmem:[#allocation8_spill] sm:$0xff] %v11764_v56  ;;  %9683 = vmatmul.mubr.msk.f32.gmra.mxu0 %vm940_vm2, %v11764_v56  ;;  %v11768_v57 = vpop.trf.xlu0 }
 0x1d0   : > { %9685 = vmatprep.mubr.msk.f32.mxu0 %vm11464_vm0, %v11463_v0  ;;  %v924_v58 = vrot.slane %v11768_v57, 1  ;;  %v1363_v16 = vrot.slane %v11768_v57, 2 }
 0x1d2   : > { %v11774_v59 = vsel %vm900_vm1, %v922_v55, %v924_v58  ;;  %v11929_v55 = vsel %vm1339_vm3, %v1351_v46, %v1353_v52 }
 0x1d3   : > { %15785 = vst [vmem:[#allocation9_spill] sm:$0xff] %v11774_v59  ;;  %9686 = vmatmul.mubr.msk.f32.gmra.mxu0 %vm940_vm2, %v11774_v59  ;;  %v11778_v60 = vpop.trf.xlu0  ;;  %15799 = vst [vmem:[#allocation23_spill] sm:$0xff] %v11929_v55 }
 0x1d4   : > { %15786 = vst [vmem:[#allocation10_spill] sm:$0xff] %v11778_v60  ;;  %9688 = vmatprep.mubr.msk.f32.mxu0 %vm11464_vm0, %v11463_v0  ;;  %v926_v61 = vrot.slane %v11778_v60, 1 }
 0x1d6   : > { %v11784_v62 = vsel %vm900_vm1, %v924_v58, %v926_v61  ;;  %v1355_v58 = vrot.slane %v11728_v45, 2 }
 0x1d7   : > { %15787 = vst [vmem:[#allocation11_spill] sm:$0xff] %v11784_v62  ;;  %9689 = vmatmul.mubr.msk.f32.gmra.mxu0 %vm940_vm2, %v11784_v62  ;;  %v11788_v63 = vpop.trf.xlu0 }
 0x1d8   : > { %9691 = vmatprep.mubr.msk.f32.mxu0 %vm11464_vm0, %v11463_v0  ;;  %v928_v1 = vrot.slane %v11788_v63, 1 }
 0x1da   : > { %v11794_v2 = vsel %vm900_vm1, %v926_v61, %v928_v1  ;;  %v11941_v61 = vsel %vm1339_vm3, %v1353_v52, %v1355_v58 }
 0x1db   : > { %15788 = vst [vmem:[#allocation12_spill] sm:$0xff] %v11794_v2  ;;  %9692 = vmatmul.mubr.msk.f32.gmra.mxu0 %vm940_vm2, %v11794_v2  ;;  %v11798_v3 = vpop.trf.xlu0  ;;  %15800 = vst [vmem:[#allocation24_spill] sm:$0xff] %v11941_v61 }
 0x1dc   : > { %9694 = vmatprep.mubr.msk.f32.mxu0 %vm11464_vm0, %v11463_v0  ;;  %v930_v4 = vrot.slane %v11798_v3, 1 }
 0x1de   : > { %v11804_v5 = vsel %vm900_vm1, %v928_v1, %v930_v4  ;;  %v1357_v1 = vrot.slane %v11738_v48, 2 }
 0x1df   : > { %15789 = vst [vmem:[#allocation13_spill] sm:$0xff] %v11804_v5  ;;  %9695 = vmatmul.mubr.msk.f32.gmra.mxu0 %vm940_vm2, %v11804_v5  ;;  %v11808_v6 = vpop.trf.xlu0 }
 0x1e0   : > { %9697 = vmatprep.mubr.msk.f32.mxu0 %vm11464_vm0, %v11463_v0  ;;  %v932_v7 = vrot.slane %v11808_v6, 1  ;;  %v1371_v33 = vrot.slane %v11808_v6, 2 }
 0x1e2   : > { %v11814_v8 = vsel %vm900_vm1, %v930_v4, %v932_v7  ;;  %v11953_v4 = vsel %vm1339_vm3, %v1355_v58, %v1357_v1 }
 0x1e3   : > { %15790 = vst [vmem:[#allocation14_spill] sm:$0xff] %v11814_v8  ;;  %9698 = vmatmul.mubr.msk.f32.gmra.mxu0 %vm940_vm2, %v11814_v8  ;;  %v11818_v9 = vpop.trf.xlu0  ;;  %15801 = vst [vmem:[#allocation25_spill] sm:$0xff] %v11953_v4 }
 0x1e4   : > { %15791 = vst [vmem:[#allocation15_spill] sm:$0xff] %v11818_v9  ;;  %9700 = vmatprep.mubr.msk.f32.mxu0 %vm11464_vm0, %v11463_v0  ;;  %v934_v10 = vrot.slane %v11818_v9, 1  ;;  %v1373_v46 = vrot.slane %v11818_v9, 2 }
 0x1e6   : > { %v11824_v11 = vsel %vm900_vm1, %v932_v7, %v934_v10  ;;  %v1359_v7 = vrot.slane %v11748_v51, 2  ;;  %v12049_v52 = vsel %vm1339_vm3, %v1371_v33, %v1373_v46 }
 0x1e7   : > { %15792 = vst [vmem:[#allocation16_spill] sm:$0xff] %v11824_v11  ;;  %9701 = vmatmul.mubr.msk.f32.gmra.mxu0 %vm940_vm2, %v11824_v11  ;;  %v11828_v12 = vpop.trf.xlu0  ;;  %15809 = vst [vmem:[#allocation33_spill] sm:$0xff] %v12049_v52  ;;  %v2141_v11 = vrot.slane %v11778_v60, 6 }
 0x1e8   : > { %9703 = vmatprep.mubr.msk.f32.mxu0 %vm11464_vm0, %v11463_v0  ;;  %v936_v13 = vrot.slane %v11828_v12, 1  ;;  %v1375_v58 = vrot.slane %v11828_v12, 2 }
 0x1ea   : > { %v11834_v14 = vsel %vm900_vm1, %v934_v10, %v936_v13  ;;  %v11965_v10 = vsel %vm1339_vm3, %v1357_v1, %v1359_v7  ;;  %v12061_v1 = vsel %vm1339_vm3, %v1373_v46, %v1375_v58  ;;  %v8587_v46 = vld [vmem:[%s15576_s2 + $0x30] sm:$0xff] }
 0x1eb   : > { %15793 = vst [vmem:[#allocation17_spill] sm:$0xff] %v11834_v14  ;;  %9704 = vmatmul.mubr.msk.f32.gmra.mxu0 %vm940_vm2, %v11834_v14  ;;  %v11839_v38 = vpop.trf.xlu0  ;;  %15802 = vst [vmem:[#allocation26_spill] sm:$0xff] %v11965_v10 }
 0x1ec   : > { %9770 = vmatprep.mubr.msk.f32.mxu0 %vm11464_vm0, %v11463_v0  ;;  %v15585_v17 = vrot.slane %v11839_v38, 1  ;;  %15810 = vst [vmem:[#allocation34_spill] sm:$0xff] %v12061_v1 }
 0x1ee   : > { %v11851_v19 = vsel %vm900_vm1, %v936_v13, %v15585_v17  ;;  %v1361_v13 = vrot.slane %v11758_v54, 2 }
 0x1ef   : > { %15794 = vst [vmem:[#allocation18_spill] sm:$0xff] %v11851_v19  ;;  %9707 = vmatmul.mubr.msk.f32.vlgmr.msra.gmra.mxu1 %vm940_vm2, %v11851_v19  ;;  %9771 = vmatmul.mubr.msk.f32.vlgmr.msra.gmra.mxu0 %vm940_vm2, %v1342_v22  ;;  %v1365_v22 = vrot.slane %v11778_v60, 2 }
 0x1f0   : > { %9710 = vmatpush3.msra.mxu1 %v877_v18  ;;  %9711 = vmatprep.mubr.msk.f32.mxu1 %vm11464_vm0, %v11463_v0  ;;  %v11977_v15 = vsel %vm1339_vm3, %v1359_v7, %v1361_v13  ;;  %v11989_v18 = vsel %vm1339_vm3, %v1361_v13, %v1363_v16  ;;  %v15584_v7 = vrot.slane %v11839_v38, 2 }
 0x1f1   : > { %9773 = vmatprep.mubr.msk.f32.mxu0 %vm11464_vm0, %v11463_v0  ;;  %9827 = vmatprep.subr.mxu1 %v11463_v0  ;;  %15803 = vst [vmem:[#allocation27_spill] sm:$0xff] %v11977_v15  ;;  %15804 = vst [vmem:[#allocation28_spill] sm:$0xff] %v11989_v18  ;;  %v12001_v23 = vsel %vm1339_vm3, %v1363_v16, %v1365_v22  ;;  %v1859_v16 = vrot.slane %v11661_v21, 4 }
 0x1f2   : > { %9887 = vmatpush3.msra.mxu0 %v8547_v24  ;;  %15805 = vst [vmem:[#allocation29_spill] sm:$0xff] %v12001_v23  ;;  %v1367_v24 = vrot.slane %v11788_v63, 2  ;;  %v12075_v13 = vsel %vm1339_vm3, %v1375_v58, %v15584_v7  ;;  %v1599_v58 = vrot.slane %v11659_v20, 3 }
 0x1f3   : > { %9712 = vmatmul.mubr.msk.f32.vlgmr.msra.gmra.mxu1 %vm940_vm2, %v11659_v20  ;;  %9774 = vmatmul.mubr.msk.f32.gmra.mxu0 %vm940_vm2, %v1344_v27  ;;  %v1369_v27 = vrot.slane %v11798_v3, 2  ;;  %15811 = vst [vmem:[#allocation35_spill] sm:$0xff] %v12075_v13 }
 0x1f4   : > { %9828 = vmatpush3.msra.mxu1 %v8527_v25  ;;  %9714 = vmatprep.mubr.msk.f32.mxu1 %vm11464_vm0, %v11463_v0  ;;  %v12013_v25 = vsel %vm1339_vm3, %v1365_v22, %v1367_v24  ;;  %v1858_v22 = vrot.slane %v11659_v20, 4 }
 0x1f5   : > { %9776 = vmatprep.mubr.msk.f32.mxu0 %vm11464_vm0, %v11463_v0  ;;  %9945 = vmatprep.subr.mxu1 %v11463_v0  ;;  %15806 = vst [vmem:[#allocation30_spill] sm:$0xff] %v12013_v25  ;;  %v12025_v28 = vsel %vm1339_vm3, %v1367_v24, %v1369_v27  ;;  %v12037_v40 = vsel %vm1339_vm3, %v1369_v27, %v1371_v33  ;;  %v1600_v27 = vrot.slane %v11661_v21, 3  ;;  %v1861_v33 = vrot.slane %v11670_v26, 4 }
 0x1f6   : > { %10004 = vmatprep.subr.mxu0 %v11463_v0  ;;  %15807 = vst [vmem:[#allocation31_spill] sm:$0xff] %v12025_v28  ;;  %15808 = vst [vmem:[#allocation32_spill] sm:$0xff] %v12037_v40  ;;  %v1860_v24 = vsel %vm1857_vm4, %v1858_v22, %v1859_v16  ;;  %v8567_v22 = vld [vmem:[%s15576_s2 + $0x28] sm:$0xff] }
 0x1f7   : > { %9715 = vmatmul.mubr.msk.f32.gmra.mxu1 %vm940_vm2, %v11661_v21  ;;  %9777 = vmatmul.mubr.msk.f32.gmra.mxu0 %vm940_vm2, %v11880_v30  ;;  %v1601_v7 = vsel %vm1598_vm5, %v1599_v58, %v1600_v27  ;;  %v1862_v17 = vsel %vm1857_vm4, %v1859_v16, %v1861_v33  ;;  %v1865_v58 = vrot.slane %v11688_v32, 4 }
 0x1f8   : > { %9717 = vmatprep.mubr.msk.f32.mxu1 %vm11464_vm0, %v11463_v0  ;;  %9779 = vmatprep.mubr.msk.f32.mxu0 %vm11464_vm0, %v11463_v0 }
 0x1fb   : > { %9718 = vmatmul.mubr.msk.f32.gmra.mxu1 %vm940_vm2, %v11670_v26  ;;  %9780 = vmatmul.mubr.msk.f32.gmra.mxu0 %vm940_vm2, %v11893_v36 }
 0x1fc   : > { %9720 = vmatprep.mubr.msk.f32.mxu1 %vm11464_vm0, %v11463_v0  ;;  %9782 = vmatprep.mubr.msk.f32.mxu0 %vm11464_vm0, %v11463_v0 }
 0x1ff   : > { %9721 = vmatmul.mubr.msk.f32.gmra.mxu1 %vm940_vm2, %v11678_v29  ;;  %9783 = vmatmul.mubr.msk.f32.gmra.mxu0 %vm940_vm2, %v11905_v43 }
 0x200   : > { %9723 = vmatprep.mubr.msk.f32.mxu1 %vm11464_vm0, %v11463_v0  ;;  %9785 = vmatprep.mubr.msk.f32.mxu0 %vm11464_vm0, %v11463_v0 }
 0x203   : > { %9724 = vmatmul.mubr.msk.f32.gmra.mxu1 %vm940_vm2, %v11688_v32  ;;  %9786 = vmatmul.mubr.msk.f32.gmra.mxu0 %vm940_vm2, %v11917_v49  ;;  %v2382_v49 = vrot.slane %v11688_v32, 7 }
 0x204   : > { %9726 = vmatprep.mubr.msk.f32.mxu1 %vm11464_vm0, %v11463_v0  ;;  %9788 = vmatprep.mubr.msk.f32.mxu0 %vm11464_vm0, %v11463_v0 }
 0x207   : > { %9727 = vmatmul.mubr.msk.f32.gmra.mxu1 %vm940_vm2, %v11698_v35  ;;  %9789 = vmatmul.mubr.msk.f32.gmra.mxu0 %vm940_vm2, %v11929_v55  ;;  %v8627_v55 = vld [vmem:[%s15576_s2 + $0x40] sm:$0xff] }
 0x208   : > { %9729 = vmatprep.mubr.msk.f32.mxu1 %vm11464_vm0, %v11463_v0  ;;  %9791 = vmatprep.mubr.msk.f32.mxu0 %vm11464_vm0, %v11463_v0 }
 0x20b   : > { %9730 = vmatmul.mubr.msk.f32.gmra.mxu1 %vm940_vm2, %v11708_v39  ;;  %9792 = vmatmul.mubr.msk.f32.gmra.mxu0 %vm940_vm2, %v11941_v61 }
 0x20c   : > { %9732 = vmatprep.mubr.msk.f32.mxu1 %vm11464_vm0, %v11463_v0  ;;  %9794 = vmatprep.mubr.msk.f32.mxu0 %vm11464_vm0, %v11463_v0 }
 0x20f   : > { %9733 = vmatmul.mubr.msk.f32.gmra.mxu1 %vm940_vm2, %v11718_v42  ;;  %9795 = vmatmul.mubr.msk.f32.gmra.mxu0 %vm940_vm2, %v11953_v4 }
 0x210   : > { %9735 = vmatprep.mubr.msk.f32.mxu1 %vm11464_vm0, %v11463_v0  ;;  %9797 = vmatprep.mubr.msk.f32.mxu0 %vm11464_vm0, %v11463_v0 }
 0x213   : > { %9736 = vmatmul.mubr.msk.f32.gmra.mxu1 %vm940_vm2, %v11728_v45  ;;  %9798 = vmatmul.mubr.msk.f32.gmra.mxu0 %vm940_vm2, %v11965_v10 }
 0x214   : > { %9738 = vmatprep.mubr.msk.f32.mxu1 %vm11464_vm0, %v11463_v0  ;;  %9800 = vmatprep.mubr.msk.f32.mxu0 %vm11464_vm0, %v11463_v0 }
 0x217   : > { %9739 = vmatmul.mubr.msk.f32.gmra.mxu1 %vm940_vm2, %v11738_v48  ;;  %9801 = vmatmul.mubr.msk.f32.gmra.mxu0 %vm940_vm2, %v11977_v15  ;;  %v1624_v15 = vrot.slane %v11778_v60, 3 }
 0x218   : > { %9741 = vmatprep.mubr.msk.f32.mxu1 %vm11464_vm0, %v11463_v0  ;;  %9803 = vmatprep.mubr.msk.f32.mxu0 %vm11464_vm0, %v11463_v0 }
 0x21b   : > { %9742 = vmatmul.mubr.msk.f32.gmra.mxu1 %vm940_vm2, %v11748_v51  ;;  %9804 = vmatmul.mubr.msk.f32.gmra.mxu0 %vm940_vm2, %v11989_v18 }
 0x21c   : > { %9744 = vmatprep.mubr.msk.f32.mxu1 %vm11464_vm0, %v11463_v0  ;;  %9806 = vmatprep.mubr.msk.f32.mxu0 %vm11464_vm0, %v11463_v0 }
 0x21f   : > { %9745 = vmatmul.mubr.msk.f32.gmra.mxu1 %vm940_vm2, %v11758_v54  ;;  %9807 = vmatmul.mubr.msk.f32.gmra.mxu0 %vm940_vm2, %v12001_v23  ;;  %v1883_v23 = vrot.slane %v11778_v60, 4 }
 0x220   : > { %9747 = vmatprep.mubr.msk.f32.mxu1 %vm11464_vm0, %v11463_v0  ;;  %9809 = vmatprep.mubr.msk.f32.mxu0 %vm11464_vm0, %v11463_v0 }
 0x223   : > { %9748 = vmatmul.mubr.msk.f32.gmra.mxu1 %vm940_vm2, %v11768_v57  ;;  %9810 = vmatmul.mubr.msk.f32.gmra.mxu0 %vm940_vm2, %v12013_v25  ;;  %v1881_v25 = vrot.slane %v11768_v57, 4 }
 0x224   : > { %9750 = vmatprep.mubr.msk.f32.mxu1 %vm11464_vm0, %v11463_v0  ;;  %9812 = vmatprep.mubr.msk.f32.mxu0 %vm11464_vm0, %v11463_v0 }
 0x225   : > { %v12267_v18 = vsel %vm1857_vm4, %v1881_v25, %v1883_v23 }
 0x226   : > { %15828 = vst [vmem:[#allocation52_spill] sm:$0xff] %v12267_v18 }
 0x227   : > { %9751 = vmatmul.mubr.msk.f32.gmra.mxu1 %vm940_vm2, %v11778_v60  ;;  %9813 = vmatmul.mubr.msk.f32.gmra.mxu0 %vm940_vm2, %v12025_v28  ;;  %v1879_v28 = vrot.slane %v11758_v54, 4 }
 0x228   : > { %9753 = vmatprep.mubr.msk.f32.mxu1 %vm11464_vm0, %v11463_v0  ;;  %9815 = vmatprep.mubr.msk.f32.mxu0 %vm11464_vm0, %v11463_v0 }
 0x22b   : > { %9754 = vmatmul.mubr.msk.f32.gmra.mxu1 %vm940_vm2, %v11788_v63  ;;  %9816 = vmatmul.mubr.msk.f32.gmra.mxu0 %vm940_vm2, %v12037_v40  ;;  %v1877_v40 = vrot.slane %v11748_v51, 4 }
 0x22c   : > { %9756 = vmatprep.mubr.msk.f32.mxu1 %vm11464_vm0, %v11463_v0  ;;  %9818 = vmatprep.mubr.msk.f32.mxu0 %vm11464_vm0, %v11463_v0 }
 0x22f   : > { %9757 = vmatmul.mubr.msk.f32.gmra.mxu1 %vm940_vm2, %v11798_v3  ;;  %9819 = vmatmul.mubr.msk.f32.gmra.mxu0 %vm940_vm2, %v12049_v52  ;;  %v1875_v52 = vrot.slane %v11738_v48, 4 }
 0x230   : > { %9759 = vmatprep.mubr.msk.f32.mxu1 %vm11464_vm0, %v11463_v0  ;;  %9821 = vmatprep.mubr.msk.f32.mxu0 %vm11464_vm0, %v11463_v0 }
 0x233   : > { %9760 = vmatmul.mubr.msk.f32.gmra.mxu1 %vm940_vm2, %v11808_v6  ;;  %9822 = vmatmul.mubr.msk.f32.gmra.mxu0 %vm940_vm2, %v12061_v1  ;;  %v1873_v1 = vrot.slane %v11728_v45, 4 }
 0x234   : > { %9762 = vmatprep.mubr.msk.f32.mxu1 %vm11464_vm0, %v11463_v0  ;;  %9824 = vmatprep.mubr.msk.f32.mxu0 %vm11464_vm0, %v11463_v0 }
 0x237   : > { %9763 = vmatmul.mubr.msk.f32.gmra.mxu1 %vm940_vm2, %v11818_v9  ;;  %9825 = vmatmul.mubr.msk.f32.gmra.mxu0 %vm940_vm2, %v12075_v13  ;;  %v1863_v13 = vrot.slane %v11678_v29, 4 }
 0x238   : > { %9765 = vmatprep.mubr.msk.f32.mxu1 %vm11464_vm0, %v11463_v0  ;;  %9888 = vmatprep.mubr.msk.f32.mxu0 %vm11464_vm0, %v11463_v0 }
 0x239   : > { %v1864_v16 = vsel %vm1857_vm4, %v1861_v33, %v1863_v13  ;;  %v1867_v33 = vrot.slane %v11698_v35, 4 }
 0x23b   : > { %9766 = vmatmul.mubr.msk.f32.gmra.mxu1 %vm940_vm2, %v11828_v12  ;;  %9889 = vmatmul.mubr.msk.f32.vlgmr.msra.gmra.mxu0 %vm940_vm2, %v1860_v24  ;;  %v1602_v24 = vrot.slane %v11670_v26, 3 }
 0x23c   : > { %9829 = vmatprep.mubr.msk.f32.mxu1 %vm11464_vm0, %v11463_v0  ;;  %9891 = vmatprep.mubr.msk.f32.mxu0 %vm11464_vm0, %v11463_v0 }
 0x23d   : > { %10005 = vmatpush3.msra.mxu0 %v8587_v46  ;;  %v1603_v20 = vsel %vm1598_vm5, %v1600_v27, %v1602_v24  ;;  %v1604_v46 = vrot.slane %v11678_v29, 3  ;;  %v1606_v27 = vrot.slane %v11688_v32, 3 }
 0x23e   : > { %10122 = vmatprep.subr.mxu0 %v11463_v0 }
 0x23f   : > { %9830 = vmatmul.mubr.msk.f32.vlgmr.msra.gmra.mxu1 %vm940_vm2, %v1601_v7  ;;  %9892 = vmatmul.mubr.msk.f32.gmra.mxu0 %vm940_vm2, %v1862_v17  ;;  %v1605_v17 = vsel %vm1598_vm5, %v1602_v24, %v1604_v46  ;;  %v12128_v7 = vsel %vm1857_vm4, %v1863_v13, %v1865_v58  ;;  %v12141_v13 = vsel %vm1857_vm4, %v1865_v58, %v1867_v33  ;;  %v1608_v24 = vrot.slane %v11698_v35, 3 }
 0x240   : > { %9946 = vmatpush3.msra.mxu1 %v8567_v22  ;;  %9832 = vmatprep.mubr.msk.f32.mxu1 %vm11464_vm0, %v11463_v0  ;;  %15812 = vst [vmem:[#allocation36_spill] sm:$0xff] %v12128_v7  ;;  %v1607_v22 = vsel %vm1598_vm5, %v1604_v46, %v1606_v27  ;;  %15813 = vst [vmem:[#allocation37_spill] sm:$0xff] %v12141_v13  ;;  %v1610_v58 = vrot.slane %v11708_v39, 3 }
 0x241   : > { %9894 = vmatprep.mubr.msk.f32.mxu0 %vm11464_vm0, %v11463_v0  ;;  %10063 = vmatprep.subr.mxu1 %v11463_v0 }
 0x243   : > { %9833 = vmatmul.mubr.msk.f32.gmra.mxu1 %vm940_vm2, %v1603_v20  ;;  %9895 = vmatmul.mubr.msk.f32.gmra.mxu0 %vm940_vm2, %v1864_v16  ;;  %v1869_v20 = vrot.slane %v11708_v39, 4  ;;  %v1609_v16 = vsel %vm1598_vm5, %v1606_v27, %v1608_v24  ;;  %v12166_v27 = vsel %vm1598_vm5, %v1608_v24, %v1610_v58 }
 0x244   : > { %9835 = vmatprep.mubr.msk.f32.mxu1 %vm11464_vm0, %v11463_v0  ;;  %9897 = vmatprep.mubr.msk.f32.mxu0 %vm11464_vm0, %v11463_v0  ;;  %15815 = vst [vmem:[#allocation39_spill] sm:$0xff] %v12166_v27 }
 0x245   : > { %v12154_v46 = vsel %vm1857_vm4, %v1867_v33, %v1869_v20 }
 0x246   : > { %15814 = vst [vmem:[#allocation38_spill] sm:$0xff] %v12154_v46 }
 0x247   : > { %9836 = vmatmul.mubr.msk.f32.gmra.mxu1 %vm940_vm2, %v1605_v17  ;;  %9898 = vmatmul.mubr.msk.f32.gmra.mxu0 %vm940_vm2, %v12128_v7  ;;  %v1871_v17 = vrot.slane %v11718_v42, 4 }
 0x248   : > { %9838 = vmatprep.mubr.msk.f32.mxu1 %vm11464_vm0, %v11463_v0  ;;  %9900 = vmatprep.mubr.msk.f32.mxu0 %vm11464_vm0, %v11463_v0 }
 0x249   : > { %v12169_v33 = vsel %vm1857_vm4, %v1869_v20, %v1871_v17  ;;  %v12185_v20 = vsel %vm1857_vm4, %v1871_v17, %v1873_v1  ;;  %v12201_v17 = vsel %vm1857_vm4, %v1873_v1, %v1875_v52  ;;  %v12217_v1 = vsel %vm1857_vm4, %v1875_v52, %v1877_v40 }
 0x24a   : > { %15816 = vst [vmem:[#allocation40_spill] sm:$0xff] %v12169_v33  ;;  %15818 = vst [vmem:[#allocation42_spill] sm:$0xff] %v12185_v20  ;;  %v12233_v52 = vsel %vm1857_vm4, %v1877_v40, %v1879_v28  ;;  %v12249_v40 = vsel %vm1857_vm4, %v1879_v28, %v1881_v25 }
 0x24b   : > { %9839 = vmatmul.mubr.msk.f32.gmra.mxu1 %vm940_vm2, %v1607_v22  ;;  %9901 = vmatmul.mubr.msk.f32.gmra.mxu0 %vm940_vm2, %v12141_v13  ;;  %v1612_v22 = vrot.slane %v11718_v42, 3  ;;  %15820 = vst [vmem:[#allocation44_spill] sm:$0xff] %v12201_v17  ;;  %15822 = vst [vmem:[#allocation46_spill] sm:$0xff] %v12217_v1 }
 0x24c   : > { %9841 = vmatprep.mubr.msk.f32.mxu1 %vm11464_vm0, %v11463_v0  ;;  %9903 = vmatprep.mubr.msk.f32.mxu0 %vm11464_vm0, %v11463_v0  ;;  %15824 = vst [vmem:[#allocation48_spill] sm:$0xff] %v12233_v52  ;;  %15826 = vst [vmem:[#allocation50_spill] sm:$0xff] %v12249_v40 }
 0x24d   : > { %v12182_v24 = vsel %vm1598_vm5, %v1610_v58, %v1612_v22 }
 0x24e   : > { %15817 = vst [vmem:[#allocation41_spill] sm:$0xff] %v12182_v24 }
 0x24f   : > { %9842 = vmatmul.mubr.msk.f32.gmra.mxu1 %vm940_vm2, %v1609_v16  ;;  %9904 = vmatmul.mubr.msk.f32.gmra.mxu0 %vm940_vm2, %v12154_v46  ;;  %v1614_v16 = vrot.slane %v11728_v45, 3 }
 0x250   : > { %9844 = vmatprep.mubr.msk.f32.mxu1 %vm11464_vm0, %v11463_v0  ;;  %9906 = vmatprep.mubr.msk.f32.mxu0 %vm11464_vm0, %v11463_v0 }
 0x251   : > { %v12198_v58 = vsel %vm1598_vm5, %v1612_v22, %v1614_v16 }
 0x252   : > { %15819 = vst [vmem:[#allocation43_spill] sm:$0xff] %v12198_v58 }
 0x253   : > { %9845 = vmatmul.mubr.msk.f32.gmra.mxu1 %vm940_vm2, %v12166_v27  ;;  %9907 = vmatmul.mubr.msk.f32.gmra.mxu0 %vm940_vm2, %v12169_v33  ;;  %v1616_v27 = vrot.slane %v11738_v48, 3 }
 0x254   : > { %9847 = vmatprep.mubr.msk.f32.mxu1 %vm11464_vm0, %v11463_v0  ;;  %9909 = vmatprep.mubr.msk.f32.mxu0 %vm11464_vm0, %v11463_v0 }
 0x255   : > { %v12214_v22 = vsel %vm1598_vm5, %v1614_v16, %v1616_v27 }
 0x256   : > { %15821 = vst [vmem:[#allocation45_spill] sm:$0xff] %v12214_v22 }
 0x257   : > { %9848 = vmatmul.mubr.msk.f32.gmra.mxu1 %vm940_vm2, %v12182_v24  ;;  %9910 = vmatmul.mubr.msk.f32.gmra.mxu0 %vm940_vm2, %v12185_v20  ;;  %v1618_v24 = vrot.slane %v11748_v51, 3 }
 0x258   : > { %9850 = vmatprep.mubr.msk.f32.mxu1 %vm11464_vm0, %v11463_v0  ;;  %9912 = vmatprep.mubr.msk.f32.mxu0 %vm11464_vm0, %v11463_v0 }
 0x259   : > { %v12230_v16 = vsel %vm1598_vm5, %v1616_v27, %v1618_v24 }
 0x25a   : > { %15823 = vst [vmem:[#allocation47_spill] sm:$0xff] %v12230_v16 }
 0x25b   : > { %9851 = vmatmul.mubr.msk.f32.gmra.mxu1 %vm940_vm2, %v12198_v58  ;;  %9913 = vmatmul.mubr.msk.f32.gmra.mxu0 %vm940_vm2, %v12201_v17  ;;  %v1620_v58 = vrot.slane %v11758_v54, 3 }
 0x25c   : > { %9853 = vmatprep.mubr.msk.f32.mxu1 %vm11464_vm0, %v11463_v0  ;;  %9915 = vmatprep.mubr.msk.f32.mxu0 %vm11464_vm0, %v11463_v0 }
 0x25d   : > { %v12246_v27 = vsel %vm1598_vm5, %v1618_v24, %v1620_v58 }
 0x25e   : > { %15825 = vst [vmem:[#allocation49_spill] sm:$0xff] %v12246_v27 }
 0x25f   : > { %9854 = vmatmul.mubr.msk.f32.gmra.mxu1 %vm940_vm2, %v12214_v22  ;;  %9916 = vmatmul.mubr.msk.f32.gmra.mxu0 %vm940_vm2, %v12217_v1  ;;  %v1622_v22 = vrot.slane %v11768_v57, 3 }
 0x260   : > { %9856 = vmatprep.mubr.msk.f32.mxu1 %vm11464_vm0, %v11463_v0  ;;  %9918 = vmatprep.mubr.msk.f32.mxu0 %vm11464_vm0, %v11463_v0 }
 0x261   : > { %v12264_v24 = vsel %vm1598_vm5, %v1620_v58, %v1622_v22  ;;  %v12282_v58 = vsel %vm1598_vm5, %v1622_v22, %v1624_v15 }
 0x262   : > { %15827 = vst [vmem:[#allocation51_spill] sm:$0xff] %v12264_v24  ;;  %15829 = vst [vmem:[#allocation53_spill] sm:$0xff] %v12282_v58 }
 0x263   : > { %9857 = vmatmul.mubr.msk.f32.gmra.mxu1 %vm940_vm2, %v12230_v16  ;;  %9919 = vmatmul.mubr.msk.f32.gmra.mxu0 %vm940_vm2, %v12233_v52 }
 0x264   : > { %9859 = vmatprep.mubr.msk.f32.mxu1 %vm11464_vm0, %v11463_v0  ;;  %9921 = vmatprep.mubr.msk.f32.mxu0 %vm11464_vm0, %v11463_v0 }
 0x267   : > { %v12253_v16 = vpop.f32.mrf.mxu0  ;;  %9860 = vmatmul.mubr.msk.f32.gmra.mxu1 %vm940_vm2, %v12246_v27  ;;  %9922 = vmatmul.mubr.msk.f32.gmra.mxu0 %vm940_vm2, %v12249_v40  ;;  %v1885_v27 = vrot.slane %v11788_v63, 4  ;;  %v1626_v40 = vrot.slane %v11788_v63, 3 }
 0x268   : > { %9862 = vmatprep.mubr.msk.f32.mxu1 %vm11464_vm0, %v11463_v0  ;;  %9924 = vmatprep.mubr.msk.f32.mxu0 %vm11464_vm0, %v11463_v0 }
 0x269   : > { %v9654_v28 = vpop.f32.mrf.mxu0  ;;  %v12300_v22 = vsel %vm1598_vm5, %v1624_v15, %v1626_v40 }
 0x26a   : > { %v12285_v28 = vsel %vm1857_vm4, %v1883_v23, %v1885_v27  ;;  %15831 = vst [vmem:[#allocation55_spill] sm:$0xff] %v12300_v22 }
 0x26b   : > { %v12271_v10 = vpop.f32.mrf.mxu0  ;;  %9863 = vmatmul.mubr.msk.f32.gmra.mxu1 %vm940_vm2, %v12264_v24  ;;  %9925 = vmatmul.mubr.msk.f32.gmra.mxu0 %vm940_vm2, %v12267_v18  ;;  %15830 = vst [vmem:[#allocation54_spill] sm:$0xff] %v12285_v28  ;;  %v1887_v24 = vrot.slane %v11798_v3, 4  ;;  %v1628_v18 = vrot.slane %v11798_v3, 3 }
 0x26c   : > { %9865 = vmatprep.mubr.msk.f32.mxu1 %vm11464_vm0, %v11463_v0  ;;  %9927 = vmatprep.mubr.msk.f32.mxu0 %vm11464_vm0, %v11463_v0 }
 0x26d   : > { %v9657_v25 = vpop.f32.mrf.mxu0 }
 0x26e   : > { %v12303_v25 = vsel %vm1857_vm4, %v1885_v27, %v1887_v24  ;;  %v12318_v27 = vsel %vm1598_vm5, %v1626_v40, %v1628_v18 }
 0x26f   : > { %v12289_v52 = vpop.f32.mrf.mxu0  ;;  %9866 = vmatmul.mubr.msk.f32.gmra.mxu1 %vm940_vm2, %v12282_v58  ;;  %9928 = vmatmul.mubr.msk.f32.gmra.mxu0 %vm940_vm2, %v12285_v28  ;;  %15832 = vst [vmem:[#allocation56_spill] sm:$0xff] %v12303_v25  ;;  %v1889_v58 = vrot.slane %v11808_v6, 4  ;;  %15833 = vst [vmem:[#allocation57_spill] sm:$0xff] %v12318_v27  ;;  %v1630_v28 = vrot.slane %v11808_v6, 3 }
 0x270   : > { %9868 = vmatprep.mubr.msk.f32.mxu1 %vm11464_vm0, %v11463_v0  ;;  %9930 = vmatprep.mubr.msk.f32.mxu0 %vm11464_vm0, %v11463_v0 }
 0x271   : > { %v9660_v23 = vpop.f32.mrf.mxu0 }
 0x272   : > { %v12321_v23 = vsel %vm1857_vm4, %v1887_v24, %v1889_v58  ;;  %v12336_v24 = vsel %vm1598_vm5, %v1628_v18, %v1630_v28 }
 0x273   : > { %v12307_v4 = vpop.f32.mrf.mxu0  ;;  %9869 = vmatmul.mubr.msk.f32.gmra.mxu1 %vm940_vm2, %v12300_v22  ;;  %9931 = vmatmul.mubr.msk.f32.gmra.mxu0 %vm940_vm2, %v12303_v25  ;;  %15834 = vst [vmem:[#allocation58_spill] sm:$0xff] %v12321_v23  ;;  %v1891_v22 = vrot.slane %v11818_v9, 4  ;;  %15835 = vst [vmem:[#allocation59_spill] sm:$0xff] %v12336_v24  ;;  %v1632_v25 = vrot.slane %v11818_v9, 3 }
 0x274   : > { %9871 = vmatprep.mubr.msk.f32.mxu1 %vm11464_vm0, %v11463_v0  ;;  %9933 = vmatprep.mubr.msk.f32.mxu0 %vm11464_vm0, %v11463_v0 }
 0x275   : > { %v9663_v15 = vpop.f32.mrf.mxu0 }
 0x276   : > { %v12339_v15 = vsel %vm1857_vm4, %v1889_v58, %v1891_v22  ;;  %v12354_v58 = vsel %vm1598_vm5, %v1630_v28, %v1632_v25 }
 0x277   : > { %v12325_v1 = vpop.f32.mrf.mxu0  ;;  %9872 = vmatmul.mubr.msk.f32.gmra.mxu1 %vm940_vm2, %v12318_v27  ;;  %9934 = vmatmul.mubr.msk.f32.gmra.mxu0 %vm940_vm2, %v12321_v23  ;;  %15836 = vst [vmem:[#allocation60_spill] sm:$0xff] %v12339_v15  ;;  %v1893_v27 = vrot.slane %v11828_v12, 4  ;;  %15837 = vst [vmem:[#allocation61_spill] sm:$0xff] %v12354_v58  ;;  %v1634_v23 = vrot.slane %v11828_v12, 3 }
 0x278   : > { %9874 = vmatprep.mubr.msk.f32.mxu1 %vm11464_vm0, %v11463_v0  ;;  %9936 = vmatprep.mubr.msk.f32.mxu0 %vm11464_vm0, %v11463_v0 }
 0x279   : > { %v9666_v40 = vpop.f32.mrf.mxu0 }
 0x27a   : > { %v12357_v40 = vsel %vm1857_vm4, %v1891_v22, %v1893_v27  ;;  %v12372_v22 = vsel %vm1598_vm5, %v1632_v25, %v1634_v23  ;;  %v2377_v25 = vrot.slane %v11661_v21, 7 }
 0x27b   : > { %v12343_v61 = vpop.f32.mrf.mxu0  ;;  %9875 = vmatmul.mubr.msk.f32.gmra.mxu1 %vm940_vm2, %v12336_v24  ;;  %9937 = vmatmul.mubr.msk.f32.gmra.mxu0 %vm940_vm2, %v12339_v15  ;;  %15838 = vst [vmem:[#allocation62_spill] sm:$0xff] %v12357_v40  ;;  %v15652_v24 = vrot.slane %v11839_v38, 4  ;;  %15839 = vst [vmem:[#allocation63_spill] sm:$0xff] %v12372_v22  ;;  %v2378_v15 = vrot.slane %v11670_v26, 7 }
 0x27c   : > { %9877 = vmatprep.mubr.msk.f32.mxu1 %vm11464_vm0, %v11463_v0  ;;  %9939 = vmatprep.mubr.msk.f32.mxu0 %vm11464_vm0, %v11463_v0 }
 0x27d   : > { %v9669_v18 = vpop.f32.mrf.mxu0 }
 0x27e   : > { %v12377_v18 = vsel %vm1857_vm4, %v1893_v27, %v15652_v24  ;;  %v2379_v24 = vsel %vm2376_vm6, %v2377_v25, %v2378_v15 }
 0x27f   : > { %v12361_v17 = vpop.f32.mrf.mxu0  ;;  %9878 = vmatmul.mubr.msk.f32.gmra.mxu1 %vm940_vm2, %v12354_v58  ;;  %9940 = vmatmul.mubr.msk.f32.gmra.mxu0 %vm940_vm2, %v12357_v40  ;;  %15840 = vst [vmem:[#allocation64_spill] sm:$0xff] %v12377_v18  ;;  %v15661_v58 = vrot.slane %v11839_v38, 3 }
 0x280   : > { %9880 = vmatprep.mubr.msk.f32.mxu1 %vm11464_vm0, %v11463_v0  ;;  %9942 = vmatprep.mubr.msk.f32.mxu0 %vm11464_vm0, %v11463_v0 }
 0x281   : > { %v9672_v28 = vpop.f32.mrf.mxu0 }
 0x282   : > { %v12395_v28 = vsel %vm1598_vm5, %v1634_v23, %v15661_v58  ;;  %v2118_v23 = vrot.slane %v11661_v21, 6 }
 0x283   : > { %v12381_v40 = vpop.f32.mrf.mxu0  ;;  %9881 = vmatmul.mubr.msk.f32.gmra.mxu1 %vm940_vm2, %v12372_v22  ;;  %9943 = vmatmul.mubr.msk.f32.gmra.mxu0 %vm940_vm2, %v12377_v18  ;;  %15841 = vst [vmem:[#allocation65_spill] sm:$0xff] %v12395_v28  ;;  %v2119_v22 = vrot.slane %v11670_v26, 6  ;;  %v2380_v18 = vrot.slane %v11678_v29, 7 }
 0x284   : > { %9883 = vmatprep.mubr.msk.f32.mxu1 %vm11464_vm0, %v11463_v0  ;;  %10006 = vmatprep.mubr.msk.f32.mxu0 %vm11464_vm0, %v11463_v0 }
 0x285   : > { %v9675_v27 = vpop.f32.mrf.mxu0  ;;  %v2120_v58 = vsel %vm2117_vm7, %v2118_v23, %v2119_v22  ;;  %v2123_v23 = vrot.slane %v11688_v32, 6 }
 0x286   : > { %v8607_v27 = vld [vmem:[%s15576_s2 + $0x38] sm:$0xff] }
 0x287   : > { %v12403_v20 = vpop.f32.mrf.mxu0  ;;  %9884 = vmatmul.mubr.msk.f32.gmra.mxu1 %vm940_vm2, %v12395_v28  ;;  %10007 = vmatmul.mubr.msk.f32.vlgmr.msra.gmra.mxu0 %vm940_vm2, %v2379_v24  ;;  %v2381_v28 = vsel %vm2376_vm6, %v2378_v15, %v2380_v18  ;;  %v2121_v24 = vrot.slane %v11678_v29, 6  ;;  %v12432_v15 = vsel %vm2376_vm6, %v2380_v18, %v2382_v49 }
 0x288   : > { %9947 = vmatprep.mubr.msk.f32.mxu1 %vm11464_vm0, %v11463_v0  ;;  %10009 = vmatprep.mubr.msk.f32.mxu0 %vm11464_vm0, %v11463_v0  ;;  %15842 = vst [vmem:[#allocation66_spill] sm:$0xff] %v12432_v15 }
 0x289   : > { %v9678_v25 = vpop.f32.mrf.mxu0  ;;  %10123 = vmatpush3.msra.mxu0 %v8627_v55  ;;  %v2122_v55 = vsel %vm2117_vm7, %v2119_v22, %v2121_v24  ;;  %v12446_v18 = vsel %vm2117_vm7, %v2121_v24, %v2123_v23 }
 0x28a   : > { %10240 = vmatprep.subr.mxu0 %v11463_v0  ;;  %15843 = vst [vmem:[#allocation67_spill] sm:$0xff] %v12446_v18 }
 0x28b   : > { %v12421_v33 = vpop.f32.mrf.mxu0  ;;  %9948 = vmatmul.mubr.msk.f32.vlgmr.msra.gmra.mxu1 %vm940_vm2, %v2120_v58  ;;  %10010 = vmatmul.mubr.msk.f32.gmra.mxu0 %vm940_vm2, %v2381_v28  ;;  %v2384_v58 = vrot.slane %v11698_v35, 7 }
 0x28c   : > { %10064 = vmatpush3.msra.mxu1 %v8607_v27  ;;  %9950 = vmatprep.mubr.msk.f32.mxu1 %vm11464_vm0, %v11463_v0  ;;  %v2125_v27 = vrot.slane %v11698_v35, 6 }
 0x28d   : > { %v9681_v21 = vpop.f32.mrf.mxu0  ;;  %10012 = vmatprep.mubr.msk.f32.mxu0 %vm11464_vm0, %v11463_v0  ;;  %10181 = vmatprep.subr.mxu1 %v11463_v0  ;;  %v12449_v25 = vsel %vm2376_vm6, %v2382_v49, %v2384_v58 }
 0x28e   : > { %15844 = vst [vmem:[#allocation68_spill] sm:$0xff] %v12449_v25  ;;  %v2386_v21 = vrot.slane %v11708_v39, 7  ;;  %v12464_v24 = vsel %vm2117_vm7, %v2123_v23, %v2125_v27 }
 0x28f   : > { %v12436_v28 = vpop.f32.mrf.mxu0  ;;  %9951 = vmatmul.mubr.msk.f32.gmra.mxu1 %vm940_vm2, %v2122_v55  ;;  %10013 = vmatmul.mubr.msk.f32.gmra.mxu0 %vm940_vm2, %v12432_v15  ;;  %15845 = vst [vmem:[#allocation69_spill] sm:$0xff] %v12464_v24  ;;  %v2127_v15 = vrot.slane %v11708_v39, 6 }
 0x290   : > { %9953 = vmatprep.mubr.msk.f32.mxu1 %vm11464_vm0, %v11463_v0  ;;  %10015 = vmatprep.mubr.msk.f32.mxu0 %vm11464_vm0, %v11463_v0 }
 0x291   : > { %v9684_v22 = vpop.f32.mrf.mxu0 }
 0x292   : > { %v12467_v22 = vsel %vm2376_vm6, %v2384_v58, %v2386_v21  ;;  %v12482_v58 = vsel %vm2117_vm7, %v2125_v27, %v2127_v15 }
 0x293   : > { %v12453_v55 = vpop.f32.mrf.mxu0  ;;  %9954 = vmatmul.mubr.msk.f32.gmra.mxu1 %vm940_vm2, %v12446_v18  ;;  %10016 = vmatmul.mubr.msk.f32.gmra.mxu0 %vm940_vm2, %v12449_v25  ;;  %15846 = vst [vmem:[#allocation70_spill] sm:$0xff] %v12467_v22  ;;  %v2388_v18 = vrot.slane %v11718_v42, 7  ;;  %15847 = vst [vmem:[#allocation71_spill] sm:$0xff] %v12482_v58  ;;  %v2129_v25 = vrot.slane %v11718_v42, 6 }
 0x294   : > { %9956 = vmatprep.mubr.msk.f32.mxu1 %vm11464_vm0, %v11463_v0  ;;  %10018 = vmatprep.mubr.msk.f32.mxu0 %vm11464_vm0, %v11463_v0 }
 0x295   : > { %v9687_v49 = vpop.f32.mrf.mxu0 }
 0x296   : > { %v12485_v49 = vsel %vm2376_vm6, %v2386_v21, %v2388_v18  ;;  %v12500_v21 = vsel %vm2117_vm7, %v2127_v15, %v2129_v25 }
 0x297   : > { %v12471_v43 = vpop.f32.mrf.mxu0  ;;  %9957 = vmatmul.mubr.msk.f32.gmra.mxu1 %vm940_vm2, %v12464_v24  ;;  %10019 = vmatmul.mubr.msk.f32.gmra.mxu0 %vm940_vm2, %v12467_v22  ;;  %15848 = vst [vmem:[#allocation72_spill] sm:$0xff] %v12485_v49  ;;  %v2390_v24 = vrot.slane %v11728_v45, 7  ;;  %15849 = vst [vmem:[#allocation73_spill] sm:$0xff] %v12500_v21  ;;  %v2131_v22 = vrot.slane %v11728_v45, 6 }
 0x298   : > { %9959 = vmatprep.mubr.msk.f32.mxu1 %vm11464_vm0, %v11463_v0  ;;  %10021 = vmatprep.mubr.msk.f32.mxu0 %vm11464_vm0, %v11463_v0 }
 0x299   : > { %v9690_v23 = vpop.f32.mrf.mxu0 }
 0x29a   : > { %v12503_v23 = vsel %vm2376_vm6, %v2388_v18, %v2390_v24  ;;  %v12518_v18 = vsel %vm2117_vm7, %v2129_v25, %v2131_v22 }
 0x29b   : > { %v12489_v46 = vpop.f32.mrf.mxu0  ;;  %9960 = vmatmul.mubr.msk.f32.gmra.mxu1 %vm940_vm2, %v12482_v58  ;;  %10022 = vmatmul.mubr.msk.f32.gmra.mxu0 %vm940_vm2, %v12485_v49  ;;  %15850 = vst [vmem:[#allocation74_spill] sm:$0xff] %v12503_v23  ;;  %v2392_v58 = vrot.slane %v11738_v48, 7  ;;  %15851 = vst [vmem:[#allocation75_spill] sm:$0xff] %v12518_v18  ;;  %v2133_v49 = vrot.slane %v11738_v48, 6 }
 0x29c   : > { %9962 = vmatprep.mubr.msk.f32.mxu1 %vm11464_vm0, %v11463_v0  ;;  %10024 = vmatprep.mubr.msk.f32.mxu0 %vm11464_vm0, %v11463_v0 }
 0x29d   : > { %v9693_v27 = vpop.f32.mrf.mxu0 }
 0x29e   : > { %v12521_v27 = vsel %vm2376_vm6, %v2390_v24, %v2392_v58  ;;  %v12536_v24 = vsel %vm2117_vm7, %v2131_v22, %v2133_v49 }
 0x29f   : > { %v12507_v36 = vpop.f32.mrf.mxu0  ;;  %9963 = vmatmul.mubr.msk.f32.gmra.mxu1 %vm940_vm2, %v12500_v21  ;;  %10025 = vmatmul.mubr.msk.f32.gmra.mxu0 %vm940_vm2, %v12503_v23  ;;  %15852 = vst [vmem:[#allocation76_spill] sm:$0xff] %v12521_v27  ;;  %v2394_v21 = vrot.slane %v11748_v51, 7  ;;  %15853 = vst [vmem:[#allocation77_spill] sm:$0xff] %v12536_v24  ;;  %v2135_v23 = vrot.slane %v11748_v51, 6 }
 0x2a0   : > { %9965 = vmatprep.mubr.msk.f32.mxu1 %vm11464_vm0, %v11463_v0  ;;  %10027 = vmatprep.mubr.msk.f32.mxu0 %vm11464_vm0, %v11463_v0 }
 0x2a1   : > { %v9696_v15 = vpop.f32.mrf.mxu0 }
 0x2a2   : > { %v12539_v15 = vsel %vm2376_vm6, %v2392_v58, %v2394_v21  ;;  %v12554_v58 = vsel %vm2117_vm7, %v2133_v49, %v2135_v23 }
 0x2a3   : > { %v12525_v13 = vpop.f32.mrf.mxu0  ;;  %9966 = vmatmul.mubr.msk.f32.gmra.mxu1 %vm940_vm2, %v12518_v18  ;;  %10028 = vmatmul.mubr.msk.f32.gmra.mxu0 %vm940_vm2, %v12521_v27  ;;  %15854 = vst [vmem:[#allocation78_spill] sm:$0xff] %v12539_v15  ;;  %v2396_v18 = vrot.slane %v11758_v54, 7  ;;  %15855 = vst [vmem:[#allocation79_spill] sm:$0xff] %v12554_v58  ;;  %v2137_v27 = vrot.slane %v11758_v54, 6 }
 0x2a4   : > { %9968 = vmatprep.mubr.msk.f32.mxu1 %vm11464_vm0, %v11463_v0  ;;  %10030 = vmatprep.mubr.msk.f32.mxu0 %vm11464_vm0, %v11463_v0 }
 0x2a5   : > { %v9699_v25 = vpop.f32.mrf.mxu0 }
 0x2a6   : > { %v12557_v25 = vsel %vm2376_vm6, %v2394_v21, %v2396_v18  ;;  %v12572_v21 = vsel %vm2117_vm7, %v2135_v23, %v2137_v27 }
 0x2a7   : > { %v12543_v30 = vpop.f32.mrf.mxu0  ;;  %9969 = vmatmul.mubr.msk.f32.gmra.mxu1 %vm940_vm2, %v12536_v24  ;;  %10031 = vmatmul.mubr.msk.f32.gmra.mxu0 %vm940_vm2, %v12539_v15  ;;  %15856 = vst [vmem:[#allocation80_spill] sm:$0xff] %v12557_v25  ;;  %v2398_v24 = vrot.slane %v11768_v57, 7  ;;  %15857 = vst [vmem:[#allocation81_spill] sm:$0xff] %v12572_v21  ;;  %v2139_v15 = vrot.slane %v11768_v57, 6 }
 0x2a8   : > { %9971 = vmatprep.mubr.msk.f32.mxu1 %vm11464_vm0, %v11463_v0  ;;  %10033 = vmatprep.mubr.msk.f32.mxu0 %vm11464_vm0, %v11463_v0 }
 0x2a9   : > { %v9702_v22 = vpop.f32.mrf.mxu0  ;;  %v12608_v5 = vsel %vm2117_vm7, %v2139_v15, %v2141_v11 }
 0x2aa   : > { %v12575_v22 = vsel %vm2376_vm6, %v2396_v18, %v2398_v24  ;;  %15861 = vst [vmem:[#allocation85_spill] sm:$0xff] %v12608_v5 }
 0x2ab   : > { %v12561_v7 = vpop.f32.mrf.mxu0  ;;  %9972 = vmatmul.mubr.msk.f32.gmra.mxu1 %vm940_vm2, %v12554_v58  ;;  %10034 = vmatmul.mubr.msk.f32.gmra.mxu0 %vm940_vm2, %v12557_v25  ;;  %15858 = vst [vmem:[#allocation82_spill] sm:$0xff] %v12575_v22  ;;  %v2400_v58 = vrot.slane %v11778_v60, 7 }
 0x2ac   : > { %9974 = vmatprep.mubr.msk.f32.mxu1 %vm11464_vm0, %v11463_v0  ;;  %10036 = vmatprep.mubr.msk.f32.mxu0 %vm11464_vm0, %v11463_v0 }
 0x2ad   : > { %v9705_v49 = vpop.f32.mrf.mxu0  ;;  %v12593_v14 = vsel %vm2376_vm6, %v2398_v24, %v2400_v58 }
 0x2ae   : > { %v12590_v49 = vsel %vm2117_vm7, %v2137_v27, %v2139_v15  ;;  %15860 = vst [vmem:[#allocation84_spill] sm:$0xff] %v12593_v14 }
 0x2af   : > { %v12579_v19 = vpop.f32.mrf.mxu1  ;;  %v1483_v25 = vpop.f32.mrf.mxu0  ;;  %9975 = vmatmul.mubr.msk.f32.gmra.mxu1 %vm940_vm2, %v12572_v21  ;;  %10037 = vmatmul.mubr.msk.f32.gmra.mxu0 %vm940_vm2, %v12575_v22  ;;  %15859 = vst [vmem:[#allocation83_spill] sm:$0xff] %v12590_v49  ;;  %v2402_v21 = vrot.slane %v11788_v63, 7 }
 0x2b0   : > { %9977 = vmatprep.mubr.msk.f32.mxu1 %vm11464_vm0, %v11463_v0  ;;  %10039 = vmatprep.mubr.msk.f32.mxu0 %vm11464_vm0, %v11463_v0 }
 0x2b1   : > { %v9708_v23 = vpop.f32.mrf.mxu1  ;;  %v9772_v18 = vpop.f32.mrf.mxu0 }
 0x2b2   : > { %v2143_v18 = vrot.slane %v11788_v63, 6 }
 0x2b3   : > { %v1243_v8 = vpop.f32.mrf.mxu1  ;;  %v1488_v22 = vpop.f32.mrf.mxu0  ;;  %9978 = vmatmul.mubr.msk.f32.gmra.mxu1 %vm940_vm2, %v12590_v49  ;;  %10040 = vmatmul.mubr.msk.f32.gmra.mxu0 %vm940_vm2, %v12593_v14  ;;  %v12611_v49 = vsel %vm2376_vm6, %v2400_v58, %v2402_v21  ;;  %v2404_v14 = vrot.slane %v11798_v3, 7 }
 0x2b4   : > { %v1244_v23 = vadd.f32 %v1243_v8, %v12253_v16  ;;  %9980 = vmatprep.mubr.msk.f32.mxu1 %vm11464_vm0, %v11463_v0  ;;  %10042 = vmatprep.mubr.msk.f32.mxu0 %vm11464_vm0, %v11463_v0  ;;  %15862 = vst [vmem:[#allocation86_spill] sm:$0xff] %v12611_v49 }
 0x2b5   : > { %v9713_v27 = vpop.f32.mrf.mxu1  ;;  %v9775_v24 = vpop.f32.mrf.mxu0 }
 0x2b6   : > { %v12614_v60 = vadd.f32 %v1483_v25, %v1244_v23  ;;  %v12626_v25 = vsel %vm2117_vm7, %v2141_v11, %v2143_v18  ;;  %v12629_v23 = vsel %vm2376_vm6, %v2402_v21, %v2404_v14  ;;  %v2145_v24 = vrot.slane %v11798_v3, 6 }
 0x2b7   : > { %v1248_v8 = vpop.f32.mrf.mxu1  ;;  %v1493_v16 = vpop.f32.mrf.mxu0  ;;  %9981 = vmatmul.mubr.msk.f32.gmra.mxu1 %vm940_vm2, %v12608_v5  ;;  %10043 = vmatmul.mubr.msk.f32.gmra.mxu0 %vm940_vm2, %v12611_v49  ;;  %15863 = vst [vmem:[#allocation87_spill] sm:$0xff] %v12626_v25  ;;  %15864 = vst [vmem:[#allocation88_spill] sm:$0xff] %v12629_v23  ;;  %v2406_v49 = vrot.slane %v11808_v6, 7 }
 0x2b8   : > { %v1249_v27 = vadd.f32 %v1248_v8, %v12271_v10  ;;  %9983 = vmatprep.mubr.msk.f32.mxu1 %vm11464_vm0, %v11463_v0  ;;  %10045 = vmatprep.mubr.msk.f32.mxu0 %vm11464_vm0, %v11463_v0 }
 0x2b9   : > { %v9716_v15 = vpop.f32.mrf.mxu1  ;;  %v9778_v58 = vpop.f32.mrf.mxu0 }
 0x2ba   : > { %v12633_v5 = vadd.f32 %v1488_v22, %v1249_v27  ;;  %v2147_v22 = vrot.slane %v11808_v6, 6  ;;  %v12646_v27 = vsel %vm2117_vm7, %v2143_v18, %v2145_v24  ;;  %v12649_v58 = vsel %vm2376_vm6, %v2404_v14, %v2406_v49 }
 0x2bb   : > { %v1253_v10 = vpop.f32.mrf.mxu1  ;;  %v1498_v8 = vpop.f32.mrf.mxu0  ;;  %9984 = vmatmul.mubr.msk.f32.gmra.mxu1 %vm940_vm2, %v12626_v25  ;;  %10046 = vmatmul.mubr.msk.f32.gmra.mxu0 %vm940_vm2, %v12629_v23  ;;  %15865 = vst [vmem:[#allocation89_spill] sm:$0xff] %v12646_v27  ;;  %15866 = vst [vmem:[#allocation90_spill] sm:$0xff] %v12649_v58  ;;  %v2408_v23 = vrot.slane %v11818_v9, 7 }
 0x2bc   : > { %v1254_v11 = vadd.f32 %v1253_v10, %v12289_v52  ;;  %9986 = vmatprep.mubr.msk.f32.mxu1 %vm11464_vm0, %v11463_v0  ;;  %10048 = vmatprep.mubr.msk.f32.mxu0 %vm11464_vm0, %v11463_v0 }
 0x2bd   : > { %v9719_v21 = vpop.f32.mrf.mxu1  ;;  %v9781_v15 = vpop.f32.mrf.mxu0 }
 0x2be   : > { %v12652_v25 = vadd.f32 %v1493_v16, %v1254_v11  ;;  %v12664_v16 = vsel %vm2117_vm7, %v2145_v24, %v2147_v22  ;;  %v12667_v11 = vsel %vm2376_vm6, %v2406_v49, %v2408_v23  ;;  %v2149_v15 = vrot.slane %v11818_v9, 6 }
 0x2bf   : > { %v1258_v52 = vpop.f32.mrf.mxu1  ;;  %v1503_v10 = vpop.f32.mrf.mxu0  ;;  %9987 = vmatmul.mubr.msk.f32.gmra.mxu1 %vm940_vm2, %v12646_v27  ;;  %10049 = vmatmul.mubr.msk.f32.gmra.mxu0 %vm940_vm2, %v12649_v58  ;;  %15867 = vst [vmem:[#allocation91_spill] sm:$0xff] %v12664_v16  ;;  %15868 = vst [vmem:[#allocation92_spill] sm:$0xff] %v12667_v11  ;;  %v2410_v58 = vrot.slane %v11828_v12, 7 }
 0x2c0   : > { %v1259_v21 = vadd.f32 %v1258_v52, %v12307_v4  ;;  %9989 = vmatprep.mubr.msk.f32.mxu1 %vm11464_vm0, %v11463_v0  ;;  %10051 = vmatprep.mubr.msk.f32.mxu0 %vm11464_vm0, %v11463_v0 }
 0x2c1   : > { %v9722_v14 = vpop.f32.mrf.mxu1  ;;  %v9784_v18 = vpop.f32.mrf.mxu0 }
 0x2c2   : > { %v12671_v27 = vadd.f32 %v1498_v8, %v1259_v21  ;;  %v2151_v8 = vrot.slane %v11828_v12, 6  ;;  %v12683_v21 = vpop.trf.xlu0  ;;  %v12686_v18 = vsel %vm2117_vm7, %v2147_v22, %v2149_v15 }
 0x2c3   : > { %v1263_v4 = vpop.f32.mrf.mxu1  ;;  %v1508_v52 = vpop.f32.mrf.mxu0  ;;  %9990 = vmatmul.mubr.msk.f32.gmra.mxu1 %vm940_vm2, %v12664_v16  ;;  %10052 = vmatmul.mubr.msk.f32.gmra.mxu0 %vm940_vm2, %v12667_v11  ;;  %15869 = vst [vmem:[#allocation93_spill] sm:$0xff] %v12686_v18  ;;  %v12689_v16 = vsel %vm2376_vm6, %v2408_v23, %v2410_v58 }
 0x2c4   : > { %v1264_v24 = vadd.f32 %v1263_v4, %v12325_v1  ;;  %9992 = vmatprep.mubr.msk.f32.mxu1 %vm11464_vm0, %v11463_v0  ;;  %10054 = vmatprep.mubr.msk.f32.mxu0 %vm11464_vm0, %v11463_v0  ;;  %15870 = vst [vmem:[#allocation94_spill] sm:$0xff] %v12689_v16  ;;  %v2412_v1 = vrot.slane %v11839_v38, 7 }
 0x2c5   : > { %v9725_v49 = vpop.f32.mrf.mxu1  ;;  %v9787_v14 = vpop.f32.mrf.mxu0 }
 0x2c6   : > { %v12692_v4 = vadd.f32 %v1503_v10, %v1264_v24  ;;  %v12704_v10 = vsel %vm2117_vm7, %v2149_v15, %v2151_v8  ;;  %v12707_v24 = vsel %vm2376_vm6, %v2410_v58, %v2412_v1  ;;  %v2153_v14 = vrot.slane %v11839_v38, 6 }
 0x2c7   : > { %v1268_v11 = vpop.f32.mrf.mxu1  ;;  %v1513_v9 = vpop.f32.mrf.mxu0  ;;  %9993 = vmatmul.mubr.msk.f32.gmra.mxu1 %vm940_vm2, %v12686_v18  ;;  %10055 = vmatmul.mubr.msk.f32.gmra.mxu0 %vm940_vm2, %v12689_v16  ;;  %15871 = vst [vmem:[#allocation95_spill] sm:$0xff] %v12704_v10  ;;  %15872 = vst [vmem:[#allocation96_spill] sm:$0xff] %v12707_v24  ;;  %v15731_v16 = vrot.slane %v12683_v21, 7 }
 0x2c8   : > { %v1269_v49 = vadd.f32 %v1268_v11, %v12343_v61  ;;  %9995 = vmatprep.mubr.msk.f32.mxu1 %vm11464_vm0, %v11463_v0  ;;  %10057 = vmatprep.mubr.msk.f32.mxu0 %vm11464_vm0, %v11463_v0 }
 0x2c9   : > { %v9728_v23 = vpop.f32.mrf.mxu1  ;;  %v9790_v22 = vpop.f32.mrf.mxu0 }
 0x2ca   : > { %v12711_v18 = vadd.f32 %v1508_v52, %v1269_v49  ;;  %v12723_v52 = vsel %vm2117_vm7, %v2151_v8, %v2153_v14  ;;  %v12728_v49 = vsel %vm2376_vm6, %v2412_v1, %v15731_v16  ;;  %v15732_v22 = vrot.slane %v12683_v21, 6 }
 0x2cb   : > { %v1273_v61 = vpop.f32.mrf.mxu1  ;;  %v1518_v11 = vpop.f32.mrf.mxu0  ;;  %9996 = vmatmul.mubr.msk.f32.gmra.mxu1 %vm940_vm2, %v12704_v10  ;;  %10058 = vmatmul.mubr.msk.f32.gmra.mxu0 %vm940_vm2, %v12707_v24  ;;  %15873 = vst [vmem:[#allocation97_spill] sm:$0xff] %v12723_v52 }
 0x2cc   : > { %v1274_v15 = vadd.f32 %v1273_v61, %v12361_v17  ;;  %9998 = vmatprep.mubr.msk.f32.mxu1 %vm11464_vm0, %v11463_v0  ;;  %10060 = vmatprep.mubr.msk.f32.mxu0 %vm11464_vm0, %v11463_v0 }
 0x2cd   : > { %v9731_v58 = vpop.f32.mrf.mxu1  ;;  %v9793_v23 = vpop.f32.mrf.mxu0 }
 0x2ce   : > { %v12731_v24 = vadd.f32 %v1513_v9, %v1274_v15  ;;  %v12745_v9 = vsel %vm2117_vm7, %v2153_v14, %v15732_v22  ;;  %v8667_v15 = vld [vmem:[%s15576_s2 + $0x50] sm:$0xff] }
 0x2cf   : > { %v1278_v17 = vpop.f32.mrf.mxu1  ;;  %v1523_v61 = vpop.f32.mrf.mxu0  ;;  %9999 = vmatmul.mubr.msk.f32.gmra.mxu1 %vm940_vm2, %v12723_v52  ;;  %10061 = vmatmul.mubr.msk.f32.gmra.mxu0 %vm940_vm2, %v12728_v49  ;;  %15874 = vst [vmem:[#allocation98_spill] sm:$0xff] %v12745_v9  ;;  %v15880_v22 = vld [vmem:[#allocation15_spill] sm:$0xff] }
 0x2d0   : > { %v1279_v8 = vadd.f32 %v1278_v17, %v12381_v40  ;;  %10001 = vmatprep.mubr.msk.f32.mxu1 %vm11464_vm0, %v11463_v0  ;;  %10124 = vmatprep.mubr.msk.f32.mxu0 %vm11464_vm0, %v11463_v0 }
 0x2d1   : > { %v9734_v1 = vpop.f32.mrf.mxu1  ;;  %v9796_v58 = vpop.f32.mrf.mxu0 }
 0x2d2   : > { %v12750_v23 = vadd.f32 %v1518_v11, %v1279_v8  ;;  %v8647_v11 = vld [vmem:[%s15576_s2 + $0x48] sm:$0xff] }
 0x2d3   : > { %v1283_v40 = vpop.f32.mrf.mxu1  ;;  %v1528_v17 = vpop.f32.mrf.mxu0  ;;  %10002 = vmatmul.mubr.msk.f32.gmra.mxu1 %vm940_vm2, %v12745_v9  ;;  %10125 = vmatmul.mubr.msk.f32.vlgmr.msra.gmra.mxu0 %vm940_vm2, %v11684_v31 }
 0x2d4   : > { %v1284_v1 = vadd.f32 %v1283_v40, %v12403_v20  ;;  %10065 = vmatprep.mubr.msk.f32.mxu1 %vm11464_vm0, %v11463_v0  ;;  %10127 = vmatprep.mubr.msk.f32.mxu0 %vm11464_vm0, %v11463_v0 }
 0x2d5   : > { %v9737_v14 = vpop.f32.mrf.mxu1  ;;  %v9799_v58 = vpop.f32.mrf.mxu0  ;;  %10241 = vmatpush3.msra.mxu0 %v8667_v15 }
 0x2d6   : > { %v12764_v8 = vadd.f32 %v1523_v61, %v1284_v1  ;;  %10358 = vmatprep.subr.mxu0 %v11463_v0 }
 0x2d7   : > { %v1288_v31 = vpop.f32.mrf.mxu1  ;;  %v1533_v16 = vpop.f32.mrf.mxu0  ;;  %10066 = vmatmul.mubr.msk.f32.vlgmr.msra.gmra.mxu1 %vm940_vm2, %v11670_v26  ;;  %10128 = vmatmul.mubr.msk.f32.gmra.mxu0 %vm940_vm2, %v11694_v34 }
 0x2d8   : > { %v1289_v20 = vadd.f32 %v1288_v31, %v12421_v33  ;;  %10182 = vmatpush3.msra.mxu1 %v8647_v11  ;;  %10068 = vmatprep.mubr.msk.f32.mxu1 %vm11464_vm0, %v11463_v0 }
 0x2d9   : > { %v9740_v40 = vpop.f32.mrf.mxu1  ;;  %v9802_v15 = vpop.f32.mrf.mxu0  ;;  %10130 = vmatprep.mubr.msk.f32.mxu0 %vm11464_vm0, %v11463_v0  ;;  %10299 = vmatprep.subr.mxu1 %v11463_v0 }
 0x2da   : > { %v12777_v61 = vadd.f32 %v1528_v17, %v1289_v20 }
 0x2db   : > { %v1293_v1 = vpop.f32.mrf.mxu1  ;;  %v1538_v26 = vpop.f32.mrf.mxu0  ;;  %10069 = vmatmul.mubr.msk.f32.gmra.mxu1 %vm940_vm2, %v11678_v29  ;;  %10131 = vmatmul.mubr.msk.f32.gmra.mxu0 %vm940_vm2, %v11704_v37 }
 0x2dc   : > { %v1294_v34 = vadd.f32 %v1293_v1, %v12436_v28  ;;  %10071 = vmatprep.mubr.msk.f32.mxu1 %vm11464_vm0, %v11463_v0  ;;  %10133 = vmatprep.mubr.msk.f32.mxu0 %vm11464_vm0, %v11463_v0 }
 0x2dd   : > { %v9743_v33 = vpop.f32.mrf.mxu1  ;;  %v9805_v14 = vpop.f32.mrf.mxu0 }
 0x2de   : > { %v12788_v17 = vadd.f32 %v1533_v16, %v1294_v34 }
 0x2df   : > { %v1298_v58 = vpop.f32.mrf.mxu1  ;;  %v1543_v11 = vpop.f32.mrf.mxu0  ;;  %10072 = vmatmul.mubr.msk.f32.gmra.mxu1 %vm940_vm2, %v11688_v32  ;;  %10134 = vmatmul.mubr.msk.f32.gmra.mxu0 %vm940_vm2, %v11714_v41 }
 0x2e0   : > { %v1299_v37 = vadd.f32 %v1298_v58, %v12453_v55  ;;  %10074 = vmatprep.mubr.msk.f32.mxu1 %vm11464_vm0, %v11463_v0  ;;  %10136 = vmatprep.mubr.msk.f32.mxu0 %vm11464_vm0, %v11463_v0 }
 0x2e1   : > { %v9746_v28 = vpop.f32.mrf.mxu1  ;;  %v9808_v31 = vpop.f32.mrf.mxu0 }
 0x2e2   : > { %v12799_v16 = vadd.f32 %v1538_v26, %v1299_v37 }
 0x2e3   : > { %v1303_v20 = vpop.f32.mrf.mxu1  ;;  %v1548_v40 = vpop.f32.mrf.mxu0  ;;  %10075 = vmatmul.mubr.msk.f32.gmra.mxu1 %vm940_vm2, %v11698_v35  ;;  %10137 = vmatmul.mubr.msk.f32.gmra.mxu0 %vm940_vm2, %v11724_v44 }
 0x2e4   : > { %v1304_v41 = vadd.f32 %v1303_v20, %v12471_v43  ;;  %10077 = vmatprep.mubr.msk.f32.mxu1 %vm11464_vm0, %v11463_v0  ;;  %10139 = vmatprep.mubr.msk.f32.mxu0 %vm11464_vm0, %v11463_v0 }
 0x2e5   : > { %v9749_v55 = vpop.f32.mrf.mxu1  ;;  %v9811_v15 = vpop.f32.mrf.mxu0 }
 0x2e6   : > { %v12810_v1 = vadd.f32 %v1543_v11, %v1304_v41 }
 0x2e7   : > { %v1308_v26 = vpop.f32.mrf.mxu1  ;;  %v1553_v34 = vpop.f32.mrf.mxu0  ;;  %10078 = vmatmul.mubr.msk.f32.gmra.mxu1 %vm940_vm2, %v11708_v39  ;;  %10140 = vmatmul.mubr.msk.f32.gmra.mxu0 %vm940_vm2, %v11734_v47  ;;  %v15901_v47 = vld [vmem:[#allocation50_spill] sm:$0xff] }
 0x2e8   : > { %v1309_v44 = vadd.f32 %v1308_v26, %v12489_v46  ;;  %10080 = vmatprep.mubr.msk.f32.mxu1 %vm11464_vm0, %v11463_v0  ;;  %10142 = vmatprep.mubr.msk.f32.mxu0 %vm11464_vm0, %v11463_v0 }
 0x2e9   : > { %v9752_v43 = vpop.f32.mrf.mxu1  ;;  %v9814_v33 = vpop.f32.mrf.mxu0 }
 0x2ea   : > { %v12821_v14 = vadd.f32 %v1548_v40, %v1309_v44 }
 0x2eb   : > { %v1313_v58 = vpop.f32.mrf.mxu1  ;;  %v1558_v11 = vpop.f32.mrf.mxu0  ;;  %10081 = vmatmul.mubr.msk.f32.gmra.mxu1 %vm940_vm2, %v11718_v42  ;;  %10143 = vmatmul.mubr.msk.f32.gmra.mxu0 %vm940_vm2, %v11744_v50  ;;  %v15900_v50 = vld [vmem:[#allocation26_spill] sm:$0xff] }
 0x2ec   : > { %v1314_v46 = vadd.f32 %v1313_v58, %v12507_v36  ;;  %10083 = vmatprep.mubr.msk.f32.mxu1 %vm11464_vm0, %v11463_v0  ;;  %10145 = vmatprep.mubr.msk.f32.mxu0 %vm11464_vm0, %v11463_v0 }
 0x2ed   : > { %v9755_v37 = vpop.f32.mrf.mxu1  ;;  %v9817_v28 = vpop.f32.mrf.mxu0 }
 0x2ee   : > { %v12832_v31 = vadd.f32 %v1553_v34, %v1314_v46 }
 0x2ef   : > { %v1318_v20 = vpop.f32.mrf.mxu1  ;;  %v1563_v40 = vpop.f32.mrf.mxu0  ;;  %10084 = vmatmul.mubr.msk.f32.gmra.mxu1 %vm940_vm2, %v11728_v45  ;;  %10146 = vmatmul.mubr.msk.f32.gmra.mxu0 %vm940_vm2, %v11754_v53  ;;  %v15899_v53 = vld [vmem:[#allocation48_spill] sm:$0xff] }
 0x2f0   : > { %v1319_v36 = vadd.f32 %v1318_v20, %v12525_v13  ;;  %10086 = vmatprep.mubr.msk.f32.mxu1 %vm11464_vm0, %v11463_v0  ;;  %10148 = vmatprep.mubr.msk.f32.mxu0 %vm11464_vm0, %v11463_v0 }
 0x2f1   : > { %v9758_v41 = vpop.f32.mrf.mxu1  ;;  %v9820_v55 = vpop.f32.mrf.mxu0 }
 0x2f2   : > { %v12843_v15 = vadd.f32 %v1558_v11, %v1319_v36 }
 0x2f3   : > { %v1323_v26 = vpop.f32.mrf.mxu1  ;;  %v1568_v34 = vpop.f32.mrf.mxu0  ;;  %10087 = vmatmul.mubr.msk.f32.gmra.mxu1 %vm940_vm2, %v11738_v48  ;;  %10149 = vmatmul.mubr.msk.f32.gmra.mxu0 %vm940_vm2, %v11764_v56  ;;  %v15898_v56 = vld [vmem:[#allocation25_spill] sm:$0xff] }
 0x2f4   : > { %v1324_v13 = vadd.f32 %v1323_v26, %v12543_v30  ;;  %10089 = vmatprep.mubr.msk.f32.mxu1 %vm11464_vm0, %v11463_v0  ;;  %10151 = vmatprep.mubr.msk.f32.mxu0 %vm11464_vm0, %v11463_v0 }
 0x2f5   : > { %v9761_v44 = vpop.f32.mrf.mxu1  ;;  %v9823_v43 = vpop.f32.mrf.mxu0 }
 0x2f6   : > { %v12854_v33 = vadd.f32 %v1563_v40, %v1324_v13 }
 0x2f7   : > { %v1328_v58 = vpop.f32.mrf.mxu1  ;;  %v1573_v11 = vpop.f32.mrf.mxu0  ;;  %10090 = vmatmul.mubr.msk.f32.gmra.mxu1 %vm940_vm2, %v11748_v51  ;;  %10152 = vmatmul.mubr.msk.f32.gmra.mxu0 %vm940_vm2, %v11774_v59  ;;  %v15897_v59 = vld [vmem:[#allocation46_spill] sm:$0xff] }
 0x2f8   : > { %v1329_v30 = vadd.f32 %v1328_v58, %v12561_v7  ;;  %10092 = vmatprep.mubr.msk.f32.mxu1 %vm11464_vm0, %v11463_v0  ;;  %10154 = vmatprep.mubr.msk.f32.mxu0 %vm11464_vm0, %v11463_v0 }
 0x2f9   : > { %v9764_v46 = vpop.f32.mrf.mxu1  ;;  %v9826_v37 = vpop.f32.mrf.mxu0 }
 0x2fa   : > { %v12865_v28 = vadd.f32 %v1568_v34, %v1329_v30  ;;  %v15875_v30 = vld [vmem:[#allocation10_spill] sm:$0xff]  ;;  %v15876_v46 = vld [vmem:[#allocation13_spill] sm:$0xff] }
 0x2fb   : > { %v1333_v20 = vpop.f32.mrf.mxu1  ;;  %v2001_v40 = vpop.f32.mrf.mxu0  ;;  %10093 = vmatmul.mubr.msk.f32.gmra.mxu1 %vm940_vm2, %v11758_v54  ;;  %10155 = vmatmul.mubr.msk.f32.gmra.mxu0 %vm940_vm2, %v11784_v62  ;;  %v15896_v62 = vld [vmem:[#allocation24_spill] sm:$0xff] }
 0x2fc   : > { %v1334_v7 = vadd.f32 %v1333_v20, %v12579_v19  ;;  %10095 = vmatprep.mubr.msk.f32.mxu1 %vm11464_vm0, %v11463_v0  ;;  %10157 = vmatprep.mubr.msk.f32.mxu0 %vm11464_vm0, %v11463_v0 }
 0x2fd   : > { %v9767_v36 = vpop.f32.mrf.mxu1  ;;  %v9890_v41 = vpop.f32.mrf.mxu0 }
 0x2fe   : > { %v12876_v55 = vadd.f32 %v1573_v11, %v1334_v7  ;;  %v15877_v41 = vld [vmem:[#allocation14_spill] sm:$0xff] }
 0x2ff   : > { %v1742_v26 = vpop.f32.mrf.mxu1  ;;  %v2006_v34 = vpop.f32.mrf.mxu0  ;;  %10096 = vmatmul.mubr.msk.f32.gmra.mxu1 %vm940_vm2, %v11768_v57  ;;  %10158 = vmatmul.mubr.msk.f32.gmra.mxu0 %vm940_vm2, %v11794_v2  ;;  %v15895_v2 = vld [vmem:[#allocation44_spill] sm:$0xff] }
 0x300   : > { %v1836_v19 = vadd.f32 %v1742_v26, %v12614_v60  ;;  %10098 = vmatprep.mubr.msk.f32.mxu1 %vm11464_vm0, %v11463_v0  ;;  %10160 = vmatprep.mubr.msk.f32.mxu0 %vm11464_vm0, %v11463_v0 }
 0x301   : > { %v9831_v13 = vpop.f32.mrf.mxu1  ;;  %v9893_v44 = vpop.f32.mrf.mxu0 }
 0x302   : > { %v12887_v43 = vadd.f32 %v2001_v40, %v1836_v19 }
 0x303   : > { %v1747_v58 = vpop.f32.mrf.mxu1  ;;  %v2011_v11 = vpop.f32.mrf.mxu0  ;;  %10099 = vmatmul.mubr.msk.f32.gmra.mxu1 %vm940_vm2, %v15875_v30  ;;  %10161 = vmatmul.mubr.msk.f32.gmra.mxu0 %vm940_vm2, %v15876_v46  ;;  %v15894_v46 = vld [vmem:[#allocation23_spill] sm:$0xff] }
 0x304   : > { %v1837_v60 = vadd.f32 %v1747_v58, %v12633_v5  ;;  %10101 = vmatprep.mubr.msk.f32.mxu1 %vm11464_vm0, %v11463_v0  ;;  %10163 = vmatprep.mubr.msk.f32.mxu0 %vm11464_vm0, %v11463_v0  ;;  %v15878_v58 = vld [vmem:[#allocation16_spill] sm:$0xff] }
 0x305   : > { %v9834_v37 = vpop.f32.mrf.mxu1  ;;  %v9896_v20 = vpop.f32.mrf.mxu0 }
 0x306   : > { %v12898_v40 = vadd.f32 %v2006_v34, %v1837_v60 }
 0x307   : > { %v1752_v7 = vpop.f32.mrf.mxu1  ;;  %v2016_v36 = vpop.f32.mrf.mxu0  ;;  %10102 = vmatmul.mubr.msk.f32.gmra.mxu1 %vm940_vm2, %v11788_v63  ;;  %10164 = vmatmul.mubr.msk.f32.gmra.mxu0 %vm940_vm2, %v15877_v41 }
 0x308   : > { %v1838_v5 = vadd.f32 %v1752_v7, %v12652_v25  ;;  %10104 = vmatprep.mubr.msk.f32.mxu1 %vm11464_vm0, %v11463_v0  ;;  %10166 = vmatprep.mubr.msk.f32.mxu0 %vm11464_vm0, %v11463_v0 }
 0x309   : > { %v9837_v26 = vpop.f32.mrf.mxu1  ;;  %v9899_v19 = vpop.f32.mrf.mxu0 }
 0x30a   : > { %v12909_v34 = vadd.f32 %v2011_v11, %v1838_v5  ;;  %v15879_v5 = vld [vmem:[#allocation17_spill] sm:$0xff] }
 0x30b   : > { %v1757_v13 = vpop.f32.mrf.mxu1  ;;  %v2021_v44 = vpop.f32.mrf.mxu0  ;;  %10105 = vmatmul.mubr.msk.f32.gmra.mxu1 %vm940_vm2, %v11798_v3  ;;  %10167 = vmatmul.mubr.msk.f32.gmra.mxu0 %vm940_vm2, %v15878_v58 }
 0x30c   : > { %v1839_v25 = vadd.f32 %v1757_v13, %v12671_v27  ;;  %10107 = vmatprep.mubr.msk.f32.mxu1 %vm11464_vm0, %v11463_v0  ;;  %10169 = vmatprep.mubr.msk.f32.mxu0 %vm11464_vm0, %v11463_v0  ;;  %v2821_v13 = vrot.slane %v12683_v21, 1 }
 0x30d   : > { %v9840_v60 = vpop.f32.mrf.mxu1  ;;  %v9902_v37 = vpop.f32.mrf.mxu0 }
 0x30e   : > { %v12920_v11 = vadd.f32 %v2016_v36, %v1839_v25  ;;  %v12931_v36 = vpop.trf.xlu0 }
 0x30f   : > { %v1762_v20 = vpop.f32.mrf.mxu1  ;;  %v2026_v7 = vpop.f32.mrf.mxu0  ;;  %10108 = vmatmul.mubr.msk.f32.gmra.mxu1 %vm940_vm2, %v11808_v6  ;;  %10170 = vmatmul.mubr.msk.f32.gmra.mxu0 %vm940_vm2, %v15879_v5  ;;  %v15733_v5 = vrot.slane %v12931_v36, 1 }
 0x310   : > { %v1840_v27 = vadd.f32 %v1762_v20, %v12692_v4  ;;  %10110 = vmatprep.mubr.msk.f32.mxu1 %vm11464_vm0, %v11463_v0  ;;  %10172 = vmatprep.mubr.msk.f32.mxu0 %vm11464_vm0, %v11463_v0  ;;  %v15881_v4 = vld [vmem:[#allocation18_spill] sm:$0xff] }
 0x311   : > { %v9843_v26 = vpop.f32.mrf.mxu1  ;;  %v9905_v19 = vpop.f32.mrf.mxu0 }
 0x312   : > { %v12934_v25 = vadd.f32 %v2021_v44, %v1840_v27  ;;  %v15882_v44 = vrot.slane %v11839_v38, 1 }
 0x313   : > { %v1767_v60 = vpop.f32.mrf.mxu1  ;;  %v2031_v37 = vpop.f32.mrf.mxu0  ;;  %10111 = vmatmul.mubr.msk.f32.gmra.mxu1 %vm940_vm2, %v15880_v22  ;;  %10173 = vmatmul.mubr.msk.f32.gmra.mxu0 %vm940_vm2, %v15881_v4 }
 0x314   : > { %v1841_v20 = vadd.f32 %v1767_v60, %v12711_v18  ;;  %10113 = vmatprep.mubr.msk.f32.mxu1 %vm11464_vm0, %v11463_v0  ;;  %10175 = vmatprep.mubr.msk.f32.mxu0 %vm11464_vm0, %v11463_v0  ;;  %v12948_v27 = vsel %vm900_vm1, %v15882_v44, %v2821_v13 }
 0x315   : > { %v9846_v26 = vpop.f32.mrf.mxu1  ;;  %v9908_v19 = vpop.f32.mrf.mxu0  ;;  %15883 = vst [vmem:[#allocation10_spill] sm:$0xff] %v12948_v27 }
 0x316   : > { %v12951_v58 = vadd.f32 %v2026_v7, %v1841_v20  ;;  %v12965_v7 = vsel %vm900_vm1, %v2821_v13, %v15733_v5 }
 0x317   : > { %v1772_v4 = vpop.f32.mrf.mxu1  ;;  %v2036_v41 = vpop.f32.mrf.mxu0  ;;  %10114 = vmatmul.mubr.msk.f32.gmra.mxu1 %vm940_vm2, %v11828_v12  ;;  %10176 = vmatmul.mubr.msk.f32.gmra.mxu0 %vm940_vm2, %v12948_v27  ;;  %15884 = vst [vmem:[#allocation15_spill] sm:$0xff] %v12965_v7  ;;  %v15892_v27 = vld [vmem:[#allocation22_spill] sm:$0xff] }
 0x318   : > { %v1842_v18 = vadd.f32 %v1772_v4, %v12731_v24  ;;  %10116 = vmatprep.mubr.msk.f32.mxu1 %vm11464_vm0, %v11463_v0  ;;  %10178 = vmatprep.mubr.msk.f32.mxu0 %vm11464_vm0, %v11463_v0 }
 0x319   : > { %v9849_v60 = vpop.f32.mrf.mxu1  ;;  %v9911_v26 = vpop.f32.mrf.mxu0 }
 0x31a   : > { %v12967_v20 = vadd.f32 %v2031_v37, %v1842_v18  ;;  %v8707_v37 = vld [vmem:[%s15576_s2 + $0x60] sm:$0xff] }
 0x31b   : > { %v1777_v19 = vpop.f32.mrf.mxu1  ;;  %v2041_v44 = vpop.f32.mrf.mxu0  ;;  %10117 = vmatmul.mubr.msk.f32.gmra.mxu1 %vm940_vm2, %v11839_v38  ;;  %10179 = vmatmul.mubr.msk.f32.gmra.mxu0 %vm940_vm2, %v12965_v7  ;;  %v15888_v7 = vld [vmem:[#allocation20_spill] sm:$0xff] }
 0x31c   : > { %v1843_v24 = vadd.f32 %v1777_v19, %v12750_v23  ;;  %10119 = vmatprep.mubr.msk.f32.mxu1 %vm11464_vm0, %v11463_v0  ;;  %10242 = vmatprep.mubr.msk.f32.mxu0 %vm11464_vm0, %v11463_v0  ;;  %v15885_v23 = vld [vmem:[#allocation36_spill] sm:$0xff] }
 0x31d   : > { %v9852_v13 = vpop.f32.mrf.mxu1  ;;  %v9914_v4 = vpop.f32.mrf.mxu0 }
 0x31e   : > { %v12981_v18 = vadd.f32 %v2036_v41, %v1843_v24  ;;  %v8687_v41 = vld [vmem:[%s15576_s2 + $0x58] sm:$0xff] }
 0x31f   : > { %v1782_v60 = vpop.f32.mrf.mxu1  ;;  %v2046_v26 = vpop.f32.mrf.mxu0  ;;  %10120 = vmatmul.mubr.msk.f32.gmra.mxu1 %vm940_vm2, %v12683_v21  ;;  %10243 = vmatmul.mubr.msk.f32.vlgmr.msra.gmra.mxu0 %vm940_vm2, %v15885_v23 }
 0x320   : > { %v1844_v19 = vadd.f32 %v1782_v60, %v12764_v8  ;;  %10183 = vmatprep.mubr.msk.f32.mxu1 %vm11464_vm0, %v11463_v0  ;;  %10245 = vmatprep.mubr.msk.f32.mxu0 %vm11464_vm0, %v11463_v0  ;;  %v15886_v8 = vld [vmem:[#allocation19_spill] sm:$0xff]  ;;  %v15887_v60 = vld [vmem:[#allocation37_spill] sm:$0xff] }
 0x321   : > { %v9855_v13 = vpop.f32.mrf.mxu1  ;;  %v9917_v4 = vpop.f32.mrf.mxu0  ;;  %10359 = vmatpush3.msra.mxu0 %v8707_v37 }
 0x322   : > { %v12995_v24 = vadd.f32 %v2041_v44, %v1844_v19  ;;  %10476 = vmatprep.subr.mxu0 %v11463_v0 }
 0x323   : > { %v1787_v23 = vpop.f32.mrf.mxu1  ;;  %v2051_v5 = vpop.f32.mrf.mxu0  ;;  %10184 = vmatmul.mubr.msk.f32.vlgmr.msra.gmra.mxu1 %vm940_vm2, %v15886_v8  ;;  %10246 = vmatmul.mubr.msk.f32.gmra.mxu0 %vm940_vm2, %v15887_v60  ;;  %v15889_v60 = vld [vmem:[#allocation38_spill] sm:$0xff] }
 0x324   : > { %v1845_v13 = vadd.f32 %v1787_v23, %v12777_v61  ;;  %10300 = vmatpush3.msra.mxu1 %v8687_v41  ;;  %10186 = vmatprep.mubr.msk.f32.mxu1 %vm11464_vm0, %v11463_v0 }
 0x325   : > { %v9858_v4 = vpop.f32.mrf.mxu1  ;;  %v9920_v37 = vpop.f32.mrf.mxu0  ;;  %10248 = vmatprep.mubr.msk.f32.mxu0 %vm11464_vm0, %v11463_v0  ;;  %10417 = vmatprep.subr.mxu1 %v11463_v0 }
 0x326   : > { %v13008_v44 = vadd.f32 %v2046_v26, %v1845_v13  ;;  %v15890_v37 = vld [vmem:[#allocation21_spill] sm:$0xff] }
 0x327   : > { %v1792_v19 = vpop.f32.mrf.mxu1  ;;  %v2056_v8 = vpop.f32.mrf.mxu0  ;;  %10187 = vmatmul.mubr.msk.f32.gmra.mxu1 %vm940_vm2, %v15888_v7  ;;  %10249 = vmatmul.mubr.msk.f32.gmra.mxu0 %vm940_vm2, %v15889_v60  ;;  %v15891_v7 = vld [vmem:[#allocation40_spill] sm:$0xff] }
 0x328   : > { %v1846_v61 = vadd.f32 %v1792_v19, %v12788_v17  ;;  %10189 = vmatprep.mubr.msk.f32.mxu1 %vm11464_vm0, %v11463_v0  ;;  %10251 = vmatprep.mubr.msk.f32.mxu0 %vm11464_vm0, %v11463_v0  ;;  %v15911_v60 = vld [vmem:[#allocation60_spill] sm:$0xff] }
 0x329   : > { %v9861_v41 = vpop.f32.mrf.mxu1  ;;  %v9923_v23 = vpop.f32.mrf.mxu0 }
 0x32a   : > { %v13019_v26 = vadd.f32 %v2051_v5, %v1846_v61 }
 0x32b   : > { %v1797_v13 = vpop.f32.mrf.mxu1  ;;  %v2061_v4 = vpop.f32.mrf.mxu0  ;;  %10190 = vmatmul.mubr.msk.f32.gmra.mxu1 %vm940_vm2, %v15890_v37  ;;  %10252 = vmatmul.mubr.msk.f32.gmra.mxu0 %vm940_vm2, %v15891_v7  ;;  %v15893_v37 = vld [vmem:[#allocation42_spill] sm:$0xff] }
 0x32c   : > { %v1847_v17 = vadd.f32 %v1797_v13, %v12799_v16  ;;  %10192 = vmatprep.mubr.msk.f32.mxu1 %vm11464_vm0, %v11463_v0  ;;  %10254 = vmatprep.mubr.msk.f32.mxu0 %vm11464_vm0, %v11463_v0  ;;  %v15909_v7 = vld [vmem:[#allocation58_spill] sm:$0xff] }
 0x32d   : > { %v9864_v19 = vpop.f32.mrf.mxu1  ;;  %v9926_v41 = vpop.f32.mrf.mxu0 }
 0x32e   : > { %v13030_v5 = vadd.f32 %v2056_v8, %v1847_v17 }
 0x32f   : > { %v1802_v61 = vpop.f32.mrf.mxu1  ;;  %v2066_v23 = vpop.f32.mrf.mxu0  ;;  %10193 = vmatmul.mubr.msk.f32.gmra.mxu1 %vm940_vm2, %v15892_v27  ;;  %10255 = vmatmul.mubr.msk.f32.gmra.mxu0 %vm940_vm2, %v15893_v37  ;;  %v15907_v37 = vld [vmem:[#allocation56_spill] sm:$0xff] }
 0x330   : > { %v1848_v16 = vadd.f32 %v1802_v61, %v12810_v1  ;;  %10195 = vmatprep.mubr.msk.f32.mxu1 %vm11464_vm0, %v11463_v0  ;;  %10257 = vmatprep.mubr.msk.f32.mxu0 %vm11464_vm0, %v11463_v0 }
 0x331   : > { %v9867_v13 = vpop.f32.mrf.mxu1  ;;  %v9929_v19 = vpop.f32.mrf.mxu0 }
 0x332   : > { %v13041_v8 = vadd.f32 %v2061_v4, %v1848_v16 }
 0x333   : > { %v1807_v17 = vpop.f32.mrf.mxu1  ;;  %v2071_v41 = vpop.f32.mrf.mxu0  ;;  %10196 = vmatmul.mubr.msk.f32.gmra.mxu1 %vm940_vm2, %v15894_v46  ;;  %10258 = vmatmul.mubr.msk.f32.gmra.mxu0 %vm940_vm2, %v15895_v2  ;;  %v15905_v2 = vld [vmem:[#allocation54_spill] sm:$0xff] }
 0x334   : > { %v1849_v1 = vadd.f32 %v1807_v17, %v12821_v14  ;;  %10198 = vmatprep.mubr.msk.f32.mxu1 %vm11464_vm0, %v11463_v0  ;;  %10260 = vmatprep.mubr.msk.f32.mxu0 %vm11464_vm0, %v11463_v0 }
 0x335   : > { %v9870_v61 = vpop.f32.mrf.mxu1  ;;  %v9932_v13 = vpop.f32.mrf.mxu0 }
 0x336   : > { %v13052_v4 = vadd.f32 %v2066_v23, %v1849_v1 }
 0x337   : > { %v1812_v16 = vpop.f32.mrf.mxu1  ;;  %v2076_v19 = vpop.f32.mrf.mxu0  ;;  %10199 = vmatmul.mubr.msk.f32.gmra.mxu1 %vm940_vm2, %v15896_v62  ;;  %10261 = vmatmul.mubr.msk.f32.gmra.mxu0 %vm940_vm2, %v15897_v59  ;;  %v15903_v59 = vld [vmem:[#allocation52_spill] sm:$0xff] }
 0x338   : > { %v1850_v14 = vadd.f32 %v1812_v16, %v12832_v31  ;;  %10201 = vmatprep.mubr.msk.f32.mxu1 %vm11464_vm0, %v11463_v0  ;;  %10263 = vmatprep.mubr.msk.f32.mxu0 %vm11464_vm0, %v11463_v0 }
 0x339   : > { %v9873_v17 = vpop.f32.mrf.mxu1  ;;  %v9935_v61 = vpop.f32.mrf.mxu0 }
 0x33a   : > { %v13063_v23 = vadd.f32 %v2071_v41, %v1850_v14 }
 0x33b   : > { %v1817_v1 = vpop.f32.mrf.mxu1  ;;  %v2081_v13 = vpop.f32.mrf.mxu0  ;;  %10202 = vmatmul.mubr.msk.f32.gmra.mxu1 %vm940_vm2, %v15898_v56  ;;  %10264 = vmatmul.mubr.msk.f32.gmra.mxu0 %vm940_vm2, %v15899_v53  ;;  %v15902_v53 = vld [vmem:[#allocation27_spill] sm:$0xff] }
 0x33c   : > { %v1851_v31 = vadd.f32 %v1817_v1, %v12843_v15  ;;  %10204 = vmatprep.mubr.msk.f32.mxu1 %vm11464_vm0, %v11463_v0  ;;  %10266 = vmatprep.mubr.msk.f32.mxu0 %vm11464_vm0, %v11463_v0 }
 0x33d   : > { %v9876_v16 = vpop.f32.mrf.mxu1  ;;  %v9938_v17 = vpop.f32.mrf.mxu0 }
 0x33e   : > { %v13074_v41 = vadd.f32 %v2076_v19, %v1851_v31 }
 0x33f   : > { %v1822_v14 = vpop.f32.mrf.mxu1  ;;  %v2086_v61 = vpop.f32.mrf.mxu0  ;;  %10205 = vmatmul.mubr.msk.f32.gmra.mxu1 %vm940_vm2, %v15900_v50  ;;  %10267 = vmatmul.mubr.msk.f32.gmra.mxu0 %vm940_vm2, %v15901_v47  ;;  %v15904_v47 = vld [vmem:[#allocation28_spill] sm:$0xff] }
 0x340   : > { %v1852_v15 = vadd.f32 %v1822_v14, %v12854_v33  ;;  %10207 = vmatprep.mubr.msk.f32.mxu1 %vm11464_vm0, %v11463_v0  ;;  %10269 = vmatprep.mubr.msk.f32.mxu0 %vm11464_vm0, %v11463_v0 }
 0x341   : > { %v9879_v1 = vpop.f32.mrf.mxu1  ;;  %v9941_v16 = vpop.f32.mrf.mxu0 }
 0x342   : > { %v13085_v19 = vadd.f32 %v2081_v13, %v1852_v15 }
 0x343   : > { %v1827_v31 = vpop.f32.mrf.mxu1  ;;  %v2091_v17 = vpop.f32.mrf.mxu0  ;;  %10208 = vmatmul.mubr.msk.f32.gmra.mxu1 %vm940_vm2, %v15902_v53  ;;  %10270 = vmatmul.mubr.msk.f32.gmra.mxu0 %vm940_vm2, %v15903_v59  ;;  %v15906_v59 = vld [vmem:[#allocation29_spill] sm:$0xff] }
 0x344   : > { %v1853_v33 = vadd.f32 %v1827_v31, %v12865_v28  ;;  %10210 = vmatprep.mubr.msk.f32.mxu1 %vm11464_vm0, %v11463_v0  ;;  %10272 = vmatprep.mubr.msk.f32.mxu0 %vm11464_vm0, %v11463_v0 }
 0x345   : > { %v9882_v14 = vpop.f32.mrf.mxu1  ;;  %v9944_v1 = vpop.f32.mrf.mxu0 }
 0x346   : > { %v13096_v13 = vadd.f32 %v2086_v61, %v1853_v33 }
 0x347   : > { %v1832_v15 = vpop.f32.mrf.mxu1  ;;  %v2520_v16 = vpop.f32.mrf.mxu0  ;;  %10211 = vmatmul.mubr.msk.f32.gmra.mxu1 %vm940_vm2, %v15904_v47  ;;  %10273 = vmatmul.mubr.msk.f32.gmra.mxu0 %vm940_vm2, %v15905_v2  ;;  %v15908_v2 = vld [vmem:[#allocation30_spill] sm:$0xff] }
 0x348   : > { %v1854_v28 = vadd.f32 %v1832_v15, %v12876_v55  ;;  %10213 = vmatprep.mubr.msk.f32.mxu1 %vm11464_vm0, %v11463_v0  ;;  %10275 = vmatprep.mubr.msk.f32.mxu0 %vm11464_vm0, %v11463_v0 }
 0x349   : > { %v9885_v31 = vpop.f32.mrf.mxu1  ;;  %v10008_v14 = vpop.f32.mrf.mxu0 }
 0x34a   : > { %v13107_v61 = vadd.f32 %v2091_v17, %v1854_v28 }
 0x34b   : > { %v2261_v33 = vpop.f32.mrf.mxu1  ;;  %v2525_v1 = vpop.f32.mrf.mxu0  ;;  %10214 = vmatmul.mubr.msk.f32.gmra.mxu1 %vm940_vm2, %v15906_v59  ;;  %10276 = vmatmul.mubr.msk.f32.gmra.mxu0 %vm940_vm2, %v15907_v37  ;;  %v15910_v37 = vld [vmem:[#allocation31_spill] sm:$0xff] }
 0x34c   : > { %v2355_v55 = vadd.f32 %v2261_v33, %v12887_v43  ;;  %10216 = vmatprep.mubr.msk.f32.mxu1 %vm11464_vm0, %v11463_v0  ;;  %10278 = vmatprep.mubr.msk.f32.mxu0 %vm11464_vm0, %v11463_v0 }
 0x34d   : > { %v9949_v15 = vpop.f32.mrf.mxu1  ;;  %v10011_v31 = vpop.f32.mrf.mxu0 }
 0x34e   : > { %v13118_v17 = vadd.f32 %v2520_v16, %v2355_v55 }
 0x34f   : > { %v2266_v28 = vpop.f32.mrf.mxu1  ;;  %v2530_v14 = vpop.f32.mrf.mxu0  ;;  %10217 = vmatmul.mubr.msk.f32.gmra.mxu1 %vm940_vm2, %v15908_v2  ;;  %10279 = vmatmul.mubr.msk.f32.gmra.mxu0 %vm940_vm2, %v15909_v7  ;;  %v15912_v7 = vld [vmem:[#allocation32_spill] sm:$0xff]  ;;  %v15918_v2 = vld [vmem:[#allocation34_spill] sm:$0xff] }
 0x350   : > { %v2356_v43 = vadd.f32 %v2266_v28, %v12898_v40  ;;  %10219 = vmatprep.mubr.msk.f32.mxu1 %vm11464_vm0, %v11463_v0  ;;  %10281 = vmatprep.mubr.msk.f32.mxu0 %vm11464_vm0, %v11463_v0 }
 0x351   : > { %v9952_v33 = vpop.f32.mrf.mxu1  ;;  %v10014_v15 = vpop.f32.mrf.mxu0 }
 0x352   : > { %v13129_v16 = vadd.f32 %v2525_v1, %v2356_v43 }
 0x353   : > { %v2271_v55 = vpop.f32.mrf.mxu1  ;;  %v2535_v31 = vpop.f32.mrf.mxu0  ;;  %10220 = vmatmul.mubr.msk.f32.gmra.mxu1 %vm940_vm2, %v15910_v37  ;;  %10282 = vmatmul.mubr.msk.f32.gmra.mxu0 %vm940_vm2, %v15911_v60  ;;  %v15913_v37 = vld [vmem:[#allocation62_spill] sm:$0xff] }
 0x354   : > { %v2357_v40 = vadd.f32 %v2271_v55, %v12909_v34  ;;  %10222 = vmatprep.mubr.msk.f32.mxu1 %vm11464_vm0, %v11463_v0  ;;  %10284 = vmatprep.mubr.msk.f32.mxu0 %vm11464_vm0, %v11463_v0 }
 0x355   : > { %v9955_v28 = vpop.f32.mrf.mxu1  ;;  %v10017_v33 = vpop.f32.mrf.mxu0 }
 0x356   : > { %v13140_v1 = vadd.f32 %v2530_v14, %v2357_v40  ;;  %v3200_v14 = vrot.slane %v12683_v21, 4 }
 0x357   : > { %v2276_v43 = vpop.f32.mrf.mxu1  ;;  %v2540_v15 = vpop.f32.mrf.mxu0  ;;  %10223 = vmatmul.mubr.msk.f32.gmra.mxu1 %vm940_vm2, %v15912_v7  ;;  %10285 = vmatmul.mubr.msk.f32.gmra.mxu0 %vm940_vm2, %v15913_v37  ;;  %v15914_v7 = vld [vmem:[#allocation33_spill] sm:$0xff]  ;;  %v15915_v37 = vld [vmem:[#allocation64_spill] sm:$0xff] }
 0x358   : > { %v2358_v34 = vadd.f32 %v2276_v43, %v12920_v11  ;;  %10225 = vmatprep.mubr.msk.f32.mxu1 %vm11464_vm0, %v11463_v0  ;;  %10287 = vmatprep.mubr.msk.f32.mxu0 %vm11464_vm0, %v11463_v0 }
 0x359   : > { %v9958_v55 = vpop.f32.mrf.mxu1  ;;  %v10020_v28 = vpop.f32.mrf.mxu0 }
 0x35a   : > { %v13152_v40 = vadd.f32 %v2535_v31, %v2358_v34  ;;  %v13163_v31 = vpop.trf.xlu0  ;;  %v15916_v34 = vrot.slane %v11839_v38, 4 }
 0x35b   : > { %v2281_v33 = vpop.f32.mrf.mxu1  ;;  %v2545_v60 = vpop.f32.mrf.mxu0  ;;  %10226 = vmatmul.mubr.msk.f32.gmra.mxu1 %vm940_vm2, %v15914_v7  ;;  %10288 = vmatmul.mubr.msk.f32.gmra.mxu0 %vm940_vm2, %v15915_v37  ;;  %v3202_v7 = vrot.slane %v12931_v36, 4 }
 0x35c   : > { %v2359_v11 = vadd.f32 %v2281_v33, %v12934_v25  ;;  %10228 = vmatprep.mubr.msk.f32.mxu1 %vm11464_vm0, %v11463_v0  ;;  %10290 = vmatprep.mubr.msk.f32.mxu0 %vm11464_vm0, %v11463_v0  ;;  %v13168_v28 = vsel %vm1857_vm4, %v15916_v34, %v3200_v14 }
 0x35d   : > { %v9961_v43 = vpop.f32.mrf.mxu1  ;;  %v10023_v55 = vpop.f32.mrf.mxu0  ;;  %15917 = vst [vmem:[#allocation36_spill] sm:$0xff] %v13168_v28 }
 0x35e   : > { %v13171_v37 = vadd.f32 %v2540_v15, %v2359_v11  ;;  %v13183_v15 = vsel %vm1857_vm4, %v3200_v14, %v3202_v7  ;;  %v3010_v11 = vrot.slane %v12683_v21, 2 }
 0x35f   : > { %v2286_v25 = vpop.f32.mrf.mxu1  ;;  %v2550_v33 = vpop.f32.mrf.mxu0  ;;  %10229 = vmatmul.mubr.msk.f32.gmra.mxu1 %vm940_vm2, %v15918_v2  ;;  %10291 = vmatmul.mubr.msk.f32.gmra.mxu0 %vm940_vm2, %v13168_v28  ;;  %15919 = vst [vmem:[#allocation19_spill] sm:$0xff] %v13183_v15  ;;  %v15747_v2 = vrot.slane %v13163_v31, 4 }
 0x360   : > { %v2360_v43 = vadd.f32 %v2286_v25, %v12951_v58  ;;  %10231 = vmatprep.mubr.msk.f32.mxu1 %vm11464_vm0, %v11463_v0  ;;  %10293 = vmatprep.mubr.msk.f32.mxu0 %vm11464_vm0, %v11463_v0  ;;  %v15920_v58 = vld [vmem:[#allocation35_spill] sm:$0xff] }
 0x361   : > { %v9964_v55 = vpop.f32.mrf.mxu1  ;;  %v10026_v34 = vpop.f32.mrf.mxu0 }
 0x362   : > { %v13187_v59 = vadd.f32 %v2545_v60, %v2360_v43  ;;  %v15921_v60 = vrot.slane %v11839_v38, 2  ;;  %v13206_v34 = vsel %vm1857_vm4, %v3202_v7, %v15747_v2 }
 0x363   : > { %v2291_v28 = vpop.f32.mrf.mxu1  ;;  %v2555_v47 = vpop.f32.mrf.mxu0  ;;  %10232 = vmatmul.mubr.msk.f32.gmra.mxu1 %vm940_vm2, %v15920_v58  ;;  %10294 = vmatmul.mubr.msk.f32.gmra.mxu0 %vm940_vm2, %v13183_v15  ;;  %15923 = vst [vmem:[#allocation20_spill] sm:$0xff] %v13206_v34 }
 0x364   : > { %v2361_v25 = vadd.f32 %v2291_v28, %v12967_v20  ;;  %10234 = vmatprep.mubr.msk.f32.mxu1 %vm11464_vm0, %v11463_v0  ;;  %10296 = vmatprep.mubr.msk.f32.mxu0 %vm11464_vm0, %v11463_v0  ;;  %v13201_v43 = vsel %vm1339_vm3, %v15921_v60, %v3010_v11  ;;  %v15748_v20 = vrot.slane %v12931_v36, 2  ;;  %v8747_v60 = vld [vmem:[%s15576_s2 + $0x70] sm:$0xff] }
 0x365   : > { %v9967_v14 = vpop.f32.mrf.mxu1  ;;  %v10029_v55 = vpop.f32.mrf.mxu0  ;;  %15922 = vst [vmem:[#allocation37_spill] sm:$0xff] %v13201_v43 }
 0x366   : > { %v13209_v28 = vadd.f32 %v2550_v33, %v2361_v25  ;;  %v13223_v33 = vsel %vm1339_vm3, %v3010_v11, %v15748_v20  ;;  %v3395_v25 = vrot.slane %v11688_v32, 5  ;;  %v8727_v20 = vld [vmem:[%s15576_s2 + $0x68] sm:$0xff] }
 0x367   : > { %v2296_v15 = vpop.f32.mrf.mxu1  ;;  %v2560_v58 = vpop.f32.mrf.mxu0  ;;  %10235 = vmatmul.mubr.msk.f32.gmra.mxu1 %vm940_vm2, %v13201_v43  ;;  %10297 = vmatmul.mubr.msk.f32.gmra.mxu0 %vm940_vm2, %v13206_v34  ;;  %15924 = vst [vmem:[#allocation21_spill] sm:$0xff] %v13223_v33  ;;  %v3397_v34 = vrot.slane %v11698_v35, 5 }
 0x368   : > { %v2362_v14 = vadd.f32 %v2296_v15, %v12981_v18  ;;  %10237 = vmatprep.mubr.msk.f32.mxu1 %vm11464_vm0, %v11463_v0  ;;  %10360 = vmatprep.mubr.msk.f32.mxu0 %vm11464_vm0, %v11463_v0 }
 0x369   : > { %v9970_v7 = vpop.f32.mrf.mxu1  ;;  %v10032_v55 = vpop.f32.mrf.mxu0 }
 0x36a   : > { %v13229_v18 = vadd.f32 %v2555_v47, %v2362_v14  ;;  %v15925_v7 = vld [vmem:[#allocation67_spill] sm:$0xff]  ;;  %v3394_v47 = vrot.slane %v11678_v29, 5  ;;  %v15926_v29 = vld [vmem:[#allocation69_spill] sm:$0xff] }
 0x36b   : > { %v2301_v15 = vpop.f32.mrf.mxu1  ;;  %v2565_v2 = vpop.f32.mrf.mxu0  ;;  %10238 = vmatmul.mubr.msk.f32.gmra.mxu1 %vm940_vm2, %v13223_v33  ;;  %10361 = vmatmul.mubr.msk.f32.vlgmr.msra.gmra.mxu0 %vm940_vm2, %v15925_v7 }
 0x36c   : > { %v2363_v11 = vadd.f32 %v2301_v15, %v12995_v24  ;;  %10301 = vmatprep.mubr.msk.f32.mxu1 %vm11464_vm0, %v11463_v0  ;;  %10363 = vmatprep.mubr.msk.f32.mxu0 %vm11464_vm0, %v11463_v0  ;;  %v3396_v7 = vsel %vm3393_vm8, %v3394_v47, %v3395_v25 }
 0x36d   : > { %v9973_v14 = vpop.f32.mrf.mxu1  ;;  %v10035_v55 = vpop.f32.mrf.mxu0  ;;  %10477 = vmatpush3.msra.mxu0 %v8747_v60 }
 0x36e   : > { %v13246_v24 = vadd.f32 %v2560_v58, %v2363_v11  ;;  %10594 = vmatprep.subr.mxu0 %v11463_v0  ;;  %v3398_v58 = vsel %vm3393_vm8, %v3395_v25, %v3397_v34  ;;  %v3399_v11 = vrot.slane %v11708_v39, 5 }
 0x36f   : > { %v2306_v15 = vpop.f32.mrf.mxu1  ;;  %v2570_v33 = vpop.f32.mrf.mxu0  ;;  %10302 = vmatmul.mubr.msk.f32.vlgmr.msra.gmra.mxu1 %vm940_vm2, %v3396_v7  ;;  %10364 = vmatmul.mubr.msk.f32.gmra.mxu0 %vm940_vm2, %v15926_v29 }
 0x370   : > { %v2364_v14 = vadd.f32 %v2306_v15, %v13008_v44  ;;  %10418 = vmatpush3.msra.mxu1 %v8727_v20  ;;  %10304 = vmatprep.mubr.msk.f32.mxu1 %vm11464_vm0, %v11463_v0  ;;  %v15927_v44 = vld [vmem:[#allocation71_spill] sm:$0xff] }
 0x371   : > { %v9976_v60 = vpop.f32.mrf.mxu1  ;;  %v10038_v47 = vpop.f32.mrf.mxu0  ;;  %10366 = vmatprep.mubr.msk.f32.mxu0 %vm11464_vm0, %v11463_v0  ;;  %10535 = vmatprep.subr.mxu1 %v11463_v0 }
 0x372   : > { %v13260_v55 = vadd.f32 %v2565_v2, %v2364_v14  ;;  %v13271_v2 = vsel %vm3393_vm8, %v3397_v34, %v3399_v11  ;;  %v3401_v14 = vrot.slane %v11718_v42, 5 }
 0x373   : > { %v2311_v7 = vpop.f32.mrf.mxu1  ;;  %v2575_v29 = vpop.f32.mrf.mxu0  ;;  %10305 = vmatmul.mubr.msk.f32.gmra.mxu1 %vm940_vm2, %v3398_v58  ;;  %10367 = vmatmul.mubr.msk.f32.gmra.mxu0 %vm940_vm2, %v15927_v44  ;;  %15928 = vst [vmem:[#allocation22_spill] sm:$0xff] %v13271_v2 }
 0x374   : > { %v2365_v20 = vadd.f32 %v2311_v7, %v13019_v26  ;;  %10307 = vmatprep.mubr.msk.f32.mxu1 %vm11464_vm0, %v11463_v0  ;;  %10369 = vmatprep.mubr.msk.f32.mxu0 %vm11464_vm0, %v11463_v0  ;;  %v15929_v26 = vld [vmem:[#allocation73_spill] sm:$0xff] }
 0x375   : > { %v9979_v25 = vpop.f32.mrf.mxu1  ;;  %v10041_v15 = vpop.f32.mrf.mxu0 }
 0x376   : > { %v13274_v60 = vadd.f32 %v2570_v33, %v2365_v20  ;;  %v13286_v33 = vsel %vm3393_vm8, %v3399_v11, %v3401_v14  ;;  %v3403_v20 = vrot.slane %v11728_v45, 5 }
 0x377   : > { %v2316_v47 = vpop.f32.mrf.mxu1  ;;  %v2580_v58 = vpop.f32.mrf.mxu0  ;;  %10308 = vmatmul.mubr.msk.f32.gmra.mxu1 %vm940_vm2, %v13271_v2  ;;  %10370 = vmatmul.mubr.msk.f32.gmra.mxu0 %vm940_vm2, %v15929_v26  ;;  %15930 = vst [vmem:[#allocation23_spill] sm:$0xff] %v13286_v33 }
 0x378   : > { %v2366_v7 = vadd.f32 %v2316_v47, %v13030_v5  ;;  %10310 = vmatprep.mubr.msk.f32.mxu1 %vm11464_vm0, %v11463_v0  ;;  %10372 = vmatprep.mubr.msk.f32.mxu0 %vm11464_vm0, %v11463_v0  ;;  %v15931_v5 = vld [vmem:[#allocation75_spill] sm:$0xff] }
 0x379   : > { %v9982_v34 = vpop.f32.mrf.mxu1  ;;  %v10044_v25 = vpop.f32.mrf.mxu0 }
 0x37a   : > { %v13289_v15 = vadd.f32 %v2575_v29, %v2366_v7  ;;  %v13301_v29 = vsel %vm3393_vm8, %v3401_v14, %v3403_v20  ;;  %v3405_v7 = vrot.slane %v11738_v48, 5 }
 0x37b   : > { %v2321_v44 = vpop.f32.mrf.mxu1  ;;  %v2585_v2 = vpop.f32.mrf.mxu0  ;;  %10311 = vmatmul.mubr.msk.f32.gmra.mxu1 %vm940_vm2, %v13286_v33  ;;  %10373 = vmatmul.mubr.msk.f32.gmra.mxu0 %vm940_vm2, %v15931_v5  ;;  %15932 = vst [vmem:[#allocation24_spill] sm:$0xff] %v13301_v29 }
 0x37c   : > { %v2367_v47 = vadd.f32 %v2321_v44, %v13041_v8  ;;  %10313 = vmatprep.mubr.msk.f32.mxu1 %vm11464_vm0, %v11463_v0  ;;  %10375 = vmatprep.mubr.msk.f32.mxu0 %vm11464_vm0, %v11463_v0  ;;  %v15933_v8 = vld [vmem:[#allocation77_spill] sm:$0xff] }
 0x37d   : > { %v9985_v11 = vpop.f32.mrf.mxu1  ;;  %v10047_v34 = vpop.f32.mrf.mxu0 }
 0x37e   : > { %v13304_v25 = vadd.f32 %v2580_v58, %v2367_v47  ;;  %v13316_v58 = vsel %vm3393_vm8, %v3403_v20, %v3405_v7  ;;  %v3407_v47 = vrot.slane %v11748_v51, 5 }
 0x37f   : > { %v2326_v26 = vpop.f32.mrf.mxu1  ;;  %v2590_v33 = vpop.f32.mrf.mxu0  ;;  %10314 = vmatmul.mubr.msk.f32.gmra.mxu1 %vm940_vm2, %v13301_v29  ;;  %10376 = vmatmul.mubr.msk.f32.gmra.mxu0 %vm940_vm2, %v15933_v8  ;;  %15934 = vst [vmem:[#allocation25_spill] sm:$0xff] %v13316_v58 }
 0x380   : > { %v2368_v44 = vadd.f32 %v2326_v26, %v13052_v4  ;;  %10316 = vmatprep.mubr.msk.f32.mxu1 %vm11464_vm0, %v11463_v0  ;;  %10378 = vmatprep.mubr.msk.f32.mxu0 %vm11464_vm0, %v11463_v0  ;;  %v15935_v4 = vld [vmem:[#allocation79_spill] sm:$0xff] }
 0x381   : > { %v9988_v14 = vpop.f32.mrf.mxu1  ;;  %v10050_v11 = vpop.f32.mrf.mxu0 }
 0x382   : > { %v13319_v34 = vadd.f32 %v2585_v2, %v2368_v44  ;;  %v13331_v2 = vsel %vm3393_vm8, %v3405_v7, %v3407_v47  ;;  %v3409_v44 = vrot.slane %v11758_v54, 5 }
 0x383   : > { %v2331_v5 = vpop.f32.mrf.mxu1  ;;  %v2595_v29 = vpop.f32.mrf.mxu0  ;;  %10317 = vmatmul.mubr.msk.f32.gmra.mxu1 %vm940_vm2, %v13316_v58  ;;  %10379 = vmatmul.mubr.msk.f32.gmra.mxu0 %vm940_vm2, %v15935_v4  ;;  %15936 = vst [vmem:[#allocation26_spill] sm:$0xff] %v13331_v2 }
 0x384   : > { %v2369_v26 = vadd.f32 %v2331_v5, %v13063_v23  ;;  %10319 = vmatprep.mubr.msk.f32.mxu1 %vm11464_vm0, %v11463_v0  ;;  %10381 = vmatprep.mubr.msk.f32.mxu0 %vm11464_vm0, %v11463_v0  ;;  %v15937_v23 = vld [vmem:[#allocation81_spill] sm:$0xff] }
 0x385   : > { %v9991_v20 = vpop.f32.mrf.mxu1  ;;  %v10053_v14 = vpop.f32.mrf.mxu0 }
 0x386   : > { %v13334_v11 = vadd.f32 %v2590_v33, %v2369_v26  ;;  %v13346_v33 = vsel %vm3393_vm8, %v3407_v47, %v3409_v44  ;;  %v3411_v26 = vrot.slane %v11768_v57, 5 }
 0x387   : > { %v2336_v8 = vpop.f32.mrf.mxu1  ;;  %v2600_v58 = vpop.f32.mrf.mxu0  ;;  %10320 = vmatmul.mubr.msk.f32.gmra.mxu1 %vm940_vm2, %v13331_v2  ;;  %10382 = vmatmul.mubr.msk.f32.gmra.mxu0 %vm940_vm2, %v15937_v23  ;;  %15938 = vst [vmem:[#allocation27_spill] sm:$0xff] %v13346_v33 }
 0x388   : > { %v2370_v5 = vadd.f32 %v2336_v8, %v13074_v41  ;;  %10322 = vmatprep.mubr.msk.f32.mxu1 %vm11464_vm0, %v11463_v0  ;;  %10384 = vmatprep.mubr.msk.f32.mxu0 %vm11464_vm0, %v11463_v0  ;;  %v15939_v41 = vld [vmem:[#allocation83_spill] sm:$0xff] }
 0x389   : > { %v9994_v7 = vpop.f32.mrf.mxu1  ;;  %v10056_v20 = vpop.f32.mrf.mxu0 }
 0x38a   : > { %v13349_v14 = vadd.f32 %v2595_v29, %v2370_v5  ;;  %v13361_v29 = vsel %vm3393_vm8, %v3409_v44, %v3411_v26  ;;  %v3413_v5 = vrot.slane %v15875_v30, 5 }
 0x38b   : > { %v2341_v4 = vpop.f32.mrf.mxu1  ;;  %v2605_v2 = vpop.f32.mrf.mxu0  ;;  %10323 = vmatmul.mubr.msk.f32.gmra.mxu1 %vm940_vm2, %v13346_v33  ;;  %10385 = vmatmul.mubr.msk.f32.gmra.mxu0 %vm940_vm2, %v15939_v41  ;;  %15940 = vst [vmem:[#allocation67_spill] sm:$0xff] %v13361_v29 }
 0x38c   : > { %v2371_v8 = vadd.f32 %v2341_v4, %v13085_v19  ;;  %10325 = vmatprep.mubr.msk.f32.mxu1 %vm11464_vm0, %v11463_v0  ;;  %10387 = vmatprep.mubr.msk.f32.mxu0 %vm11464_vm0, %v11463_v0  ;;  %v15941_v19 = vld [vmem:[#allocation85_spill] sm:$0xff] }
 0x38d   : > { %v9997_v47 = vpop.f32.mrf.mxu1  ;;  %v10059_v7 = vpop.f32.mrf.mxu0 }
 0x38e   : > { %v13364_v20 = vadd.f32 %v2600_v58, %v2371_v8  ;;  %v13376_v58 = vsel %vm3393_vm8, %v3411_v26, %v3413_v5  ;;  %v3415_v8 = vrot.slane %v11788_v63, 5 }
 0x38f   : > { %v2346_v23 = vpop.f32.mrf.mxu1  ;;  %v2610_v33 = vpop.f32.mrf.mxu0  ;;  %10326 = vmatmul.mubr.msk.f32.gmra.mxu1 %vm940_vm2, %v13361_v29  ;;  %10388 = vmatmul.mubr.msk.f32.gmra.mxu0 %vm940_vm2, %v15941_v19  ;;  %15942 = vst [vmem:[#allocation69_spill] sm:$0xff] %v13376_v58 }
 0x390   : > { %v2372_v4 = vadd.f32 %v2346_v23, %v13096_v13  ;;  %10328 = vmatprep.mubr.msk.f32.mxu1 %vm11464_vm0, %v11463_v0  ;;  %10390 = vmatprep.mubr.msk.f32.mxu0 %vm11464_vm0, %v11463_v0  ;;  %v15943_v13 = vld [vmem:[#allocation87_spill] sm:$0xff] }
 0x391   : > { %v10000_v44 = vpop.f32.mrf.mxu1  ;;  %v10062_v47 = vpop.f32.mrf.mxu0 }
 0x392   : > { %v13379_v7 = vadd.f32 %v2605_v2, %v2372_v4  ;;  %v13391_v2 = vsel %vm3393_vm8, %v3413_v5, %v3415_v8  ;;  %v3417_v4 = vrot.slane %v11798_v3, 5 }
 0x393   : > { %v2351_v41 = vpop.f32.mrf.mxu1  ;;  %v2895_v29 = vpop.f32.mrf.mxu0  ;;  %10329 = vmatmul.mubr.msk.f32.gmra.mxu1 %vm940_vm2, %v13376_v58  ;;  %10391 = vmatmul.mubr.msk.f32.gmra.mxu0 %vm940_vm2, %v15943_v13  ;;  %15944 = vst [vmem:[#allocation99_spill] sm:$0xff] %v13391_v2 }
 0x394   : > { %v2373_v23 = vadd.f32 %v2351_v41, %v13107_v61  ;;  %10331 = vmatprep.mubr.msk.f32.mxu1 %vm11464_vm0, %v11463_v0  ;;  %10393 = vmatprep.mubr.msk.f32.mxu0 %vm11464_vm0, %v11463_v0  ;;  %v15945_v61 = vld [vmem:[#allocation89_spill] sm:$0xff] }
 0x395   : > { %v10003_v26 = vpop.f32.mrf.mxu1  ;;  %v10126_v44 = vpop.f32.mrf.mxu0 }
 0x396   : > { %v13394_v47 = vadd.f32 %v2610_v33, %v2373_v23  ;;  %v13406_v33 = vsel %vm3393_vm8, %v3415_v8, %v3417_v4  ;;  %v3419_v23 = vrot.slane %v11808_v6, 5 }
 0x397   : > { %v2705_v19 = vpop.f32.mrf.mxu1  ;;  %v2900_v58 = vpop.f32.mrf.mxu0  ;;  %10332 = vmatmul.mubr.msk.f32.gmra.mxu1 %vm940_vm2, %v13391_v2  ;;  %10394 = vmatmul.mubr.msk.f32.gmra.mxu0 %vm940_vm2, %v15945_v61  ;;  %15946 = vst [vmem:[#allocation100_spill] sm:$0xff] %v13406_v33 }
 0x398   : > { %v2799_v41 = vadd.f32 %v2705_v19, %v13118_v17  ;;  %10334 = vmatprep.mubr.msk.f32.mxu1 %vm11464_vm0, %v11463_v0  ;;  %10396 = vmatprep.mubr.msk.f32.mxu0 %vm11464_vm0, %v11463_v0  ;;  %v15947_v17 = vld [vmem:[#allocation91_spill] sm:$0xff] }
 0x399   : > { %v10067_v5 = vpop.f32.mrf.mxu1  ;;  %v10129_v26 = vpop.f32.mrf.mxu0 }
 0x39a   : > { %v13409_v44 = vadd.f32 %v2895_v29, %v2799_v41  ;;  %v13421_v29 = vsel %vm3393_vm8, %v3417_v4, %v3419_v23  ;;  %v3421_v41 = vrot.slane %v15880_v22, 5 }
 0x39b   : > { %v2710_v13 = vpop.f32.mrf.mxu1  ;;  %v2905_v2 = vpop.f32.mrf.mxu0  ;;  %10335 = vmatmul.mubr.msk.f32.gmra.mxu1 %vm940_vm2, %v13406_v33  ;;  %10397 = vmatmul.mubr.msk.f32.gmra.mxu0 %vm940_vm2, %v15947_v17  ;;  %15948 = vst [vmem:[#allocation101_spill] sm:$0xff] %v13421_v29 }
 0x39c   : > { %v2800_v19 = vadd.f32 %v2710_v13, %v13129_v16  ;;  %10337 = vmatprep.mubr.msk.f32.mxu1 %vm11464_vm0, %v11463_v0  ;;  %10399 = vmatprep.mubr.msk.f32.mxu0 %vm11464_vm0, %v11463_v0  ;;  %v15949_v16 = vld [vmem:[#allocation93_spill] sm:$0xff] }
 0x39d   : > { %v10070_v8 = vpop.f32.mrf.mxu1  ;;  %v10132_v5 = vpop.f32.mrf.mxu0 }
 0x39e   : > { %v13424_v26 = vadd.f32 %v2900_v58, %v2800_v19  ;;  %v13436_v58 = vsel %vm3393_vm8, %v3419_v23, %v3421_v41  ;;  %v3423_v19 = vrot.slane %v11828_v12, 5 }
 0x39f   : > { %v2715_v61 = vpop.f32.mrf.mxu1  ;;  %v2910_v33 = vpop.f32.mrf.mxu0  ;;  %10338 = vmatmul.mubr.msk.f32.gmra.mxu1 %vm940_vm2, %v13421_v29  ;;  %10400 = vmatmul.mubr.msk.f32.gmra.mxu0 %vm940_vm2, %v15949_v16 }
 0x3a0   : > { %v2801_v13 = vadd.f32 %v2715_v61, %v13140_v1  ;;  %10340 = vmatprep.mubr.msk.f32.mxu1 %vm11464_vm0, %v11463_v0  ;;  %10402 = vmatprep.mubr.msk.f32.mxu0 %vm11464_vm0, %v11463_v0 }
 0x3a1   : > { %v10073_v4 = vpop.f32.mrf.mxu1  ;;  %v10135_v8 = vpop.f32.mrf.mxu0 }
 0x3a2   : > { %v13439_v5 = vadd.f32 %v2905_v2, %v2801_v13  ;;  %v13451_v2 = vsel %vm3393_vm8, %v3421_v41, %v3423_v19  ;;  %v3425_v13 = vrot.slane %v11839_v38, 5 }
 0x3a3   : > { %v2720_v17 = vpop.f32.mrf.mxu1  ;;  %v2915_v29 = vpop.f32.mrf.mxu0  ;;  %10341 = vmatmul.mubr.msk.f32.gmra.mxu1 %vm940_vm2, %v13436_v58  ;;  %10403 = vmatmul.mubr.msk.f32.gmra.mxu0 %vm940_vm2, %v12704_v10 }
 0x3a4   : > { %v2802_v1 = vadd.f32 %v2720_v17, %v13152_v40  ;;  %10343 = vmatprep.mubr.msk.f32.mxu1 %vm11464_vm0, %v11463_v0  ;;  %10405 = vmatprep.mubr.msk.f32.mxu0 %vm11464_vm0, %v11463_v0 }
 0x3a5   : > { %v10076_v61 = vpop.f32.mrf.mxu1  ;;  %v10138_v23 = vpop.f32.mrf.mxu0 }
 0x3a6   : > { %v13454_v4 = vadd.f32 %v2910_v33, %v2802_v1  ;;  %v3427_v33 = vrot.slane %v12683_v21, 5  ;;  %v13467_v1 = vsel %vm3393_vm8, %v3423_v19, %v3425_v13  ;;  %v3652_v61 = vrot.slane %v12931_v36, 6 }
 0x3a7   : > { %v2725_v8 = vpop.f32.mrf.mxu1  ;;  %v2920_v16 = vpop.f32.mrf.mxu0  ;;  %10344 = vmatmul.mubr.msk.f32.gmra.mxu1 %vm940_vm2, %v13451_v2  ;;  %10406 = vmatmul.mubr.msk.f32.gmra.mxu0 %vm940_vm2, %v12723_v52  ;;  %15950 = vst [vmem:[#allocation102_spill] sm:$0xff] %v13467_v1 }
 0x3a8   : > { %v2803_v40 = vadd.f32 %v2725_v8, %v13171_v37  ;;  %10346 = vmatprep.mubr.msk.f32.mxu1 %vm11464_vm0, %v11463_v0  ;;  %10408 = vmatprep.mubr.msk.f32.mxu0 %vm11464_vm0, %v11463_v0 }
 0x3a9   : > { %v10079_v17 = vpop.f32.mrf.mxu1  ;;  %v10141_v41 = vpop.f32.mrf.mxu0 }
 0x3aa   : > { %v13470_v23 = vadd.f32 %v2915_v29, %v2803_v40  ;;  %v13482_v29 = vsel %vm3393_vm8, %v3425_v13, %v3427_v33  ;;  %v15951_v40 = vrot.slane %v12683_v21, 6  ;;  %v3429_v41 = vrot.slane %v12931_v36, 5 }
 0x3ab   : > { %v2730_v52 = vpop.f32.mrf.mxu1  ;;  %v2925_v10 = vpop.f32.mrf.mxu0  ;;  %10347 = vmatmul.mubr.msk.f32.gmra.mxu1 %vm940_vm2, %v13467_v1  ;;  %10409 = vmatmul.mubr.msk.f32.gmra.mxu0 %vm940_vm2, %v12745_v9 }
 0x3ac   : > { %v2804_v37 = vadd.f32 %v2730_v52, %v13187_v59  ;;  %10349 = vmatprep.mubr.msk.f32.mxu1 %vm11464_vm0, %v11463_v0  ;;  %10411 = vmatprep.mubr.msk.f32.mxu0 %vm11464_vm0, %v11463_v0  ;;  %v13487_v17 = vsel %vm2117_vm7, %v15951_v40, %v3652_v61  ;;  %v15769_v59 = vrot.slane %v13163_v31, 6  ;;  %v15770_v40 = vrot.slane %v13163_v31, 5 }
 0x3ad   : > { %v10082_v19 = vpop.f32.mrf.mxu1  ;;  %v10144_v8 = vpop.f32.mrf.mxu0  ;;  %15952 = vst [vmem:[#allocation103_spill] sm:$0xff] %v13487_v17 }
 0x3ae   : > { %v13491_v52 = vadd.f32 %v2920_v16, %v2804_v37  ;;  %v13503_v16 = vsel %vm3393_vm8, %v3427_v33, %v3429_v41  ;;  %v13508_v37 = vsel %vm2117_vm7, %v3652_v61, %v15769_v59 }
 0x3af   : > { %v2735_v9 = vpop.f32.mrf.mxu1  ;;  %v2930_v1 = vpop.f32.mrf.mxu0  ;;  %10350 = vmatmul.mubr.msk.f32.gmra.mxu1 %vm940_vm2, %v13482_v29  ;;  %10412 = vmatmul.mubr.msk.f32.gmra.mxu0 %vm940_vm2, %v13487_v17 }
 0x3b0   : > { %v2805_v13 = vadd.f32 %v2735_v9, %v13209_v28  ;;  %10352 = vmatprep.mubr.msk.f32.mxu1 %vm11464_vm0, %v11463_v0  ;;  %10414 = vmatprep.mubr.msk.f32.mxu0 %vm11464_vm0, %v11463_v0 }
 0x3b1   : > { %v10085_v19 = vpop.f32.mrf.mxu1  ;;  %v10147_v8 = vpop.f32.mrf.mxu0 }
 0x3b2   : > { %v13511_v17 = vadd.f32 %v2925_v10, %v2805_v13  ;;  %v13525_v10 = vsel %vm3393_vm8, %v3429_v41, %v15770_v40  ;;  %v8787_v13 = vld [vmem:[%s15576_s2 + $0x80] sm:$0xff] }
 0x3b3   : > { %v2740_v9 = vpop.f32.mrf.mxu1  ;;  %v2935_v28 = vpop.f32.mrf.mxu0  ;;  %10353 = vmatmul.mubr.msk.f32.gmra.mxu1 %vm940_vm2, %v13503_v16  ;;  %10415 = vmatmul.mubr.msk.f32.gmra.mxu0 %vm940_vm2, %v13508_v37  ;;  %v15979_v40 = vld [vmem:[#allocation29_spill] sm:$0xff] }
 0x3b4   : > { %v2806_v33 = vadd.f32 %v2740_v9, %v13229_v18  ;;  %10355 = vmatprep.mubr.msk.f32.mxu1 %vm11464_vm0, %v11463_v0  ;;  %10478 = vmatprep.mubr.msk.f32.mxu0 %vm11464_vm0, %v11463_v0 }
 0x3b5   : > { %v10088_v61 = vpop.f32.mrf.mxu1  ;;  %v10150_v19 = vpop.f32.mrf.mxu0 }
 0x3b6   : > { %v13530_v8 = vadd.f32 %v2930_v1, %v2806_v33  ;;  %v8767_v1 = vld [vmem:[%s15576_s2 + $0x78] sm:$0xff] }
 0x3b7   : > { %v2745_v18 = vpop.f32.mrf.mxu1  ;;  %v2940_v9 = vpop.f32.mrf.mxu0  ;;  %10356 = vmatmul.mubr.msk.f32.gmra.mxu1 %vm940_vm2, %v13525_v10  ;;  %10479 = vmatmul.mubr.msk.f32.vlgmr.msra.gmra.mxu0 %vm940_vm2, %v11688_v32 }
 0x3b8   : > { %v2807_v61 = vadd.f32 %v2745_v18, %v13246_v24  ;;  %10419 = vmatprep.mubr.msk.f32.mxu1 %vm11464_vm0, %v11463_v0  ;;  %10481 = vmatprep.mubr.msk.f32.mxu0 %vm11464_vm0, %v11463_v0  ;;  %v15953_v24 = vld [vmem:[#allocation66_spill] sm:$0xff] }
 0x3b9   : > { %v10091_v41 = vpop.f32.mrf.mxu1  ;;  %v10153_v19 = vpop.f32.mrf.mxu0  ;;  %10595 = vmatpush3.msra.mxu0 %v8787_v13 }
 0x3ba   : > { %v13544_v33 = vadd.f32 %v2935_v28, %v2807_v61  ;;  %10712 = vmatprep.subr.mxu0 %v11463_v0 }
 0x3bb   : > { %v2750_v32 = vpop.f32.mrf.mxu1  ;;  %v2945_v59 = vpop.f32.mrf.mxu0  ;;  %10420 = vmatmul.mubr.msk.f32.vlgmr.msra.gmra.mxu1 %vm940_vm2, %v15953_v24  ;;  %10482 = vmatmul.mubr.msk.f32.gmra.mxu0 %vm940_vm2, %v11698_v35  ;;  %v15954_v24 = vld [vmem:[#allocation68_spill] sm:$0xff] }
 0x3bc   : > { %v2808_v18 = vadd.f32 %v2750_v32, %v13260_v55  ;;  %10536 = vmatpush3.msra.mxu1 %v8767_v1  ;;  %10422 = vmatprep.mubr.msk.f32.mxu1 %vm11464_vm0, %v11463_v0 }
 0x3bd   : > { %v10094_v41 = vpop.f32.mrf.mxu1  ;;  %v10156_v13 = vpop.f32.mrf.mxu0  ;;  %10484 = vmatprep.mubr.msk.f32.mxu0 %vm11464_vm0, %v11463_v0  ;;  %10653 = vmatprep.subr.mxu1 %v11463_v0 }
 0x3be   : > { %v13557_v28 = vadd.f32 %v2940_v9, %v2808_v18  ;;  %v15955_v41 = vld [vmem:[#allocation70_spill] sm:$0xff] }
 0x3bf   : > { %v2755_v61 = vpop.f32.mrf.mxu1  ;;  %v2950_v19 = vpop.f32.mrf.mxu0  ;;  %10423 = vmatmul.mubr.msk.f32.gmra.mxu1 %vm940_vm2, %v15954_v24  ;;  %10485 = vmatmul.mubr.msk.f32.gmra.mxu0 %vm940_vm2, %v11708_v39 }
 0x3c0   : > { %v2809_v35 = vadd.f32 %v2755_v61, %v13274_v60  ;;  %10425 = vmatprep.mubr.msk.f32.mxu1 %vm11464_vm0, %v11463_v0  ;;  %10487 = vmatprep.mubr.msk.f32.mxu0 %vm11464_vm0, %v11463_v0 }
 0x3c1   : > { %v10097_v55 = vpop.f32.mrf.mxu1  ;;  %v10159_v1 = vpop.f32.mrf.mxu0 }
 0x3c2   : > { %v13568_v9 = vadd.f32 %v2945_v59, %v2809_v35  ;;  %v15956_v35 = vld [vmem:[#allocation72_spill] sm:$0xff] }
 0x3c3   : > { %v2760_v32 = vpop.f32.mrf.mxu1  ;;  %v2955_v18 = vpop.f32.mrf.mxu0  ;;  %10426 = vmatmul.mubr.msk.f32.gmra.mxu1 %vm940_vm2, %v15955_v41  ;;  %10488 = vmatmul.mubr.msk.f32.gmra.mxu0 %vm940_vm2, %v11718_v42 }
 0x3c4   : > { %v2810_v39 = vadd.f32 %v2760_v32, %v13289_v15  ;;  %10428 = vmatprep.mubr.msk.f32.mxu1 %vm11464_vm0, %v11463_v0  ;;  %10490 = vmatprep.mubr.msk.f32.mxu0 %vm11464_vm0, %v11463_v0 }
 0x3c5   : > { %v10100_v60 = vpop.f32.mrf.mxu1  ;;  %v10162_v13 = vpop.f32.mrf.mxu0 }
 0x3c6   : > { %v13579_v59 = vadd.f32 %v2950_v19, %v2810_v39  ;;  %v15957_v39 = vld [vmem:[#allocation74_spill] sm:$0xff] }
 0x3c7   : > { %v2765_v61 = vpop.f32.mrf.mxu1  ;;  %v2960_v24 = vpop.f32.mrf.mxu0  ;;  %10429 = vmatmul.mubr.msk.f32.gmra.mxu1 %vm940_vm2, %v15956_v35  ;;  %10491 = vmatmul.mubr.msk.f32.gmra.mxu0 %vm940_vm2, %v11728_v45 }
 0x3c8   : > { %v2811_v15 = vadd.f32 %v2765_v61, %v13304_v25  ;;  %10431 = vmatprep.mubr.msk.f32.mxu1 %vm11464_vm0, %v11463_v0  ;;  %10493 = vmatprep.mubr.msk.f32.mxu0 %vm11464_vm0, %v11463_v0 }
 0x3c9   : > { %v10103_v55 = vpop.f32.mrf.mxu1  ;;  %v10165_v1 = vpop.f32.mrf.mxu0 }
 0x3ca   : > { %v13590_v19 = vadd.f32 %v2955_v18, %v2811_v15  ;;  %v15958_v15 = vld [vmem:[#allocation76_spill] sm:$0xff] }
 0x3cb   : > { %v2770_v32 = vpop.f32.mrf.mxu1  ;;  %v2965_v41 = vpop.f32.mrf.mxu0  ;;  %10432 = vmatmul.mubr.msk.f32.gmra.mxu1 %vm940_vm2, %v15957_v39  ;;  %10494 = vmatmul.mubr.msk.f32.gmra.mxu0 %vm940_vm2, %v11738_v48 }
 0x3cc   : > { %v2812_v25 = vadd.f32 %v2770_v32, %v13319_v34  ;;  %10434 = vmatprep.mubr.msk.f32.mxu1 %vm11464_vm0, %v11463_v0  ;;  %10496 = vmatprep.mubr.msk.f32.mxu0 %vm11464_vm0, %v11463_v0 }
 0x3cd   : > { %v10106_v60 = vpop.f32.mrf.mxu1  ;;  %v10168_v13 = vpop.f32.mrf.mxu0 }
 0x3ce   : > { %v13601_v18 = vadd.f32 %v2960_v24, %v2812_v25  ;;  %v15959_v25 = vld [vmem:[#allocation78_spill] sm:$0xff] }
 0x3cf   : > { %v2775_v61 = vpop.f32.mrf.mxu1  ;;  %v2970_v35 = vpop.f32.mrf.mxu0  ;;  %10435 = vmatmul.mubr.msk.f32.gmra.mxu1 %vm940_vm2, %v15958_v15  ;;  %10497 = vmatmul.mubr.msk.f32.gmra.mxu0 %vm940_vm2, %v11748_v51 }
 0x3d0   : > { %v2813_v34 = vadd.f32 %v2775_v61, %v13334_v11  ;;  %10437 = vmatprep.mubr.msk.f32.mxu1 %vm11464_vm0, %v11463_v0  ;;  %10499 = vmatprep.mubr.msk.f32.mxu0 %vm11464_vm0, %v11463_v0 }
 0x3d1   : > { %v10109_v55 = vpop.f32.mrf.mxu1  ;;  %v10171_v1 = vpop.f32.mrf.mxu0 }
 0x3d2   : > { %v13612_v24 = vadd.f32 %v2965_v41, %v2813_v34  ;;  %v15960_v34 = vld [vmem:[#allocation80_spill] sm:$0xff] }
 0x3d3   : > { %v2780_v32 = vpop.f32.mrf.mxu1  ;;  %v2975_v39 = vpop.f32.mrf.mxu0  ;;  %10438 = vmatmul.mubr.msk.f32.gmra.mxu1 %vm940_vm2, %v15959_v25  ;;  %10500 = vmatmul.mubr.msk.f32.gmra.mxu0 %vm940_vm2, %v11758_v54 }
 0x3d4   : > { %v2814_v11 = vadd.f32 %v2780_v32, %v13349_v14  ;;  %10440 = vmatprep.mubr.msk.f32.mxu1 %vm11464_vm0, %v11463_v0  ;;  %10502 = vmatprep.mubr.msk.f32.mxu0 %vm11464_vm0, %v11463_v0 }
 0x3d5   : > { %v10112_v60 = vpop.f32.mrf.mxu1  ;;  %v10174_v13 = vpop.f32.mrf.mxu0 }
 0x3d6   : > { %v13623_v41 = vadd.f32 %v2970_v35, %v2814_v11  ;;  %v15961_v11 = vld [vmem:[#allocation82_spill] sm:$0xff] }
 0x3d7   : > { %v2785_v61 = vpop.f32.mrf.mxu1  ;;  %v2980_v15 = vpop.f32.mrf.mxu0  ;;  %10441 = vmatmul.mubr.msk.f32.gmra.mxu1 %vm940_vm2, %v15960_v34  ;;  %10503 = vmatmul.mubr.msk.f32.gmra.mxu0 %vm940_vm2, %v11768_v57 }
 0x3d8   : > { %v2815_v14 = vadd.f32 %v2785_v61, %v13364_v20  ;;  %10443 = vmatprep.mubr.msk.f32.mxu1 %vm11464_vm0, %v11463_v0  ;;  %10505 = vmatprep.mubr.msk.f32.mxu0 %vm11464_vm0, %v11463_v0 }
 0x3d9   : > { %v10115_v55 = vpop.f32.mrf.mxu1  ;;  %v10177_v1 = vpop.f32.mrf.mxu0 }
 0x3da   : > { %v13634_v35 = vadd.f32 %v2975_v39, %v2815_v14  ;;  %v15962_v14 = vld [vmem:[#allocation84_spill] sm:$0xff] }
 0x3db   : > { %v2790_v32 = vpop.f32.mrf.mxu1  ;;  %v2985_v25 = vpop.f32.mrf.mxu0  ;;  %10444 = vmatmul.mubr.msk.f32.gmra.mxu1 %vm940_vm2, %v15961_v11  ;;  %10506 = vmatmul.mubr.msk.f32.gmra.mxu0 %vm940_vm2, %v15875_v30 }
 0x3dc   : > { %v2816_v20 = vadd.f32 %v2790_v32, %v13379_v7  ;;  %10446 = vmatprep.mubr.msk.f32.mxu1 %vm11464_vm0, %v11463_v0  ;;  %10508 = vmatprep.mubr.msk.f32.mxu0 %vm11464_vm0, %v11463_v0 }
 0x3dd   : > { %v10118_v60 = vpop.f32.mrf.mxu1  ;;  %v10180_v13 = vpop.f32.mrf.mxu0 }
 0x3de   : > { %v13645_v39 = vadd.f32 %v2980_v15, %v2816_v20  ;;  %v15963_v20 = vld [vmem:[#allocation86_spill] sm:$0xff] }
 0x3df   : > { %v2795_v61 = vpop.f32.mrf.mxu1  ;;  %v3278_v34 = vpop.f32.mrf.mxu0  ;;  %10447 = vmatmul.mubr.msk.f32.gmra.mxu1 %vm940_vm2, %v15962_v14  ;;  %10509 = vmatmul.mubr.msk.f32.gmra.mxu0 %vm940_vm2, %v11788_v63 }
 0x3e0   : > { %v2817_v7 = vadd.f32 %v2795_v61, %v13394_v47  ;;  %10449 = vmatprep.mubr.msk.f32.mxu1 %vm11464_vm0, %v11463_v0  ;;  %10511 = vmatprep.mubr.msk.f32.mxu0 %vm11464_vm0, %v11463_v0 }
 0x3e1   : > { %v10121_v55 = vpop.f32.mrf.mxu1  ;;  %v10244_v1 = vpop.f32.mrf.mxu0 }
 0x3e2   : > { %v13656_v15 = vadd.f32 %v2985_v25, %v2817_v7  ;;  %v15964_v7 = vld [vmem:[#allocation88_spill] sm:$0xff] }
 0x3e3   : > { %v3084_v32 = vpop.f32.mrf.mxu1  ;;  %v3283_v11 = vpop.f32.mrf.mxu0  ;;  %10450 = vmatmul.mubr.msk.f32.gmra.mxu1 %vm940_vm2, %v15963_v20  ;;  %10512 = vmatmul.mubr.msk.f32.gmra.mxu0 %vm940_vm2, %v11798_v3 }
 0x3e4   : > { %v3178_v47 = vadd.f32 %v3084_v32, %v13409_v44  ;;  %10452 = vmatprep.mubr.msk.f32.mxu1 %vm11464_vm0, %v11463_v0  ;;  %10514 = vmatprep.mubr.msk.f32.mxu0 %vm11464_vm0, %v11463_v0 }
 0x3e5   : > { %v10185_v60 = vpop.f32.mrf.mxu1  ;;  %v10247_v13 = vpop.f32.mrf.mxu0 }
 0x3e6   : > { %v13667_v25 = vadd.f32 %v3278_v34, %v3178_v47  ;;  %v15965_v47 = vld [vmem:[#allocation90_spill] sm:$0xff] }
 0x3e7   : > { %v3089_v61 = vpop.f32.mrf.mxu1  ;;  %v3288_v14 = vpop.f32.mrf.mxu0  ;;  %10453 = vmatmul.mubr.msk.f32.gmra.mxu1 %vm940_vm2, %v15964_v7  ;;  %10515 = vmatmul.mubr.msk.f32.gmra.mxu0 %vm940_vm2, %v11808_v6 }
 0x3e8   : > { %v3179_v44 = vadd.f32 %v3089_v61, %v13424_v26  ;;  %10455 = vmatprep.mubr.msk.f32.mxu1 %vm11464_vm0, %v11463_v0  ;;  %10517 = vmatprep.mubr.msk.f32.mxu0 %vm11464_vm0, %v11463_v0 }
 0x3e9   : > { %v10188_v55 = vpop.f32.mrf.mxu1  ;;  %v10250_v1 = vpop.f32.mrf.mxu0 }
 0x3ea   : > { %v13678_v34 = vadd.f32 %v3283_v11, %v3179_v44  ;;  %v15966_v44 = vld [vmem:[#allocation92_spill] sm:$0xff] }
 0x3eb   : > { %v3094_v32 = vpop.f32.mrf.mxu1  ;;  %v3293_v20 = vpop.f32.mrf.mxu0  ;;  %10456 = vmatmul.mubr.msk.f32.gmra.mxu1 %vm940_vm2, %v15965_v47  ;;  %10518 = vmatmul.mubr.msk.f32.gmra.mxu0 %vm940_vm2, %v15880_v22 }
 0x3ec   : > { %v3180_v26 = vadd.f32 %v3094_v32, %v13439_v5  ;;  %10458 = vmatprep.mubr.msk.f32.mxu1 %vm11464_vm0, %v11463_v0  ;;  %10520 = vmatprep.mubr.msk.f32.mxu0 %vm11464_vm0, %v11463_v0 }
 0x3ed   : > { %v10191_v60 = vpop.f32.mrf.mxu1  ;;  %v10253_v13 = vpop.f32.mrf.mxu0 }
 0x3ee   : > { %v13689_v11 = vadd.f32 %v3288_v14, %v3180_v26  ;;  %v15967_v26 = vld [vmem:[#allocation94_spill] sm:$0xff] }
 0x3ef   : > { %v3099_v61 = vpop.f32.mrf.mxu1  ;;  %v3298_v7 = vpop.f32.mrf.mxu0  ;;  %10459 = vmatmul.mubr.msk.f32.gmra.mxu1 %vm940_vm2, %v15966_v44  ;;  %10521 = vmatmul.mubr.msk.f32.gmra.mxu0 %vm940_vm2, %v11828_v12 }
 0x3f0   : > { %v3181_v5 = vadd.f32 %v3099_v61, %v13454_v4  ;;  %10461 = vmatprep.mubr.msk.f32.mxu1 %vm11464_vm0, %v11463_v0  ;;  %10523 = vmatprep.mubr.msk.f32.mxu0 %vm11464_vm0, %v11463_v0 }
 0x3f1   : > { %v10194_v55 = vpop.f32.mrf.mxu1  ;;  %v10256_v1 = vpop.f32.mrf.mxu0 }
 0x3f2   : > { %v13700_v14 = vadd.f32 %v3293_v20, %v3181_v5  ;;  %v15968_v5 = vld [vmem:[#allocation96_spill] sm:$0xff] }
 0x3f3   : > { %v3104_v32 = vpop.f32.mrf.mxu1  ;;  %v3303_v47 = vpop.f32.mrf.mxu0  ;;  %10462 = vmatmul.mubr.msk.f32.gmra.mxu1 %vm940_vm2, %v15967_v26  ;;  %10524 = vmatmul.mubr.msk.f32.gmra.mxu0 %vm940_vm2, %v11839_v38 }
 0x3f4   : > { %v3182_v4 = vadd.f32 %v3104_v32, %v13470_v23  ;;  %10464 = vmatprep.mubr.msk.f32.mxu1 %vm11464_vm0, %v11463_v0  ;;  %10526 = vmatprep.mubr.msk.f32.mxu0 %vm11464_vm0, %v11463_v0 }
 0x3f5   : > { %v10197_v60 = vpop.f32.mrf.mxu1  ;;  %v10259_v13 = vpop.f32.mrf.mxu0 }
 0x3f6   : > { %v13711_v20 = vadd.f32 %v3298_v7, %v3182_v4  ;;  %v3841_v7 = vrot.slane %v12931_v36, 7 }
 0x3f7   : > { %v3109_v61 = vpop.f32.mrf.mxu1  ;;  %v3308_v44 = vpop.f32.mrf.mxu0  ;;  %10465 = vmatmul.mubr.msk.f32.gmra.mxu1 %vm940_vm2, %v15968_v5  ;;  %10527 = vmatmul.mubr.msk.f32.gmra.mxu0 %vm940_vm2, %v12683_v21  ;;  %v3843_v5 = vrot.slane %v13163_v31, 7 }
 0x3f8   : > { %v3183_v23 = vadd.f32 %v3109_v61, %v13491_v52  ;;  %10467 = vmatprep.mubr.msk.f32.mxu1 %vm11464_vm0, %v11463_v0  ;;  %10529 = vmatprep.mubr.msk.f32.mxu0 %vm11464_vm0, %v11463_v0 }
 0x3f9   : > { %v10200_v55 = vpop.f32.mrf.mxu1  ;;  %v10262_v1 = vpop.f32.mrf.mxu0 }
 0x3fa   : > { %v13723_v32 = vadd.f32 %v3303_v47, %v3183_v23  ;;  %v15969_v47 = vrot.slane %v12683_v21, 7 }
 0x3fb   : > { %v3114_v26 = vpop.f32.mrf.mxu1  ;;  %v3313_v4 = vpop.f32.mrf.mxu0  ;;  %10468 = vmatmul.mubr.msk.f32.gmra.mxu1 %vm940_vm2, %v12728_v49  ;;  %10530 = vmatmul.mubr.msk.f32.gmra.mxu0 %vm940_vm2, %v12931_v36 }
 0x3fc   : > { %v3184_v52 = vadd.f32 %v3114_v26, %v13511_v17  ;;  %10470 = vmatprep.mubr.msk.f32.mxu1 %vm11464_vm0, %v11463_v0  ;;  %10532 = vmatprep.mubr.msk.f32.mxu0 %vm11464_vm0, %v11463_v0  ;;  %v3842_v61 = vsel %vm2376_vm6, %v15969_v47, %v3841_v7 }
 0x3fd   : > { %v10203_v60 = vpop.f32.mrf.mxu1  ;;  %v10265_v13 = vpop.f32.mrf.mxu0 }
 0x3fe   : > { %v13738_v49 = vadd.f32 %v3308_v44, %v3184_v52  ;;  %v3844_v44 = vsel %vm2376_vm6, %v3841_v7, %v3843_v5  ;;  %v8827_v52 = vld [vmem:[%s15576_s2 + $0x90] sm:$0xff] }
 0x3ff   : > { %v3119_v23 = vpop.f32.mrf.mxu1  ;;  %v3318_v55 = vpop.f32.mrf.mxu0  ;;  %10471 = vmatmul.mubr.msk.f32.gmra.mxu1 %vm940_vm2, %v3842_v61  ;;  %10533 = vmatmul.mubr.msk.f32.gmra.mxu0 %vm940_vm2, %v13163_v31 }
 0x400   : > { %v3185_v17 = vadd.f32 %v3119_v23, %v13530_v8  ;;  %10473 = vmatprep.mubr.msk.f32.mxu1 %vm11464_vm0, %v11463_v0  ;;  %10596 = vmatprep.mubr.msk.f32.mxu0 %vm11464_vm0, %v11463_v0  ;;  %v15970_v8 = vld [vmem:[#allocation39_spill] sm:$0xff] }
 0x401   : > { %v10206_v1 = vpop.f32.mrf.mxu1  ;;  %v10268_v26 = vpop.f32.mrf.mxu0 }
 0x402   : > { %v13752_v60 = vadd.f32 %v3313_v4, %v3185_v17  ;;  %v8807_v4 = vld [vmem:[%s15576_s2 + $0x88] sm:$0xff] }
 0x403   : > { %v3124_v13 = vpop.f32.mrf.mxu1  ;;  %v3323_v47 = vpop.f32.mrf.mxu0  ;;  %10474 = vmatmul.mubr.msk.f32.gmra.mxu1 %vm940_vm2, %v3844_v44  ;;  %10597 = vmatmul.mubr.msk.f32.vlgmr.msra.gmra.mxu0 %vm940_vm2, %v15970_v8  ;;  %v15972_v8 = vld [vmem:[#allocation43_spill] sm:$0xff] }
 0x404   : > { %v3186_v61 = vadd.f32 %v3124_v13, %v13544_v33  ;;  %10537 = vmatprep.mubr.msk.f32.mxu1 %vm11464_vm0, %v11463_v0  ;;  %10599 = vmatprep.mubr.msk.f32.mxu0 %vm11464_vm0, %v11463_v0  ;;  %v15971_v33 = vld [vmem:[#allocation41_spill] sm:$0xff] }
 0x405   : > { %v10209_v7 = vpop.f32.mrf.mxu1  ;;  %v10271_v5 = vpop.f32.mrf.mxu0  ;;  %10713 = vmatpush3.msra.mxu0 %v8827_v52 }
 0x406   : > { %v13765_v23 = vadd.f32 %v3318_v55, %v3186_v61  ;;  %10830 = vmatprep.subr.mxu0 %v11463_v0 }
 0x407   : > { %v3129_v17 = vpop.f32.mrf.mxu1  ;;  %v3328_v1 = vpop.f32.mrf.mxu0  ;;  %10538 = vmatmul.mubr.msk.f32.vlgmr.msra.gmra.mxu1 %vm940_vm2, %v15892_v27  ;;  %10600 = vmatmul.mubr.msk.f32.gmra.mxu0 %vm940_vm2, %v15971_v33 }
 0x408   : > { %v3187_v26 = vadd.f32 %v3129_v17, %v13557_v28  ;;  %10654 = vmatpush3.msra.mxu1 %v8807_v4  ;;  %10540 = vmatprep.mubr.msk.f32.mxu1 %vm11464_vm0, %v11463_v0 }
 0x409   : > { %v10212_v44 = vpop.f32.mrf.mxu1  ;;  %v10274_v52 = vpop.f32.mrf.mxu0  ;;  %10602 = vmatprep.mubr.msk.f32.mxu0 %vm11464_vm0, %v11463_v0  ;;  %10771 = vmatprep.subr.mxu1 %v11463_v0 }
 0x40a   : > { %v13778_v55 = vadd.f32 %v3323_v47, %v3187_v26  ;;  %v15974_v52 = vld [vmem:[#allocation47_spill] sm:$0xff] }
 0x40b   : > { %v3134_v13 = vpop.f32.mrf.mxu1  ;;  %v3333_v27 = vpop.f32.mrf.mxu0  ;;  %10541 = vmatmul.mubr.msk.f32.gmra.mxu1 %vm940_vm2, %v15894_v46  ;;  %10603 = vmatmul.mubr.msk.f32.gmra.mxu0 %vm940_vm2, %v15972_v8  ;;  %v15973_v46 = vld [vmem:[#allocation45_spill] sm:$0xff]  ;;  %v15988_v8 = vld [vmem:[#allocation63_spill] sm:$0xff] }
 0x40c   : > { %v3188_v28 = vadd.f32 %v3134_v13, %v13568_v9  ;;  %10543 = vmatprep.mubr.msk.f32.mxu1 %vm11464_vm0, %v11463_v0  ;;  %10605 = vmatprep.mubr.msk.f32.mxu0 %vm11464_vm0, %v11463_v0 }
 0x40d   : > { %v10215_v61 = vpop.f32.mrf.mxu1  ;;  %v10277_v7 = vpop.f32.mrf.mxu0 }
 0x40e   : > { %v13789_v47 = vadd.f32 %v3328_v1, %v3188_v28 }
 0x40f   : > { %v3139_v5 = vpop.f32.mrf.mxu1  ;;  %v3338_v4 = vpop.f32.mrf.mxu0  ;;  %10544 = vmatmul.mubr.msk.f32.gmra.mxu1 %vm940_vm2, %v15896_v62  ;;  %10606 = vmatmul.mubr.msk.f32.gmra.mxu0 %vm940_vm2, %v15973_v46  ;;  %v15986_v46 = vld [vmem:[#allocation61_spill] sm:$0xff] }
 0x410   : > { %v3189_v9 = vadd.f32 %v3139_v5, %v13579_v59  ;;  %10546 = vmatprep.mubr.msk.f32.mxu1 %vm11464_vm0, %v11463_v0  ;;  %10608 = vmatprep.mubr.msk.f32.mxu0 %vm11464_vm0, %v11463_v0  ;;  %v15975_v5 = vld [vmem:[#allocation49_spill] sm:$0xff] }
 0x411   : > { %v10218_v17 = vpop.f32.mrf.mxu1  ;;  %v10280_v33 = vpop.f32.mrf.mxu0 }
 0x412   : > { %v13800_v1 = vadd.f32 %v3333_v27, %v3189_v9 }
 0x413   : > { %v3144_v26 = vpop.f32.mrf.mxu1  ;;  %v3343_v44 = vpop.f32.mrf.mxu0  ;;  %10547 = vmatmul.mubr.msk.f32.gmra.mxu1 %vm940_vm2, %v15898_v56  ;;  %10609 = vmatmul.mubr.msk.f32.gmra.mxu0 %vm940_vm2, %v15974_v52  ;;  %v15984_v52 = vld [vmem:[#allocation59_spill] sm:$0xff] }
 0x414   : > { %v3190_v59 = vadd.f32 %v3144_v26, %v13590_v19  ;;  %10549 = vmatprep.mubr.msk.f32.mxu1 %vm11464_vm0, %v11463_v0  ;;  %10611 = vmatprep.mubr.msk.f32.mxu0 %vm11464_vm0, %v11463_v0 }
 0x415   : > { %v10221_v13 = vpop.f32.mrf.mxu1  ;;  %v10283_v28 = vpop.f32.mrf.mxu0 }
 0x416   : > { %v13811_v27 = vadd.f32 %v3338_v4, %v3190_v59  ;;  %v15976_v59 = vld [vmem:[#allocation51_spill] sm:$0xff] }
 0x417   : > { %v3149_v61 = vpop.f32.mrf.mxu1  ;;  %v3348_v7 = vpop.f32.mrf.mxu0  ;;  %10550 = vmatmul.mubr.msk.f32.gmra.mxu1 %vm940_vm2, %v15900_v50  ;;  %10612 = vmatmul.mubr.msk.f32.gmra.mxu0 %vm940_vm2, %v15975_v5  ;;  %v15982_v5 = vld [vmem:[#allocation57_spill] sm:$0xff] }
 0x418   : > { %v3191_v19 = vadd.f32 %v3149_v61, %v13601_v18  ;;  %10552 = vmatprep.mubr.msk.f32.mxu1 %vm11464_vm0, %v11463_v0  ;;  %10614 = vmatprep.mubr.msk.f32.mxu0 %vm11464_vm0, %v11463_v0 }
 0x419   : > { %v10224_v9 = vpop.f32.mrf.mxu1  ;;  %v10286_v17 = vpop.f32.mrf.mxu0 }
 0x41a   : > { %v13822_v4 = vadd.f32 %v3343_v44, %v3191_v19  ;;  %v15977_v9 = vld [vmem:[#allocation28_spill] sm:$0xff]  ;;  %v15978_v17 = vld [vmem:[#allocation53_spill] sm:$0xff] }
 0x41b   : > { %v3154_v33 = vpop.f32.mrf.mxu1  ;;  %v3353_v26 = vpop.f32.mrf.mxu0  ;;  %10553 = vmatmul.mubr.msk.f32.gmra.mxu1 %vm940_vm2, %v15902_v53  ;;  %10615 = vmatmul.mubr.msk.f32.gmra.mxu0 %vm940_vm2, %v15976_v59  ;;  %v15980_v59 = vld [vmem:[#allocation55_spill] sm:$0xff] }
 0x41c   : > { %v3192_v18 = vadd.f32 %v3154_v33, %v13612_v24  ;;  %10555 = vmatprep.mubr.msk.f32.mxu1 %vm11464_vm0, %v11463_v0  ;;  %10617 = vmatprep.mubr.msk.f32.mxu0 %vm11464_vm0, %v11463_v0 }
 0x41d   : > { %v10227_v13 = vpop.f32.mrf.mxu1  ;;  %v10289_v28 = vpop.f32.mrf.mxu0 }
 0x41e   : > { %v13833_v44 = vadd.f32 %v3348_v7, %v3192_v18 }
 0x41f   : > { %v3159_v61 = vpop.f32.mrf.mxu1  ;;  %v3358_v19 = vpop.f32.mrf.mxu0  ;;  %10556 = vmatmul.mubr.msk.f32.gmra.mxu1 %vm940_vm2, %v15977_v9  ;;  %10618 = vmatmul.mubr.msk.f32.gmra.mxu0 %vm940_vm2, %v15978_v17  ;;  %v15981_v17 = vld [vmem:[#allocation30_spill] sm:$0xff] }
 0x420   : > { %v3193_v24 = vadd.f32 %v3159_v61, %v13623_v41  ;;  %10558 = vmatprep.mubr.msk.f32.mxu1 %vm11464_vm0, %v11463_v0  ;;  %10620 = vmatprep.mubr.msk.f32.mxu0 %vm11464_vm0, %v11463_v0 }
 0x421   : > { %v10230_v33 = vpop.f32.mrf.mxu1  ;;  %v10292_v13 = vpop.f32.mrf.mxu0 }
 0x422   : > { %v13844_v7 = vadd.f32 %v3353_v26, %v3193_v24 }
 0x423   : > { %v3164_v18 = vpop.f32.mrf.mxu1  ;;  %v3363_v28 = vpop.f32.mrf.mxu0  ;;  %10559 = vmatmul.mubr.msk.f32.gmra.mxu1 %vm940_vm2, %v15979_v40  ;;  %10621 = vmatmul.mubr.msk.f32.gmra.mxu0 %vm940_vm2, %v15980_v59  ;;  %v15983_v59 = vld [vmem:[#allocation31_spill] sm:$0xff] }
 0x424   : > { %v3194_v41 = vadd.f32 %v3164_v18, %v13634_v35  ;;  %10561 = vmatprep.mubr.msk.f32.mxu1 %vm11464_vm0, %v11463_v0  ;;  %10623 = vmatprep.mubr.msk.f32.mxu0 %vm11464_vm0, %v11463_v0 }
 0x425   : > { %v10233_v61 = vpop.f32.mrf.mxu1  ;;  %v10295_v33 = vpop.f32.mrf.mxu0 }
 0x426   : > { %v13855_v26 = vadd.f32 %v3358_v19, %v3194_v41 }
 0x427   : > { %v3169_v24 = vpop.f32.mrf.mxu1  ;;  %v3368_v13 = vpop.f32.mrf.mxu0  ;;  %10562 = vmatmul.mubr.msk.f32.gmra.mxu1 %vm940_vm2, %v15981_v17  ;;  %10624 = vmatmul.mubr.msk.f32.gmra.mxu0 %vm940_vm2, %v15982_v5  ;;  %v15985_v5 = vld [vmem:[#allocation32_spill] sm:$0xff] }
 0x428   : > { %v3195_v35 = vadd.f32 %v3169_v24, %v13645_v39  ;;  %10564 = vmatprep.mubr.msk.f32.mxu1 %vm11464_vm0, %v11463_v0  ;;  %10626 = vmatprep.mubr.msk.f32.mxu0 %vm11464_vm0, %v11463_v0 }
 0x429   : > { %v10236_v18 = vpop.f32.mrf.mxu1  ;;  %v10298_v61 = vpop.f32.mrf.mxu0 }
 0x42a   : > { %v13866_v19 = vadd.f32 %v3363_v28, %v3195_v35 }
 0x42b   : > { %v3174_v41 = vpop.f32.mrf.mxu1  ;;  %v3726_v33 = vpop.f32.mrf.mxu0  ;;  %10565 = vmatmul.mubr.msk.f32.gmra.mxu1 %vm940_vm2, %v15983_v59  ;;  %10627 = vmatmul.mubr.msk.f32.gmra.mxu0 %vm940_vm2, %v15984_v52  ;;  %v15987_v52 = vld [vmem:[#allocation33_spill] sm:$0xff] }
 0x42c   : > { %v3196_v39 = vadd.f32 %v3174_v41, %v13656_v15  ;;  %10567 = vmatprep.mubr.msk.f32.mxu1 %vm11464_vm0, %v11463_v0  ;;  %10629 = vmatprep.mubr.msk.f32.mxu0 %vm11464_vm0, %v11463_v0 }
 0x42d   : > { %v10239_v24 = vpop.f32.mrf.mxu1  ;;  %v10362_v18 = vpop.f32.mrf.mxu0 }
 0x42e   : > { %v13877_v28 = vadd.f32 %v3368_v13, %v3196_v39 }
 0x42f   : > { %v3537_v35 = vpop.f32.mrf.mxu1  ;;  %v3731_v61 = vpop.f32.mrf.mxu0  ;;  %10568 = vmatmul.mubr.msk.f32.gmra.mxu1 %vm940_vm2, %v15985_v5  ;;  %10630 = vmatmul.mubr.msk.f32.gmra.mxu0 %vm940_vm2, %v15986_v46 }
 0x430   : > { %v3631_v15 = vadd.f32 %v3537_v35, %v13667_v25  ;;  %10570 = vmatprep.mubr.msk.f32.mxu1 %vm11464_vm0, %v11463_v0  ;;  %10632 = vmatprep.mubr.msk.f32.mxu0 %vm11464_vm0, %v11463_v0 }
 0x431   : > { %v10303_v41 = vpop.f32.mrf.mxu1  ;;  %v10365_v24 = vpop.f32.mrf.mxu0 }
 0x432   : > { %v13888_v13 = vadd.f32 %v3726_v33, %v3631_v15  ;;  %v4410_v33 = vrot.slane %v12683_v21, 3 }
 0x433   : > { %v3542_v39 = vpop.f32.mrf.mxu1  ;;  %v3736_v18 = vpop.f32.mrf.mxu0  ;;  %10571 = vmatmul.mubr.msk.f32.gmra.mxu1 %vm940_vm2, %v15987_v52  ;;  %10633 = vmatmul.mubr.msk.f32.gmra.mxu0 %vm940_vm2, %v15988_v8  ;;  %v15989_v52 = vld [vmem:[#allocation34_spill] sm:$0xff]  ;;  %v15990_v8 = vld [vmem:[#allocation65_spill] sm:$0xff] }
 0x434   : > { %v3632_v25 = vadd.f32 %v3542_v39, %v13678_v34  ;;  %10573 = vmatprep.mubr.msk.f32.mxu1 %vm11464_vm0, %v11463_v0  ;;  %10635 = vmatprep.mubr.msk.f32.mxu0 %vm11464_vm0, %v11463_v0 }
 0x435   : > { %v10306_v35 = vpop.f32.mrf.mxu1  ;;  %v10368_v41 = vpop.f32.mrf.mxu0 }
 0x436   : > { %v13900_v15 = vadd.f32 %v3731_v61, %v3632_v25  ;;  %v15991_v61 = vrot.slane %v11839_v38, 3  ;;  %v4412_v41 = vrot.slane %v12931_v36, 3 }
 0x437   : > { %v3547_v24 = vpop.f32.mrf.mxu1  ;;  %v3741_v46 = vpop.f32.mrf.mxu0  ;;  %10574 = vmatmul.mubr.msk.f32.gmra.mxu1 %vm940_vm2, %v15989_v52  ;;  %10636 = vmatmul.mubr.msk.f32.gmra.mxu0 %vm940_vm2, %v15990_v8 }
 0x438   : > { %v3633_v34 = vadd.f32 %v3547_v24, %v13689_v11  ;;  %10576 = vmatprep.mubr.msk.f32.mxu1 %vm11464_vm0, %v11463_v0  ;;  %10638 = vmatprep.mubr.msk.f32.mxu0 %vm11464_vm0, %v11463_v0  ;;  %v13914_v25 = vsel %vm1598_vm5, %v15991_v61, %v4410_v33  ;;  %v15993_v11 = vld [vmem:[#allocation35_spill] sm:$0xff]  ;;  %v13923_v24 = vpop.trf.xlu0  ;;  %v4414_v61 = vrot.slane %v13163_v31, 3 }
 0x439   : > { %v10309_v39 = vpop.f32.mrf.mxu1  ;;  %v10371_v35 = vpop.f32.mrf.mxu0  ;;  %15992 = vst [vmem:[#allocation66_spill] sm:$0xff] %v13914_v25 }
 0x43a   : > { %v13917_v52 = vadd.f32 %v3736_v18, %v3633_v34  ;;  %v13931_v35 = vsel %vm1598_vm5, %v4410_v33, %v4412_v41 }
 0x43b   : > { %v3552_v8 = vpop.f32.mrf.mxu1  ;;  %v3746_v5 = vpop.f32.mrf.mxu0  ;;  %10577 = vmatmul.mubr.msk.f32.gmra.mxu1 %vm940_vm2, %v15993_v11  ;;  %10639 = vmatmul.mubr.msk.f32.gmra.mxu0 %vm940_vm2, %v13914_v25  ;;  %15994 = vst [vmem:[#allocation68_spill] sm:$0xff] %v13931_v35 }
 0x43c   : > { %v3634_v39 = vadd.f32 %v3552_v8, %v13700_v14  ;;  %10579 = vmatprep.mubr.msk.f32.mxu1 %vm11464_vm0, %v11463_v0  ;;  %10641 = vmatprep.mubr.msk.f32.mxu0 %vm11464_vm0, %v11463_v0  ;;  %v13945_v8 = vpop.trf.xlu0 }
 0x43d   : > { %v10312_v18 = vpop.f32.mrf.mxu1  ;;  %v10374_v34 = vpop.f32.mrf.mxu0 }
 0x43e   : > { %v13934_v11 = vadd.f32 %v3741_v46, %v3634_v39  ;;  %v13948_v39 = vsel %vm1598_vm5, %v4412_v41, %v4414_v61  ;;  %v4217_v18 = vrot.slane %v13163_v31, 2  ;;  %v4416_v34 = vrot.slane %v13923_v24, 3 }
 0x43f   : > { %v3557_v25 = vpop.f32.mrf.mxu1  ;;  %v3751_v59 = vpop.f32.mrf.mxu0  ;;  %10580 = vmatmul.mubr.msk.f32.gmra.mxu1 %vm940_vm2, %v13201_v43  ;;  %10642 = vmatmul.mubr.msk.f32.gmra.mxu0 %vm940_vm2, %v13931_v35  ;;  %15995 = vst [vmem:[#allocation70_spill] sm:$0xff] %v13948_v39  ;;  %v15996_v43 = vld [vmem:[#allocation21_spill] sm:$0xff]  ;;  %v15776_v41 = vrot.slane %v13945_v8, 3 }
 0x440   : > { %v3635_v14 = vadd.f32 %v3557_v25, %v13711_v20  ;;  %10582 = vmatprep.mubr.msk.f32.mxu1 %vm11464_vm0, %v11463_v0  ;;  %10644 = vmatprep.mubr.msk.f32.mxu0 %vm11464_vm0, %v11463_v0 }
 0x441   : > { %v10315_v46 = vpop.f32.mrf.mxu1  ;;  %v10377_v33 = vpop.f32.mrf.mxu0 }
 0x442   : > { %v13952_v35 = vadd.f32 %v3746_v5, %v3635_v14  ;;  %v15997_v33 = vrot.slane %v12931_v36, 2 }
 0x443   : > { %v3562_v20 = vpop.f32.mrf.mxu1  ;;  %v3756_v25 = vpop.f32.mrf.mxu0  ;;  %10583 = vmatmul.mubr.msk.f32.gmra.mxu1 %vm940_vm2, %v15996_v43  ;;  %10645 = vmatmul.mubr.msk.f32.gmra.mxu0 %vm940_vm2, %v13948_v39  ;;  %v13970_v43 = vsel %vm1598_vm5, %v4414_v61, %v4416_v34 }
 0x444   : > { %v3636_v46 = vadd.f32 %v3562_v20, %v13723_v32  ;;  %10585 = vmatprep.mubr.msk.f32.mxu1 %vm11464_vm0, %v11463_v0  ;;  %10647 = vmatprep.mubr.msk.f32.mxu0 %vm11464_vm0, %v11463_v0  ;;  %v13967_v17 = vsel %vm1339_vm3, %v15997_v33, %v4217_v18  ;;  %15998 = vst [vmem:[#allocation72_spill] sm:$0xff] %v13970_v43  ;;  %v4219_v32 = vrot.slane %v13923_v24, 2  ;;  %v15777_v33 = vrot.slane %v13945_v8, 2 }
 0x445   : > { %v10318_v5 = vpop.f32.mrf.mxu1  ;;  %v10380_v14 = vpop.f32.mrf.mxu0 }
 0x446   : > { %v13973_v20 = vadd.f32 %v3751_v59, %v3636_v46  ;;  %v13987_v59 = vsel %vm1598_vm5, %v4416_v34, %v15776_v41  ;;  %v13990_v14 = vsel %vm1339_vm3, %v4217_v18, %v4219_v32  ;;  %v16000_v41 = vld [vmem:[#allocation22_spill] sm:$0xff] }
 0x447   : > { %v3567_v39 = vpop.f32.mrf.mxu1  ;;  %v3761_v40 = vpop.f32.mrf.mxu0  ;;  %10586 = vmatmul.mubr.msk.f32.gmra.mxu1 %vm940_vm2, %v13967_v17  ;;  %10648 = vmatmul.mubr.msk.f32.gmra.mxu0 %vm940_vm2, %v13970_v43  ;;  %15999 = vst [vmem:[#allocation74_spill] sm:$0xff] %v13987_v59 }
 0x448   : > { %v3637_v5 = vadd.f32 %v3567_v39, %v13738_v49  ;;  %10588 = vmatprep.mubr.msk.f32.mxu1 %vm11464_vm0, %v11463_v0  ;;  %10650 = vmatprep.mubr.msk.f32.mxu0 %vm11464_vm0, %v11463_v0 }
 0x449   : > { %v10321_v61 = vpop.f32.mrf.mxu1  ;;  %v10383_v46 = vpop.f32.mrf.mxu0 }
 0x44a   : > { %v13993_v43 = vadd.f32 %v3756_v25, %v3637_v5  ;;  %v14007_v25 = vsel %vm1339_vm3, %v4219_v32, %v15777_v33  ;;  %v8867_v5 = vld [vmem:[%s15576_s2 + $0xa0] sm:$0xff] }
 0x44b   : > { %v3572_v49 = vpop.f32.mrf.mxu1  ;;  %v3766_v39 = vpop.f32.mrf.mxu0  ;;  %10589 = vmatmul.mubr.msk.f32.gmra.mxu1 %vm940_vm2, %v13990_v14  ;;  %10651 = vmatmul.mubr.msk.f32.gmra.mxu0 %vm940_vm2, %v13987_v59  ;;  %v16003_v59 = vld [vmem:[#allocation40_spill] sm:$0xff] }
 0x44c   : > { %v3638_v34 = vadd.f32 %v3572_v49, %v13752_v60  ;;  %10591 = vmatprep.mubr.msk.f32.mxu1 %vm11464_vm0, %v11463_v0  ;;  %10714 = vmatprep.mubr.msk.f32.mxu0 %vm11464_vm0, %v11463_v0 }
 0x44d   : > { %v10324_v18 = vpop.f32.mrf.mxu1  ;;  %v10386_v61 = vpop.f32.mrf.mxu0 }
 0x44e   : > { %v14012_v46 = vadd.f32 %v3761_v40, %v3638_v34  ;;  %v8847_v40 = vld [vmem:[%s15576_s2 + $0x98] sm:$0xff] }
 0x44f   : > { %v3577_v60 = vpop.f32.mrf.mxu1  ;;  %v3771_v49 = vpop.f32.mrf.mxu0  ;;  %10592 = vmatmul.mubr.msk.f32.gmra.mxu1 %vm940_vm2, %v14007_v25  ;;  %10715 = vmatmul.mubr.msk.f32.vlgmr.msra.gmra.mxu0 %vm940_vm2, %v16000_v41 }
 0x450   : > { %v3639_v18 = vadd.f32 %v3577_v60, %v13765_v23  ;;  %10655 = vmatprep.mubr.msk.f32.mxu1 %vm11464_vm0, %v11463_v0  ;;  %10717 = vmatprep.mubr.msk.f32.mxu0 %vm11464_vm0, %v11463_v0  ;;  %v16001_v23 = vld [vmem:[#allocation38_spill] sm:$0xff]  ;;  %v16002_v60 = vld [vmem:[#allocation23_spill] sm:$0xff] }
 0x451   : > { %v10327_v32 = vpop.f32.mrf.mxu1  ;;  %v10389_v61 = vpop.f32.mrf.mxu0  ;;  %10831 = vmatpush3.msra.mxu0 %v8867_v5 }
 0x452   : > { %v14026_v34 = vadd.f32 %v3766_v39, %v3639_v18  ;;  %10948 = vmatprep.subr.mxu0 %v11463_v0 }
 0x453   : > { %v3582_v41 = vpop.f32.mrf.mxu1  ;;  %v3776_v33 = vpop.f32.mrf.mxu0  ;;  %10656 = vmatmul.mubr.msk.f32.vlgmr.msra.gmra.mxu1 %vm940_vm2, %v16001_v23  ;;  %10718 = vmatmul.mubr.msk.f32.gmra.mxu0 %vm940_vm2, %v16002_v60  ;;  %v16004_v60 = vld [vmem:[#allocation24_spill] sm:$0xff] }
 0x454   : > { %v3640_v32 = vadd.f32 %v3582_v41, %v13778_v55  ;;  %10772 = vmatpush3.msra.mxu1 %v8847_v40  ;;  %10658 = vmatprep.mubr.msk.f32.mxu1 %vm11464_vm0, %v11463_v0 }
 0x455   : > { %v10330_v61 = vpop.f32.mrf.mxu1  ;;  %v10392_v5 = vpop.f32.mrf.mxu0  ;;  %10720 = vmatprep.mubr.msk.f32.mxu0 %vm11464_vm0, %v11463_v0  ;;  %10889 = vmatprep.subr.mxu1 %v11463_v0 }
 0x456   : > { %v14039_v39 = vadd.f32 %v3771_v49, %v3640_v32  ;;  %v16005_v5 = vld [vmem:[#allocation42_spill] sm:$0xff] }
 0x457   : > { %v3587_v18 = vpop.f32.mrf.mxu1  ;;  %v3781_v23 = vpop.f32.mrf.mxu0  ;;  %10659 = vmatmul.mubr.msk.f32.gmra.mxu1 %vm940_vm2, %v16003_v59  ;;  %10721 = vmatmul.mubr.msk.f32.gmra.mxu0 %vm940_vm2, %v16004_v60  ;;  %v16006_v59 = vld [vmem:[#allocation25_spill] sm:$0xff] }
 0x458   : > { %v3641_v55 = vadd.f32 %v3587_v18, %v13789_v47  ;;  %10661 = vmatprep.mubr.msk.f32.mxu1 %vm11464_vm0, %v11463_v0  ;;  %10723 = vmatprep.mubr.msk.f32.mxu0 %vm11464_vm0, %v11463_v0 }
 0x459   : > { %v10333_v40 = vpop.f32.mrf.mxu1  ;;  %v10395_v41 = vpop.f32.mrf.mxu0 }
 0x45a   : > { %v14050_v49 = vadd.f32 %v3776_v33, %v3641_v55  ;;  %v16007_v41 = vld [vmem:[#allocation44_spill] sm:$0xff] }
 0x45b   : > { %v3592_v32 = vpop.f32.mrf.mxu1  ;;  %v3786_v61 = vpop.f32.mrf.mxu0  ;;  %10662 = vmatmul.mubr.msk.f32.gmra.mxu1 %vm940_vm2, %v16005_v5  ;;  %10724 = vmatmul.mubr.msk.f32.gmra.mxu0 %vm940_vm2, %v16006_v59  ;;  %v16008_v5 = vld [vmem:[#allocation26_spill] sm:$0xff] }
 0x45c   : > { %v3642_v47 = vadd.f32 %v3592_v32, %v13800_v1  ;;  %10664 = vmatprep.mubr.msk.f32.mxu1 %vm11464_vm0, %v11463_v0  ;;  %10726 = vmatprep.mubr.msk.f32.mxu0 %vm11464_vm0, %v11463_v0 }
 0x45d   : > { %v10336_v18 = vpop.f32.mrf.mxu1  ;;  %v10398_v60 = vpop.f32.mrf.mxu0 }
 0x45e   : > { %v14061_v33 = vadd.f32 %v3781_v23, %v3642_v47  ;;  %v16009_v60 = vld [vmem:[#allocation46_spill] sm:$0xff] }
 0x45f   : > { %v3597_v55 = vpop.f32.mrf.mxu1  ;;  %v3791_v40 = vpop.f32.mrf.mxu0  ;;  %10665 = vmatmul.mubr.msk.f32.gmra.mxu1 %vm940_vm2, %v16007_v41  ;;  %10727 = vmatmul.mubr.msk.f32.gmra.mxu0 %vm940_vm2, %v16008_v5  ;;  %v16010_v41 = vld [vmem:[#allocation27_spill] sm:$0xff] }
 0x460   : > { %v3643_v1 = vadd.f32 %v3597_v55, %v13811_v27  ;;  %10667 = vmatprep.mubr.msk.f32.mxu1 %vm11464_vm0, %v11463_v0  ;;  %10729 = vmatprep.mubr.msk.f32.mxu0 %vm11464_vm0, %v11463_v0 }
 0x461   : > { %v10339_v32 = vpop.f32.mrf.mxu1  ;;  %v10401_v59 = vpop.f32.mrf.mxu0 }
 0x462   : > { %v14072_v23 = vadd.f32 %v3786_v61, %v3643_v1  ;;  %v16011_v59 = vld [vmem:[#allocation48_spill] sm:$0xff] }
 0x463   : > { %v3602_v47 = vpop.f32.mrf.mxu1  ;;  %v3796_v18 = vpop.f32.mrf.mxu0  ;;  %10668 = vmatmul.mubr.msk.f32.gmra.mxu1 %vm940_vm2, %v16009_v60  ;;  %10730 = vmatmul.mubr.msk.f32.gmra.mxu0 %vm940_vm2, %v16010_v41  ;;  %v16012_v60 = vld [vmem:[#allocation67_spill] sm:$0xff] }
 0x464   : > { %v3644_v27 = vadd.f32 %v3602_v47, %v13822_v4  ;;  %10670 = vmatprep.mubr.msk.f32.mxu1 %vm11464_vm0, %v11463_v0  ;;  %10732 = vmatprep.mubr.msk.f32.mxu0 %vm11464_vm0, %v11463_v0 }
 0x465   : > { %v10342_v5 = vpop.f32.mrf.mxu1  ;;  %v10404_v55 = vpop.f32.mrf.mxu0 }
 0x466   : > { %v14083_v61 = vadd.f32 %v3791_v40, %v3644_v27  ;;  %v16013_v55 = vld [vmem:[#allocation50_spill] sm:$0xff] }
 0x467   : > { %v3607_v1 = vpop.f32.mrf.mxu1  ;;  %v3801_v32 = vpop.f32.mrf.mxu0  ;;  %10671 = vmatmul.mubr.msk.f32.gmra.mxu1 %vm940_vm2, %v16011_v59  ;;  %10733 = vmatmul.mubr.msk.f32.gmra.mxu0 %vm940_vm2, %v16012_v60  ;;  %v16014_v59 = vld [vmem:[#allocation69_spill] sm:$0xff] }
 0x468   : > { %v3645_v4 = vadd.f32 %v3607_v1, %v13833_v44  ;;  %10673 = vmatprep.mubr.msk.f32.mxu1 %vm11464_vm0, %v11463_v0  ;;  %10735 = vmatprep.mubr.msk.f32.mxu0 %vm11464_vm0, %v11463_v0 }
 0x469   : > { %v10345_v41 = vpop.f32.mrf.mxu1  ;;  %v10407_v47 = vpop.f32.mrf.mxu0 }
 0x46a   : > { %v14094_v40 = vadd.f32 %v3796_v18, %v3645_v4  ;;  %v16015_v47 = vld [vmem:[#allocation52_spill] sm:$0xff] }
 0x46b   : > { %v3612_v27 = vpop.f32.mrf.mxu1  ;;  %v3806_v5 = vpop.f32.mrf.mxu0  ;;  %10674 = vmatmul.mubr.msk.f32.gmra.mxu1 %vm940_vm2, %v16013_v55  ;;  %10736 = vmatmul.mubr.msk.f32.gmra.mxu0 %vm940_vm2, %v16014_v59  ;;  %v16016_v55 = vld [vmem:[#allocation99_spill] sm:$0xff] }
 0x46c   : > { %v3646_v44 = vadd.f32 %v3612_v27, %v13844_v7  ;;  %10676 = vmatprep.mubr.msk.f32.mxu1 %vm11464_vm0, %v11463_v0  ;;  %10738 = vmatprep.mubr.msk.f32.mxu0 %vm11464_vm0, %v11463_v0 }
 0x46d   : > { %v10348_v60 = vpop.f32.mrf.mxu1  ;;  %v10410_v1 = vpop.f32.mrf.mxu0 }
 0x46e   : > { %v14105_v18 = vadd.f32 %v3801_v32, %v3646_v44  ;;  %v16017_v1 = vld [vmem:[#allocation54_spill] sm:$0xff] }
 0x46f   : > { %v3617_v4 = vpop.f32.mrf.mxu1  ;;  %v3811_v41 = vpop.f32.mrf.mxu0  ;;  %10677 = vmatmul.mubr.msk.f32.gmra.mxu1 %vm940_vm2, %v16015_v47  ;;  %10739 = vmatmul.mubr.msk.f32.gmra.mxu0 %vm940_vm2, %v16016_v55  ;;  %v16018_v47 = vld [vmem:[#allocation100_spill] sm:$0xff] }
 0x470   : > { %v3647_v7 = vadd.f32 %v3617_v4, %v13855_v26  ;;  %10679 = vmatprep.mubr.msk.f32.mxu1 %vm11464_vm0, %v11463_v0  ;;  %10741 = vmatprep.mubr.msk.f32.mxu0 %vm11464_vm0, %v11463_v0 }
 0x471   : > { %v10351_v59 = vpop.f32.mrf.mxu1  ;;  %v10413_v27 = vpop.f32.mrf.mxu0 }
 0x472   : > { %v14116_v32 = vadd.f32 %v3806_v5, %v3647_v7  ;;  %v16019_v27 = vld [vmem:[#allocation56_spill] sm:$0xff] }
 0x473   : > { %v3622_v44 = vpop.f32.mrf.mxu1  ;;  %v3816_v60 = vpop.f32.mrf.mxu0  ;;  %10680 = vmatmul.mubr.msk.f32.gmra.mxu1 %vm940_vm2, %v16017_v1  ;;  %10742 = vmatmul.mubr.msk.f32.gmra.mxu0 %vm940_vm2, %v16018_v47  ;;  %v16020_v1 = vld [vmem:[#allocation101_spill] sm:$0xff] }
 0x474   : > { %v3648_v26 = vadd.f32 %v3622_v44, %v13866_v19  ;;  %10682 = vmatprep.mubr.msk.f32.mxu1 %vm11464_vm0, %v11463_v0  ;;  %10744 = vmatprep.mubr.msk.f32.mxu0 %vm11464_vm0, %v11463_v0 }
 0x475   : > { %v10354_v55 = vpop.f32.mrf.mxu1  ;;  %v10416_v4 = vpop.f32.mrf.mxu0 }
 0x476   : > { %v14127_v5 = vadd.f32 %v3811_v41, %v3648_v26  ;;  %v16021_v4 = vld [vmem:[#allocation58_spill] sm:$0xff] }
 0x477   : > { %v3627_v7 = vpop.f32.mrf.mxu1  ;;  %v4100_v59 = vpop.f32.mrf.mxu0  ;;  %10683 = vmatmul.mubr.msk.f32.gmra.mxu1 %vm940_vm2, %v16019_v27  ;;  %10745 = vmatmul.mubr.msk.f32.gmra.mxu0 %vm940_vm2, %v16020_v1 }
 0x478   : > { %v3649_v19 = vadd.f32 %v3627_v7, %v13877_v28  ;;  %10685 = vmatprep.mubr.msk.f32.mxu1 %vm11464_vm0, %v11463_v0  ;;  %10747 = vmatprep.mubr.msk.f32.mxu0 %vm11464_vm0, %v11463_v0 }
 0x479   : > { %v10357_v47 = vpop.f32.mrf.mxu1  ;;  %v10480_v44 = vpop.f32.mrf.mxu0 }
 0x47a   : > { %v14138_v41 = vadd.f32 %v3816_v60, %v3649_v19  ;;  %v16022_v44 = vld [vmem:[#allocation60_spill] sm:$0xff] }
 0x47b   : > { %v3915_v26 = vpop.f32.mrf.mxu1  ;;  %v4105_v55 = vpop.f32.mrf.mxu0  ;;  %10686 = vmatmul.mubr.msk.f32.gmra.mxu1 %vm940_vm2, %v16021_v4  ;;  %10748 = vmatmul.mubr.msk.f32.gmra.mxu0 %vm940_vm2, %v13436_v58 }
 0x47c   : > { %v4009_v28 = vadd.f32 %v3915_v26, %v13888_v13  ;;  %10688 = vmatprep.mubr.msk.f32.mxu1 %vm11464_vm0, %v11463_v0  ;;  %10750 = vmatprep.mubr.msk.f32.mxu0 %vm11464_vm0, %v11463_v0 }
 0x47d   : > { %v10421_v1 = vpop.f32.mrf.mxu1  ;;  %v10483_v7 = vpop.f32.mrf.mxu0 }
 0x47e   : > { %v14149_v60 = vadd.f32 %v4100_v59, %v4009_v28  ;;  %v16023_v7 = vld [vmem:[#allocation62_spill] sm:$0xff] }
 0x47f   : > { %v3920_v19 = vpop.f32.mrf.mxu1  ;;  %v4110_v47 = vpop.f32.mrf.mxu0  ;;  %10689 = vmatmul.mubr.msk.f32.gmra.mxu1 %vm940_vm2, %v16022_v44  ;;  %10751 = vmatmul.mubr.msk.f32.gmra.mxu0 %vm940_vm2, %v13451_v2  ;;  %v16024_v44 = vld [vmem:[#allocation102_spill] sm:$0xff] }
 0x480   : > { %v4010_v58 = vadd.f32 %v3920_v19, %v13900_v15  ;;  %10691 = vmatprep.mubr.msk.f32.mxu1 %vm11464_vm0, %v11463_v0  ;;  %10753 = vmatprep.mubr.msk.f32.mxu0 %vm11464_vm0, %v11463_v0 }
 0x481   : > { %v10424_v13 = vpop.f32.mrf.mxu1  ;;  %v10486_v26 = vpop.f32.mrf.mxu0 }
 0x482   : > { %v14160_v59 = vadd.f32 %v4105_v55, %v4010_v58  ;;  %v16025_v26 = vld [vmem:[#allocation64_spill] sm:$0xff] }
 0x483   : > { %v3925_v28 = vpop.f32.mrf.mxu1  ;;  %v4115_v1 = vpop.f32.mrf.mxu0  ;;  %10692 = vmatmul.mubr.msk.f32.gmra.mxu1 %vm940_vm2, %v16023_v7  ;;  %10754 = vmatmul.mubr.msk.f32.gmra.mxu0 %vm940_vm2, %v16024_v44 }
 0x484   : > { %v4011_v2 = vadd.f32 %v3925_v28, %v13917_v52  ;;  %10694 = vmatprep.mubr.msk.f32.mxu1 %vm11464_vm0, %v11463_v0  ;;  %10756 = vmatprep.mubr.msk.f32.mxu0 %vm11464_vm0, %v11463_v0 }
 0x485   : > { %v10427_v15 = vpop.f32.mrf.mxu1  ;;  %v10489_v19 = vpop.f32.mrf.mxu0 }
 0x486   : > { %v14171_v55 = vadd.f32 %v4110_v47, %v4011_v2  ;;  %v16026_v19 = vld [vmem:[#allocation36_spill] sm:$0xff] }
 0x487   : > { %v3930_v58 = vpop.f32.mrf.mxu1  ;;  %v4120_v13 = vpop.f32.mrf.mxu0  ;;  %10695 = vmatmul.mubr.msk.f32.gmra.mxu1 %vm940_vm2, %v16025_v26  ;;  %10757 = vmatmul.mubr.msk.f32.gmra.mxu0 %vm940_vm2, %v13482_v29 }
 0x488   : > { %v4012_v52 = vadd.f32 %v3930_v58, %v13934_v11  ;;  %10697 = vmatprep.mubr.msk.f32.mxu1 %vm11464_vm0, %v11463_v0  ;;  %10759 = vmatprep.mubr.msk.f32.mxu0 %vm11464_vm0, %v11463_v0 }
 0x489   : > { %v10430_v44 = vpop.f32.mrf.mxu1  ;;  %v10492_v28 = vpop.f32.mrf.mxu0 }
 0x48a   : > { %v14182_v47 = vadd.f32 %v4115_v1, %v4012_v52  ;;  %v4800_v1 = vrot.slane %v13923_v24, 5 }
 0x48b   : > { %v3935_v2 = vpop.f32.mrf.mxu1  ;;  %v4125_v15 = vpop.f32.mrf.mxu0  ;;  %10698 = vmatmul.mubr.msk.f32.gmra.mxu1 %vm940_vm2, %v16026_v19  ;;  %10760 = vmatmul.mubr.msk.f32.gmra.mxu0 %vm940_vm2, %v13503_v16  ;;  %v16027_v19 = vld [vmem:[#allocation19_spill] sm:$0xff] }
 0x48c   : > { %v4013_v29 = vadd.f32 %v3935_v2, %v13952_v35  ;;  %10700 = vmatprep.mubr.msk.f32.mxu1 %vm11464_vm0, %v11463_v0  ;;  %10762 = vmatprep.mubr.msk.f32.mxu0 %vm11464_vm0, %v11463_v0 }
 0x48d   : > { %v10433_v11 = vpop.f32.mrf.mxu1  ;;  %v10495_v58 = vpop.f32.mrf.mxu0 }
 0x48e   : > { %v14194_v52 = vadd.f32 %v4120_v13, %v4013_v29  ;;  %v16028_v13 = vrot.slane %v13163_v31, 5  ;;  %v4611_v11 = vrot.slane %v13923_v24, 4  ;;  %v4802_v58 = vrot.slane %v13945_v8, 5 }
 0x48f   : > { %v3940_v44 = vpop.f32.mrf.mxu1  ;;  %v4130_v28 = vpop.f32.mrf.mxu0  ;;  %10701 = vmatmul.mubr.msk.f32.gmra.mxu1 %vm940_vm2, %v16027_v19  ;;  %10763 = vmatmul.mubr.msk.f32.gmra.mxu0 %vm940_vm2, %v13525_v10 }
 0x490   : > { %v4014_v16 = vadd.f32 %v3940_v44, %v13973_v20  ;;  %10703 = vmatprep.mubr.msk.f32.mxu1 %vm11464_vm0, %v11463_v0  ;;  %10765 = vmatprep.mubr.msk.f32.mxu0 %vm11464_vm0, %v11463_v0  ;;  %v4801_v29 = vsel %vm3393_vm8, %v16028_v13, %v4800_v1  ;;  %v16029_v44 = vld [vmem:[#allocation20_spill] sm:$0xff]  ;;  %v4803_v26 = vsel %vm3393_vm8, %v4800_v1, %v4802_v58 }
 0x491   : > { %v10436_v35 = vpop.f32.mrf.mxu1  ;;  %v10498_v2 = vpop.f32.mrf.mxu0 }
 0x492   : > { %v14210_v19 = vadd.f32 %v4125_v15, %v4014_v16  ;;  %v16030_v15 = vrot.slane %v13163_v31, 4 }
 0x493   : > { %v3945_v10 = vpop.f32.mrf.mxu1  ;;  %v4135_v20 = vpop.f32.mrf.mxu0  ;;  %10704 = vmatmul.mubr.msk.f32.gmra.mxu1 %vm940_vm2, %v16029_v44  ;;  %10766 = vmatmul.mubr.msk.f32.gmra.mxu0 %vm940_vm2, %v4801_v29  ;;  %v4613_v44 = vrot.slane %v13945_v8, 4 }
 0x494   : > { %v4015_v35 = vadd.f32 %v3945_v10, %v13993_v43  ;;  %10706 = vmatprep.mubr.msk.f32.mxu1 %vm11464_vm0, %v11463_v0  ;;  %10768 = vmatprep.mubr.msk.f32.mxu0 %vm11464_vm0, %v11463_v0  ;;  %v14223_v16 = vsel %vm1857_vm4, %v16030_v15, %v4611_v11 }
 0x495   : > { %v10439_v2 = vpop.f32.mrf.mxu1  ;;  %v10501_v13 = vpop.f32.mrf.mxu0 }
 0x496   : > { %v14227_v29 = vadd.f32 %v4130_v28, %v4015_v35  ;;  %v14240_v28 = vsel %vm1857_vm4, %v4611_v11, %v4613_v44  ;;  %v8907_v35 = vld [vmem:[%s15576_s2 + $0xb0] sm:$0xff] }
 0x497   : > { %v3950_v43 = vpop.f32.mrf.mxu1  ;;  %v4140_v10 = vpop.f32.mrf.mxu0  ;;  %10707 = vmatmul.mubr.msk.f32.gmra.mxu1 %vm940_vm2, %v14223_v16  ;;  %10769 = vmatmul.mubr.msk.f32.gmra.mxu0 %vm940_vm2, %v4803_v26 }
 0x498   : > { %v4016_v2 = vadd.f32 %v3950_v43, %v14012_v46  ;;  %10709 = vmatprep.mubr.msk.f32.mxu1 %vm11464_vm0, %v11463_v0  ;;  %10832 = vmatprep.mubr.msk.f32.mxu0 %vm11464_vm0, %v11463_v0 }
 0x499   : > { %v10442_v1 = vpop.f32.mrf.mxu1  ;;  %v10504_v58 = vpop.f32.mrf.mxu0 }
 0x49a   : > { %v14245_v26 = vadd.f32 %v4135_v20, %v4016_v2  ;;  %v8887_v20 = vld [vmem:[%s15576_s2 + $0xa8] sm:$0xff] }
 0x49b   : > { %v3955_v46 = vpop.f32.mrf.mxu1  ;;  %v4145_v13 = vpop.f32.mrf.mxu0  ;;  %10710 = vmatmul.mubr.msk.f32.gmra.mxu1 %vm940_vm2, %v14240_v28  ;;  %10833 = vmatmul.mubr.msk.f32.vlgmr.msra.gmra.mxu0 %vm940_vm2, %v11718_v42 }
 0x49c   : > { %v4017_v15 = vadd.f32 %v3955_v46, %v14026_v34  ;;  %10773 = vmatprep.mubr.msk.f32.mxu1 %vm11464_vm0, %v11463_v0  ;;  %10835 = vmatprep.mubr.msk.f32.mxu0 %vm11464_vm0, %v11463_v0  ;;  %v16031_v34 = vld [vmem:[#allocation71_spill] sm:$0xff] }
 0x49d   : > { %v10445_v11 = vpop.f32.mrf.mxu1  ;;  %v10507_v43 = vpop.f32.mrf.mxu0  ;;  %10949 = vmatpush3.msra.mxu0 %v8907_v35 }
 0x49e   : > { %v14259_v2 = vadd.f32 %v4140_v10, %v4017_v15  ;;  %11066 = vmatprep.subr.mxu0 %v11463_v0  ;;  %v16032_v43 = vld [vmem:[#allocation73_spill] sm:$0xff] }
 0x49f   : > { %v3960_v42 = vpop.f32.mrf.mxu1  ;;  %v4150_v1 = vpop.f32.mrf.mxu0  ;;  %10774 = vmatmul.mubr.msk.f32.vlgmr.msra.gmra.mxu1 %vm940_vm2, %v16031_v34  ;;  %10836 = vmatmul.mubr.msk.f32.gmra.mxu0 %vm940_vm2, %v11728_v45 }
 0x4a0   : > { %v4018_v58 = vadd.f32 %v3960_v42, %v14039_v39  ;;  %10890 = vmatpush3.msra.mxu1 %v8887_v20  ;;  %10776 = vmatprep.mubr.msk.f32.mxu1 %vm11464_vm0, %v11463_v0 }
 0x4a1   : > { %v10448_v46 = vpop.f32.mrf.mxu1  ;;  %v10510_v35 = vpop.f32.mrf.mxu0  ;;  %10838 = vmatprep.mubr.msk.f32.mxu0 %vm11464_vm0, %v11463_v0  ;;  %11007 = vmatprep.subr.mxu1 %v11463_v0 }
 0x4a2   : > { %v14272_v10 = vadd.f32 %v4145_v13, %v4018_v58  ;;  %v16033_v58 = vld [vmem:[#allocation75_spill] sm:$0xff] }
 0x4a3   : > { %v3965_v15 = vpop.f32.mrf.mxu1  ;;  %v4155_v11 = vpop.f32.mrf.mxu0  ;;  %10777 = vmatmul.mubr.msk.f32.gmra.mxu1 %vm940_vm2, %v16032_v43  ;;  %10839 = vmatmul.mubr.msk.f32.gmra.mxu0 %vm940_vm2, %v11738_v48  ;;  %v16034_v43 = vld [vmem:[#allocation77_spill] sm:$0xff] }
 0x4a4   : > { %v4019_v45 = vadd.f32 %v3965_v15, %v14050_v49  ;;  %10779 = vmatprep.mubr.msk.f32.mxu1 %vm11464_vm0, %v11463_v0  ;;  %10841 = vmatprep.mubr.msk.f32.mxu0 %vm11464_vm0, %v11463_v0 }
 0x4a5   : > { %v10451_v39 = vpop.f32.mrf.mxu1  ;;  %v10513_v20 = vpop.f32.mrf.mxu0 }
 0x4a6   : > { %v14283_v13 = vadd.f32 %v4150_v1, %v4019_v45 }
 0x4a7   : > { %v3970_v42 = vpop.f32.mrf.mxu1  ;;  %v4160_v34 = vpop.f32.mrf.mxu0  ;;  %10780 = vmatmul.mubr.msk.f32.gmra.mxu1 %vm940_vm2, %v16033_v58  ;;  %10842 = vmatmul.mubr.msk.f32.gmra.mxu0 %vm940_vm2, %v11748_v51 }
 0x4a8   : > { %v4020_v48 = vadd.f32 %v3970_v42, %v14061_v33  ;;  %10782 = vmatprep.mubr.msk.f32.mxu1 %vm11464_vm0, %v11463_v0  ;;  %10844 = vmatprep.mubr.msk.f32.mxu0 %vm11464_vm0, %v11463_v0  ;;  %v16035_v42 = vld [vmem:[#allocation79_spill] sm:$0xff] }
 0x4a9   : > { %v10454_v49 = vpop.f32.mrf.mxu1  ;;  %v10516_v46 = vpop.f32.mrf.mxu0 }
 0x4aa   : > { %v14294_v1 = vadd.f32 %v4155_v11, %v4020_v48  ;;  %v16036_v46 = vld [vmem:[#allocation81_spill] sm:$0xff] }
 0x4ab   : > { %v3975_v35 = vpop.f32.mrf.mxu1  ;;  %v4165_v15 = vpop.f32.mrf.mxu0  ;;  %10783 = vmatmul.mubr.msk.f32.gmra.mxu1 %vm940_vm2, %v16034_v43  ;;  %10845 = vmatmul.mubr.msk.f32.gmra.mxu0 %vm940_vm2, %v11758_v54 }
 0x4ac   : > { %v4021_v51 = vadd.f32 %v3975_v35, %v14072_v23  ;;  %10785 = vmatprep.mubr.msk.f32.mxu1 %vm11464_vm0, %v11463_v0  ;;  %10847 = vmatprep.mubr.msk.f32.mxu0 %vm11464_vm0, %v11463_v0 }
 0x4ad   : > { %v10457_v33 = vpop.f32.mrf.mxu1  ;;  %v10519_v45 = vpop.f32.mrf.mxu0 }
 0x4ae   : > { %v14305_v11 = vadd.f32 %v4160_v34, %v4021_v51  ;;  %v16037_v33 = vld [vmem:[#allocation83_spill] sm:$0xff] }
 0x4af   : > { %v3980_v39 = vpop.f32.mrf.mxu1  ;;  %v4170_v20 = vpop.f32.mrf.mxu0  ;;  %10786 = vmatmul.mubr.msk.f32.gmra.mxu1 %vm940_vm2, %v16035_v42  ;;  %10848 = vmatmul.mubr.msk.f32.gmra.mxu0 %vm940_vm2, %v11768_v57 }
 0x4b0   : > { %v4022_v54 = vadd.f32 %v3980_v39, %v14083_v61  ;;  %10788 = vmatprep.mubr.msk.f32.mxu1 %vm11464_vm0, %v11463_v0  ;;  %10850 = vmatprep.mubr.msk.f32.mxu0 %vm11464_vm0, %v11463_v0 }
 0x4b1   : > { %v10460_v23 = vpop.f32.mrf.mxu1  ;;  %v10522_v58 = vpop.f32.mrf.mxu0 }
 0x4b2   : > { %v14316_v34 = vadd.f32 %v4165_v15, %v4022_v54  ;;  %v16038_v54 = vld [vmem:[#allocation85_spill] sm:$0xff] }
 0x4b3   : > { %v3985_v48 = vpop.f32.mrf.mxu1  ;;  %v4175_v49 = vpop.f32.mrf.mxu0  ;;  %10789 = vmatmul.mubr.msk.f32.gmra.mxu1 %vm940_vm2, %v16036_v46  ;;  %10851 = vmatmul.mubr.msk.f32.gmra.mxu0 %vm940_vm2, %v15875_v30  ;;  %v16039_v46 = vld [vmem:[#allocation87_spill] sm:$0xff] }
 0x4b4   : > { %v4023_v57 = vadd.f32 %v3985_v48, %v14094_v40  ;;  %10791 = vmatprep.mubr.msk.f32.mxu1 %vm11464_vm0, %v11463_v0  ;;  %10853 = vmatprep.mubr.msk.f32.mxu0 %vm11464_vm0, %v11463_v0 }
 0x4b5   : > { %v10463_v61 = vpop.f32.mrf.mxu1  ;;  %v10525_v35 = vpop.f32.mrf.mxu0 }
 0x4b6   : > { %v14327_v15 = vadd.f32 %v4170_v20, %v4023_v57 }
 0x4b7   : > { %v3990_v43 = vpop.f32.mrf.mxu1  ;;  %v4180_v51 = vpop.f32.mrf.mxu0  ;;  %10792 = vmatmul.mubr.msk.f32.gmra.mxu1 %vm940_vm2, %v16037_v33  ;;  %10854 = vmatmul.mubr.msk.f32.gmra.mxu0 %vm940_vm2, %v11788_v63 }
 0x4b8   : > { %v4024_v30 = vadd.f32 %v3990_v43, %v14105_v18  ;;  %10794 = vmatprep.mubr.msk.f32.mxu1 %vm11464_vm0, %v11463_v0  ;;  %10856 = vmatprep.mubr.msk.f32.mxu0 %vm11464_vm0, %v11463_v0 }
 0x4b9   : > { %v10466_v40 = vpop.f32.mrf.mxu1  ;;  %v10528_v45 = vpop.f32.mrf.mxu0 }
 0x4ba   : > { %v14338_v39 = vadd.f32 %v4175_v49, %v4024_v30 }
 0x4bb   : > { %v3995_v20 = vpop.f32.mrf.mxu1  ;;  %v4185_v42 = vpop.f32.mrf.mxu0  ;;  %10795 = vmatmul.mubr.msk.f32.gmra.mxu1 %vm940_vm2, %v16038_v54  ;;  %10857 = vmatmul.mubr.msk.f32.gmra.mxu0 %vm940_vm2, %v11798_v3 }
 0x4bc   : > { %v4025_v63 = vadd.f32 %v3995_v20, %v14116_v32  ;;  %10797 = vmatprep.mubr.msk.f32.mxu1 %vm11464_vm0, %v11463_v0  ;;  %10859 = vmatprep.mubr.msk.f32.mxu0 %vm11464_vm0, %v11463_v0  ;;  %v16041_v20 = vld [vmem:[#allocation91_spill] sm:$0xff] }
 0x4bd   : > { %v10469_v18 = vpop.f32.mrf.mxu1  ;;  %v10531_v23 = vpop.f32.mrf.mxu0 }
 0x4be   : > { %v14349_v58 = vadd.f32 %v4180_v51, %v4025_v63  ;;  %v16040_v51 = vld [vmem:[#allocation89_spill] sm:$0xff] }
 0x4bf   : > { %v4000_v48 = vpop.f32.mrf.mxu1  ;;  %v4190_v49 = vpop.f32.mrf.mxu0  ;;  %10798 = vmatmul.mubr.msk.f32.gmra.mxu1 %vm940_vm2, %v16039_v46  ;;  %10860 = vmatmul.mubr.msk.f32.gmra.mxu0 %vm940_vm2, %v11808_v6  ;;  %v16042_v23 = vld [vmem:[#allocation93_spill] sm:$0xff] }
 0x4c0   : > { %v4026_v3 = vadd.f32 %v4000_v48, %v14127_v5  ;;  %10800 = vmatprep.mubr.msk.f32.mxu1 %vm11464_vm0, %v11463_v0  ;;  %10862 = vmatprep.mubr.msk.f32.mxu0 %vm11464_vm0, %v11463_v0 }
 0x4c1   : > { %v10472_v32 = vpop.f32.mrf.mxu1  ;;  %v10534_v57 = vpop.f32.mrf.mxu0 }
 0x4c2   : > { %v14360_v61 = vadd.f32 %v4185_v42, %v4026_v3  ;;  %v16043_v32 = vld [vmem:[#allocation95_spill] sm:$0xff] }
 0x4c3   : > { %v4005_v35 = vpop.f32.mrf.mxu1  ;;  %v4496_v43 = vpop.f32.mrf.mxu0  ;;  %10801 = vmatmul.mubr.msk.f32.gmra.mxu1 %vm940_vm2, %v16040_v51  ;;  %10863 = vmatmul.mubr.msk.f32.gmra.mxu0 %vm940_vm2, %v15880_v22 }
 0x4c4   : > { %v4027_v6 = vadd.f32 %v4005_v35, %v14138_v41  ;;  %10803 = vmatprep.mubr.msk.f32.mxu1 %vm11464_vm0, %v11463_v0  ;;  %10865 = vmatprep.mubr.msk.f32.mxu0 %vm11464_vm0, %v11463_v0 }
 0x4c5   : > { %v10475_v5 = vpop.f32.mrf.mxu1  ;;  %v10598_v33 = vpop.f32.mrf.mxu0 }
 0x4c6   : > { %v14371_v30 = vadd.f32 %v4190_v49, %v4027_v6  ;;  %v16044_v6 = vld [vmem:[#allocation97_spill] sm:$0xff] }
 0x4c7   : > { %v4295_v40 = vpop.f32.mrf.mxu1  ;;  %v4501_v45 = vpop.f32.mrf.mxu0  ;;  %10804 = vmatmul.mubr.msk.f32.gmra.mxu1 %vm940_vm2, %v16041_v20  ;;  %10866 = vmatmul.mubr.msk.f32.gmra.mxu0 %vm940_vm2, %v11828_v12  ;;  %v16045_v20 = vld [vmem:[#allocation98_spill] sm:$0xff] }
 0x4c8   : > { %v4389_v22 = vadd.f32 %v4295_v40, %v14149_v60  ;;  %10806 = vmatprep.mubr.msk.f32.mxu1 %vm11464_vm0, %v11463_v0  ;;  %10868 = vmatprep.mubr.msk.f32.mxu0 %vm11464_vm0, %v11463_v0 }
 0x4c9   : > { %v10539_v41 = vpop.f32.mrf.mxu1  ;;  %v10601_v42 = vpop.f32.mrf.mxu0 }
 0x4ca   : > { %v14382_v54 = vadd.f32 %v4496_v43, %v4389_v22 }
 0x4cb   : > { %v4300_v63 = vpop.f32.mrf.mxu1  ;;  %v4506_v18 = vpop.f32.mrf.mxu0  ;;  %10807 = vmatmul.mubr.msk.f32.gmra.mxu1 %vm940_vm2, %v16042_v23  ;;  %10869 = vmatmul.mubr.msk.f32.gmra.mxu0 %vm940_vm2, %v11839_v38  ;;  %v16046_v23 = vld [vmem:[#allocation103_spill] sm:$0xff] }
 0x4cc   : > { %v4390_v12 = vadd.f32 %v4300_v63, %v14160_v59  ;;  %10809 = vmatprep.mubr.msk.f32.mxu1 %vm11464_vm0, %v11463_v0  ;;  %10871 = vmatprep.mubr.msk.f32.mxu0 %vm11464_vm0, %v11463_v0 }
 0x4cd   : > { %v10542_v60 = vpop.f32.mrf.mxu1  ;;  %v10604_v48 = vpop.f32.mrf.mxu0 }
 0x4ce   : > { %v14393_v49 = vadd.f32 %v4501_v45, %v4390_v12  ;;  %v4989_v48 = vrot.slane %v13923_v24, 6 }
 0x4cf   : > { %v4305_v46 = vpop.f32.mrf.mxu1  ;;  %v4511_v3 = vpop.f32.mrf.mxu0  ;;  %10810 = vmatmul.mubr.msk.f32.gmra.mxu1 %vm940_vm2, %v16043_v32  ;;  %10872 = vmatmul.mubr.msk.f32.gmra.mxu0 %vm940_vm2, %v12683_v21 }
 0x4d0   : > { %v4391_v38 = vadd.f32 %v4305_v46, %v14171_v55  ;;  %10812 = vmatprep.mubr.msk.f32.mxu1 %vm11464_vm0, %v11463_v0  ;;  %10874 = vmatprep.mubr.msk.f32.mxu0 %vm11464_vm0, %v11463_v0 }
 0x4d1   : > { %v10545_v59 = vpop.f32.mrf.mxu1  ;;  %v10607_v57 = vpop.f32.mrf.mxu0 }
 0x4d2   : > { %v14404_v35 = vadd.f32 %v4506_v18, %v4391_v38  ;;  %v14449_v57 = vpop.trf.xlu0 }
 0x4d3   : > { %v4310_v43 = vpop.f32.mrf.mxu1  ;;  %v4516_v51 = vpop.f32.mrf.mxu0  ;;  %10813 = vmatmul.mubr.msk.f32.gmra.mxu1 %vm940_vm2, %v16044_v6  ;;  %10875 = vmatmul.mubr.msk.f32.gmra.mxu0 %vm940_vm2, %v12931_v36 }
 0x4d4   : > { %v4392_v21 = vadd.f32 %v4310_v43, %v14182_v47  ;;  %10815 = vmatprep.mubr.msk.f32.mxu1 %vm11464_vm0, %v11463_v0  ;;  %10877 = vmatprep.mubr.msk.f32.mxu0 %vm11464_vm0, %v11463_v0  ;;  %v16047_v43 = vrot.slane %v13163_v31, 6 }
 0x4d5   : > { %v10548_v55 = vpop.f32.mrf.mxu1  ;;  %v10610_v5 = vpop.f32.mrf.mxu0 }
 0x4d6   : > { %v14415_v33 = vadd.f32 %v4511_v3, %v4392_v21 }
 0x4d7   : > { %v4315_v40 = vpop.f32.mrf.mxu1  ;;  %v4521_v45 = vpop.f32.mrf.mxu0  ;;  %10816 = vmatmul.mubr.msk.f32.gmra.mxu1 %vm940_vm2, %v16045_v20  ;;  %10878 = vmatmul.mubr.msk.f32.gmra.mxu0 %vm940_vm2, %v13163_v31  ;;  %v8947_v20 = vld [vmem:[%s15576_s2 + $0xc0] sm:$0xff] }
 0x4d8   : > { %v4393_v47 = vadd.f32 %v4315_v40, %v14194_v52  ;;  %10818 = vmatprep.mubr.msk.f32.mxu1 %vm11464_vm0, %v11463_v0  ;;  %10880 = vmatprep.mubr.msk.f32.mxu0 %vm11464_vm0, %v11463_v0 }
 0x4d9   : > { %v10551_v22 = vpop.f32.mrf.mxu1  ;;  %v10613_v41 = vpop.f32.mrf.mxu0 }
 0x4da   : > { %v14426_v42 = vadd.f32 %v4516_v51, %v4393_v47  ;;  %v4990_v51 = vsel %vm2117_vm7, %v16047_v43, %v4989_v48 }
 0x4db   : > { %v4320_v63 = vpop.f32.mrf.mxu1  ;;  %v4526_v18 = vpop.f32.mrf.mxu0  ;;  %10819 = vmatmul.mubr.msk.f32.gmra.mxu1 %vm940_vm2, %v16046_v23  ;;  %10881 = vmatmul.mubr.msk.f32.gmra.mxu0 %vm940_vm2, %v13923_v24  ;;  %v8927_v23 = vld [vmem:[%s15576_s2 + $0xb8] sm:$0xff] }
 0x4dc   : > { %v4394_v52 = vadd.f32 %v4320_v63, %v14210_v19  ;;  %10821 = vmatprep.mubr.msk.f32.mxu1 %vm11464_vm0, %v11463_v0  ;;  %10883 = vmatprep.mubr.msk.f32.mxu0 %vm11464_vm0, %v11463_v0 }
 0x4dd   : > { %v10554_v12 = vpop.f32.mrf.mxu1  ;;  %v10616_v60 = vpop.f32.mrf.mxu0 }
 0x4de   : > { %v14438_v46 = vadd.f32 %v4521_v45, %v4394_v52 }
 0x4df   : > { %v4325_v3 = vpop.f32.mrf.mxu1  ;;  %v4531_v32 = vpop.f32.mrf.mxu0  ;;  %10822 = vmatmul.mubr.msk.f32.gmra.mxu1 %vm940_vm2, %v13508_v37  ;;  %10884 = vmatmul.mubr.msk.f32.gmra.mxu0 %vm940_vm2, %v13945_v8  ;;  %v4991_v37 = vrot.slane %v13945_v8, 6 }
 0x4e0   : > { %v4395_v19 = vadd.f32 %v4325_v3, %v14227_v29  ;;  %10824 = vmatprep.mubr.msk.f32.mxu1 %vm11464_vm0, %v11463_v0  ;;  %10886 = vmatprep.mubr.msk.f32.mxu0 %vm11464_vm0, %v11463_v0 }
 0x4e1   : > { %v10557_v38 = vpop.f32.mrf.mxu1  ;;  %v10619_v59 = vpop.f32.mrf.mxu0  ;;  %v4992_v45 = vsel %vm2117_vm7, %v4989_v48, %v4991_v37 }
 0x4e2   : > { %v14455_v6 = vadd.f32 %v4526_v18, %v4395_v19  ;;  %v16049_v59 = vld [vmem:[#allocation6_spill] sm:$0xff] }
 0x4e3   : > { %v4330_v21 = vpop.f32.mrf.mxu1  ;;  %v4536_v29 = vpop.f32.mrf.mxu0  ;;  %10825 = vmatmul.mubr.msk.f32.gmra.mxu1 %vm940_vm2, %v4990_v51  ;;  %10887 = vmatmul.mubr.msk.f32.gmra.mxu0 %vm940_vm2, %v14449_v57 }
 0x4e4   : > { %v4396_v55 = vadd.f32 %v4330_v21, %v14245_v26  ;;  %10827 = vmatprep.mubr.msk.f32.mxu1 %vm11464_vm0, %v11463_v0  ;;  %10950 = vmatprep.mubr.msk.f32.mxu0 %vm11464_vm0, %v11463_v0 }
 0x4e5   : > { %v10560_v5 = vpop.f32.mrf.mxu1  ;;  %v10622_v40 = vpop.f32.mrf.mxu0 }
 0x4e6   : > { %v14469_v47 = vadd.f32 %v4531_v32, %v4396_v55 }
 0x4e7   : > { %v4335_v22 = vpop.f32.mrf.mxu1  ;;  %v4541_v41 = vpop.f32.mrf.mxu0  ;;  %10828 = vmatmul.mubr.msk.f32.gmra.mxu1 %vm940_vm2, %v4992_v45  ;;  %10951 = vmatmul.mubr.msk.f32.vlgmr.msra.gmra.mxu0 %vm940_vm2, %v15896_v62 }
 0x4e8   : > { %v4397_v26 = vadd.f32 %v4335_v22, %v14259_v2  ;;  %10891 = vmatprep.mubr.msk.f32.mxu1 %vm11464_vm0, %v11463_v0  ;;  %10953 = vmatprep.mubr.msk.f32.mxu0 %vm11464_vm0, %v11463_v0  ;;  %v16048_v2 = vld [vmem:[#allocation5_spill] sm:$0xff] }
 0x4e9   : > { %v10563_v63 = vpop.f32.mrf.mxu1  ;;  %v10625_v18 = vpop.f32.mrf.mxu0  ;;  %11067 = vmatpush3.msra.mxu0 %v8947_v20  ;;  %v16051_v20 = vld [vmem:[#allocation8_spill] sm:$0xff] }
 0x4ea   : > { %v14482_v52 = vadd.f32 %v4536_v29, %v4397_v26  ;;  %11258 = vmatprep.subr.mxu0 %v11463_v0  ;;  %v16050_v29 = vld [vmem:[#allocation7_spill] sm:$0xff]  ;;  %v16052_v18 = vld [vmem:[#allocation9_spill] sm:$0xff] }
 0x4eb   : > { %v4340_v62 = vpop.f32.mrf.mxu1  ;;  %v4546_v12 = vpop.f32.mrf.mxu0  ;;  %10892 = vmatmul.mubr.msk.f32.vlgmr.msra.gmra.mxu1 %vm940_vm2, %v16048_v2  ;;  %10954 = vmatmul.mubr.msk.f32.gmra.mxu0 %vm940_vm2, %v15898_v56 }
 0x4ec   : > { %v4398_v60 = vadd.f32 %v4340_v62, %v14272_v10  ;;  %11008 = vmatpush3.msra.mxu1 %v8927_v23  ;;  %10894 = vmatprep.mubr.msk.f32.mxu1 %vm11464_vm0, %v11463_v0  ;;  %v16053_v23 = vld [vmem:[#allocation29_spill] sm:$0xff] }
 0x4ed   : > { %v10566_v48 = vpop.f32.mrf.mxu1  ;;  %v10628_v3 = vpop.f32.mrf.mxu0  ;;  %10956 = vmatprep.mubr.msk.f32.mxu0 %vm11464_vm0, %v11463_v0  ;;  %11125 = vmatprep.subr.mxu1 %v11463_v0 }
 0x4ee   : > { %v14495_v32 = vadd.f32 %v4541_v41, %v4398_v60  ;;  %v16054_v48 = vld [vmem:[#allocation11_spill] sm:$0xff]  ;;  %v16055_v3 = vld [vmem:[#allocation30_spill] sm:$0xff] }
 0x4ef   : > { %v4345_v19 = vpop.f32.mrf.mxu1  ;;  %v4551_v38 = vpop.f32.mrf.mxu0  ;;  %10895 = vmatmul.mubr.msk.f32.gmra.mxu1 %vm940_vm2, %v16049_v59  ;;  %10957 = vmatmul.mubr.msk.f32.gmra.mxu0 %vm940_vm2, %v15900_v50 }
 0x4f0   : > { %v4399_v56 = vadd.f32 %v4345_v19, %v14283_v13  ;;  %10897 = vmatprep.mubr.msk.f32.mxu1 %vm11464_vm0, %v11463_v0  ;;  %10959 = vmatprep.mubr.msk.f32.mxu0 %vm11464_vm0, %v11463_v0 }
 0x4f1   : > { %v10569_v10 = vpop.f32.mrf.mxu1  ;;  %v10631_v43 = vpop.f32.mrf.mxu0 }
 0x4f2   : > { %v14506_v51 = vadd.f32 %v4546_v12, %v4399_v56  ;;  %v16056_v43 = vld [vmem:[#allocation12_spill] sm:$0xff] }
 0x4f3   : > { %v4350_v37 = vpop.f32.mrf.mxu1  ;;  %v4556_v21 = vpop.f32.mrf.mxu0  ;;  %10898 = vmatmul.mubr.msk.f32.gmra.mxu1 %vm940_vm2, %v16050_v29  ;;  %10960 = vmatmul.mubr.msk.f32.gmra.mxu0 %vm940_vm2, %v15902_v53 }
 0x4f4   : > { %v4400_v50 = vadd.f32 %v4350_v37, %v14294_v1  ;;  %10900 = vmatprep.mubr.msk.f32.mxu1 %vm11464_vm0, %v11463_v0  ;;  %10962 = vmatprep.mubr.msk.f32.mxu0 %vm11464_vm0, %v11463_v0  ;;  %v16057_v37 = vld [vmem:[#allocation31_spill] sm:$0xff] }
 0x4f5   : > { %v10572_v13 = vpop.f32.mrf.mxu1  ;;  %v10634_v55 = vpop.f32.mrf.mxu0 }
 0x4f6   : > { %v14517_v5 = vadd.f32 %v4551_v38, %v4400_v50 }
 0x4f7   : > { %v4355_v40 = vpop.f32.mrf.mxu1  ;;  %v4561_v45 = vpop.f32.mrf.mxu0  ;;  %10901 = vmatmul.mubr.msk.f32.gmra.mxu1 %vm940_vm2, %v16051_v20  ;;  %10963 = vmatmul.mubr.msk.f32.gmra.mxu0 %vm940_vm2, %v15977_v9 }
 0x4f8   : > { %v4401_v53 = vadd.f32 %v4355_v40, %v14305_v11  ;;  %10903 = vmatprep.mubr.msk.f32.mxu1 %vm11464_vm0, %v11463_v0  ;;  %10965 = vmatprep.mubr.msk.f32.mxu0 %vm11464_vm0, %v11463_v0  ;;  %v16058_v40 = vld [vmem:[#allocation13_spill] sm:$0xff] }
 0x4f9   : > { %v10575_v1 = vpop.f32.mrf.mxu1  ;;  %v10637_v22 = vpop.f32.mrf.mxu0 }
 0x4fa   : > { %v14528_v41 = vadd.f32 %v4556_v21, %v4401_v53 }
 0x4fb   : > { %v4360_v26 = vpop.f32.mrf.mxu1  ;;  %v4566_v63 = vpop.f32.mrf.mxu0  ;;  %10904 = vmatmul.mubr.msk.f32.gmra.mxu1 %vm940_vm2, %v16052_v18  ;;  %10966 = vmatmul.mubr.msk.f32.gmra.mxu0 %vm940_vm2, %v16053_v23  ;;  %v16061_v18 = vld [vmem:[#allocation33_spill] sm:$0xff] }
 0x4fc   : > { %v4402_v9 = vadd.f32 %v4360_v26, %v14316_v34  ;;  %10906 = vmatprep.mubr.msk.f32.mxu1 %vm11464_vm0, %v11463_v0  ;;  %10968 = vmatprep.mubr.msk.f32.mxu0 %vm11464_vm0, %v11463_v0 }
 0x4fd   : > { %v10578_v11 = vpop.f32.mrf.mxu1  ;;  %v10640_v62 = vpop.f32.mrf.mxu0 }
 0x4fe   : > { %v14539_v12 = vadd.f32 %v4561_v45, %v4402_v9  ;;  %v16059_v45 = vld [vmem:[#allocation32_spill] sm:$0xff] }
 0x4ff   : > { %v4365_v2 = vpop.f32.mrf.mxu1  ;;  %v4571_v60 = vpop.f32.mrf.mxu0  ;;  %10907 = vmatmul.mubr.msk.f32.gmra.mxu1 %vm940_vm2, %v16054_v48  ;;  %10969 = vmatmul.mubr.msk.f32.gmra.mxu0 %vm940_vm2, %v16055_v3  ;;  %v16063_v48 = vld [vmem:[#allocation34_spill] sm:$0xff] }
 0x500   : > { %v4403_v34 = vadd.f32 %v4365_v2, %v14327_v15  ;;  %10909 = vmatprep.mubr.msk.f32.mxu1 %vm11464_vm0, %v11463_v0  ;;  %10971 = vmatprep.mubr.msk.f32.mxu0 %vm11464_vm0, %v11463_v0 }
 0x501   : > { %v10581_v19 = vpop.f32.mrf.mxu1  ;;  %v10643_v38 = vpop.f32.mrf.mxu0 }
 0x502   : > { %v14550_v59 = vadd.f32 %v4566_v63, %v4403_v34  ;;  %v16060_v63 = vld [vmem:[#allocation14_spill] sm:$0xff] }
 0x503   : > { %v4370_v56 = vpop.f32.mrf.mxu1  ;;  %v4576_v10 = vpop.f32.mrf.mxu0  ;;  %10910 = vmatmul.mubr.msk.f32.gmra.mxu1 %vm940_vm2, %v16056_v43  ;;  %10972 = vmatmul.mubr.msk.f32.gmra.mxu0 %vm940_vm2, %v16057_v37  ;;  %v16065_v43 = vld [vmem:[#allocation35_spill] sm:$0xff] }
 0x504   : > { %v4404_v15 = vadd.f32 %v4370_v56, %v14338_v39  ;;  %10912 = vmatprep.mubr.msk.f32.mxu1 %vm11464_vm0, %v11463_v0  ;;  %10974 = vmatprep.mubr.msk.f32.mxu0 %vm11464_vm0, %v11463_v0 }
 0x505   : > { %v10584_v21 = vpop.f32.mrf.mxu1  ;;  %v10646_v29 = vpop.f32.mrf.mxu0 }
 0x506   : > { %v14561_v50 = vadd.f32 %v4571_v60, %v4404_v15  ;;  %v16062_v60 = vld [vmem:[#allocation16_spill] sm:$0xff] }
 0x507   : > { %v4375_v13 = vpop.f32.mrf.mxu1  ;;  %v4581_v55 = vpop.f32.mrf.mxu0  ;;  %10913 = vmatmul.mubr.msk.f32.gmra.mxu1 %vm940_vm2, %v16058_v40  ;;  %10975 = vmatmul.mubr.msk.f32.gmra.mxu0 %vm940_vm2, %v16059_v45  ;;  %v16067_v40 = vld [vmem:[#allocation37_spill] sm:$0xff] }
 0x508   : > { %v4405_v39 = vadd.f32 %v4375_v13, %v14349_v58  ;;  %10915 = vmatprep.mubr.msk.f32.mxu1 %vm11464_vm0, %v11463_v0  ;;  %10977 = vmatprep.mubr.msk.f32.mxu0 %vm11464_vm0, %v11463_v0 }
 0x509   : > { %v10587_v20 = vpop.f32.mrf.mxu1  ;;  %v10649_v53 = vpop.f32.mrf.mxu0 }
 0x50a   : > { %v14572_v1 = vadd.f32 %v4576_v10, %v4405_v39  ;;  %v16064_v10 = vld [vmem:[#allocation17_spill] sm:$0xff] }
 0x50b   : > { %v4380_v22 = vpop.f32.mrf.mxu1  ;;  %v4586_v26 = vpop.f32.mrf.mxu0  ;;  %10916 = vmatmul.mubr.msk.f32.gmra.mxu1 %vm940_vm2, %v16060_v63  ;;  %10978 = vmatmul.mubr.msk.f32.gmra.mxu0 %vm940_vm2, %v16061_v18  ;;  %v16069_v63 = vld [vmem:[#allocation21_spill] sm:$0xff] }
 0x50c   : > { %v4406_v58 = vadd.f32 %v4380_v22, %v14360_v61  ;;  %10918 = vmatprep.mubr.msk.f32.mxu1 %vm11464_vm0, %v11463_v0  ;;  %10980 = vmatprep.mubr.msk.f32.mxu0 %vm11464_vm0, %v11463_v0 }
 0x50d   : > { %v10590_v23 = vpop.f32.mrf.mxu1  ;;  %v10652_v9 = vpop.f32.mrf.mxu0 }
 0x50e   : > { %v14583_v11 = vadd.f32 %v4581_v55, %v4406_v58  ;;  %v16066_v55 = vld [vmem:[#allocation18_spill] sm:$0xff]  ;;  %v5367_v23 = vrot.slane %v13163_v31, 1 }
 0x50f   : > { %v4385_v62 = vpop.f32.mrf.mxu1  ;;  %v4874_v2 = vpop.f32.mrf.mxu0  ;;  %10919 = vmatmul.mubr.msk.f32.gmra.mxu1 %vm940_vm2, %v16062_v60  ;;  %10981 = vmatmul.mubr.msk.f32.gmra.mxu0 %vm940_vm2, %v16063_v48  ;;  %v16070_v60 = vld [vmem:[#allocation15_spill] sm:$0xff] }
 0x510   : > { %v4407_v61 = vadd.f32 %v4385_v62, %v14371_v30  ;;  %10921 = vmatprep.mubr.msk.f32.mxu1 %vm11464_vm0, %v11463_v0  ;;  %10983 = vmatprep.mubr.msk.f32.mxu0 %vm11464_vm0, %v11463_v0 }
 0x511   : > { %v10593_v3 = vpop.f32.mrf.mxu1  ;;  %v10716_v34 = vpop.f32.mrf.mxu0 }
 0x512   : > { %v14594_v19 = vadd.f32 %v4586_v26, %v4407_v61  ;;  %v16068_v26 = vld [vmem:[#allocation10_spill] sm:$0xff]  ;;  %v16071_v61 = vrot.slane %v12931_v36, 1  ;;  %v5369_v34 = vrot.slane %v13923_v24, 1  ;;  %v5568_v24 = vrot.slane %v14449_v57, 2 }
 0x513   : > { %v4685_v38 = vpop.f32.mrf.mxu1  ;;  %v4879_v56 = vpop.f32.mrf.mxu0  ;;  %10922 = vmatmul.mubr.msk.f32.gmra.mxu1 %vm940_vm2, %v16064_v10  ;;  %10984 = vmatmul.mubr.msk.f32.gmra.mxu0 %vm940_vm2, %v16065_v43 }
 0x514   : > { %v4779_v30 = vadd.f32 %v4685_v38, %v14382_v54  ;;  %10924 = vmatprep.mubr.msk.f32.mxu1 %vm11464_vm0, %v11463_v0  ;;  %10986 = vmatprep.mubr.msk.f32.mxu0 %vm11464_vm0, %v11463_v0  ;;  %v5368_v3 = vsel %vm900_vm1, %v16071_v61, %v5367_v23  ;;  %v14654_v43 = vpop.trf.xlu0 }
 0x515   : > { %v10657_v37 = vpop.f32.mrf.mxu1  ;;  %v10719_v15 = vpop.f32.mrf.mxu0 }
 0x516   : > { %v14605_v21 = vadd.f32 %v4874_v2, %v4779_v30  ;;  %v5370_v30 = vsel %vm900_vm1, %v5367_v23, %v5369_v34  ;;  %v5371_v37 = vrot.slane %v13945_v8, 1 }
 0x517   : > { %v4690_v29 = vpop.f32.mrf.mxu1  ;;  %v4884_v13 = vpop.f32.mrf.mxu0  ;;  %10925 = vmatmul.mubr.msk.f32.gmra.mxu1 %vm940_vm2, %v16066_v55  ;;  %10987 = vmatmul.mubr.msk.f32.gmra.mxu0 %vm940_vm2, %v16067_v40 }
 0x518   : > { %v4780_v54 = vadd.f32 %v4690_v29, %v14393_v49  ;;  %10927 = vmatprep.mubr.msk.f32.mxu1 %vm11464_vm0, %v11463_v0  ;;  %10989 = vmatprep.mubr.msk.f32.mxu0 %vm11464_vm0, %v11463_v0 }
 0x519   : > { %v10660_v45 = vpop.f32.mrf.mxu1  ;;  %v10722_v39 = vpop.f32.mrf.mxu0 }
 0x51a   : > { %v14616_v20 = vadd.f32 %v4879_v56, %v4780_v54  ;;  %v5570_v54 = vrot.slane %v14654_v43, 2  ;;  %v5372_v45 = vsel %vm900_vm1, %v5369_v34, %v5371_v37  ;;  %v16072_v39 = vrot.slane %v13945_v8, 2 }
 0x51b   : > { %v4695_v53 = vpop.f32.mrf.mxu1  ;;  %v4889_v22 = vpop.f32.mrf.mxu0  ;;  %10928 = vmatmul.mubr.msk.f32.gmra.mxu1 %vm940_vm2, %v16068_v26  ;;  %10990 = vmatmul.mubr.msk.f32.gmra.mxu0 %vm940_vm2, %v16069_v63 }
 0x51c   : > { %v4781_v49 = vadd.f32 %v4695_v53, %v14404_v35  ;;  %10930 = vmatprep.mubr.msk.f32.mxu1 %vm11464_vm0, %v11463_v0  ;;  %10992 = vmatprep.mubr.msk.f32.mxu0 %vm11464_vm0, %v11463_v0  ;;  %v5571_v23 = vsel %vm1339_vm3, %v5568_v24, %v5570_v54  ;;  %v16077_v54 = vld [vmem:[#allocation46_spill] sm:$0xff] }
 0x51d   : > { %v10663_v18 = vpop.f32.mrf.mxu1  ;;  %v10725_v58 = vpop.f32.mrf.mxu0 }
 0x51e   : > { %v14628_v9 = vadd.f32 %v4884_v13, %v4781_v49  ;;  %v5373_v13 = vrot.slane %v14449_v57, 1  ;;  %v5375_v18 = vrot.slane %v14654_v43, 1 }
 0x51f   : > { %v4700_v62 = vpop.f32.mrf.mxu1  ;;  %v4894_v2 = vpop.f32.mrf.mxu0  ;;  %10931 = vmatmul.mubr.msk.f32.gmra.mxu1 %vm940_vm2, %v16070_v60  ;;  %10993 = vmatmul.mubr.msk.f32.gmra.mxu0 %vm940_vm2, %v13967_v17 }
 0x520   : > { %v4782_v35 = vadd.f32 %v4700_v62, %v14415_v33  ;;  %10933 = vmatprep.mubr.msk.f32.mxu1 %vm11464_vm0, %v11463_v0  ;;  %10995 = vmatprep.mubr.msk.f32.mxu0 %vm11464_vm0, %v11463_v0  ;;  %v5374_v58 = vsel %vm900_vm1, %v5371_v37, %v5373_v13  ;;  %v16075_v37 = vld [vmem:[#allocation44_spill] sm:$0xff] }
 0x521   : > { %v10666_v48 = vpop.f32.mrf.mxu1  ;;  %v10728_v31 = vpop.f32.mrf.mxu0 }
 0x522   : > { %v14643_v38 = vadd.f32 %v4889_v22, %v4782_v35  ;;  %v5376_v31 = vsel %vm900_vm1, %v5373_v13, %v5375_v18 }
 0x523   : > { %v4705_v56 = vpop.f32.mrf.mxu1  ;;  %v4899_v17 = vpop.f32.mrf.mxu0  ;;  %10934 = vmatmul.mubr.msk.f32.gmra.mxu1 %vm940_vm2, %v5368_v3  ;;  %10996 = vmatmul.mubr.msk.f32.gmra.mxu0 %vm940_vm2, %v13990_v14 }
 0x524   : > { %v4783_v33 = vadd.f32 %v4705_v56, %v14426_v42  ;;  %10936 = vmatprep.mubr.msk.f32.mxu1 %vm11464_vm0, %v11463_v0  ;;  %10998 = vmatprep.mubr.msk.f32.mxu0 %vm11464_vm0, %v11463_v0  ;;  %v16073_v56 = vld [vmem:[#allocation42_spill] sm:$0xff] }
 0x525   : > { %v10669_v36 = vpop.f32.mrf.mxu1  ;;  %v10731_v10 = vpop.f32.mrf.mxu0 }
 0x526   : > { %v14658_v15 = vadd.f32 %v4894_v2, %v4783_v33 }
 0x527   : > { %v4710_v14 = vpop.f32.mrf.mxu1  ;;  %v4904_v42 = vpop.f32.mrf.mxu0  ;;  %10937 = vmatmul.mubr.msk.f32.gmra.mxu1 %vm940_vm2, %v5370_v30  ;;  %10999 = vmatmul.mubr.msk.f32.gmra.mxu0 %vm940_vm2, %v14007_v25  ;;  %v5569_v25 = vsel %vm1339_vm3, %v16072_v39, %v5568_v24  ;;  %v16074_v30 = vld [vmem:[#allocation43_spill] sm:$0xff] }
 0x528   : > { %v4784_v29 = vadd.f32 %v4710_v14, %v14438_v46  ;;  %10939 = vmatprep.mubr.msk.f32.mxu1 %vm11464_vm0, %v11463_v0  ;;  %11001 = vmatprep.mubr.msk.f32.mxu0 %vm11464_vm0, %v11463_v0 }
 0x529   : > { %v10672_v55 = vpop.f32.mrf.mxu1  ;;  %v10734_v40 = vpop.f32.mrf.mxu0 }
 0x52a   : > { %v14674_v53 = vadd.f32 %v4899_v17, %v4784_v29  ;;  %v16076_v40 = vld [vmem:[#allocation45_spill] sm:$0xff] }
 0x52b   : > { %v4715_v46 = vpop.f32.mrf.mxu1  ;;  %v4909_v22 = vpop.f32.mrf.mxu0  ;;  %10940 = vmatmul.mubr.msk.f32.gmra.mxu1 %vm940_vm2, %v5372_v45  ;;  %11002 = vmatmul.mubr.msk.f32.gmra.mxu0 %vm940_vm2, %v5569_v25 }
 0x52c   : > { %v4785_v26 = vadd.f32 %v4715_v46, %v14455_v6  ;;  %10942 = vmatprep.mubr.msk.f32.mxu1 %vm11464_vm0, %v11463_v0  ;;  %11004 = vmatprep.mubr.msk.f32.mxu0 %vm11464_vm0, %v11463_v0 }
 0x52d   : > { %v10675_v63 = vpop.f32.mrf.mxu1  ;;  %v10737_v49 = vpop.f32.mrf.mxu0 }
 0x52e   : > { %v14686_v62 = vadd.f32 %v4904_v42, %v4785_v26  ;;  %v16078_v26 = vld [vmem:[#allocation47_spill] sm:$0xff]  ;;  %v16079_v63 = vld [vmem:[#allocation48_spill] sm:$0xff] }
 0x52f   : > { %v4720_v2 = vpop.f32.mrf.mxu1  ;;  %v4914_v60 = vpop.f32.mrf.mxu0  ;;  %10943 = vmatmul.mubr.msk.f32.gmra.mxu1 %vm940_vm2, %v5374_v58  ;;  %11005 = vmatmul.mubr.msk.f32.gmra.mxu0 %vm940_vm2, %v5571_v23 }
 0x530   : > { %v4786_v6 = vadd.f32 %v4720_v2, %v14469_v47  ;;  %10945 = vmatprep.mubr.msk.f32.mxu1 %vm11464_vm0, %v11463_v0  ;;  %11068 = vmatprep.mubr.msk.f32.mxu0 %vm11464_vm0, %v11463_v0 }
 0x531   : > { %v10678_v35 = vpop.f32.mrf.mxu1  ;;  %v10740_v48 = vpop.f32.mrf.mxu0 }
 0x532   : > { %v14696_v61 = vadd.f32 %v4909_v22, %v4786_v6  ;;  %v16081_v6 = vld [vmem:[#allocation50_spill] sm:$0xff] }
 0x533   : > { %v4725_v3 = vpop.f32.mrf.mxu1  ;;  %v4919_v34 = vpop.f32.mrf.mxu0  ;;  %10946 = vmatmul.mubr.msk.f32.gmra.mxu1 %vm940_vm2, %v5376_v31  ;;  %11069 = vmatmul.mubr.msk.f32.vlgmr.msra.gmra.mxu0 %vm940_vm2, %v16073_v56  ;;  %v6287_v31 = vld [vmem:[%s15577_s3 + $0x8] sm:$0xff] }
 0x534   : > { %v4787_v47 = vadd.f32 %v4725_v3, %v14482_v52  ;;  %11009 = vmatprep.mubr.msk.f32.mxu1 %vm11464_vm0, %v11463_v0  ;;  %11071 = vmatprep.mubr.msk.f32.mxu0 %vm11464_vm0, %v11463_v0 }
 0x535   : > { %v10681_v17 = vpop.f32.mrf.mxu1  ;;  %v10743_v33 = vpop.f32.mrf.mxu0 }
 0x536   : > { %v14706_v36 = vadd.f32 %v4914_v60, %v4787_v47  ;;  %v16080_v60 = vld [vmem:[#allocation49_spill] sm:$0xff]  ;;  %v16082_v47 = vld [vmem:[#allocation51_spill] sm:$0xff] }
 0x537   : > { %v4730_v10 = vpop.f32.mrf.mxu1  ;;  %v4924_v24 = vpop.f32.mrf.mxu0  ;;  %11010 = vmatmul.mubr.msk.f32.vlgmr.msra.gmra.mxu1 %vm940_vm2, %v16074_v30  ;;  %11072 = vmatmul.mubr.msk.f32.gmra.mxu0 %vm940_vm2, %v16075_v37 }
 0x538   : > { %v4788_v52 = vadd.f32 %v4730_v10, %v14495_v32  ;;  %11012 = vmatprep.mubr.msk.f32.mxu1 %vm11464_vm0, %v11463_v0  ;;  %11074 = vmatprep.mubr.msk.f32.mxu0 %vm11464_vm0, %v11463_v0 }
 0x539   : > { %v10684_v14 = vpop.f32.mrf.mxu1  ;;  %v10746_v42 = vpop.f32.mrf.mxu0  ;;  %11126 = vmatpush3.msra.mxu1 %v6287_v31  ;;  %v16090_v31 = vld [vmem:[#allocation61_spill] sm:$0xff] }
 0x53a   : > { %v14717_v29 = vadd.f32 %v4919_v34, %v4788_v52  ;;  %11127 = vmatprep.subr.mxu1 %v11463_v0  ;;  %v16084_v52 = vld [vmem:[#allocation53_spill] sm:$0xff]  ;;  %v16085_v14 = vld [vmem:[#allocation54_spill] sm:$0xff] }
 0x53b   : > { %v4735_v13 = vpop.f32.mrf.mxu1  ;;  %v4929_v55 = vpop.f32.mrf.mxu0  ;;  %11013 = vmatmul.mubr.msk.f32.gmra.mxu1 %vm940_vm2, %v16076_v40  ;;  %11075 = vmatmul.mubr.msk.f32.gmra.mxu0 %vm940_vm2, %v16077_v54 }
 0x53c   : > { %v4789_v32 = vadd.f32 %v4735_v13, %v14506_v51  ;;  %11015 = vmatprep.mubr.msk.f32.mxu1 %vm11464_vm0, %v11463_v0  ;;  %11077 = vmatprep.mubr.msk.f32.mxu0 %vm11464_vm0, %v11463_v0 }
 0x53d   : > { %v10687_v45 = vpop.f32.mrf.mxu1  ;;  %v10749_v39 = vpop.f32.mrf.mxu0 }
 0x53e   : > { %v14728_v25 = vadd.f32 %v4924_v24, %v4789_v32  ;;  %v16086_v32 = vld [vmem:[#allocation55_spill] sm:$0xff] }
 0x53f   : > { %v4740_v46 = vpop.f32.mrf.mxu1  ;;  %v4934_v22 = vpop.f32.mrf.mxu0  ;;  %11016 = vmatmul.mubr.msk.f32.gmra.mxu1 %vm940_vm2, %v16078_v26  ;;  %11078 = vmatmul.mubr.msk.f32.gmra.mxu0 %vm940_vm2, %v16079_v63  ;;  %v16087_v63 = vld [vmem:[#allocation57_spill] sm:$0xff] }
 0x540   : > { %v4790_v51 = vadd.f32 %v4740_v46, %v14517_v5  ;;  %11018 = vmatprep.mubr.msk.f32.mxu1 %vm11464_vm0, %v11463_v0  ;;  %11080 = vmatprep.mubr.msk.f32.mxu0 %vm11464_vm0, %v11463_v0 }
 0x541   : > { %v10690_v49 = vpop.f32.mrf.mxu1  ;;  %v10752_v18 = vpop.f32.mrf.mxu0 }
 0x542   : > { %v14739_v58 = vadd.f32 %v4929_v55, %v4790_v51 }
 0x543   : > { %v4745_v23 = vpop.f32.mrf.mxu1  ;;  %v4939_v2 = vpop.f32.mrf.mxu0  ;;  %11019 = vmatmul.mubr.msk.f32.gmra.mxu1 %vm940_vm2, %v16080_v60  ;;  %11081 = vmatmul.mubr.msk.f32.gmra.mxu0 %vm940_vm2, %v16081_v6  ;;  %v16089_v60 = vld [vmem:[#allocation60_spill] sm:$0xff] }
 0x544   : > { %v4791_v5 = vadd.f32 %v4745_v23, %v14528_v41  ;;  %11021 = vmatprep.mubr.msk.f32.mxu1 %vm11464_vm0, %v11463_v0  ;;  %11083 = vmatprep.mubr.msk.f32.mxu0 %vm11464_vm0, %v11463_v0  ;;  %v16083_v41 = vld [vmem:[#allocation52_spill] sm:$0xff] }
 0x545   : > { %v10693_v35 = vpop.f32.mrf.mxu1  ;;  %v10755_v48 = vpop.f32.mrf.mxu0 }
 0x546   : > { %v14753_v3 = vadd.f32 %v4934_v22, %v4791_v5 }
 0x547   : > { %v4750_v34 = vpop.f32.mrf.mxu1  ;;  %v4944_v56 = vpop.f32.mrf.mxu0  ;;  %11022 = vmatmul.mubr.msk.f32.gmra.mxu1 %vm940_vm2, %v16082_v47  ;;  %11084 = vmatmul.mubr.msk.f32.gmra.mxu0 %vm940_vm2, %v16083_v41 }
 0x548   : > { %v4792_v17 = vadd.f32 %v4750_v34, %v14539_v12  ;;  %11024 = vmatprep.mubr.msk.f32.mxu1 %vm11464_vm0, %v11463_v0  ;;  %11086 = vmatprep.mubr.msk.f32.mxu0 %vm11464_vm0, %v11463_v0 }
 0x549   : > { %v10696_v33 = vpop.f32.mrf.mxu1  ;;  %v10758_v10 = vpop.f32.mrf.mxu0 }
 0x54a   : > { %v14765_v24 = vadd.f32 %v4939_v2, %v4792_v17  ;;  %v16088_v2 = vld [vmem:[#allocation59_spill] sm:$0xff]  ;;  %v16092_v10 = vld [vmem:[#allocation64_spill] sm:$0xff] }
 0x54b   : > { %v4755_v30 = vpop.f32.mrf.mxu1  ;;  %v4949_v37 = vpop.f32.mrf.mxu0  ;;  %11025 = vmatmul.mubr.msk.f32.gmra.mxu1 %vm940_vm2, %v16084_v52  ;;  %11087 = vmatmul.mubr.msk.f32.gmra.mxu0 %vm940_vm2, %v16085_v14  ;;  %v16091_v33 = vld [vmem:[#allocation63_spill] sm:$0xff] }
 0x54c   : > { %v4793_v12 = vadd.f32 %v4755_v30, %v14550_v59  ;;  %11027 = vmatprep.mubr.msk.f32.mxu1 %vm11464_vm0, %v11463_v0  ;;  %11089 = vmatprep.mubr.msk.f32.mxu0 %vm11464_vm0, %v11463_v0 }
 0x54d   : > { %v10699_v42 = vpop.f32.mrf.mxu1  ;;  %v10761_v13 = vpop.f32.mrf.mxu0 }
 0x54e   : > { %v14776_v55 = vadd.f32 %v4944_v56, %v4793_v12  ;;  %v16093_v12 = vld [vmem:[#allocation65_spill] sm:$0xff]  ;;  %v16094_v42 = vld [vmem:[#allocation36_spill] sm:$0xff] }
 0x54f   : > { %v4760_v40 = vpop.f32.mrf.mxu1  ;;  %v4954_v54 = vpop.f32.mrf.mxu0  ;;  %11028 = vmatmul.mubr.msk.f32.gmra.mxu1 %vm940_vm2, %v16086_v32  ;;  %11090 = vmatmul.mubr.msk.f32.gmra.mxu0 %vm940_vm2, %v16019_v27 }
 0x550   : > { %v4794_v59 = vadd.f32 %v4760_v40, %v14561_v50  ;;  %11030 = vmatprep.mubr.msk.f32.mxu1 %vm11464_vm0, %v11463_v0  ;;  %11092 = vmatprep.mubr.msk.f32.mxu0 %vm11464_vm0, %v11463_v0 }
 0x551   : > { %v10702_v45 = vpop.f32.mrf.mxu1  ;;  %v10764_v39 = vpop.f32.mrf.mxu0 }
 0x552   : > { %v14787_v46 = vadd.f32 %v4949_v37, %v4794_v59  ;;  %v16095_v45 = vld [vmem:[#allocation66_spill] sm:$0xff]  ;;  %v16096_v39 = vld [vmem:[#allocation19_spill] sm:$0xff] }
 0x553   : > { %v4765_v22 = vpop.f32.mrf.mxu1  ;;  %v4959_v26 = vpop.f32.mrf.mxu0  ;;  %11031 = vmatmul.mubr.msk.f32.gmra.mxu1 %vm940_vm2, %v16087_v63  ;;  %11093 = vmatmul.mubr.msk.f32.gmra.mxu0 %vm940_vm2, %v16021_v4 }
 0x554   : > { %v4795_v27 = vadd.f32 %v4765_v22, %v14572_v1  ;;  %11033 = vmatprep.mubr.msk.f32.mxu1 %vm11464_vm0, %v11463_v0  ;;  %11095 = vmatprep.mubr.msk.f32.mxu0 %vm11464_vm0, %v11463_v0 }
 0x555   : > { %v10705_v50 = vpop.f32.mrf.mxu1  ;;  %v10767_v51 = vpop.f32.mrf.mxu0 }
 0x556   : > { %v14798_v49 = vadd.f32 %v4954_v54, %v4795_v27  ;;  %v16097_v51 = vld [vmem:[#allocation68_spill] sm:$0xff] }
 0x557   : > { %v4770_v18 = vpop.f32.mrf.mxu1  ;;  %v4964_v23 = vpop.f32.mrf.mxu0  ;;  %11034 = vmatmul.mubr.msk.f32.gmra.mxu1 %vm940_vm2, %v16088_v2  ;;  %11096 = vmatmul.mubr.msk.f32.gmra.mxu0 %vm940_vm2, %v16089_v60 }
 0x558   : > { %v4796_v4 = vadd.f32 %v4770_v18, %v14583_v11  ;;  %11036 = vmatprep.mubr.msk.f32.mxu1 %vm11464_vm0, %v11463_v0  ;;  %11098 = vmatprep.mubr.msk.f32.mxu0 %vm11464_vm0, %v11463_v0  ;;  %v16098_v18 = vld [vmem:[#allocation20_spill] sm:$0xff] }
 0x559   : > { %v10708_v1 = vpop.f32.mrf.mxu1  ;;  %v10770_v6 = vpop.f32.mrf.mxu0 }
 0x55a   : > { %v14809_v5 = vadd.f32 %v4959_v26, %v4796_v4 }
 0x55b   : > { %v4775_v35 = vpop.f32.mrf.mxu1  ;;  %v5251_v48 = vpop.f32.mrf.mxu0  ;;  %11037 = vmatmul.mubr.msk.f32.gmra.mxu1 %vm940_vm2, %v16090_v31  ;;  %11099 = vmatmul.mubr.msk.f32.gmra.mxu0 %vm940_vm2, %v16023_v7 }
 0x55c   : > { %v4797_v11 = vadd.f32 %v4775_v35, %v14594_v19  ;;  %11039 = vmatprep.mubr.msk.f32.mxu1 %vm11464_vm0, %v11463_v0  ;;  %11101 = vmatprep.mubr.msk.f32.mxu0 %vm11464_vm0, %v11463_v0 }
 0x55d   : > { %v10711_v34 = vpop.f32.mrf.mxu1  ;;  %v10834_v56 = vpop.f32.mrf.mxu0 }
 0x55e   : > { %v14820_v47 = vadd.f32 %v4964_v23, %v4797_v11  ;;  %v6286_v23 = vld [vmem:[%s15577_s3] sm:$0xff]  ;;  %v5946_v11 = vrot.slane %v14449_v57, 4 }
 0x55f   : > { %v5063_v41 = vpop.f32.mrf.mxu1  ;;  %v5256_v17 = vpop.f32.mrf.mxu0  ;;  %11040 = vmatmul.mubr.msk.f32.gmra.mxu1 %vm940_vm2, %v16091_v33  ;;  %11102 = vmatmul.mubr.msk.f32.gmra.mxu0 %vm940_vm2, %v16092_v10  ;;  %v5757_v10 = vrot.slane %v14449_v57, 3 }
 0x560   : > { %v5157_v7 = vadd.f32 %v5063_v41, %v14605_v21  ;;  %11042 = vmatprep.mubr.msk.f32.mxu1 %vm11464_vm0, %v11463_v0  ;;  %11104 = vmatprep.mubr.msk.f32.mxu0 %vm11464_vm0, %v11463_v0 }
 0x561   : > { %v10775_v19 = vpop.f32.mrf.mxu1  ;;  %v10837_v30 = vpop.f32.mrf.mxu0  ;;  %11128 = vmatpush3.msra.mxu1 %v6286_v23 }
 0x562   : > { %v14831_v37 = vadd.f32 %v5251_v48, %v5157_v7  ;;  %11132 = vmatprep.subr.mxu1 %v11463_v0  ;;  %v5948_v7 = vrot.slane %v14654_v43, 4  ;;  %v5947_v19 = vsel %vm1857_vm4, %v4613_v44, %v5946_v11  ;;  %v5759_v44 = vrot.slane %v14654_v43, 3 }
 0x563   : > { %v5068_v52 = vpop.f32.mrf.mxu1  ;;  %v5261_v14 = vpop.f32.mrf.mxu0  ;;  %11043 = vmatmul.mubr.msk.f32.gmra.mxu1 %vm940_vm2, %v16093_v12  ;;  %11105 = vmatmul.mubr.msk.f32.gmra.mxu0 %vm940_vm2, %v16094_v42  ;;  %v16102_v42 = vrot.slane %v13945_v8, 3 }
 0x564   : > { %v5158_v21 = vadd.f32 %v5068_v52, %v14616_v20  ;;  %11045 = vmatprep.mubr.msk.f32.mxu1 %vm11464_vm0, %v11463_v0  ;;  %11107 = vmatprep.mubr.msk.f32.mxu0 %vm11464_vm0, %v11463_v0  ;;  %v16101_v52 = vld [vmem:[#allocation74_spill] sm:$0xff] }
 0x565   : > { %v10778_v13 = vpop.f32.mrf.mxu1  ;;  %v10840_v40 = vpop.f32.mrf.mxu0 }
 0x566   : > { %v14842_v54 = vadd.f32 %v5256_v17, %v5158_v21  ;;  %v16100_v17 = vld [vmem:[#allocation72_spill] sm:$0xff]  ;;  %v5758_v21 = vsel %vm1598_vm5, %v16102_v42, %v5757_v10  ;;  %v5949_v13 = vsel %vm1857_vm4, %v5946_v11, %v5948_v7 }
 0x567   : > { %v5073_v32 = vpop.f32.mrf.mxu1  ;;  %v5266_v59 = vpop.f32.mrf.mxu0  ;;  %11046 = vmatmul.mubr.msk.f32.gmra.mxu1 %vm940_vm2, %v16095_v45  ;;  %11108 = vmatmul.mubr.msk.f32.gmra.mxu0 %vm940_vm2, %v16096_v39  ;;  %v5760_v45 = vsel %vm1598_vm5, %v5757_v10, %v5759_v44 }
 0x568   : > { %v5159_v20 = vadd.f32 %v5073_v32, %v14628_v9  ;;  %11048 = vmatprep.mubr.msk.f32.mxu1 %vm11464_vm0, %v11463_v0  ;;  %11110 = vmatprep.mubr.msk.f32.mxu0 %vm11464_vm0, %v11463_v0 }
 0x569   : > { %v10781_v22 = vpop.f32.mrf.mxu1  ;;  %v10843_v26 = vpop.f32.mrf.mxu0 }
 0x56a   : > { %v14853_v63 = vadd.f32 %v5261_v14, %v5159_v20 }
 0x56b   : > { %v5078_v27 = vpop.f32.mrf.mxu1  ;;  %v5271_v50 = vpop.f32.mrf.mxu0  ;;  %11049 = vmatmul.mubr.msk.f32.gmra.mxu1 %vm940_vm2, %v16097_v51  ;;  %11111 = vmatmul.mubr.msk.f32.gmra.mxu0 %vm940_vm2, %v16098_v18 }
 0x56c   : > { %v5160_v9 = vadd.f32 %v5078_v27, %v14643_v38  ;;  %11051 = vmatprep.mubr.msk.f32.mxu1 %vm11464_vm0, %v11463_v0  ;;  %11113 = vmatprep.mubr.msk.f32.mxu0 %vm11464_vm0, %v11463_v0  ;;  %v16099_v38 = vld [vmem:[#allocation70_spill] sm:$0xff] }
 0x56d   : > { %v10784_v2 = vpop.f32.mrf.mxu1  ;;  %v10846_v60 = vpop.f32.mrf.mxu0 }
 0x56e   : > { %v14867_v4 = vadd.f32 %v5266_v59, %v5160_v9 }
 0x56f   : > { %v5083_v1 = vpop.f32.mrf.mxu1  ;;  %v5276_v6 = vpop.f32.mrf.mxu0  ;;  %11052 = vmatmul.mubr.msk.f32.gmra.mxu1 %vm940_vm2, %v16099_v38  ;;  %11114 = vmatmul.mubr.msk.f32.gmra.mxu0 %vm940_vm2, %v14223_v16 }
 0x570   : > { %v5161_v35 = vadd.f32 %v5083_v1, %v14658_v15  ;;  %11054 = vmatprep.mubr.msk.f32.mxu1 %vm11464_vm0, %v11463_v0  ;;  %11116 = vmatprep.mubr.msk.f32.mxu0 %vm11464_vm0, %v11463_v0 }
 0x571   : > { %v10787_v48 = vpop.f32.mrf.mxu1  ;;  %v10849_v31 = vpop.f32.mrf.mxu0 }
 0x572   : > { %v14880_v34 = vadd.f32 %v5271_v50, %v5161_v35 }
 0x573   : > { %v5088_v56 = vpop.f32.mrf.mxu1  ;;  %v5281_v41 = vpop.f32.mrf.mxu0  ;;  %11055 = vmatmul.mubr.msk.f32.gmra.mxu1 %vm940_vm2, %v16100_v17  ;;  %11117 = vmatmul.mubr.msk.f32.gmra.mxu0 %vm940_vm2, %v14240_v28 }
 0x574   : > { %v5162_v16 = vadd.f32 %v5088_v56, %v14674_v53  ;;  %11057 = vmatprep.mubr.msk.f32.mxu1 %vm11464_vm0, %v11463_v0  ;;  %11119 = vmatprep.mubr.msk.f32.mxu0 %vm11464_vm0, %v11463_v0 }
 0x575   : > { %v10790_v15 = vpop.f32.mrf.mxu1  ;;  %v10852_v33 = vpop.f32.mrf.mxu0 }
 0x576   : > { %v14896_v30 = vadd.f32 %v5276_v6, %v5162_v16 }
 0x577   : > { %v5093_v28 = vpop.f32.mrf.mxu1  ;;  %v5286_v53 = vpop.f32.mrf.mxu0  ;;  %11058 = vmatmul.mubr.msk.f32.gmra.mxu1 %vm940_vm2, %v16101_v52  ;;  %11120 = vmatmul.mubr.msk.f32.gmra.mxu0 %vm940_vm2, %v5947_v19 }
 0x578   : > { %v5163_v14 = vadd.f32 %v5093_v28, %v14686_v62  ;;  %11060 = vmatprep.mubr.msk.f32.mxu1 %vm11464_vm0, %v11463_v0  ;;  %11122 = vmatprep.mubr.msk.f32.mxu0 %vm11464_vm0, %v11463_v0 }
 0x579   : > { %v10793_v57 = vpop.f32.mrf.mxu1  ;;  %v10855_v12 = vpop.f32.mrf.mxu0 }
 0x57a   : > { %v14911_v40 = vadd.f32 %v5281_v41, %v5163_v14 }
 0x57b   : > { %v5098_v32 = vpop.f32.mrf.mxu1  ;;  %v5291_v62 = vpop.f32.mrf.mxu0  ;;  %11061 = vmatmul.mubr.msk.f32.gmra.mxu1 %vm940_vm2, %v5758_v21  ;;  %11123 = vmatmul.mubr.msk.f32.gmra.mxu0 %vm940_vm2, %v5949_v13 }
 0x57c   : > { %v5164_v59 = vadd.f32 %v5098_v32, %v14696_v61  ;;  %11063 = vmatprep.mubr.msk.f32.mxu1 %vm11464_vm0, %v11463_v0  ;;  %11262 = vmatprep.mubr.msk.f32.mxu0 %vm11464_vm0, %v11463_v0 }
 0x57d   : > { %v10796_v8 = vpop.f32.mrf.mxu1  ;;  %v10858_v43 = vpop.f32.mrf.mxu0 }
 0x57e   : > { %v14921_v39 = vadd.f32 %v5286_v53, %v5164_v59 }
 0x57f   : > { %v5103_v20 = vpop.f32.mrf.mxu1  ;;  %v5296_v22 = vpop.f32.mrf.mxu0  ;;  %11064 = vmatmul.mubr.msk.f32.gmra.mxu1 %vm940_vm2, %v5760_v45 }
 0x580   : > { %v5165_v26 = vadd.f32 %v5103_v20, %v14706_v36  ;;  %11129 = vmatprep.mubr.msk.f32.mxu1 %vm11464_vm0, %v11463_v0 }
 0x581   : > { %v10799_v61 = vpop.f32.mrf.mxu1  ;;  %v10861_v27 = vpop.f32.mrf.mxu0 }
 0x582   : > { %v14927_v50 = vadd.f32 %v5291_v62, %v5165_v26 }
 0x583   : > { %v5108_v51 = vpop.f32.mrf.mxu1  ;;  %v5301_v18 = vpop.f32.mrf.mxu0 }
 0x584   : > { %v5166_v9 = vadd.f32 %v5108_v51, %v14717_v29 }
 0x585   : > { %v10802_v23 = vpop.f32.mrf.mxu1  ;;  %v10864_v2 = vpop.f32.mrf.mxu0 }
 0x586   : > { %v14930_v60 = vadd.f32 %v5296_v22, %v5166_v9 }
 0x587   : > { %v5113_v1 = vpop.f32.mrf.mxu1  ;;  %v5306_v6 = vpop.f32.mrf.mxu0 }
 0x588   : > { %v5167_v38 = vadd.f32 %v5113_v1, %v14728_v25 }
 0x589   : > { %v10805_v36 = vpop.f32.mrf.mxu1  ;;  %v10867_v35 = vpop.f32.mrf.mxu0 }
 0x58a   : > { %v14933_v48 = vadd.f32 %v5301_v18, %v5167_v38 }
 0x58b   : > { %v5118_v31 = vpop.f32.mrf.mxu1  ;;  %v5311_v11 = vpop.f32.mrf.mxu0 }
 0x58c   : > { %v5168_v56 = vadd.f32 %v5118_v31, %v14739_v58 }
 0x58d   : > { %v10808_v41 = vpop.f32.mrf.mxu1  ;;  %v10870_v17 = vpop.f32.mrf.mxu0 }
 0x58e   : > { %v14936_v16 = vadd.f32 %v5306_v6, %v5168_v56 }
 0x58f   : > { %v5123_v29 = vpop.f32.mrf.mxu1  ;;  %v5316_v15 = vpop.f32.mrf.mxu0 }
 0x590   : > { %v5169_v33 = vadd.f32 %v5123_v29, %v14753_v3 }
 0x591   : > { %v10811_v10 = vpop.f32.mrf.mxu1  ;;  %v10873_v7 = vpop.f32.mrf.mxu0 }
 0x592   : > { %v14939_v19 = vadd.f32 %v5311_v11, %v5169_v33 }
 0x593   : > { %v5128_v25 = vpop.f32.mrf.mxu1  ;;  %v5321_v28 = vpop.f32.mrf.mxu0 }
 0x594   : > { %v5170_v53 = vadd.f32 %v5128_v25, %v14765_v24  ;;  %v9023_v24 = vld [vmem:[%s15577_s3 + $0x138] sm:$0xff] }
 0x595   : > { %v10814_v52 = vpop.f32.mrf.mxu1  ;;  %v10876_v14 = vpop.f32.mrf.mxu0  ;;  %11259 = vmatpush3.msra.mxu0 %v9023_v24 }
 0x596   : > { %v14942_v57 = vadd.f32 %v5316_v15, %v5170_v53  ;;  %11260 = vmatprep.subr.mxu0 %v11463_v0 }
 0x597   : > { %v5133_v58 = vpop.f32.mrf.mxu1  ;;  %v5326_v12 = vpop.f32.mrf.mxu0 }
 0x598   : > { %v5171_v44 = vadd.f32 %v5133_v58, %v14776_v55 }
 0x599   : > { %v10817_v42 = vpop.f32.mrf.mxu1  ;;  %v10879_v21 = vpop.f32.mrf.mxu0 }
 0x59a   : > { %v14945_v13 = vadd.f32 %v5321_v28, %v5171_v44 }
 0x59b   : > { %v5138_v3 = vpop.f32.mrf.mxu1  ;;  %v5331_v32 = vpop.f32.mrf.mxu0 }
 0x59c   : > { %v5172_v62 = vadd.f32 %v5138_v3, %v14787_v46 }
 0x59d   : > { %v10820_v59 = vpop.f32.mrf.mxu1  ;;  %v10882_v8 = vpop.f32.mrf.mxu0 }
 0x59e   : > { %v14951_v43 = vadd.f32 %v5326_v12, %v5172_v62 }
 0x59f   : > { %v5143_v55 = vpop.f32.mrf.mxu1  ;;  %v5336_v45 = vpop.f32.mrf.mxu0 }
 0x5a0   : > { %v5173_v20 = vadd.f32 %v5143_v55, %v14798_v49 }
 0x5a1   : > { %v10823_v22 = vpop.f32.mrf.mxu1  ;;  %v10885_v26 = vpop.f32.mrf.mxu0 }
 0x5a2   : > { %v14955_v61 = vadd.f32 %v5331_v32, %v5173_v20 }
 0x5a3   : > { %v5148_v46 = vpop.f32.mrf.mxu1  ;;  %v5341_v27 = vpop.f32.mrf.mxu0 }
 0x5a4   : > { %v5174_v51 = vadd.f32 %v5148_v46, %v14809_v5 }
 0x5a5   : > { %v10826_v18 = vpop.f32.mrf.mxu1  ;;  %v10888_v9 = vpop.f32.mrf.mxu0 }
 0x5a6   : > { %v14958_v23 = vadd.f32 %v5336_v45, %v5174_v51 }
 0x5a7   : > { %v5153_v2 = vpop.f32.mrf.mxu1  ;;  %v5642_v1 = vpop.f32.mrf.mxu0 }
 0x5a8   : > { %v5175_v6 = vadd.f32 %v5153_v2, %v14820_v47 }
 0x5a9   : > { %v10829_v38 = vpop.f32.mrf.mxu1  ;;  %v10952_v36 = vpop.f32.mrf.mxu0 }
 0x5aa   : > { %v14961_v35 = vadd.f32 %v5341_v27, %v5175_v6 }
 0x5ab   : > { %v5453_v49 = vpop.f32.mrf.mxu1  ;;  %v5647_v31 = vpop.f32.mrf.mxu0 }
 0x5ac   : > { %v5547_v11 = vadd.f32 %v5453_v49, %v14831_v37 }
 0x5ad   : > { %v10893_v56 = vpop.f32.mrf.mxu1  ;;  %v10955_v41 = vpop.f32.mrf.mxu0 }
 0x5ae   : > { %v14964_v17 = vadd.f32 %v5642_v1, %v5547_v11 }
 0x5af   : > { %v5458_v5 = vpop.f32.mrf.mxu1  ;;  %v5652_v29 = vpop.f32.mrf.mxu0 }
 0x5b0   : > { %v5548_v15 = vadd.f32 %v5458_v5, %v14842_v54 }
 0x5b1   : > { %v10896_v33 = vpop.f32.mrf.mxu1  ;;  %v10958_v10 = vpop.f32.mrf.mxu0 }
 0x5b2   : > { %v14967_v7 = vadd.f32 %v5647_v31, %v5548_v15 }
 0x5b3   : > { %v5463_v47 = vpop.f32.mrf.mxu1  ;;  %v5657_v25 = vpop.f32.mrf.mxu0 }
 0x5b4   : > { %v5549_v28 = vadd.f32 %v5463_v47, %v14853_v63  ;;  %v9022_v63 = vld [vmem:[%s15577_s3 + $0x130] sm:$0xff] }
 0x5b5   : > { %v10899_v53 = vpop.f32.mrf.mxu1  ;;  %v10961_v52 = vpop.f32.mrf.mxu0  ;;  %11261 = vmatpush3.msra.mxu0 %v9022_v63 }
 0x5b6   : > { %v14970_v14 = vadd.f32 %v5652_v29, %v5549_v28  ;;  %11272 = vmatprep.subr.mxu0 %v11463_v0 }
 0x5b7   : > { %v5468_v37 = vpop.f32.mrf.mxu1  ;;  %v5662_v58 = vpop.f32.mrf.mxu0 }
 0x5b8   : > { %v5550_v12 = vadd.f32 %v5468_v37, %v14867_v4 }
 0x5b9   : > { %v10902_v44 = vpop.f32.mrf.mxu1  ;;  %v10964_v42 = vpop.f32.mrf.mxu0 }
 0x5ba   : > { %v14973_v21 = vadd.f32 %v5657_v25, %v5550_v12 }
 0x5bb   : > { %v5473_v54 = vpop.f32.mrf.mxu1  ;;  %v5667_v3 = vpop.f32.mrf.mxu0 }
 0x5bc   : > { %v5551_v32 = vadd.f32 %v5473_v54, %v14880_v34 }
 0x5bd   : > { %v10905_v62 = vpop.f32.mrf.mxu1  ;;  %v10967_v24 = vpop.f32.mrf.mxu0 }
 0x5be   : > { %v14976_v59 = vadd.f32 %v5662_v58, %v5551_v32 }
 0x5bf   : > { %v5478_v8 = vpop.f32.mrf.mxu1  ;;  %v5672_v55 = vpop.f32.mrf.mxu0 }
 0x5c0   : > { %v5552_v4 = vadd.f32 %v5478_v8, %v14896_v30 }
 0x5c1   : > { %v10908_v45 = vpop.f32.mrf.mxu1  ;;  %v10970_v20 = vpop.f32.mrf.mxu0 }
 0x5c2   : > { %v14983_v22 = vadd.f32 %v5667_v3, %v5552_v4 }
 0x5c3   : > { %v5483_v34 = vpop.f32.mrf.mxu1  ;;  %v5677_v26 = vpop.f32.mrf.mxu0 }
 0x5c4   : > { %v5553_v46 = vadd.f32 %v5483_v34, %v14911_v40 }
 0x5c5   : > { %v10911_v27 = vpop.f32.mrf.mxu1  ;;  %v10973_v51 = vpop.f32.mrf.mxu0 }
 0x5c6   : > { %v14986_v18 = vadd.f32 %v5672_v55, %v5553_v46 }
 0x5c7   : > { %v5488_v9 = vpop.f32.mrf.mxu1  ;;  %v5682_v2 = vpop.f32.mrf.mxu0 }
 0x5c8   : > { %v5554_v1 = vadd.f32 %v5488_v9, %v14921_v39 }
 0x5c9   : > { %v10914_v6 = vpop.f32.mrf.mxu1  ;;  %v10976_v30 = vpop.f32.mrf.mxu0 }
 0x5ca   : > { %v14989_v38 = vadd.f32 %v5677_v26, %v5554_v1 }
 0x5cb   : > { %v5493_v36 = vpop.f32.mrf.mxu1  ;;  %v5687_v49 = vpop.f32.mrf.mxu0 }
 0x5cc   : > { %v5555_v31 = vadd.f32 %v5493_v36, %v14927_v50 }
 0x5cd   : > { %v10917_v11 = vpop.f32.mrf.mxu1  ;;  %v10979_v56 = vpop.f32.mrf.mxu0 }
 0x5ce   : > { %v14992_v41 = vadd.f32 %v5682_v2, %v5555_v31 }
 0x5cf   : > { %v5498_v40 = vpop.f32.mrf.mxu1  ;;  %v5692_v5 = vpop.f32.mrf.mxu0 }
 0x5d0   : > { %v5556_v29 = vadd.f32 %v5498_v40, %v14930_v60 }
 0x5d1   : > { %v10920_v15 = vpop.f32.mrf.mxu1  ;;  %v10982_v33 = vpop.f32.mrf.mxu0 }
 0x5d2   : > { %v14995_v10 = vadd.f32 %v5687_v49, %v5556_v29 }
 0x5d3   : > { %v5503_v39 = vpop.f32.mrf.mxu1  ;;  %v5697_v47 = vpop.f32.mrf.mxu0 }
 0x5d4   : > { %v5557_v25 = vadd.f32 %v5503_v39, %v14933_v48 }
 0x5d5   : > { %v10923_v28 = vpop.f32.mrf.mxu1  ;;  %v10985_v53 = vpop.f32.mrf.mxu0 }
 0x5d6   : > { %v14998_v52 = vadd.f32 %v5692_v5, %v5557_v25 }
 0x5d7   : > { %v5508_v50 = vpop.f32.mrf.mxu1  ;;  %v5702_v37 = vpop.f32.mrf.mxu0 }
 0x5d8   : > { %v5558_v58 = vadd.f32 %v5508_v50, %v14936_v16 }
 0x5d9   : > { %v10926_v12 = vpop.f32.mrf.mxu1  ;;  %v10988_v44 = vpop.f32.mrf.mxu0 }
 0x5da   : > { %v15001_v42 = vadd.f32 %v5697_v47, %v5558_v58 }
 0x5db   : > { %v5513_v60 = vpop.f32.mrf.mxu1  ;;  %v5707_v54 = vpop.f32.mrf.mxu0 }
 0x5dc   : > { %v5559_v3 = vadd.f32 %v5513_v60, %v14939_v19 }
 0x5dd   : > { %v10929_v32 = vpop.f32.mrf.mxu1  ;;  %v10991_v62 = vpop.f32.mrf.mxu0 }
 0x5de   : > { %v15004_v24 = vadd.f32 %v5702_v37, %v5559_v3 }
 0x5df   : > { %v5518_v48 = vpop.f32.mrf.mxu1  ;;  %v5712_v63 = vpop.f32.mrf.mxu0 }
 0x5e0   : > { %v5560_v8 = vadd.f32 %v5518_v48, %v14942_v57 }
 0x5e1   : > { %v10932_v55 = vpop.f32.mrf.mxu1  ;;  %v10994_v4 = vpop.f32.mrf.mxu0 }
 0x5e2   : > { %v15007_v45 = vadd.f32 %v5707_v54, %v5560_v8 }
 0x5e3   : > { %v5523_v16 = vpop.f32.mrf.mxu1  ;;  %v5717_v20 = vpop.f32.mrf.mxu0 }
 0x5e4   : > { %v5561_v34 = vadd.f32 %v5523_v16, %v14945_v13 }
 0x5e5   : > { %v10935_v26 = vpop.f32.mrf.mxu1  ;;  %v10997_v46 = vpop.f32.mrf.mxu0 }
 0x5e6   : > { %v15010_v27 = vadd.f32 %v5712_v63, %v5561_v34 }
 0x5e7   : > { %v5528_v19 = vpop.f32.mrf.mxu1  ;;  %v5722_v51 = vpop.f32.mrf.mxu0 }
 0x5e8   : > { %v5562_v9 = vadd.f32 %v5528_v19, %v14951_v43 }
 0x5e9   : > { %v10938_v2 = vpop.f32.mrf.mxu1  ;;  %v11000_v1 = vpop.f32.mrf.mxu0 }
 0x5ea   : > { %v15013_v6 = vadd.f32 %v5717_v20, %v5562_v9 }
 0x5eb   : > { %v5533_v57 = vpop.f32.mrf.mxu1  ;;  %v5727_v30 = vpop.f32.mrf.mxu0 }
 0x5ec   : > { %v5563_v36 = vadd.f32 %v5533_v57, %v14955_v61 }
 0x5ed   : > { %v10941_v49 = vpop.f32.mrf.mxu1  ;;  %v11003_v31 = vpop.f32.mrf.mxu0 }
 0x5ee   : > { %v15016_v11 = vadd.f32 %v5722_v51, %v5563_v36 }
 0x5ef   : > { %v5538_v13 = vpop.f32.mrf.mxu1  ;;  %v5732_v56 = vpop.f32.mrf.mxu0 }
 0x5f0   : > { %v5564_v40 = vadd.f32 %v5538_v13, %v14958_v23 }
 0x5f1   : > { %v10944_v5 = vpop.f32.mrf.mxu1  ;;  %v11006_v29 = vpop.f32.mrf.mxu0 }
 0x5f2   : > { %v15019_v15 = vadd.f32 %v5727_v30, %v5564_v40 }
 0x5f3   : > { %v5543_v43 = vpop.f32.mrf.mxu1  ;;  %v6020_v33 = vpop.f32.mrf.mxu0 }
 0x5f4   : > { %v5565_v39 = vadd.f32 %v5543_v43, %v14961_v35 }
 0x5f5   : > { %v10947_v47 = vpop.f32.mrf.mxu1  ;;  %v11070_v25 = vpop.f32.mrf.mxu0 }
 0x5f6   : > { %v15022_v28 = vadd.f32 %v5732_v56, %v5565_v39 }
 0x5f7   : > { %v5831_v61 = vpop.f32.mrf.mxu1  ;;  %v6025_v53 = vpop.f32.mrf.mxu0 }
 0x5f8   : > { %v5925_v50 = vadd.f32 %v5831_v61, %v14964_v17 }
 0x5f9   : > { %v11011_v37 = vpop.f32.mrf.mxu1  ;;  %v11073_v58 = vpop.f32.mrf.mxu0 }
 0x5fa   : > { %v6114_v44 = vadd.f32 %v6020_v33, %v5925_v50 }
 0x5fb   : > { %v5836_v12 = vpop.f32.mrf.mxu1  ;;  %v6030_v23 = vpop.f32.mrf.mxu0 }
 0x5fc   : > { %v5926_v60 = vadd.f32 %v5836_v12, %v14967_v7  ;;  %v6148_v48 = vrot.slane %v6114_v44, 1 }
 0x5fd   : > { %v11014_v54 = vpop.f32.mrf.mxu1  ;;  %v11076_v3 = vpop.f32.mrf.mxu0 }
 0x5fe   : > { %v6115_v32 = vadd.f32 %v6025_v53, %v5926_v60 }
 0x5ff   : > { %v5841_v62 = vpop.f32.mrf.mxu1  ;;  %v6035_v35 = vpop.f32.mrf.mxu0 }
 0x600   : > { %v6149_v63 = vrot.slane %v6115_v32, 1  ;;  %v5927_v8 = vadd.f32 %v5841_v62, %v14970_v14 }
 0x601   : > { %v11017_v55 = vpop.f32.mrf.mxu1  ;;  %v11079_v4 = vpop.f32.mrf.mxu0 }
 0x602   : > { %v6150_v17 = vsel %vm900_vm1, %v6148_v48, %v6149_v63  ;;  %v6116_v16 = vadd.f32 %v6030_v23, %v5927_v8 }
 0x603   : > { %v6183_v20 = vmax.f32 %v6114_v44, %v6150_v17  ;;  %v5846_v34 = vpop.f32.mrf.mxu1  ;;  %v6040_v26 = vpop.f32.mrf.mxu0 }
 0x604   : > { %v6151_v46 = vrot.slane %v6116_v16, 1  ;;  %v5928_v7 = vadd.f32 %v5846_v34, %v14973_v21 }
 0x605   : > { %v11020_v19 = vpop.f32.mrf.mxu1  ;;  %v11082_v51 = vpop.f32.mrf.mxu0 }
 0x606   : > { %v6152_v9 = vsel %vm900_vm1, %v6149_v63, %v6151_v46  ;;  %v6117_v2 = vadd.f32 %v6035_v35, %v5928_v7  ;;  %v8968_v35 = vld [vmem:[%s15577_s3 + $0x10] sm:$0xff] }
 0x607   : > { %v15030_v1 = vmax.f32 %v6115_v32, %v6152_v9  ;;  %v5851_v57 = vpop.f32.mrf.mxu1  ;;  %v6045_v14 = vpop.f32.mrf.mxu0 }
 0x608   : > { %v6153_v30 = vrot.slane %v6117_v2, 1  ;;  %v5929_v36 = vadd.f32 %v5851_v57, %v14976_v59 }
 0x609   : > { %v11023_v49 = vpop.f32.mrf.mxu1  ;;  %v11085_v31 = vpop.f32.mrf.mxu0  ;;  %v6240_v33 = vrot.slane %v15030_v1, 6 }
 0x60a   : > { %v6197_v13 = vsel %vm900_vm1, %v6151_v46, %v6153_v30  ;;  %v6118_v56 = vadd.f32 %v6040_v26, %v5929_v36 }
 0x60b   : > { %v6217_v40 = vmax.f32 %v6116_v16, %v6197_v13  ;;  %v5856_v5 = vpop.f32.mrf.mxu1  ;;  %v6050_v21 = vpop.f32.mrf.mxu0  ;;  %v8972_v16 = vld [vmem:[%s15577_s3 + $0x28] sm:$0xff] }
 0x60c   : > { %v6154_v29 = vrot.slane %v6118_v56, 1  ;;  %v5930_v43 = vadd.f32 %v5856_v5, %v14983_v22  ;;  %v8969_v22 = vld [vmem:[%s15577_s3 + $0x18] sm:$0xff] }
 0x60d   : > { %v6241_v39 = vrot.slane %v6217_v40, 6  ;;  %v11026_v47 = vpop.f32.mrf.mxu1  ;;  %v11088_v25 = vpop.f32.mrf.mxu0 }
 0x60e   : > { %v6155_v61 = vsel %vm900_vm1, %v6153_v30, %v6154_v29  ;;  %v6119_v53 = vadd.f32 %v6045_v14, %v5930_v43  ;;  %v8975_v30 = vld [vmem:[%s15577_s3 + $0x38] sm:$0xff] }
 0x60f   : > { %v6242_v59 = vsel %vm2117_vm7, %v6240_v33, %v6241_v39  ;;  %v6185_v50 = vmax.f32 %v6117_v2, %v6155_v61  ;;  %v5861_v37 = vpop.f32.mrf.mxu1  ;;  %v6055_v58 = vpop.f32.mrf.mxu0  ;;  %v8978_v61 = vld [vmem:[%s15577_s3 + $0x48] sm:$0xff] }
 0x610   : > { %v15038_v12 = vmax.f32 %v6183_v20, %v6242_v59  ;;  %v6156_v23 = vrot.slane %v6119_v53, 1  ;;  %v5931_v44 = vadd.f32 %v5861_v37, %v14986_v18 }
 0x611   : > { %v6243_v60 = vrot.slane %v6185_v50, 6  ;;  %v11029_v54 = vpop.f32.mrf.mxu1  ;;  %v11091_v3 = vpop.f32.mrf.mxu0 }
 0x612   : > { %v6157_v32 = vsel %vm900_vm1, %v6154_v29, %v6156_v23  ;;  %v6120_v62 = vadd.f32 %v6050_v21, %v5931_v44  ;;  %11130 = vmatmul.mubr.msk.f32.vlgmr.msra.gmra.mxu1 %vm6288_vm9, %v15038_v12  ;;  %v6366_v17 = vrot.slane %v15038_v12, 2  ;;  %v6443_v14 = vrot.slane %v15038_v12, 4 }
 0x613   : > { %v15051_v48 = vsel %vm2117_vm7, %v6241_v39, %v6243_v60  ;;  %v15053_v18 = vmax.f32 %v6118_v56, %v6157_v32  ;;  %11133 = vmatpush3.msra.mxu1 %v8969_v22  ;;  %v5866_v63 = vpop.f32.mrf.mxu1  ;;  %v6060_v8 = vpop.f32.mrf.mxu0  ;;  %11136 = vmatprep.mubr.msk.f32.mxu1 %vm11464_vm0, %v11463_v0  ;;  %v6520_v25 = vrot.slane %v15038_v12, 6  ;;  %v8981_v32 = vld [vmem:[%s15577_s3 + $0x58] sm:$0xff] }
 0x614   : > { %v6198_v55 = vrot.slane %v6120_v62, 1  ;;  %v5932_v4 = vadd.f32 %v5866_v63, %v14989_v38  ;;  %11134 = vmatprep.subr.mxu1 %v11463_v0  ;;  %v6276_v20 = vmax.f32 %v15030_v1, %v15051_v48  ;;  %v8971_v38 = vld [vmem:[%s15577_s3 + $0x20] sm:$0xff]  ;;  %v8984_v48 = vld [vmem:[%s15577_s3 + $0x68] sm:$0xff] }
 0x615   : > { %11135 = vmatpush3.msra.mxu1 %v8968_v35  ;;  %v11032_v34 = vpop.f32.mrf.mxu1  ;;  %v11094_v26 = vpop.f32.mrf.mxu0  ;;  %v6245_v36 = vrot.slane %v15053_v18, 6 }
 0x616   : > { %v6199_v46 = vsel %vm900_vm1, %v6156_v23, %v6198_v55  ;;  %v15066_v7 = vadd.f32 %v6055_v58, %v5932_v4  ;;  %11139 = vmatprep.subr.mxu1 %v11463_v0  ;;  %11137 = vmatmul.mubr.msk.f32.vlgmr.msra.gmra.mxu1 %vm6288_vm9, %v6366_v17 }
 0x617   : > { %v6218_v19 = vmax.f32 %v6119_v53, %v6199_v46  ;;  %11140 = vmatpush3.msra.mxu1 %v8972_v16  ;;  %v5871_v51 = vpop.f32.mrf.mxu1  ;;  %v6065_v9 = vpop.f32.mrf.mxu0  ;;  %11143 = vmatprep.mubr.msk.f32.mxu1 %vm11464_vm0, %v11463_v0 }
 0x618   : > { %v6158_v2 = vrot.slane %v15066_v7, 1  ;;  %v5933_v57 = vadd.f32 %v5871_v51, %v14992_v41  ;;  %11141 = vmatprep.subr.mxu1 %v11463_v0  ;;  %v8974_v41 = vld [vmem:[%s15577_s3 + $0x30] sm:$0xff] }
 0x619   : > { %v6246_v49 = vrot.slane %v6218_v19, 6  ;;  %11142 = vmatpush3.msra.mxu1 %v8971_v38  ;;  %v11035_v31 = vpop.f32.mrf.mxu1  ;;  %v11097_v13 = vpop.f32.mrf.mxu0 }
 0x61a   : > { %v6200_v56 = vsel %vm900_vm1, %v6198_v55, %v6158_v2  ;;  %v6122_v40 = vadd.f32 %v6060_v8, %v5933_v57  ;;  %11146 = vmatprep.subr.mxu1 %v11463_v0  ;;  %11144 = vmatmul.mubr.msk.f32.vlgmr.msra.gmra.mxu1 %vm6288_vm9, %v6443_v14  ;;  %v8987_v57 = vld [vmem:[%s15577_s3 + $0x78] sm:$0xff] }
 0x61b   : > { %v6247_v5 = vsel %vm2117_vm7, %v6245_v36, %v6246_v49  ;;  %v6219_v21 = vmax.f32 %v6120_v62, %v6200_v56  ;;  %11147 = vmatpush3.msra.mxu1 %v8975_v30  ;;  %v5876_v29 = vpop.f32.mrf.mxu1  ;;  %v6070_v43 = vpop.f32.mrf.mxu0  ;;  %11150 = vmatprep.mubr.msk.f32.mxu1 %vm11464_vm0, %v11463_v0 }
 0x61c   : > { %v15092_v33 = vmax.f32 %v6185_v50, %v6247_v5  ;;  %v6159_v39 = vrot.slane %v6122_v40, 1  ;;  %v5934_v47 = vadd.f32 %v5876_v29, %v14995_v10  ;;  %11148 = vmatprep.subr.mxu1 %v11463_v0  ;;  %v8977_v10 = vld [vmem:[%s15577_s3 + $0x40] sm:$0xff] }
 0x61d   : > { %v6248_v53 = vrot.slane %v6219_v21, 6  ;;  %11149 = vmatpush3.msra.mxu1 %v8974_v41  ;;  %v11038_v59 = vpop.f32.mrf.mxu1  ;;  %v11100_v37 = vpop.f32.mrf.mxu0 }
 0x61e   : > { %v15101_v58 = vsel %vm900_vm1, %v6158_v2, %v6159_v39  ;;  %v6123_v50 = vadd.f32 %v6065_v9, %v5934_v47  ;;  %11153 = vmatprep.subr.mxu1 %v11463_v0  ;;  %11151 = vmatmul.mubr.msk.f32.vlgmr.msra.gmra.mxu1 %vm6288_vm9, %v6520_v25  ;;  %v6675_v1 = vrot.slane %v15092_v33, 4  ;;  %v6752_v2 = vrot.slane %v15092_v33, 6  ;;  %v8990_v33 = vld [vmem:[%s15577_s3 + $0x88] sm:$0xff] }
 0x61f   : > { %v6249_v12 = vsel %vm2117_vm7, %v6246_v49, %v6248_v53  ;;  %v6187_v23 = vmax.f32 %v15066_v7, %v15101_v58  ;;  %11154 = vmatpush3.msra.mxu1 %v8978_v61  ;;  %v5881_v44 = vpop.f32.mrf.mxu1  ;;  %v6075_v22 = vpop.f32.mrf.mxu0  ;;  %11157 = vmatprep.mubr.msk.f32.mxu1 %vm11464_vm0, %v11463_v0 }
 0x620   : > { %v15114_v60 = vmax.f32 %v15053_v18, %v6249_v12  ;;  %v6161_v54 = vrot.slane %v6123_v50, 1  ;;  %v5935_v3 = vadd.f32 %v5881_v44, %v14998_v52  ;;  %11155 = vmatprep.subr.mxu1 %v11463_v0  ;;  %v8980_v52 = vld [vmem:[%s15577_s3 + $0x50] sm:$0xff]  ;;  %v8993_v44 = vld [vmem:[%s15577_s3 + $0x98] sm:$0xff] }
 0x621   : > { %11156 = vmatpush3.msra.mxu1 %v8977_v10  ;;  %v11041_v62 = vpop.f32.mrf.mxu1  ;;  %v11103_v35 = vpop.f32.mrf.mxu0 }
 0x622   : > { %v6162_v63 = vsel %vm900_vm1, %v6159_v39, %v6161_v54  ;;  %v6124_v8 = vadd.f32 %v6070_v43, %v5935_v3  ;;  %11160 = vmatprep.subr.mxu1 %v11463_v0  ;;  %11158 = vmatmul.mubr.msk.f32.vlgmr.msra.gmra.mxu1 %vm6288_vm9, %v6276_v20 }
 0x623   : > { %v15130_v18 = vmax.f32 %v6122_v40, %v6162_v63  ;;  %11161 = vmatpush3.msra.mxu1 %v8981_v32  ;;  %v5886_v55 = vpop.f32.mrf.mxu1  ;;  %v6080_v4 = vpop.f32.mrf.mxu0  ;;  %11164 = vmatprep.mubr.msk.f32.mxu1 %vm11464_vm0, %v11463_v0 }
 0x624   : > { %v6163_v17 = vrot.slane %v6124_v8, 1  ;;  %v5936_v16 = vadd.f32 %v5886_v55, %v15001_v42  ;;  %11162 = vmatprep.subr.mxu1 %v11463_v0  ;;  %v8983_v42 = vld [vmem:[%s15577_s3 + $0x60] sm:$0xff] }
 0x625   : > { %11163 = vmatpush3.msra.mxu1 %v8980_v52  ;;  %v11044_v20 = vpop.f32.mrf.mxu1  ;;  %v11106_v34 = vpop.f32.mrf.mxu0  ;;  %v6250_v14 = vrot.slane %v15130_v18, 6 }
 0x626   : > { %v6201_v26 = vsel %vm900_vm1, %v6161_v54, %v6163_v17  ;;  %v6125_v46 = vadd.f32 %v6075_v22, %v5936_v16  ;;  %11167 = vmatprep.subr.mxu1 %v11463_v0  ;;  %11165 = vmatmul.mubr.msk.f32.vlgmr.msra.gmra.mxu1 %vm6288_vm9, %v6675_v1 }
 0x627   : > { %v6220_v7 = vmax.f32 %v6123_v50, %v6201_v26  ;;  %11168 = vmatpush3.msra.mxu1 %v8984_v48  ;;  %v5891_v38 = vpop.f32.mrf.mxu1  ;;  %v6085_v19 = vpop.f32.mrf.mxu0  ;;  %11171 = vmatprep.mubr.msk.f32.mxu1 %vm11464_vm0, %v11463_v0 }
 0x628   : > { %v6164_v51 = vrot.slane %v6125_v46, 1  ;;  %v5937_v9 = vadd.f32 %v5891_v38, %v15004_v24  ;;  %11169 = vmatprep.subr.mxu1 %v11463_v0  ;;  %v8986_v24 = vld [vmem:[%s15577_s3 + $0x70] sm:$0xff] }
 0x629   : > { %v6251_v30 = vrot.slane %v6220_v7, 6  ;;  %11170 = vmatpush3.msra.mxu1 %v8983_v42  ;;  %v11047_v36 = vpop.f32.mrf.mxu1  ;;  %v11109_v49 = vpop.f32.mrf.mxu0 }
 0x62a   : > { %v6165_v31 = vsel %vm900_vm1, %v6163_v17, %v6164_v51  ;;  %v6126_v13 = vadd.f32 %v6080_v4, %v5937_v9  ;;  %11174 = vmatprep.subr.mxu1 %v11463_v0  ;;  %11172 = vmatmul.mubr.msk.f32.vlgmr.msra.gmra.mxu1 %vm6288_vm9, %v6752_v2  ;;  %v6983_v4 = vrot.slane %v15114_v60, 4  ;;  %v8996_v17 = vld [vmem:[%s15577_s3 + $0xa8] sm:$0xff]  ;;  %v8999_v9 = vld [vmem:[%s15577_s3 + $0xb8] sm:$0xff] }
 0x62b   : > { %v6252_v56 = vsel %vm2117_vm7, %v6250_v14, %v6251_v30  ;;  %v15162_v40 = vmax.f32 %v6124_v8, %v6165_v31  ;;  %11175 = vmatpush3.msra.mxu1 %v8987_v57  ;;  %v5896_v41 = vpop.f32.mrf.mxu1  ;;  %v6090_v5 = vpop.f32.mrf.mxu0  ;;  %11178 = vmatprep.mubr.msk.f32.mxu1 %vm11464_vm0, %v11463_v0 }
 0x62c   : > { %v15166_v21 = vmax.f32 %v6187_v23, %v6252_v56  ;;  %v6166_v29 = vrot.slane %v6126_v13, 1  ;;  %v5938_v43 = vadd.f32 %v5896_v41, %v15007_v45  ;;  %11176 = vmatprep.subr.mxu1 %v11463_v0  ;;  %v8989_v45 = vld [vmem:[%s15577_s3 + $0x80] sm:$0xff]  ;;  %v6906_v23 = vrot.slane %v15114_v60, 2 }
 0x62d   : > { %v6253_v39 = vrot.slane %v15162_v40, 6  ;;  %11177 = vmatpush3.msra.mxu1 %v8986_v24  ;;  %v11050_v47 = vpop.f32.mrf.mxu1  ;;  %v11112_v25 = vpop.f32.mrf.mxu0 }
 0x62e   : > { %v6167_v61 = vsel %vm900_vm1, %v6164_v51, %v6166_v29  ;;  %v6127_v53 = vadd.f32 %v6085_v19, %v5938_v43  ;;  %11181 = vmatprep.subr.mxu1 %v11463_v0  ;;  %11179 = vmatmul.mubr.msk.f32.vlgmr.msra.gmra.mxu1 %vm6288_vm9, %v15114_v60 }
 0x62f   : > { %v15182_v59 = vsel %vm2117_vm7, %v6251_v30, %v6253_v39  ;;  %v15184_v37 = vmax.f32 %v6125_v46, %v6167_v61  ;;  %11182 = vmatpush3.msra.mxu1 %v8990_v33  ;;  %v5901_v58 = vpop.f32.mrf.mxu1  ;;  %v6095_v50 = vpop.f32.mrf.mxu0  ;;  %11185 = vmatprep.mubr.msk.f32.mxu1 %vm11464_vm0, %v11463_v0  ;;  %v9029_v61 = vld [vmem:[%s15577_s3 + $0x158] sm:$0xff] }
 0x630   : > { %v6202_v10 = vrot.slane %v6127_v53, 1  ;;  %v5939_v12 = vadd.f32 %v5901_v58, %v15010_v27  ;;  %11183 = vmatprep.subr.mxu1 %v11463_v0  ;;  %v6280_v22 = vmax.f32 %v15130_v18, %v15182_v59  ;;  %v8992_v27 = vld [vmem:[%s15577_s3 + $0x90] sm:$0xff] }
 0x631   : > { %11184 = vmatpush3.msra.mxu1 %v8989_v45  ;;  %v11053_v54 = vpop.f32.mrf.mxu1  ;;  %v11115_v3 = vpop.f32.mrf.mxu0  ;;  %v6255_v16 = vrot.slane %v15184_v37, 6 }
 0x632   : > { %v6203_v32 = vsel %vm900_vm1, %v6166_v29, %v6202_v10  ;;  %v15197_v62 = vadd.f32 %v6090_v5, %v5939_v12  ;;  %11188 = vmatprep.subr.mxu1 %v11463_v0  ;;  %11186 = vmatmul.mubr.msk.f32.vlgmr.msra.gmra.mxu1 %vm6288_vm9, %v6906_v23  ;;  %v7137_v5 = vrot.slane %v15166_v21, 2  ;;  %v9002_v29 = vld [vmem:[%s15577_s3 + $0xc8] sm:$0xff]  ;;  %v9028_v54 = vld [vmem:[%s15577_s3 + $0x150] sm:$0xff] }
 0x633   : > { %v6221_v35 = vmax.f32 %v6126_v13, %v6203_v32  ;;  %11189 = vmatpush3.msra.mxu1 %v8993_v44  ;;  %v5906_v63 = vpop.f32.mrf.mxu1  ;;  %v6100_v8 = vpop.f32.mrf.mxu0  ;;  %11192 = vmatprep.mubr.msk.f32.mxu1 %vm11464_vm0, %v11463_v0 }
 0x634   : > { %v6168_v52 = vrot.slane %v15197_v62, 1  ;;  %v5940_v55 = vadd.f32 %v5906_v63, %v15013_v6  ;;  %11190 = vmatprep.subr.mxu1 %v11463_v0  ;;  %v8995_v6 = vld [vmem:[%s15577_s3 + $0xa0] sm:$0xff] }
 0x635   : > { %v6256_v1 = vrot.slane %v6221_v35, 6  ;;  %11191 = vmatpush3.msra.mxu1 %v8992_v27  ;;  %v11056_v48 = vpop.f32.mrf.mxu1  ;;  %v11118_v20 = vpop.f32.mrf.mxu0  ;;  %v9008_v27 = vld [vmem:[%s15577_s3 + $0xe8] sm:$0xff] }
 0x636   : > { %v6204_v34 = vsel %vm900_vm1, %v6202_v10, %v6168_v52  ;;  %v6129_v26 = vadd.f32 %v6095_v50, %v5940_v55  ;;  %11195 = vmatprep.subr.mxu1 %v11463_v0  ;;  %11193 = vmatmul.mubr.msk.f32.vlgmr.msra.gmra.mxu1 %vm6288_vm9, %v6983_v4  ;;  %v7214_v50 = vrot.slane %v15166_v21, 4  ;;  %v9005_v10 = vld [vmem:[%s15577_s3 + $0xd8] sm:$0xff] }
 0x637   : > { %v6257_v60 = vsel %vm2117_vm7, %v6255_v16, %v6256_v1  ;;  %v6222_v46 = vmax.f32 %v6127_v53, %v6204_v34  ;;  %11196 = vmatpush3.msra.mxu1 %v8996_v17  ;;  %v5911_v42 = vpop.f32.mrf.mxu1  ;;  %v6105_v7 = vpop.f32.mrf.mxu0  ;;  %11199 = vmatprep.mubr.msk.f32.mxu1 %vm11464_vm0, %v11463_v0  ;;  %v9011_v17 = vld [vmem:[%s15577_s3 + $0xf8] sm:$0xff] }
 0x638   : > { %v15224_v38 = vmax.f32 %v15162_v40, %v6257_v60  ;;  %v6169_v19 = vrot.slane %v6129_v26, 1  ;;  %v5941_v51 = vadd.f32 %v5911_v42, %v15016_v11  ;;  %11197 = vmatprep.subr.mxu1 %v11463_v0  ;;  %v8998_v11 = vld [vmem:[%s15577_s3 + $0xb0] sm:$0xff]  ;;  %v9035_v20 = vld [vmem:[%s15577_s3 + $0x178] sm:$0xff] }
 0x639   : > { %v6258_v2 = vrot.slane %v6222_v46, 6  ;;  %11198 = vmatpush3.msra.mxu1 %v8995_v6  ;;  %v11059_v57 = vpop.f32.mrf.mxu1  ;;  %v11121_v14 = vpop.f32.mrf.mxu0  ;;  %v9013_v6 = vld [vmem:[%s15577_s3 + $0x100] sm:$0xff]  ;;  %v9017_v42 = vld [vmem:[%s15577_s3 + $0x118] sm:$0xff] }
 0x63a   : > { %v15232_v30 = vsel %vm900_vm1, %v6168_v52, %v6169_v19  ;;  %v6130_v36 = vadd.f32 %v6100_v8, %v5941_v51  ;;  %11202 = vmatprep.subr.mxu1 %v11463_v0  ;;  %11200 = vmatmul.mubr.msk.f32.vlgmr.msra.gmra.mxu1 %vm6288_vm9, %v15166_v21  ;;  %v7446_v59 = vrot.slane %v15224_v38, 4  ;;  %v7523_v46 = vrot.slane %v15224_v38, 6  ;;  %v9020_v38 = vld [vmem:[%s15577_s3 + $0x128] sm:$0xff]  ;;  %v9031_v14 = vld [vmem:[%s15577_s3 + $0x160] sm:$0xff] }
 0x63b   : > { %v6259_v49 = vsel %vm2117_vm7, %v6256_v1, %v6258_v2  ;;  %v6191_v31 = vmax.f32 %v15197_v62, %v15232_v30  ;;  %11203 = vmatpush3.msra.mxu1 %v8999_v9  ;;  %v5916_v13 = vpop.f32.mrf.mxu1  ;;  %v6110_v24 = vpop.f32.mrf.mxu0  ;;  %11206 = vmatprep.mubr.msk.f32.mxu1 %vm11464_vm0, %v11463_v0  ;;  %v7291_v62 = vrot.slane %v15166_v21, 6  ;;  %v9007_v21 = vld [vmem:[%s15577_s3 + $0xe0] sm:$0xff]  ;;  %v9010_v1 = vld [vmem:[%s15577_s3 + $0xf0] sm:$0xff]  ;;  %v9026_v9 = vld [vmem:[%s15577_s3 + $0x148] sm:$0xff] }
 0x63c   : > { %v15246_v56 = vmax.f32 %v15184_v37, %v6259_v49  ;;  %v6171_v40 = vrot.slane %v6130_v36, 1  ;;  %v5942_v41 = vadd.f32 %v5916_v13, %v15019_v15  ;;  %11204 = vmatprep.subr.mxu1 %v11463_v0  ;;  %v9001_v15 = vld [vmem:[%s15577_s3 + $0xc0] sm:$0xff]  ;;  %v9032_v57 = vld [vmem:[%s15577_s3 + $0x168] sm:$0xff]  ;;  %v8227_v49 = vld [vmem:[%s15579_s5 + $0x70] sm:$0xff] }
 0x63d   : > { %11205 = vmatpush3.msra.mxu1 %v8998_v11  ;;  %v11062_v43 = vpop.f32.mrf.mxu1  ;;  %v11124_v33 = vpop.f32.mrf.mxu0  ;;  %v9025_v2 = vld [vmem:[%s15577_s3 + $0x140] sm:$0xff] }
 0x63e   : > { %v7754_v39 = vrot.slane %v15246_v56, 4  ;;  %v6172_v47 = vsel %vm900_vm1, %v6169_v19, %v6171_v40  ;;  %v6131_v25 = vadd.f32 %v6105_v7, %v5942_v41  ;;  %11209 = vmatprep.subr.mxu1 %v11463_v0  ;;  %11207 = vmatmul.mubr.msk.f32.vlgmr.msra.gmra.mxu1 %vm6288_vm9, %v7137_v5  ;;  %v9016_v7 = vld [vmem:[%s15577_s3 + $0x110] sm:$0xff]  ;;  %v9019_v19 = vld [vmem:[%s15577_s3 + $0x120] sm:$0xff]  ;;  %v7677_v51 = vrot.slane %v15246_v56, 2  ;;  %v8220_v5 = vld [vmem:[%s15579_s5 + $0x38] sm:$0xff] }
 0x63f   : > { %v15264_v53 = vmax.f32 %v6129_v26, %v6172_v47  ;;  %11210 = vmatpush3.msra.mxu1 %v9002_v29  ;;  %v5921_v45 = vpop.f32.mrf.mxu1  ;;  %11213 = vmatprep.mubr.msk.f32.mxu1 %vm11464_vm0, %v11463_v0  ;;  %v9034_v26 = vld [vmem:[%s15577_s3 + $0x170] sm:$0xff]  ;;  %v9037_v11 = vld [vmem:[%s15577_s3 + $0x180] sm:$0xff]  ;;  %v8218_v43 = vld [vmem:[%s15579_s5 + $0x28] sm:$0xff] }
 0x640   : > { %v6205_v37 = vrot.slane %v6131_v25, 1  ;;  %v5943_v58 = vadd.f32 %v5921_v45, %v15022_v28  ;;  %11211 = vmatprep.subr.mxu1 %v11463_v0  ;;  %11263 = vmatmul.mubr.msk.f32.vlgmr.msra.gmra.mxu0 %vm6288_vm9, %v7754_v39  ;;  %v9004_v28 = vld [vmem:[%s15577_s3 + $0xd0] sm:$0xff]  ;;  %v8225_v13 = vld [vmem:[%s15579_s5 + $0x60] sm:$0xff]  ;;  %v8216_v39 = vld [vmem:[%s15579_s5 + $0x18] sm:$0xff] }
 0x641   : > { %11212 = vmatpush3.msra.mxu1 %v9001_v15  ;;  %v11065_v12 = vpop.f32.mrf.mxu1  ;;  %11273 = vmatpush3.msra.mxu0 %v9029_v61  ;;  %v6260_v35 = vrot.slane %v15264_v53, 6  ;;  %v8221_v41 = vld [vmem:[%s15579_s5 + $0x40] sm:$0xff]  ;;  %v8219_v29 = vld [vmem:[%s15579_s5 + $0x30] sm:$0xff] }
 0x642   : > { %v6206_v23 = vsel %vm900_vm1, %v6171_v40, %v6205_v37  ;;  %v6132_v44 = vadd.f32 %v6110_v24, %v5943_v58  ;;  %11216 = vmatprep.subr.mxu1 %v11463_v0  ;;  %11214 = vmatmul.mubr.msk.f32.vlgmr.msra.gmra.mxu1 %vm6288_vm9, %v7214_v50  ;;  %v8224_v24 = vld [vmem:[%s15579_s5 + $0x58] sm:$0xff]  ;;  %v8222_v40 = vld [vmem:[%s15579_s5 + $0x48] sm:$0xff]  ;;  %v8217_v33 = vld [vmem:[%s15579_s5 + $0x20] sm:$0xff] }
 0x643   : > { %v6223_v3 = vmax.f32 %v6130_v36, %v6206_v23  ;;  %11217 = vmatpush3.msra.mxu1 %v9005_v10  ;;  %11220 = vmatprep.mubr.msk.f32.mxu1 %vm11464_vm0, %v11463_v0  ;;  %v9038_v36 = vld [vmem:[%s15577_s3 + $0x188] sm:$0xff]  ;;  %v8215_v47 = vld [vmem:[%s15579_s5 + $0x10] sm:$0xff]  ;;  %v8213_v15 = vld [vmem:[%s15579_s5] sm:$0xff] }
 0x644   : > { %v6207_v32 = vrot.slane %v6132_v44, 1  ;;  %11218 = vmatprep.subr.mxu1 %v11463_v0  ;;  %11274 = vmatprep.subr.mxu0 %v11463_v0  ;;  %v8313_v61 = vld [vmem:[%s15581_s7 + $0x50] sm:$0xf]  ;;  %v8311_v45 = vld [vmem:[%s15581_s7 + $0x40] sm:$0xff]  ;;  %v8308_v50 = vld [vmem:[%s15581_s7 + $0x28] sm:$0xff] }
 0x645   : > { %v6261_v63 = vrot.slane %v6223_v3, 6  ;;  %11219 = vmatpush3.msra.mxu1 %v9004_v28  ;;  %11275 = vmatpush3.msra.mxu0 %v9028_v54  ;;  %v8309_v58 = vld [vmem:[%s15581_s7 + $0x30] sm:$0xff]  ;;  %v8307_v10 = vld [vmem:[%s15581_s7 + $0x20] sm:$0xff]  ;;  %v8306_v12 = vld [vmem:[%s15581_s7 + $0x18] sm:$0xff] }
 0x646   : > { %v6208_v8 = vsel %vm900_vm1, %v6205_v37, %v6207_v32  ;;  %11223 = vmatprep.subr.mxu1 %v11463_v0  ;;  %11221 = vmatmul.mubr.msk.f32.vlgmr.msra.gmra.mxu1 %vm6288_vm9, %v7291_v62  ;;  %v8310_v37 = vld [vmem:[%s15581_s7 + $0x38] sm:$0xff]  ;;  %v8305_v23 = vld [vmem:[%s15581_s7 + $0x10] sm:$0xff] }
 0x647   : > { %v6262_v52 = vsel %vm2117_vm7, %v6260_v35, %v6261_v63  ;;  %v6224_v55 = vmax.f32 %v6131_v25, %v6208_v8  ;;  %11224 = vmatpush3.msra.mxu1 %v9008_v27  ;;  %11227 = vmatprep.mubr.msk.f32.mxu1 %vm11464_vm0, %v11463_v0  ;;  %v8214_v25 = vld [vmem:[%s15579_s5 + $0x8] sm:$0xff] }
 0x648   : > { %v15302_v4 = vmax.f32 %v6191_v31, %v6262_v52  ;;  %11225 = vmatprep.subr.mxu1 %v11463_v0  ;;  %11276 = vmatprep.mubr.msk.f32.mxu0 %vm11464_vm0, %v11463_v0  ;;  %v8226_v31 = vld [vmem:[%s15579_s5 + $0x68] sm:$0xff] }
 0x649   : > { %v6263_v16 = vrot.slane %v6224_v55, 6  ;;  %11226 = vmatpush3.msra.mxu1 %v9007_v21  ;;  %11286 = vmatprep.subr.mxu0 %v11463_v0 }
 0x64a   : > { %11230 = vmatprep.subr.mxu1 %v11463_v0  ;;  %11228 = vmatmul.mubr.msk.f32.vlgmr.msra.gmra.mxu1 %vm6288_vm9, %v6280_v22  ;;  %v7908_v48 = vrot.slane %v15302_v4, 2  ;;  %v9014_v22 = vld [vmem:[%s15577_s3 + $0x108] sm:$0xff]  ;;  %v8062_v60 = vrot.slane %v15302_v4, 6  ;;  %v7985_v30 = vrot.slane %v15302_v4, 4 }
 0x64b   : > { %v15324_v34 = vsel %vm2117_vm7, %v6261_v63, %v6263_v16  ;;  %11231 = vmatpush3.msra.mxu1 %v9011_v17  ;;  %11234 = vmatprep.mubr.msk.f32.mxu1 %vm11464_vm0, %v11463_v0 }
 0x64c   : > { %v6284_v18 = vmax.f32 %v15264_v53, %v15324_v34  ;;  %11232 = vmatprep.subr.mxu1 %v11463_v0  ;;  %11277 = vmatmul.mubr.msk.f32.vlgmr.msra.gmra.mxu0 %vm6288_vm9, %v7908_v48  ;;  %v8312_v53 = vld [vmem:[%s15581_s7 + $0x48] sm:$0xff] }
 0x64d   : > { %11233 = vmatpush3.msra.mxu1 %v9010_v1  ;;  %11287 = vmatpush3.msra.mxu0 %v9035_v20  ;;  %v6285_v20 = vld [vmem:[%s15578_s4] sm:$0x1] }
 0x64e   : > { %11237 = vmatprep.subr.mxu1 %v11463_v0  ;;  %11235 = vmatmul.mubr.msk.f32.vlgmr.msra.gmra.mxu1 %vm6288_vm9, %v7446_v59 }
 0x64f   : > { %11238 = vmatpush3.msra.mxu1 %v9014_v22  ;;  %11288 = vmatprep.subr.mxu0 %v11463_v0 }
 0x650   : > { %11239 = vmatprep.subr.mxu1 %v11463_v0  ;;  %11289 = vmatpush3.msra.mxu0 %v9034_v26 }
 0x651   : > { %11290 = vmatprep.mubr.msk.f32.mxu0 %vm11464_vm0, %v11463_v0  ;;  %11240 = vmatpush3.msra.mxu1 %v9013_v6 }
 0x652   : > { %11291 = vmatmul.mubr.msk.f32.vlgmr.msra.gmra.mxu0 %vm6288_vm9, %v8062_v60  ;;  %11241 = vmatprep.mubr.msk.f32.mxu1 %vm11464_vm0, %v11463_v0 }
 0x653   : > { %11244 = vmatprep.subr.mxu1 %v11463_v0  ;;  %11242 = vmatmul.mubr.msk.f32.vlgmr.msra.gmra.mxu1 %vm6288_vm9, %v7523_v46 }
 0x654   : > { %11245 = vmatpush3.msra.mxu1 %v9017_v42  ;;  %11248 = vmatprep.mubr.msk.f32.mxu1 %vm11464_vm0, %v11463_v0 }
 0x655   : > { %11246 = vmatprep.subr.mxu1 %v11463_v0  ;;  %11300 = vmatprep.subr.mxu0 %v11463_v0 }
 0x656   : > { %11247 = vmatpush3.msra.mxu1 %v9016_v7  ;;  %11330 = vmatprep.mubr.msk.f32.mxu0 %vm11464_vm0, %v11463_v0 }
 0x657   : > { %11251 = vmatprep.subr.mxu1 %v11463_v0  ;;  %11249 = vmatmul.mubr.msk.f32.vlgmr.msra.gmra.mxu1 %vm6288_vm9, %v15246_v56  ;;  %v8223_v56 = vld [vmem:[%s15579_s5 + $0x50] sm:$0xff] }
 0x658   : > { %11252 = vmatpush3.msra.mxu1 %v9020_v38  ;;  %11255 = vmatprep.mubr.msk.f32.mxu1 %vm11464_vm0, %v11463_v0 }
 0x659   : > { %11253 = vmatprep.subr.mxu1 %v11463_v0  ;;  %11301 = vmatpush3.msra.mxu0 %v8227_v49 }
 0x65a   : > { %11254 = vmatpush3.msra.mxu1 %v9019_v19  ;;  %11302 = vmatprep.subr.mxu0 %v11463_v0 }
 0x65b   : > { %11265 = vmatprep.subr.mxu1 %v11463_v0  ;;  %11256 = vmatmul.mubr.msk.f32.vlgmr.msra.gmra.mxu1 %vm6288_vm9, %v7677_v51 }
 0x65c   : > { %11266 = vmatpush3.msra.mxu1 %v9026_v9  ;;  %11269 = vmatprep.mubr.msk.f32.mxu1 %vm11464_vm0, %v11463_v0 }
 0x65d   : > { %11267 = vmatprep.subr.mxu1 %v11463_v0  ;;  %11303 = vmatpush3.msra.mxu0 %v8226_v31 }
 0x65e   : > { %11268 = vmatpush3.msra.mxu1 %v9025_v2  ;;  %11304 = vmatprep.subr.mxu0 %v11463_v0 }
 0x65f   : > { %11279 = vmatprep.subr.mxu1 %v11463_v0  ;;  %11270 = vmatmul.mubr.msk.f32.vlgmr.msra.gmra.mxu1 %vm6288_vm9, %v15302_v4 }
 0x660   : > { %11280 = vmatpush3.msra.mxu1 %v9032_v57  ;;  %11283 = vmatprep.mubr.msk.f32.mxu1 %vm11464_vm0, %v11463_v0 }
 0x661   : > { %11281 = vmatprep.subr.mxu1 %v11463_v0  ;;  %11305 = vmatpush3.msra.mxu0 %v8225_v13 }
 0x662   : > { %11282 = vmatpush3.msra.mxu1 %v9031_v14  ;;  %11306 = vmatprep.subr.mxu0 %v11463_v0 }
 0x663   : > { %11293 = vmatprep.subr.mxu1 %v11463_v0  ;;  %11284 = vmatmul.mubr.msk.f32.vlgmr.msra.gmra.mxu1 %vm6288_vm9, %v7985_v30 }
 0x664   : > { %11294 = vmatpush3.msra.mxu1 %v9038_v36  ;;  %11297 = vmatprep.mubr.msk.f32.mxu1 %vm11464_vm0, %v11463_v0 }
 0x665   : > { %11295 = vmatprep.subr.mxu1 %v11463_v0  ;;  %11307 = vmatpush3.msra.mxu0 %v8224_v24 }
 0x666   : > { %11296 = vmatpush3.msra.mxu1 %v9037_v11  ;;  %11308 = vmatprep.subr.mxu0 %v11463_v0 }
 0x667   : > { %11298 = vmatmul.mubr.msk.f32.vlgmr.msra.gmra.mxu1 %vm6288_vm9, %v6284_v18  ;;  %11333 = vmatprep.subr.mxu1 %v11463_v0 }
 0x668   : > { %11355 = vmatprep.mubr.msk.f32.mxu1 %vm11464_vm0, %v11463_v0  ;;  %11309 = vmatpush3.msra.mxu0 %v8223_v56 }
 0x669   : > { %11310 = vmatprep.subr.mxu0 %v11463_v0  ;;  %11334 = vmatpush3.msk.msra.mxu1 %vm1857_vm4, %v8313_v61 }
 0x66a   : > { %11311 = vmatpush3.msra.mxu0 %v8222_v40  ;;  %11335 = vmatprep.subr.mxu1 %v11463_v0 }
 0x66b   : > { %11312 = vmatprep.subr.mxu0 %v11463_v0  ;;  %11336 = vmatpush3.msra.mxu1 %v8312_v53 }
 0x66c   : > { %11313 = vmatpush3.msra.mxu0 %v8221_v41  ;;  %11337 = vmatprep.subr.mxu1 %v11463_v0 }
 0x66d   : > { %11314 = vmatprep.subr.mxu0 %v11463_v0  ;;  %11338 = vmatpush3.msra.mxu1 %v8311_v45 }
 0x66e   : > { %11315 = vmatpush3.msra.mxu0 %v8220_v5  ;;  %11339 = vmatprep.subr.mxu1 %v11463_v0 }
 0x66f   : > { %11316 = vmatprep.subr.mxu0 %v11463_v0  ;;  %11340 = vmatpush3.msra.mxu1 %v8310_v37 }
 0x670   : > { %11317 = vmatpush3.msra.mxu0 %v8219_v29  ;;  %11341 = vmatprep.subr.mxu1 %v11463_v0 }
 0x671   : > { %11318 = vmatprep.subr.mxu0 %v11463_v0  ;;  %11342 = vmatpush3.msra.mxu1 %v8309_v58 }
 0x672   : > { %11319 = vmatpush3.msra.mxu0 %v8218_v43  ;;  %11343 = vmatprep.subr.mxu1 %v11463_v0 }
 0x673   : > { %11320 = vmatprep.subr.mxu0 %v11463_v0  ;;  %11344 = vmatpush3.msra.mxu1 %v8308_v50 }
 0x674   : > { %11321 = vmatpush3.msra.mxu0 %v8217_v33  ;;  %11345 = vmatprep.subr.mxu1 %v11463_v0 }
 0x675   : > { %11322 = vmatprep.subr.mxu0 %v11463_v0  ;;  %11346 = vmatpush3.msra.mxu1 %v8307_v10 }
 0x676   : > { %11323 = vmatpush3.msra.mxu0 %v8216_v39  ;;  %11347 = vmatprep.subr.mxu1 %v11463_v0 }
 0x677   : > { %11324 = vmatprep.subr.mxu0 %v11463_v0  ;;  %11348 = vmatpush3.msra.mxu1 %v8306_v12 }
 0x678   : > { %11325 = vmatpush3.msra.mxu0 %v8215_v47  ;;  %11349 = vmatprep.subr.mxu1 %v11463_v0 }
 0x679   : > { %11326 = vmatprep.subr.mxu0 %v11463_v0  ;;  %11350 = vmatpush3.msra.mxu1 %v8305_v23 }
 0x67a   : > { %11327 = vmatpush3.msra.mxu0 %v8214_v25  ;;  %11351 = vmatprep.subr.mxu1 %v11463_v0 }
 0x67b   : > { %11328 = vmatprep.subr.mxu0 %v11463_v0 }
 0x67c   : > { %11329 = vmatpush3.msra.mxu0 %v8213_v15 }
 0x6d2   : > { %v6358_v44 = vpop.f32.mrf.mxu1 }
 0x6d3   : > { %v6362_v18 = vadd.f32 %v6358_v44, %v6285_v20 }
 0x6d4   : > { %v11131_v28 = vpop.f32.mrf.mxu1 }
 0x6d6   : > { %v6435_v54 = vpop.f32.mrf.mxu1 }
 0x6d7   : > { %v6439_v22 = vadd.f32 %v6435_v54, %v6362_v18 }
 0x6d8   : > { %v11138_v3 = vpop.f32.mrf.mxu1 }
 0x6da   : > { %v6512_v32 = vpop.f32.mrf.mxu1 }
 0x6db   : > { %v6516_v6 = vadd.f32 %v6512_v32, %v6439_v22 }
 0x6dc   : > { %v11145_v62 = vpop.f32.mrf.mxu1 }
 0x6de   : > { %v6589_v27 = vpop.f32.mrf.mxu1 }
 0x6df   : > { %v6593_v46 = vadd.f32 %v6589_v27, %v6516_v6 }
 0x6e0   : > { %v11152_v35 = vpop.f32.mrf.mxu1 }
 0x6e2   : > { %v6666_v63 = vpop.f32.mrf.mxu1 }
 0x6e3   : > { %v6670_v7 = vadd.f32 %v6666_v63, %v6593_v46 }
 0x6e4   : > { %v11159_v8 = vpop.f32.mrf.mxu1 }
 0x6e6   : > { %v6744_v21 = vpop.f32.mrf.mxu1 }
 0x6e7   : > { %v6748_v51 = vadd.f32 %v6744_v21, %v6670_v7 }
 0x6e8   : > { %v11166_v52 = vpop.f32.mrf.mxu1 }
 0x6ea   : > { %v6821_v55 = vpop.f32.mrf.mxu1 }
 0x6eb   : > { %v6825_v57 = vadd.f32 %v6821_v55, %v6748_v51 }
 0x6ec   : > { %v11173_v4 = vpop.f32.mrf.mxu1 }
 0x6ed   : > { %v8304_v4 = vld [vmem:[%s15581_s7 + $0x8] sm:$0xff] }
 0x6ee   : > { %v6898_v17 = vpop.f32.mrf.mxu1  ;;  %11352 = vmatpush3.msra.mxu1 %v8304_v4 }
 0x6ef   : > { %v6902_v30 = vadd.f32 %v6898_v17, %v6825_v57  ;;  %11353 = vmatprep.subr.mxu1 %v11463_v0  ;;  %v8303_v17 = vld [vmem:[%s15581_s7] sm:$0xff] }
 0x6f0   : > { %v11180_v16 = vpop.f32.mrf.mxu1  ;;  %11354 = vmatpush3.msra.mxu1 %v8303_v17  ;;  %v8314_v0 = vld [vmem:[%s15582_s8] sm:$0x1] }
 0x6f1   : > { %v8228_v16 = vld [vmem:[%s15580_s6] sm:$0x1] }
 0x6f2   : > { %v6975_v1 = vpop.f32.mrf.mxu1 }
 0x6f3   : > { %v6979_v11 = vadd.f32 %v6975_v1, %v6902_v30 }
 0x6f4   : > { %v11187_v48 = vpop.f32.mrf.mxu1 }
 0x6f6   : > { %v7052_v34 = vpop.f32.mrf.mxu1 }
 0x6f7   : > { %v7056_v31 = vadd.f32 %v7052_v34, %v6979_v11 }
 0x6f8   : > { %v11194_v59 = vpop.f32.mrf.mxu1 }
 0x6fa   : > { %v7129_v26 = vpop.f32.mrf.mxu1 }
 0x6fb   : > { %v7133_v24 = vadd.f32 %v7129_v26, %v7056_v31 }
 0x6fc   : > { %v11201_v60 = vpop.f32.mrf.mxu1 }
 0x6fe   : > { %v7206_v42 = vpop.f32.mrf.mxu1 }
 0x6ff   : > { %v7210_v41 = vadd.f32 %v7206_v42, %v7133_v24 }
 0x700   : > { %v11208_v38 = vpop.f32.mrf.mxu1  ;;  %v7823_v19 = vpop.f32.mrf.mxu0 }
 0x702   : > { %v7283_v9 = vpop.f32.mrf.mxu1  ;;  %v11264_v2 = vpop.f32.mrf.mxu0 }
 0x703   : > { %v7287_v43 = vadd.f32 %v7283_v9, %v7210_v41 }
 0x704   : > { %v11215_v14 = vpop.f32.mrf.mxu1 }
 0x706   : > { %v7360_v36 = vpop.f32.mrf.mxu1 }
 0x707   : > { %v7364_v39 = vadd.f32 %v7360_v36, %v7287_v43 }
 0x708   : > { %v11222_v49 = vpop.f32.mrf.mxu1 }
 0x70a   : > { %v7437_v13 = vpop.f32.mrf.mxu1 }
 0x70b   : > { %v7441_v15 = vadd.f32 %v7437_v13, %v7364_v39 }
 0x70c   : > { %v11229_v56 = vpop.f32.mrf.mxu1  ;;  %v7977_v40 = vpop.f32.mrf.mxu0 }
 0x70e   : > { %v7515_v5 = vpop.f32.mrf.mxu1  ;;  %v11278_v29 = vpop.f32.mrf.mxu0 }
 0x70f   : > { %v7519_v45 = vadd.f32 %v7515_v5, %v7441_v15 }
 0x710   : > { %v11236_v33 = vpop.f32.mrf.mxu1 }
 0x712   : > { %v8131_v47 = vpop.f32.mrf.mxu0 }
 0x713   : > { %v7592_v25 = vpop.f32.mrf.mxu1 }
 0x714   : > { %v11292_v61 = vpop.f32.mrf.mxu0  ;;  %v7596_v58 = vadd.f32 %v7592_v25, %v7519_v45 }
 0x715   : > { %v11243_v53 = vpop.f32.mrf.mxu1 }
 0x717   : > { %v7669_v37 = vpop.f32.mrf.mxu1 }
 0x718   : > { %v7673_v10 = vadd.f32 %v7669_v37, %v7596_v58 }
 0x719   : > { %v11250_v50 = vpop.f32.mrf.mxu1 }
 0x71b   : > { %v7746_v12 = vpop.f32.mrf.mxu1 }
 0x71c   : > { %v7750_v23 = vadd.f32 %v7746_v12, %v7673_v10 }
 0x71d   : > { %v11257_v44 = vpop.f32.mrf.mxu1 }
 0x71e   : > { %v7827_v28 = vadd.f32 %v7823_v19, %v7750_v23 }
 0x71f   : > { %v7900_v54 = vpop.f32.mrf.mxu1 }
 0x720   : > { %v7904_v3 = vadd.f32 %v7900_v54, %v7827_v28 }
 0x721   : > { %v11271_v32 = vpop.f32.mrf.mxu1 }
 0x722   : > { %v7981_v62 = vadd.f32 %v7977_v40, %v7904_v3 }
 0x723   : > { %v8054_v27 = vpop.f32.mrf.mxu1 }
 0x724   : > { %v8058_v35 = vadd.f32 %v8054_v27, %v7981_v62 }
 0x725   : > { %v11285_v63 = vpop.f32.mrf.mxu1 }
 0x726   : > { %v8135_v8 = vadd.f32 %v8131_v47, %v8058_v35 }
 0x727   : > { %v8208_v21 = vpop.f32.mrf.mxu1 }
 0x728   : > { %v8212_v52 = vadd.f32 %v8208_v21, %v8135_v8 }
 0x729   : > { %v11299_v55 = vpop.f32.mrf.mxu1 }
 0x72a   : > { %11331 = vmatmul.mubr.msk.f32.vlgmr.msra.gmra.mxu0 %vm8229_vm10, %v8212_v52 }
 0x7ea   : > { %v8299_v1 = vpop.f32.mrf.mxu0 }
 0x7eb   : > { %v8300_v48 = vadd.f32 %v8299_v1, %v8228_v16 }
 0x7ec   : > { %v11332_v20 = vpop.f32.mrf.mxu0 }
 0x7ed   : > { %11356 = vmatmul.mubr.msk.f32.vlgmr.msra.gmra.mxu1 %vm8315_vm11, %v8300_v48 }
 0x8ad   : > { %v8388_v34 = vpop.f32.mrf.mxu1 }
 0x8ae   : > { %v8389_v18 = vadd.f32 %v8388_v34, %v8314_v0 }
 0x8af   : > { %v11357_v59 = vpop.f32.mrf.mxu1 }
 0x8b0   : > { %8393 = vst.msk [vmem:[%s324_s22] sm:$0x1] %vm8392_vm12, %v8389_v18 }
 0x8b1   : > { %11414 = shalt.err (!%p11411_p3)
}
 0x8b2   : > { %s11415_s17 = scalar_lea.hbm %s15539_s26, 16  ;;  %s11419_s22 = scalar_lea.hbm %s15583_s9, 32 }
 0x8b3   : > { %p11416_p4 = scmp.ne.s32.totalorder %s15539_s26, %s11415_s17  ;;  %p11420_p9 = scmp.lt.s32.totalorder %s15539_s26, %s15583_s9 }
 0x8b4   : > { %p11421_p10 = scmp.lt.s32.totalorder %s11419_s22, %s11415_s17 }
 0x8b5   : > { %p11417_p7 = pnand %p11416_p4, %p11554_p5 }
 0x8b6   : > { %p11422_p11 = por %p11421_p10, %p11420_p9 }
 0x8b7   : > { %p11418_p8 = pneg %p11417_p7 }
 0x8b9   : > { %p11423_p12 = pnand %p11422_p11, %p11418_p8 }
 0x8bb   : > { %11426 = shalt.err (!%p11423_p12)
}
 0x8bc   : > { %11360 = dma.vmem_to_hbm [thread:$0]  (%p11554_p5), %s8408_s23, 16, %s15539_s26, %s8395_s27  }
 0x8bd PF: > { %p11366_p13 = scmp.ge.s32.totalorder %s11461_s12, 2  ;;  %s8419_s28 = sand.u32 1, %s11449_s30  }
 0x8be   : > { %s8420_s13 = scalar_lea.sflag [#allocation3], %s8419_s28 }
 0x8bf   : > { %p11363_p0 = pnand %p11366_p13, %p11558_p6 }
 0x8c1   : > { %p11364_p1 = pneg %p11363_p0 }
 0x8c3   : > { %11444 = dma.done.wait (%p11364_p1), %s8420_s13, 16  }
 0x8c4   : > { %11446 = vsyncadd (%p11364_p1), %s8420_s13, 4294967280  ;;  %p19_p2 = scmp.ge.s32.totalorder %s11541_s15, 4   ;;  %s16103_s30 = smov %s11453_s10 }
 0x8c5   : > { %s16104_s10 = smov %s11457_s11  ;;  %s16105_s11 = smov %s11552_s18 }
 0x8c6   : > { %s16106_s12 = smov %s11541_s15  ;;  %21 = sbr.rel (!%p19_p2) target bundleno = 3 (0x3), region = 139 }
 0x8cb   :  { %8424 = vsyncpa [#allocation3], 1 }
 0x8cc   :  { %8426 = vsyncpa [#allocation3 + $0x1], 1 }

</bundles_post_ra>
